<compile_context>
chip_gen: v7x
topology: tpu7x:2x2x1
jax: 0.10.0
libtpu: 0.0.40
codegen_flags: <defaults>
</compile_context>

<pallas_src>
import functools
import math

import numpy as np
import jax
import jax.numpy as jnp
from jax.experimental import pallas as pl
from jax.experimental.pallas import tpu as pltpu


# ----------------------------------------------------------------------------
# In-kernel helpers (pure jnp, traced inside the Pallas kernel)
# ----------------------------------------------------------------------------

def _layernorm(x, g, b, eps=1e-5):
    """LayerNorm over the last axis. x: (M, D) f32; g, b: (1, D) f32."""
    mean = jnp.mean(x, axis=-1, keepdims=True)
    xc = x - mean
    var = jnp.mean(xc * xc, axis=-1, keepdims=True)
    return xc * jax.lax.rsqrt(var + eps) * g + b


def _mm(x_f32, w_bf16, b_f32=None):
    """bf16 MXU matmul with f32 accumulation (+ optional f32 bias)."""
    out = jnp.dot(x_f32.astype(jnp.bfloat16), w_bf16,
                  preferred_element_type=jnp.float32)
    if b_f32 is not None:
        out = out + b_f32
    return out


def _mha_heads(q, k, v, n_heads, mask):
    """Multi-head scaled-dot-product attention for one sequence.

    q: (Sq, D) f32, k/v: (Skv, D) f32, mask: additive (Sq, Skv) f32 or None.
    Heads are static lane slices; matmuls use bf16 operands with f32 accumulation,
    softmax math stays f32.
    """
    d_head = q.shape[-1] // n_heads
    scale = 1.0 / math.sqrt(d_head)
    outs = []
    for h in range(n_heads):
        sl = slice(h * d_head, (h + 1) * d_head)
        qh = q[:, sl].astype(jnp.bfloat16)
        kh = k[:, sl].astype(jnp.bfloat16)
        vh = v[:, sl].astype(jnp.bfloat16)
        # q @ k^T without an explicit transpose (NT matmul on the MXU).
        s = jax.lax.dot_general(qh, kh, (((1,), (1,)), ((), ())),
                                preferred_element_type=jnp.float32) * scale
        if mask is not None:
            s = s + mask
        s = s - jnp.max(s, axis=-1, keepdims=True)
        p = jnp.exp(s)
        p = p / jnp.sum(p, axis=-1, keepdims=True)
        outs.append(jnp.dot(p.astype(jnp.bfloat16), vh,
                            preferred_element_type=jnp.float32))
    return jnp.concatenate(outs, axis=-1)        # (Sq, D) f32


# ----------------------------------------------------------------------------
# Fused whole-model Pallas kernel (one grid step per batch element)
# ----------------------------------------------------------------------------

def _fused_transformer_kernel(
        # activations / PE
        src_ref, tgt_ref, pe_src_ref, pe_tgt_ref,
        # encoder layer weights (stacked along leading layer axis)
        e_wqkv, e_bqkv, e_wo, e_bo, e_ln1g, e_ln1b,
        e_w1, e_b1, e_w2, e_b2, e_ln2g, e_ln2b,
        # final encoder norm
        enc_ng, enc_nb,
        # decoder layer weights (stacked along leading layer axis)
        d_sa_wqkv, d_sa_bqkv, d_sa_wo, d_sa_bo, d_ln1g, d_ln1b,
        d_ca_wq, d_ca_bq, d_ca_wkv, d_ca_bkv, d_ca_wo, d_ca_bo, d_ln2g, d_ln2b,
        d_w1, d_b1, d_w2, d_b2, d_ln3g, d_ln3b,
        # final decoder norm + vocab projection
        dec_ng, dec_nb, fc_w, fc_b,
        # output
        o_ref,
        *, n_heads, n_enc, n_dec):
    dm = src_ref.shape[-1]

    # ---------------- encoder stack ----------------
    x = src_ref[0] + pe_src_ref[...]                    # (Ss, D) f32
    for l in range(n_enc):
        qkv = _mm(x, e_wqkv[l], e_bqkv[l])              # (Ss, 3D)
        attn = _mha_heads(qkv[:, :dm], qkv[:, dm:2 * dm], qkv[:, 2 * dm:],
                          n_heads, None)
        attn = _mm(attn, e_wo[l], e_bo[l])
        x = _layernorm(x + attn, e_ln1g[l], e_ln1b[l])
        h = jnp.maximum(_mm(x, e_w1[l], e_b1[l]), 0.0)  # (Ss, F) stays in VMEM
        ff = _mm(h, e_w2[l], e_b2[l])
        x = _layernorm(x + ff, e_ln2g[l], e_ln2b[l])
    mem = _layernorm(x, enc_ng[...], enc_nb[...])       # encoder memory, in VMEM

    # ---------------- decoder stack ----------------
    y = tgt_ref[0] + pe_tgt_ref[...]                    # (St, D) f32
    st = y.shape[0]
    row = jax.lax.broadcasted_iota(jnp.int32, (st, st), 0)
    col = jax.lax.broadcasted_iota(jnp.int32, (st, st), 1)
    causal = jnp.where(col > row, jnp.float32(-1e30), jnp.float32(0.0))

    for l in range(n_dec):
        # masked self-attention (fused QKV)
        qkv = _mm(y, d_sa_wqkv[l], d_sa_bqkv[l])
        sa = _mha_heads(qkv[:, :dm], qkv[:, dm:2 * dm], qkv[:, 2 * dm:],
                        n_heads, causal)
        sa = _mm(sa, d_sa_wo[l], d_sa_bo[l])
        y = _layernorm(y + sa, d_ln1g[l], d_ln1b[l])

        # cross-attention over encoder memory (fused KV)
        qc = _mm(y, d_ca_wq[l], d_ca_bq[l])
        kvc = _mm(mem, d_ca_wkv[l], d_ca_bkv[l])
        ca = _mha_heads(qc, kvc[:, :dm], kvc[:, dm:], n_heads, None)
        ca = _mm(ca, d_ca_wo[l], d_ca_bo[l])
        y = _layernorm(y + ca, d_ln2g[l], d_ln2b[l])

        # FFN
        h = jnp.maximum(_mm(y, d_w1[l], d_b1[l]), 0.0)
        ff = _mm(h, d_w2[l], d_b2[l])
        y = _layernorm(y + ff, d_ln3g[l], d_ln3b[l])

    # final decoder LayerNorm + vocab projection (lane-dense padded output)
    yn = _layernorm(y, dec_ng[...], dec_nb[...])
    o_ref[0] = _mm(yn, fc_w[...], fc_b[...]).astype(o_ref.dtype)


# ----------------------------------------------------------------------------
# Model composition
# ----------------------------------------------------------------------------

_ENC_ORDER = ["wqkv", "bqkv", "wo", "bo", "ln1_g", "ln1_b",
              "w1", "b1", "w2", "b2", "ln2_g", "ln2_b"]
_DEC_ORDER = ["sa_wqkv", "sa_bqkv", "sa_wo", "sa_bo", "ln1_g", "ln1_b",
              "ca_wq", "ca_bq", "ca_wkv", "ca_bkv", "ca_wo", "ca_bo",
              "ln2_g", "ln2_b", "w1", "b1", "w2", "b2", "ln3_g", "ln3_b"]


def transformer_forward(params, src_tokens, tgt_tokens, *, n_heads, vocab_size):
    # Embedding lookups (gather) — plain JAX glue.
    src = params["emb_src"][src_tokens]          # (B, Ss, D) f32
    tgt = params["emb_tgt"][tgt_tokens]          # (B, St, D) f32

    B, Ss, D = src.shape
    St = tgt.shape[1]
    pe_src = params["pe"][:Ss]                   # (Ss, D)
    pe_tgt = params["pe"][:St]                   # (St, D)

    enc, dec = params["enc"], params["dec"]
    n_enc = enc["wqkv"].shape[0]
    n_dec = dec["sa_wqkv"].shape[0]
    Vp = params["fc_w_pad"].shape[1]

    def rep(a):
        # Grid-invariant BlockSpec covering the whole array (DMA'd once).
        shape = a.shape
        n = len(shape)
        return pl.BlockSpec(shape, lambda b, _n=n: (0,) * _n)

    weight_args = ([enc[k] for k in _ENC_ORDER]
                   + [params["enc_norm_g"], params["enc_norm_b"]]
                   + [dec[k] for k in _DEC_ORDER]
                   + [params["dec_norm_g"], params["dec_norm_b"]]
                   + [params["fc_w_pad"], params["fc_b_pad"]])

    in_specs = ([pl.BlockSpec((1, Ss, D), lambda b: (b, 0, 0)),
                 pl.BlockSpec((1, St, D), lambda b: (b, 0, 0)),
                 rep(pe_src), rep(pe_tgt)]
                + [rep(a) for a in weight_args])

    logits_pad = pl.pallas_call(
        functools.partial(_fused_transformer_kernel,
                          n_heads=n_heads, n_enc=n_enc, n_dec=n_dec),
        out_shape=jax.ShapeDtypeStruct((B, St, Vp), jnp.float32),
        grid=(B,),
        in_specs=in_specs,
        out_specs=pl.BlockSpec((1, St, Vp), lambda b: (b, 0, 0)),
        compiler_params=pltpu.CompilerParams(
            dimension_semantics=("parallel",),
            vmem_limit_bytes=64 << 20),
    )(src, tgt, pe_src, pe_tgt, *weight_args)

    # Slice the padded vocab back to the real vocab.
    return logits_pad[:, :, :vocab_size]


# ----------------------------------------------------------------------------
# Deterministic parameter construction
# ----------------------------------------------------------------------------

def make_positional_encoding(max_len, d_model):
    pos = np.arange(max_len, dtype=np.float32)[:, None]
    div = np.exp(np.arange(0, d_model, 2, dtype=np.float32)
                 * (-math.log(10000.0) / d_model))
    pe = np.zeros((max_len, d_model), np.float32)
    pe[:, 0::2] = np.sin(pos * div)
    pe[:, 1::2] = np.cos(pos * div)
    return jnp.asarray(pe)


def init_params(key, vocab_size, encoder_input_length, d_model, n_heads,
                num_encoder_layers, num_decoder_layers, dim_feedforward=2048):
    keys = iter(jax.random.split(key, 64))
    Le, Ld, D, F = num_encoder_layers, num_decoder_layers, d_model, dim_feedforward

    def dense(shape, scale=0.02):
        w = scale * jax.random.normal(next(keys), shape, jnp.float32)
        return w.astype(jnp.bfloat16)            # MXU operands live in bf16

    def zeros(shape):
        return jnp.zeros(shape, jnp.float32)

    def ones(shape):
        return jnp.ones(shape, jnp.float32)

    enc = dict(
        wqkv=dense((Le, D, 3 * D)), bqkv=zeros((Le, 1, 3 * D)),
        wo=dense((Le, D, D)), bo=zeros((Le, 1, D)),
        ln1_g=ones((Le, 1, D)), ln1_b=zeros((Le, 1, D)),
        w1=dense((Le, D, F)), b1=zeros((Le, 1, F)),
        w2=dense((Le, F, D)), b2=zeros((Le, 1, D)),
        ln2_g=ones((Le, 1, D)), ln2_b=zeros((Le, 1, D)),
    )
    dec = dict(
        sa_wqkv=dense((Ld, D, 3 * D)), sa_bqkv=zeros((Ld, 1, 3 * D)),
        sa_wo=dense((Ld, D, D)), sa_bo=zeros((Ld, 1, D)),
        ln1_g=ones((Ld, 1, D)), ln1_b=zeros((Ld, 1, D)),
        ca_wq=dense((Ld, D, D)), ca_bq=zeros((Ld, 1, D)),
        ca_wkv=dense((Ld, D, 2 * D)), ca_bkv=zeros((Ld, 1, 2 * D)),
        ca_wo=dense((Ld, D, D)), ca_bo=zeros((Ld, 1, D)),
        ln2_g=ones((Ld, 1, D)), ln2_b=zeros((Ld, 1, D)),
        w1=dense((Ld, D, F)), b1=zeros((Ld, 1, F)),
        w2=dense((Ld, F, D)), b2=zeros((Ld, 1, D)),
        ln3_g=ones((Ld, 1, D)), ln3_b=zeros((Ld, 1, D)),
    )

    # Final projection, padded to a 128-multiple of lanes (lane-dense store).
    v_pad = ((vocab_size + 127) // 128) * 128
    fc_w = 0.02 * jax.random.normal(next(keys), (d_model, vocab_size), jnp.float32)
    fc_w_pad = jnp.zeros((d_model, v_pad), jnp.float32).at[:, :vocab_size].set(fc_w)

    return dict(
        emb_src=jax.random.normal(next(keys), (vocab_size, d_model), jnp.float32),
        emb_tgt=jax.random.normal(next(keys), (vocab_size, d_model), jnp.float32),
        pe=make_positional_encoding(encoder_input_length, d_model),
        enc=enc, dec=dec,
        enc_norm_g=ones((1, D)), enc_norm_b=zeros((1, D)),
        dec_norm_g=ones((1, D)), dec_norm_b=zeros((1, D)),
        fc_w_pad=fc_w_pad.astype(jnp.bfloat16),
        fc_b_pad=zeros((1, v_pad)),
    )


# ----------------------------------------------------------------------------
# Main
# ----------------------------------------------------------------------------

if __name__ == "__main__":
    vocab_size = 50
    encoder_input_length = 16   # PE max_len
    d_model = 32
    n_heads = 4
    num_encoder_layers = 2
    num_decoder_layers = 2
    batch = 2
    src_len = 8
    tgt_len = 8

    key = jax.random.PRNGKey(0)
    k_params, k_src, k_tgt = jax.random.split(key, 3)
    params = init_params(k_params, vocab_size, encoder_input_length, d_model,
                         n_heads, num_encoder_layers, num_decoder_layers)

    src_tokens = jax.random.randint(k_src, (batch, src_len), 0, vocab_size, jnp.int32)
    tgt_tokens = jax.random.randint(k_tgt, (batch, tgt_len), 0, vocab_size, jnp.int32)

    fwd = jax.jit(functools.partial(transformer_forward,
                                    n_heads=n_heads, vocab_size=vocab_size))
    logits = fwd(params, src_tokens, tgt_tokens)
    jax.block_until_ready(logits)

    assert logits.shape == (batch, tgt_len, vocab_size), logits.shape
    assert bool(jnp.all(jnp.isfinite(logits)))
    # TODO(synk): dropout layers are identity (inference); no Pallas RNG dropout emitted.
    print("KERNEL_OK")
</pallas_src>

<mosaic_0001>
module attributes {stable_mosaic.version = 11 : i64} {
  func.func @_fused_transformer_kernel(%arg0: i32, %arg1: memref<1x8x32xf32, #tpu.memory_space<vmem>>, %arg2: memref<1x8x32xf32, #tpu.memory_space<vmem>>, %arg3: memref<8x32xf32, #tpu.memory_space<vmem>>, %arg4: memref<8x32xf32, #tpu.memory_space<vmem>>, %arg5: memref<2x32x96xbf16, #tpu.memory_space<vmem>>, %arg6: memref<2x1x96xf32, #tpu.memory_space<vmem>>, %arg7: memref<2x32x32xbf16, #tpu.memory_space<vmem>>, %arg8: memref<2x1x32xf32, #tpu.memory_space<vmem>>, %arg9: memref<2x1x32xf32, #tpu.memory_space<vmem>>, %arg10: memref<2x1x32xf32, #tpu.memory_space<vmem>>, %arg11: memref<2x32x2048xbf16, #tpu.memory_space<vmem>>, %arg12: memref<2x1x2048xf32, #tpu.memory_space<vmem>>, %arg13: memref<2x2048x32xbf16, #tpu.memory_space<vmem>>, %arg14: memref<2x1x32xf32, #tpu.memory_space<vmem>>, %arg15: memref<2x1x32xf32, #tpu.memory_space<vmem>>, %arg16: memref<2x1x32xf32, #tpu.memory_space<vmem>>, %arg17: memref<1x32xf32, #tpu.memory_space<vmem>>, %arg18: memref<1x32xf32, #tpu.memory_space<vmem>>, %arg19: memref<2x32x96xbf16, #tpu.memory_space<vmem>>, %arg20: memref<2x1x96xf32, #tpu.memory_space<vmem>>, %arg21: memref<2x32x32xbf16, #tpu.memory_space<vmem>>, %arg22: memref<2x1x32xf32, #tpu.memory_space<vmem>>, %arg23: memref<2x1x32xf32, #tpu.memory_space<vmem>>, %arg24: memref<2x1x32xf32, #tpu.memory_space<vmem>>, %arg25: memref<2x32x32xbf16, #tpu.memory_space<vmem>>, %arg26: memref<2x1x32xf32, #tpu.memory_space<vmem>>, %arg27: memref<2x32x64xbf16, #tpu.memory_space<vmem>>, %arg28: memref<2x1x64xf32, #tpu.memory_space<vmem>>, %arg29: memref<2x32x32xbf16, #tpu.memory_space<vmem>>, %arg30: memref<2x1x32xf32, #tpu.memory_space<vmem>>, %arg31: memref<2x1x32xf32, #tpu.memory_space<vmem>>, %arg32: memref<2x1x32xf32, #tpu.memory_space<vmem>>, %arg33: memref<2x32x2048xbf16, #tpu.memory_space<vmem>>, %arg34: memref<2x1x2048xf32, #tpu.memory_space<vmem>>, %arg35: memref<2x2048x32xbf16, #tpu.memory_space<vmem>>, %arg36: memref<2x1x32xf32, #tpu.memory_space<vmem>>, %arg37: memref<2x1x32xf32, #tpu.memory_space<vmem>>, %arg38: memref<2x1x32xf32, #tpu.memory_space<vmem>>, %arg39: memref<1x32xf32, #tpu.memory_space<vmem>>, %arg40: memref<1x32xf32, #tpu.memory_space<vmem>>, %arg41: memref<32x128xbf16, #tpu.memory_space<vmem>>, %arg42: memref<1x128xf32, #tpu.memory_space<vmem>>, %arg43: memref<1x8x128xf32, #tpu.memory_space<vmem>>) attributes {dimension_semantics = [#tpu.dimension_semantics<parallel>], iteration_bounds = array<i64: 2>, scalar_prefetch = 0 : i64, scratch_operands = 0 : i64, tpu.core_type = #tpu.core_type<tc>, window_params = [{transform_indices = @transform_0, window_bounds = array<i64: 1, 8, 32>}, {transform_indices = @transform_1, window_bounds = array<i64: 1, 8, 32>}, {pipeline_mode = #tpu.pipeline_mode<synchronous>, transform_indices = @transform_2, window_bounds = array<i64: 8, 32>}, {pipeline_mode = #tpu.pipeline_mode<synchronous>, transform_indices = @transform_3, window_bounds = array<i64: 8, 32>}, {pipeline_mode = #tpu.pipeline_mode<synchronous>, transform_indices = @transform_4, window_bounds = array<i64: 2, 32, 96>}, {pipeline_mode = #tpu.pipeline_mode<synchronous>, transform_indices = @transform_5, window_bounds = array<i64: 2, 1, 96>}, {pipeline_mode = #tpu.pipeline_mode<synchronous>, transform_indices = @transform_6, window_bounds = array<i64: 2, 32, 32>}, {pipeline_mode = #tpu.pipeline_mode<synchronous>, transform_indices = @transform_7, window_bounds = array<i64: 2, 1, 32>}, {pipeline_mode = #tpu.pipeline_mode<synchronous>, transform_indices = @transform_8, window_bounds = array<i64: 2, 1, 32>}, {pipeline_mode = #tpu.pipeline_mode<synchronous>, transform_indices = @transform_9, window_bounds = array<i64: 2, 1, 32>}, {pipeline_mode = #tpu.pipeline_mode<synchronous>, transform_indices = @transform_10, window_bounds = array<i64: 2, 32, 2048>}, {pipeline_mode = #tpu.pipeline_mode<synchronous>, transform_indices = @transform_11, window_bounds = array<i64: 2, 1, 2048>}, {pipeline_mode = #tpu.pipeline_mode<synchronous>, transform_indices = @transform_12, window_bounds = array<i64: 2, 2048, 32>}, {pipeline_mode = #tpu.pipeline_mode<synchronous>, transform_indices = @transform_13, window_bounds = array<i64: 2, 1, 32>}, {pipeline_mode = #tpu.pipeline_mode<synchronous>, transform_indices = @transform_14, window_bounds = array<i64: 2, 1, 32>}, {pipeline_mode = #tpu.pipeline_mode<synchronous>, transform_indices = @transform_15, window_bounds = array<i64: 2, 1, 32>}, {pipeline_mode = #tpu.pipeline_mode<synchronous>, transform_indices = @transform_16, window_bounds = array<i64: 1, 32>}, {pipeline_mode = #tpu.pipeline_mode<synchronous>, transform_indices = @transform_17, window_bounds = array<i64: 1, 32>}, {pipeline_mode = #tpu.pipeline_mode<synchronous>, transform_indices = @transform_18, window_bounds = array<i64: 2, 32, 96>}, {pipeline_mode = #tpu.pipeline_mode<synchronous>, transform_indices = @transform_19, window_bounds = array<i64: 2, 1, 96>}, {pipeline_mode = #tpu.pipeline_mode<synchronous>, transform_indices = @transform_20, window_bounds = array<i64: 2, 32, 32>}, {pipeline_mode = #tpu.pipeline_mode<synchronous>, transform_indices = @transform_21, window_bounds = array<i64: 2, 1, 32>}, {pipeline_mode = #tpu.pipeline_mode<synchronous>, transform_indices = @transform_22, window_bounds = array<i64: 2, 1, 32>}, {pipeline_mode = #tpu.pipeline_mode<synchronous>, transform_indices = @transform_23, window_bounds = array<i64: 2, 1, 32>}, {pipeline_mode = #tpu.pipeline_mode<synchronous>, transform_indices = @transform_24, window_bounds = array<i64: 2, 32, 32>}, {pipeline_mode = #tpu.pipeline_mode<synchronous>, transform_indices = @transform_25, window_bounds = array<i64: 2, 1, 32>}, {pipeline_mode = #tpu.pipeline_mode<synchronous>, transform_indices = @transform_26, window_bounds = array<i64: 2, 32, 64>}, {pipeline_mode = #tpu.pipeline_mode<synchronous>, transform_indices = @transform_27, window_bounds = array<i64: 2, 1, 64>}, {pipeline_mode = #tpu.pipeline_mode<synchronous>, transform_indices = @transform_28, window_bounds = array<i64: 2, 32, 32>}, {pipeline_mode = #tpu.pipeline_mode<synchronous>, transform_indices = @transform_29, window_bounds = array<i64: 2, 1, 32>}, {pipeline_mode = #tpu.pipeline_mode<synchronous>, transform_indices = @transform_30, window_bounds = array<i64: 2, 1, 32>}, {pipeline_mode = #tpu.pipeline_mode<synchronous>, transform_indices = @transform_31, window_bounds = array<i64: 2, 1, 32>}, {pipeline_mode = #tpu.pipeline_mode<synchronous>, transform_indices = @transform_32, window_bounds = array<i64: 2, 32, 2048>}, {pipeline_mode = #tpu.pipeline_mode<synchronous>, transform_indices = @transform_33, window_bounds = array<i64: 2, 1, 2048>}, {pipeline_mode = #tpu.pipeline_mode<synchronous>, transform_indices = @transform_34, window_bounds = array<i64: 2, 2048, 32>}, {pipeline_mode = #tpu.pipeline_mode<synchronous>, transform_indices = @transform_35, window_bounds = array<i64: 2, 1, 32>}, {pipeline_mode = #tpu.pipeline_mode<synchronous>, transform_indices = @transform_36, window_bounds = array<i64: 2, 1, 32>}, {pipeline_mode = #tpu.pipeline_mode<synchronous>, transform_indices = @transform_37, window_bounds = array<i64: 2, 1, 32>}, {pipeline_mode = #tpu.pipeline_mode<synchronous>, transform_indices = @transform_38, window_bounds = array<i64: 1, 32>}, {pipeline_mode = #tpu.pipeline_mode<synchronous>, transform_indices = @transform_39, window_bounds = array<i64: 1, 32>}, {pipeline_mode = #tpu.pipeline_mode<synchronous>, transform_indices = @transform_40, window_bounds = array<i64: 32, 128>}, {pipeline_mode = #tpu.pipeline_mode<synchronous>, transform_indices = @transform_41, window_bounds = array<i64: 1, 128>}, {transform_indices = @transform_42, window_bounds = array<i64: 1, 8, 128>}]} {
    %c0 = arith.constant 0 : index
    %c0_0 = arith.constant 0 : index
    %c0_1 = arith.constant 0 : index
    %0 = vector.load %arg1[%c0, %c0_0, %c0_1] : memref<1x8x32xf32, #tpu.memory_space<vmem>>, vector<1x8x32xf32>
    %1 = vector.shape_cast %0 : vector<1x8x32xf32> to vector<8x32xf32>
    %c0_2 = arith.constant 0 : index
    %c0_3 = arith.constant 0 : index
    %2 = vector.load %arg3[%c0_2, %c0_3] : memref<8x32xf32, #tpu.memory_space<vmem>>, vector<8x32xf32>
    %3 = arith.addf %1, %2 : vector<8x32xf32>
    %c0_4 = arith.constant 0 : index
    %c0_5 = arith.constant 0 : index
    %c0_6 = arith.constant 0 : index
    %4 = vector.load %arg5[%c0_4, %c0_5, %c0_6] : memref<2x32x96xbf16, #tpu.memory_space<vmem>>, vector<1x32x96xbf16>
    %5 = vector.shape_cast %4 : vector<1x32x96xbf16> to vector<32x96xbf16>
    %c0_7 = arith.constant 0 : index
    %c0_8 = arith.constant 0 : index
    %c0_9 = arith.constant 0 : index
    %6 = vector.load %arg6[%c0_7, %c0_8, %c0_9] : memref<2x1x96xf32, #tpu.memory_space<vmem>>, vector<1x1x96xf32>
    %7 = vector.shape_cast %6 : vector<1x1x96xf32> to vector<1x96xf32>
    %8 = arith.truncf %3 : vector<8x32xf32> to vector<8x32xbf16>
    %cst = arith.constant dense<0.000000e+00> : vector<8x96xf32>
    %9 = tpu.matmul %8, %5, %cst {dimension_numbers = #tpu.dot_dimension_numbers<[1], [0], [0], [1], [0, 0, 1, 1], [], []>} : vector<8x32xbf16>, vector<32x96xbf16>, vector<8x96xf32> -> vector<8x96xf32>
    %10 = vector.broadcast %7 : vector<1x96xf32> to vector<8x96xf32>
    %11 = arith.addf %9, %10 : vector<8x96xf32>
    %12 = vector.extract_strided_slice %11 {offsets = [0, 0], sizes = [8, 32], strides = [1, 1]} : vector<8x96xf32> to vector<8x32xf32>
    %13 = vector.extract_strided_slice %11 {offsets = [0, 32], sizes = [8, 32], strides = [1, 1]} : vector<8x96xf32> to vector<8x32xf32>
    %14 = vector.extract_strided_slice %11 {offsets = [0, 64], sizes = [8, 32], strides = [1, 1]} : vector<8x96xf32> to vector<8x32xf32>
    %15 = vector.extract_strided_slice %12 {offsets = [0, 0], sizes = [8, 8], strides = [1, 1]} : vector<8x32xf32> to vector<8x8xf32>
    %16 = arith.truncf %15 : vector<8x8xf32> to vector<8x8xbf16>
    %17 = vector.extract_strided_slice %13 {offsets = [0, 0], sizes = [8, 8], strides = [1, 1]} : vector<8x32xf32> to vector<8x8xf32>
    %18 = arith.truncf %17 : vector<8x8xf32> to vector<8x8xbf16>
    %19 = vector.extract_strided_slice %14 {offsets = [0, 0], sizes = [8, 8], strides = [1, 1]} : vector<8x32xf32> to vector<8x8xf32>
    %20 = arith.truncf %19 : vector<8x8xf32> to vector<8x8xbf16>
    %cst_10 = arith.constant dense<0.000000e+00> : vector<8x8xf32>
    %21 = tpu.matmul %16, %18, %cst_10 {dimension_numbers = #tpu.dot_dimension_numbers<[1], [1], [0], [0], [0, 0, 1, 0], [], []>} : vector<8x8xbf16>, vector<8x8xbf16>, vector<8x8xf32> -> vector<8x8xf32>
    %cst_11 = arith.constant 0.353553385 : f32
    %22 = vector.broadcast %cst_11 : f32 to vector<8x8xf32>
    %23 = arith.mulf %21, %22 : vector<8x8xf32>
    %cst_12 = arith.constant dense<0xFF800000> : vector<8xf32>
    %24 = vector.multi_reduction <maximumf>, %23, %cst_12 [1] : vector<8x8xf32> to vector<8xf32>
    %25 = vector.shape_cast %24 : vector<8xf32> to vector<8x1xf32>
    %26 = vector.broadcast %25 : vector<8x1xf32> to vector<8x8xf32>
    %27 = arith.subf %23, %26 : vector<8x8xf32>
    %28 = math.exp %27 : vector<8x8xf32>
    %cst_13 = arith.constant dense<0.000000e+00> : vector<8xf32>
    %29 = vector.multi_reduction <add>, %28, %cst_13 [1] : vector<8x8xf32> to vector<8xf32>
    %30 = vector.shape_cast %29 : vector<8xf32> to vector<8x1xf32>
    %31 = vector.broadcast %30 : vector<8x1xf32> to vector<8x8xf32>
    %32 = arith.divf %28, %31 : vector<8x8xf32>
    %33 = arith.truncf %32 : vector<8x8xf32> to vector<8x8xbf16>
    %cst_14 = arith.constant dense<0.000000e+00> : vector<8x8xf32>
    %34 = tpu.matmul %33, %20, %cst_14 {dimension_numbers = #tpu.dot_dimension_numbers<[1], [0], [0], [1], [0, 0, 1, 1], [], []>} : vector<8x8xbf16>, vector<8x8xbf16>, vector<8x8xf32> -> vector<8x8xf32>
    %35 = vector.extract_strided_slice %12 {offsets = [0, 8], sizes = [8, 8], strides = [1, 1]} : vector<8x32xf32> to vector<8x8xf32>
    %36 = arith.truncf %35 : vector<8x8xf32> to vector<8x8xbf16>
    %37 = vector.extract_strided_slice %13 {offsets = [0, 8], sizes = [8, 8], strides = [1, 1]} : vector<8x32xf32> to vector<8x8xf32>
    %38 = arith.truncf %37 : vector<8x8xf32> to vector<8x8xbf16>
    %39 = vector.extract_strided_slice %14 {offsets = [0, 8], sizes = [8, 8], strides = [1, 1]} : vector<8x32xf32> to vector<8x8xf32>
    %40 = arith.truncf %39 : vector<8x8xf32> to vector<8x8xbf16>
    %cst_15 = arith.constant dense<0.000000e+00> : vector<8x8xf32>
    %41 = tpu.matmul %36, %38, %cst_15 {dimension_numbers = #tpu.dot_dimension_numbers<[1], [1], [0], [0], [0, 0, 1, 0], [], []>} : vector<8x8xbf16>, vector<8x8xbf16>, vector<8x8xf32> -> vector<8x8xf32>
    %cst_16 = arith.constant 0.353553385 : f32
    %42 = vector.broadcast %cst_16 : f32 to vector<8x8xf32>
    %43 = arith.mulf %41, %42 : vector<8x8xf32>
    %cst_17 = arith.constant dense<0xFF800000> : vector<8xf32>
    %44 = vector.multi_reduction <maximumf>, %43, %cst_17 [1] : vector<8x8xf32> to vector<8xf32>
    %45 = vector.shape_cast %44 : vector<8xf32> to vector<8x1xf32>
    %46 = vector.broadcast %45 : vector<8x1xf32> to vector<8x8xf32>
    %47 = arith.subf %43, %46 : vector<8x8xf32>
    %48 = math.exp %47 : vector<8x8xf32>
    %cst_18 = arith.constant dense<0.000000e+00> : vector<8xf32>
    %49 = vector.multi_reduction <add>, %48, %cst_18 [1] : vector<8x8xf32> to vector<8xf32>
    %50 = vector.shape_cast %49 : vector<8xf32> to vector<8x1xf32>
    %51 = vector.broadcast %50 : vector<8x1xf32> to vector<8x8xf32>
    %52 = arith.divf %48, %51 : vector<8x8xf32>
    %53 = arith.truncf %52 : vector<8x8xf32> to vector<8x8xbf16>
    %cst_19 = arith.constant dense<0.000000e+00> : vector<8x8xf32>
    %54 = tpu.matmul %53, %40, %cst_19 {dimension_numbers = #tpu.dot_dimension_numbers<[1], [0], [0], [1], [0, 0, 1, 1], [], []>} : vector<8x8xbf16>, vector<8x8xbf16>, vector<8x8xf32> -> vector<8x8xf32>
    %55 = vector.extract_strided_slice %12 {offsets = [0, 16], sizes = [8, 8], strides = [1, 1]} : vector<8x32xf32> to vector<8x8xf32>
    %56 = arith.truncf %55 : vector<8x8xf32> to vector<8x8xbf16>
    %57 = vector.extract_strided_slice %13 {offsets = [0, 16], sizes = [8, 8], strides = [1, 1]} : vector<8x32xf32> to vector<8x8xf32>
    %58 = arith.truncf %57 : vector<8x8xf32> to vector<8x8xbf16>
    %59 = vector.extract_strided_slice %14 {offsets = [0, 16], sizes = [8, 8], strides = [1, 1]} : vector<8x32xf32> to vector<8x8xf32>
    %60 = arith.truncf %59 : vector<8x8xf32> to vector<8x8xbf16>
    %cst_20 = arith.constant dense<0.000000e+00> : vector<8x8xf32>
    %61 = tpu.matmul %56, %58, %cst_20 {dimension_numbers = #tpu.dot_dimension_numbers<[1], [1], [0], [0], [0, 0, 1, 0], [], []>} : vector<8x8xbf16>, vector<8x8xbf16>, vector<8x8xf32> -> vector<8x8xf32>
    %cst_21 = arith.constant 0.353553385 : f32
    %62 = vector.broadcast %cst_21 : f32 to vector<8x8xf32>
    %63 = arith.mulf %61, %62 : vector<8x8xf32>
    %cst_22 = arith.constant dense<0xFF800000> : vector<8xf32>
    %64 = vector.multi_reduction <maximumf>, %63, %cst_22 [1] : vector<8x8xf32> to vector<8xf32>
    %65 = vector.shape_cast %64 : vector<8xf32> to vector<8x1xf32>
    %66 = vector.broadcast %65 : vector<8x1xf32> to vector<8x8xf32>
    %67 = arith.subf %63, %66 : vector<8x8xf32>
    %68 = math.exp %67 : vector<8x8xf32>
    %cst_23 = arith.constant dense<0.000000e+00> : vector<8xf32>
    %69 = vector.multi_reduction <add>, %68, %cst_23 [1] : vector<8x8xf32> to vector<8xf32>
    %70 = vector.shape_cast %69 : vector<8xf32> to vector<8x1xf32>
    %71 = vector.broadcast %70 : vector<8x1xf32> to vector<8x8xf32>
    %72 = arith.divf %68, %71 : vector<8x8xf32>
    %73 = arith.truncf %72 : vector<8x8xf32> to vector<8x8xbf16>
    %cst_24 = arith.constant dense<0.000000e+00> : vector<8x8xf32>
    %74 = tpu.matmul %73, %60, %cst_24 {dimension_numbers = #tpu.dot_dimension_numbers<[1], [0], [0], [1], [0, 0, 1, 1], [], []>} : vector<8x8xbf16>, vector<8x8xbf16>, vector<8x8xf32> -> vector<8x8xf32>
    %75 = vector.extract_strided_slice %12 {offsets = [0, 24], sizes = [8, 8], strides = [1, 1]} : vector<8x32xf32> to vector<8x8xf32>
    %76 = arith.truncf %75 : vector<8x8xf32> to vector<8x8xbf16>
    %77 = vector.extract_strided_slice %13 {offsets = [0, 24], sizes = [8, 8], strides = [1, 1]} : vector<8x32xf32> to vector<8x8xf32>
    %78 = arith.truncf %77 : vector<8x8xf32> to vector<8x8xbf16>
    %79 = vector.extract_strided_slice %14 {offsets = [0, 24], sizes = [8, 8], strides = [1, 1]} : vector<8x32xf32> to vector<8x8xf32>
    %80 = arith.truncf %79 : vector<8x8xf32> to vector<8x8xbf16>
    %cst_25 = arith.constant dense<0.000000e+00> : vector<8x8xf32>
    %81 = tpu.matmul %76, %78, %cst_25 {dimension_numbers = #tpu.dot_dimension_numbers<[1], [1], [0], [0], [0, 0, 1, 0], [], []>} : vector<8x8xbf16>, vector<8x8xbf16>, vector<8x8xf32> -> vector<8x8xf32>
    %cst_26 = arith.constant 0.353553385 : f32
    %82 = vector.broadcast %cst_26 : f32 to vector<8x8xf32>
    %83 = arith.mulf %81, %82 : vector<8x8xf32>
    %cst_27 = arith.constant dense<0xFF800000> : vector<8xf32>
    %84 = vector.multi_reduction <maximumf>, %83, %cst_27 [1] : vector<8x8xf32> to vector<8xf32>
    %85 = vector.shape_cast %84 : vector<8xf32> to vector<8x1xf32>
    %86 = vector.broadcast %85 : vector<8x1xf32> to vector<8x8xf32>
    %87 = arith.subf %83, %86 : vector<8x8xf32>
    %88 = math.exp %87 : vector<8x8xf32>
    %cst_28 = arith.constant dense<0.000000e+00> : vector<8xf32>
    %89 = vector.multi_reduction <add>, %88, %cst_28 [1] : vector<8x8xf32> to vector<8xf32>
    %90 = vector.shape_cast %89 : vector<8xf32> to vector<8x1xf32>
    %91 = vector.broadcast %90 : vector<8x1xf32> to vector<8x8xf32>
    %92 = arith.divf %88, %91 : vector<8x8xf32>
    %93 = arith.truncf %92 : vector<8x8xf32> to vector<8x8xbf16>
    %cst_29 = arith.constant dense<0.000000e+00> : vector<8x8xf32>
    %94 = tpu.matmul %93, %80, %cst_29 {dimension_numbers = #tpu.dot_dimension_numbers<[1], [0], [0], [1], [0, 0, 1, 1], [], []>} : vector<8x8xbf16>, vector<8x8xbf16>, vector<8x8xf32> -> vector<8x8xf32>
    %95 = tpu.concatenate %34, %54, %74, %94 in 1 : vector<8x8xf32>, vector<8x8xf32>, vector<8x8xf32>, vector<8x8xf32> -> vector<8x32xf32>
    %c0_30 = arith.constant 0 : index
    %c0_31 = arith.constant 0 : index
    %c0_32 = arith.constant 0 : index
    %96 = vector.load %arg7[%c0_30, %c0_31, %c0_32] : memref<2x32x32xbf16, #tpu.memory_space<vmem>>, vector<1x32x32xbf16>
    %97 = vector.shape_cast %96 : vector<1x32x32xbf16> to vector<32x32xbf16>
    %c0_33 = arith.constant 0 : index
    %c0_34 = arith.constant 0 : index
    %c0_35 = arith.constant 0 : index
    %98 = vector.load %arg8[%c0_33, %c0_34, %c0_35] : memref<2x1x32xf32, #tpu.memory_space<vmem>>, vector<1x1x32xf32>
    %99 = vector.shape_cast %98 : vector<1x1x32xf32> to vector<1x32xf32>
    %100 = arith.truncf %95 : vector<8x32xf32> to vector<8x32xbf16>
    %cst_36 = arith.constant dense<0.000000e+00> : vector<8x32xf32>
    %101 = tpu.matmul %100, %97, %cst_36 {dimension_numbers = #tpu.dot_dimension_numbers<[1], [0], [0], [1], [0, 0, 1, 1], [], []>} : vector<8x32xbf16>, vector<32x32xbf16>, vector<8x32xf32> -> vector<8x32xf32>
    %102 = vector.broadcast %99 : vector<1x32xf32> to vector<8x32xf32>
    %103 = arith.addf %101, %102 : vector<8x32xf32>
    %104 = arith.addf %3, %103 : vector<8x32xf32>
    %c0_37 = arith.constant 0 : index
    %c0_38 = arith.constant 0 : index
    %c0_39 = arith.constant 0 : index
    %105 = vector.load %arg9[%c0_37, %c0_38, %c0_39] : memref<2x1x32xf32, #tpu.memory_space<vmem>>, vector<1x1x32xf32>
    %106 = vector.shape_cast %105 : vector<1x1x32xf32> to vector<1x32xf32>
    %c0_40 = arith.constant 0 : index
    %c0_41 = arith.constant 0 : index
    %c0_42 = arith.constant 0 : index
    %107 = vector.load %arg10[%c0_40, %c0_41, %c0_42] : memref<2x1x32xf32, #tpu.memory_space<vmem>>, vector<1x1x32xf32>
    %108 = vector.shape_cast %107 : vector<1x1x32xf32> to vector<1x32xf32>
    %cst_43 = arith.constant dense<0.000000e+00> : vector<8xf32>
    %109 = vector.multi_reduction <add>, %104, %cst_43 [1] : vector<8x32xf32> to vector<8xf32>
    %110 = vector.shape_cast %109 : vector<8xf32> to vector<8x1xf32>
    %cst_44 = arith.constant 3.200000e+01 : f32
    %111 = vector.broadcast %cst_44 : f32 to vector<8x1xf32>
    %112 = arith.divf %110, %111 : vector<8x1xf32>
    %113 = vector.broadcast %112 : vector<8x1xf32> to vector<8x32xf32>
    %114 = arith.subf %104, %113 : vector<8x32xf32>
    %115 = arith.mulf %114, %114 : vector<8x32xf32>
    %cst_45 = arith.constant dense<0.000000e+00> : vector<8xf32>
    %116 = vector.multi_reduction <add>, %115, %cst_45 [1] : vector<8x32xf32> to vector<8xf32>
    %117 = vector.shape_cast %116 : vector<8xf32> to vector<8x1xf32>
    %cst_46 = arith.constant 3.200000e+01 : f32
    %118 = vector.broadcast %cst_46 : f32 to vector<8x1xf32>
    %119 = arith.divf %117, %118 : vector<8x1xf32>
    %cst_47 = arith.constant 9.99999974E-6 : f32
    %120 = vector.broadcast %cst_47 : f32 to vector<8x1xf32>
    %121 = arith.addf %119, %120 : vector<8x1xf32>
    %122 = math.rsqrt %121 : vector<8x1xf32>
    %123 = vector.broadcast %122 : vector<8x1xf32> to vector<8x32xf32>
    %124 = arith.mulf %114, %123 : vector<8x32xf32>
    %125 = vector.broadcast %106 : vector<1x32xf32> to vector<8x32xf32>
    %126 = arith.mulf %124, %125 : vector<8x32xf32>
    %127 = vector.broadcast %108 : vector<1x32xf32> to vector<8x32xf32>
    %128 = arith.addf %126, %127 : vector<8x32xf32>
    %c0_48 = arith.constant 0 : index
    %c0_49 = arith.constant 0 : index
    %c0_50 = arith.constant 0 : index
    %129 = vector.load %arg11[%c0_48, %c0_49, %c0_50] : memref<2x32x2048xbf16, #tpu.memory_space<vmem>>, vector<1x32x2048xbf16>
    %130 = vector.shape_cast %129 : vector<1x32x2048xbf16> to vector<32x2048xbf16>
    %c0_51 = arith.constant 0 : index
    %c0_52 = arith.constant 0 : index
    %c0_53 = arith.constant 0 : index
    %131 = vector.load %arg12[%c0_51, %c0_52, %c0_53] : memref<2x1x2048xf32, #tpu.memory_space<vmem>>, vector<1x1x2048xf32>
    %132 = vector.shape_cast %131 : vector<1x1x2048xf32> to vector<1x2048xf32>
    %133 = arith.truncf %128 : vector<8x32xf32> to vector<8x32xbf16>
    %cst_54 = arith.constant dense<0.000000e+00> : vector<8x2048xf32>
    %134 = tpu.matmul %133, %130, %cst_54 {dimension_numbers = #tpu.dot_dimension_numbers<[1], [0], [0], [1], [0, 0, 1, 1], [], []>} : vector<8x32xbf16>, vector<32x2048xbf16>, vector<8x2048xf32> -> vector<8x2048xf32>
    %135 = vector.broadcast %132 : vector<1x2048xf32> to vector<8x2048xf32>
    %136 = arith.addf %134, %135 : vector<8x2048xf32>
    %cst_55 = arith.constant 0.000000e+00 : f32
    %137 = vector.broadcast %cst_55 : f32 to vector<8x2048xf32>
    %138 = arith.maximumf %136, %137 : vector<8x2048xf32>
    %c0_56 = arith.constant 0 : index
    %c0_57 = arith.constant 0 : index
    %c0_58 = arith.constant 0 : index
    %139 = vector.load %arg13[%c0_56, %c0_57, %c0_58] : memref<2x2048x32xbf16, #tpu.memory_space<vmem>>, vector<1x2048x32xbf16>
    %140 = vector.shape_cast %139 : vector<1x2048x32xbf16> to vector<2048x32xbf16>
    %c0_59 = arith.constant 0 : index
    %c0_60 = arith.constant 0 : index
    %c0_61 = arith.constant 0 : index
    %141 = vector.load %arg14[%c0_59, %c0_60, %c0_61] : memref<2x1x32xf32, #tpu.memory_space<vmem>>, vector<1x1x32xf32>
    %142 = vector.shape_cast %141 : vector<1x1x32xf32> to vector<1x32xf32>
    %143 = arith.truncf %138 : vector<8x2048xf32> to vector<8x2048xbf16>
    %cst_62 = arith.constant dense<0.000000e+00> : vector<8x32xf32>
    %144 = tpu.matmul %143, %140, %cst_62 {dimension_numbers = #tpu.dot_dimension_numbers<[1], [0], [0], [1], [0, 0, 1, 1], [], []>} : vector<8x2048xbf16>, vector<2048x32xbf16>, vector<8x32xf32> -> vector<8x32xf32>
    %145 = vector.broadcast %142 : vector<1x32xf32> to vector<8x32xf32>
    %146 = arith.addf %144, %145 : vector<8x32xf32>
    %147 = arith.addf %128, %146 : vector<8x32xf32>
    %c0_63 = arith.constant 0 : index
    %c0_64 = arith.constant 0 : index
    %c0_65 = arith.constant 0 : index
    %148 = vector.load %arg15[%c0_63, %c0_64, %c0_65] : memref<2x1x32xf32, #tpu.memory_space<vmem>>, vector<1x1x32xf32>
    %149 = vector.shape_cast %148 : vector<1x1x32xf32> to vector<1x32xf32>
    %c0_66 = arith.constant 0 : index
    %c0_67 = arith.constant 0 : index
    %c0_68 = arith.constant 0 : index
    %150 = vector.load %arg16[%c0_66, %c0_67, %c0_68] : memref<2x1x32xf32, #tpu.memory_space<vmem>>, vector<1x1x32xf32>
    %151 = vector.shape_cast %150 : vector<1x1x32xf32> to vector<1x32xf32>
    %cst_69 = arith.constant dense<0.000000e+00> : vector<8xf32>
    %152 = vector.multi_reduction <add>, %147, %cst_69 [1] : vector<8x32xf32> to vector<8xf32>
    %153 = vector.shape_cast %152 : vector<8xf32> to vector<8x1xf32>
    %cst_70 = arith.constant 3.200000e+01 : f32
    %154 = vector.broadcast %cst_70 : f32 to vector<8x1xf32>
    %155 = arith.divf %153, %154 : vector<8x1xf32>
    %156 = vector.broadcast %155 : vector<8x1xf32> to vector<8x32xf32>
    %157 = arith.subf %147, %156 : vector<8x32xf32>
    %158 = arith.mulf %157, %157 : vector<8x32xf32>
    %cst_71 = arith.constant dense<0.000000e+00> : vector<8xf32>
    %159 = vector.multi_reduction <add>, %158, %cst_71 [1] : vector<8x32xf32> to vector<8xf32>
    %160 = vector.shape_cast %159 : vector<8xf32> to vector<8x1xf32>
    %cst_72 = arith.constant 3.200000e+01 : f32
    %161 = vector.broadcast %cst_72 : f32 to vector<8x1xf32>
    %162 = arith.divf %160, %161 : vector<8x1xf32>
    %cst_73 = arith.constant 9.99999974E-6 : f32
    %163 = vector.broadcast %cst_73 : f32 to vector<8x1xf32>
    %164 = arith.addf %162, %163 : vector<8x1xf32>
    %165 = math.rsqrt %164 : vector<8x1xf32>
    %166 = vector.broadcast %165 : vector<8x1xf32> to vector<8x32xf32>
    %167 = arith.mulf %157, %166 : vector<8x32xf32>
    %168 = vector.broadcast %149 : vector<1x32xf32> to vector<8x32xf32>
    %169 = arith.mulf %167, %168 : vector<8x32xf32>
    %170 = vector.broadcast %151 : vector<1x32xf32> to vector<8x32xf32>
    %171 = arith.addf %169, %170 : vector<8x32xf32>
    %c1 = arith.constant 1 : index
    %c0_74 = arith.constant 0 : index
    %c0_75 = arith.constant 0 : index
    %172 = vector.load %arg5[%c1, %c0_74, %c0_75] : memref<2x32x96xbf16, #tpu.memory_space<vmem>>, vector<1x32x96xbf16>
    %173 = vector.shape_cast %172 : vector<1x32x96xbf16> to vector<32x96xbf16>
    %c1_76 = arith.constant 1 : index
    %c0_77 = arith.constant 0 : index
    %c0_78 = arith.constant 0 : index
    %174 = vector.load %arg6[%c1_76, %c0_77, %c0_78] : memref<2x1x96xf32, #tpu.memory_space<vmem>>, vector<1x1x96xf32>
    %175 = vector.shape_cast %174 : vector<1x1x96xf32> to vector<1x96xf32>
    %176 = arith.truncf %171 : vector<8x32xf32> to vector<8x32xbf16>
    %cst_79 = arith.constant dense<0.000000e+00> : vector<8x96xf32>
    %177 = tpu.matmul %176, %173, %cst_79 {dimension_numbers = #tpu.dot_dimension_numbers<[1], [0], [0], [1], [0, 0, 1, 1], [], []>} : vector<8x32xbf16>, vector<32x96xbf16>, vector<8x96xf32> -> vector<8x96xf32>
    %178 = vector.broadcast %175 : vector<1x96xf32> to vector<8x96xf32>
    %179 = arith.addf %177, %178 : vector<8x96xf32>
    %180 = vector.extract_strided_slice %179 {offsets = [0, 0], sizes = [8, 32], strides = [1, 1]} : vector<8x96xf32> to vector<8x32xf32>
    %181 = vector.extract_strided_slice %179 {offsets = [0, 32], sizes = [8, 32], strides = [1, 1]} : vector<8x96xf32> to vector<8x32xf32>
    %182 = vector.extract_strided_slice %179 {offsets = [0, 64], sizes = [8, 32], strides = [1, 1]} : vector<8x96xf32> to vector<8x32xf32>
    %183 = vector.extract_strided_slice %180 {offsets = [0, 0], sizes = [8, 8], strides = [1, 1]} : vector<8x32xf32> to vector<8x8xf32>
    %184 = arith.truncf %183 : vector<8x8xf32> to vector<8x8xbf16>
    %185 = vector.extract_strided_slice %181 {offsets = [0, 0], sizes = [8, 8], strides = [1, 1]} : vector<8x32xf32> to vector<8x8xf32>
    %186 = arith.truncf %185 : vector<8x8xf32> to vector<8x8xbf16>
    %187 = vector.extract_strided_slice %182 {offsets = [0, 0], sizes = [8, 8], strides = [1, 1]} : vector<8x32xf32> to vector<8x8xf32>
    %188 = arith.truncf %187 : vector<8x8xf32> to vector<8x8xbf16>
    %cst_80 = arith.constant dense<0.000000e+00> : vector<8x8xf32>
    %189 = tpu.matmul %184, %186, %cst_80 {dimension_numbers = #tpu.dot_dimension_numbers<[1], [1], [0], [0], [0, 0, 1, 0], [], []>} : vector<8x8xbf16>, vector<8x8xbf16>, vector<8x8xf32> -> vector<8x8xf32>
    %cst_81 = arith.constant 0.353553385 : f32
    %190 = vector.broadcast %cst_81 : f32 to vector<8x8xf32>
    %191 = arith.mulf %189, %190 : vector<8x8xf32>
    %cst_82 = arith.constant dense<0xFF800000> : vector<8xf32>
    %192 = vector.multi_reduction <maximumf>, %191, %cst_82 [1] : vector<8x8xf32> to vector<8xf32>
    %193 = vector.shape_cast %192 : vector<8xf32> to vector<8x1xf32>
    %194 = vector.broadcast %193 : vector<8x1xf32> to vector<8x8xf32>
    %195 = arith.subf %191, %194 : vector<8x8xf32>
    %196 = math.exp %195 : vector<8x8xf32>
    %cst_83 = arith.constant dense<0.000000e+00> : vector<8xf32>
    %197 = vector.multi_reduction <add>, %196, %cst_83 [1] : vector<8x8xf32> to vector<8xf32>
    %198 = vector.shape_cast %197 : vector<8xf32> to vector<8x1xf32>
    %199 = vector.broadcast %198 : vector<8x1xf32> to vector<8x8xf32>
    %200 = arith.divf %196, %199 : vector<8x8xf32>
    %201 = arith.truncf %200 : vector<8x8xf32> to vector<8x8xbf16>
    %cst_84 = arith.constant dense<0.000000e+00> : vector<8x8xf32>
    %202 = tpu.matmul %201, %188, %cst_84 {dimension_numbers = #tpu.dot_dimension_numbers<[1], [0], [0], [1], [0, 0, 1, 1], [], []>} : vector<8x8xbf16>, vector<8x8xbf16>, vector<8x8xf32> -> vector<8x8xf32>
    %203 = vector.extract_strided_slice %180 {offsets = [0, 8], sizes = [8, 8], strides = [1, 1]} : vector<8x32xf32> to vector<8x8xf32>
    %204 = arith.truncf %203 : vector<8x8xf32> to vector<8x8xbf16>
    %205 = vector.extract_strided_slice %181 {offsets = [0, 8], sizes = [8, 8], strides = [1, 1]} : vector<8x32xf32> to vector<8x8xf32>
    %206 = arith.truncf %205 : vector<8x8xf32> to vector<8x8xbf16>
    %207 = vector.extract_strided_slice %182 {offsets = [0, 8], sizes = [8, 8], strides = [1, 1]} : vector<8x32xf32> to vector<8x8xf32>
    %208 = arith.truncf %207 : vector<8x8xf32> to vector<8x8xbf16>
    %cst_85 = arith.constant dense<0.000000e+00> : vector<8x8xf32>
    %209 = tpu.matmul %204, %206, %cst_85 {dimension_numbers = #tpu.dot_dimension_numbers<[1], [1], [0], [0], [0, 0, 1, 0], [], []>} : vector<8x8xbf16>, vector<8x8xbf16>, vector<8x8xf32> -> vector<8x8xf32>
    %cst_86 = arith.constant 0.353553385 : f32
    %210 = vector.broadcast %cst_86 : f32 to vector<8x8xf32>
    %211 = arith.mulf %209, %210 : vector<8x8xf32>
    %cst_87 = arith.constant dense<0xFF800000> : vector<8xf32>
    %212 = vector.multi_reduction <maximumf>, %211, %cst_87 [1] : vector<8x8xf32> to vector<8xf32>
    %213 = vector.shape_cast %212 : vector<8xf32> to vector<8x1xf32>
    %214 = vector.broadcast %213 : vector<8x1xf32> to vector<8x8xf32>
    %215 = arith.subf %211, %214 : vector<8x8xf32>
    %216 = math.exp %215 : vector<8x8xf32>
    %cst_88 = arith.constant dense<0.000000e+00> : vector<8xf32>
    %217 = vector.multi_reduction <add>, %216, %cst_88 [1] : vector<8x8xf32> to vector<8xf32>
    %218 = vector.shape_cast %217 : vector<8xf32> to vector<8x1xf32>
    %219 = vector.broadcast %218 : vector<8x1xf32> to vector<8x8xf32>
    %220 = arith.divf %216, %219 : vector<8x8xf32>
    %221 = arith.truncf %220 : vector<8x8xf32> to vector<8x8xbf16>
    %cst_89 = arith.constant dense<0.000000e+00> : vector<8x8xf32>
    %222 = tpu.matmul %221, %208, %cst_89 {dimension_numbers = #tpu.dot_dimension_numbers<[1], [0], [0], [1], [0, 0, 1, 1], [], []>} : vector<8x8xbf16>, vector<8x8xbf16>, vector<8x8xf32> -> vector<8x8xf32>
    %223 = vector.extract_strided_slice %180 {offsets = [0, 16], sizes = [8, 8], strides = [1, 1]} : vector<8x32xf32> to vector<8x8xf32>
    %224 = arith.truncf %223 : vector<8x8xf32> to vector<8x8xbf16>
    %225 = vector.extract_strided_slice %181 {offsets = [0, 16], sizes = [8, 8], strides = [1, 1]} : vector<8x32xf32> to vector<8x8xf32>
    %226 = arith.truncf %225 : vector<8x8xf32> to vector<8x8xbf16>
    %227 = vector.extract_strided_slice %182 {offsets = [0, 16], sizes = [8, 8], strides = [1, 1]} : vector<8x32xf32> to vector<8x8xf32>
    %228 = arith.truncf %227 : vector<8x8xf32> to vector<8x8xbf16>
    %cst_90 = arith.constant dense<0.000000e+00> : vector<8x8xf32>
    %229 = tpu.matmul %224, %226, %cst_90 {dimension_numbers = #tpu.dot_dimension_numbers<[1], [1], [0], [0], [0, 0, 1, 0], [], []>} : vector<8x8xbf16>, vector<8x8xbf16>, vector<8x8xf32> -> vector<8x8xf32>
    %cst_91 = arith.constant 0.353553385 : f32
    %230 = vector.broadcast %cst_91 : f32 to vector<8x8xf32>
    %231 = arith.mulf %229, %230 : vector<8x8xf32>
    %cst_92 = arith.constant dense<0xFF800000> : vector<8xf32>
    %232 = vector.multi_reduction <maximumf>, %231, %cst_92 [1] : vector<8x8xf32> to vector<8xf32>
    %233 = vector.shape_cast %232 : vector<8xf32> to vector<8x1xf32>
    %234 = vector.broadcast %233 : vector<8x1xf32> to vector<8x8xf32>
    %235 = arith.subf %231, %234 : vector<8x8xf32>
    %236 = math.exp %235 : vector<8x8xf32>
    %cst_93 = arith.constant dense<0.000000e+00> : vector<8xf32>
    %237 = vector.multi_reduction <add>, %236, %cst_93 [1] : vector<8x8xf32> to vector<8xf32>
    %238 = vector.shape_cast %237 : vector<8xf32> to vector<8x1xf32>
    %239 = vector.broadcast %238 : vector<8x1xf32> to vector<8x8xf32>
    %240 = arith.divf %236, %239 : vector<8x8xf32>
    %241 = arith.truncf %240 : vector<8x8xf32> to vector<8x8xbf16>
    %cst_94 = arith.constant dense<0.000000e+00> : vector<8x8xf32>
    %242 = tpu.matmul %241, %228, %cst_94 {dimension_numbers = #tpu.dot_dimension_numbers<[1], [0], [0], [1], [0, 0, 1, 1], [], []>} : vector<8x8xbf16>, vector<8x8xbf16>, vector<8x8xf32> -> vector<8x8xf32>
    %243 = vector.extract_strided_slice %180 {offsets = [0, 24], sizes = [8, 8], strides = [1, 1]} : vector<8x32xf32> to vector<8x8xf32>
    %244 = arith.truncf %243 : vector<8x8xf32> to vector<8x8xbf16>
    %245 = vector.extract_strided_slice %181 {offsets = [0, 24], sizes = [8, 8], strides = [1, 1]} : vector<8x32xf32> to vector<8x8xf32>
    %246 = arith.truncf %245 : vector<8x8xf32> to vector<8x8xbf16>
    %247 = vector.extract_strided_slice %182 {offsets = [0, 24], sizes = [8, 8], strides = [1, 1]} : vector<8x32xf32> to vector<8x8xf32>
    %248 = arith.truncf %247 : vector<8x8xf32> to vector<8x8xbf16>
    %cst_95 = arith.constant dense<0.000000e+00> : vector<8x8xf32>
    %249 = tpu.matmul %244, %246, %cst_95 {dimension_numbers = #tpu.dot_dimension_numbers<[1], [1], [0], [0], [0, 0, 1, 0], [], []>} : vector<8x8xbf16>, vector<8x8xbf16>, vector<8x8xf32> -> vector<8x8xf32>
    %cst_96 = arith.constant 0.353553385 : f32
    %250 = vector.broadcast %cst_96 : f32 to vector<8x8xf32>
    %251 = arith.mulf %249, %250 : vector<8x8xf32>
    %cst_97 = arith.constant dense<0xFF800000> : vector<8xf32>
    %252 = vector.multi_reduction <maximumf>, %251, %cst_97 [1] : vector<8x8xf32> to vector<8xf32>
    %253 = vector.shape_cast %252 : vector<8xf32> to vector<8x1xf32>
    %254 = vector.broadcast %253 : vector<8x1xf32> to vector<8x8xf32>
    %255 = arith.subf %251, %254 : vector<8x8xf32>
    %256 = math.exp %255 : vector<8x8xf32>
    %cst_98 = arith.constant dense<0.000000e+00> : vector<8xf32>
    %257 = vector.multi_reduction <add>, %256, %cst_98 [1] : vector<8x8xf32> to vector<8xf32>
    %258 = vector.shape_cast %257 : vector<8xf32> to vector<8x1xf32>
    %259 = vector.broadcast %258 : vector<8x1xf32> to vector<8x8xf32>
    %260 = arith.divf %256, %259 : vector<8x8xf32>
    %261 = arith.truncf %260 : vector<8x8xf32> to vector<8x8xbf16>
    %cst_99 = arith.constant dense<0.000000e+00> : vector<8x8xf32>
    %262 = tpu.matmul %261, %248, %cst_99 {dimension_numbers = #tpu.dot_dimension_numbers<[1], [0], [0], [1], [0, 0, 1, 1], [], []>} : vector<8x8xbf16>, vector<8x8xbf16>, vector<8x8xf32> -> vector<8x8xf32>
    %263 = tpu.concatenate %202, %222, %242, %262 in 1 : vector<8x8xf32>, vector<8x8xf32>, vector<8x8xf32>, vector<8x8xf32> -> vector<8x32xf32>
    %c1_100 = arith.constant 1 : index
    %c0_101 = arith.constant 0 : index
    %c0_102 = arith.constant 0 : index
    %264 = vector.load %arg7[%c1_100, %c0_101, %c0_102] : memref<2x32x32xbf16, #tpu.memory_space<vmem>>, vector<1x32x32xbf16>
    %265 = vector.shape_cast %264 : vector<1x32x32xbf16> to vector<32x32xbf16>
    %c1_103 = arith.constant 1 : index
    %c0_104 = arith.constant 0 : index
    %c0_105 = arith.constant 0 : index
    %266 = vector.load %arg8[%c1_103, %c0_104, %c0_105] : memref<2x1x32xf32, #tpu.memory_space<vmem>>, vector<1x1x32xf32>
    %267 = vector.shape_cast %266 : vector<1x1x32xf32> to vector<1x32xf32>
    %268 = arith.truncf %263 : vector<8x32xf32> to vector<8x32xbf16>
    %cst_106 = arith.constant dense<0.000000e+00> : vector<8x32xf32>
    %269 = tpu.matmul %268, %265, %cst_106 {dimension_numbers = #tpu.dot_dimension_numbers<[1], [0], [0], [1], [0, 0, 1, 1], [], []>} : vector<8x32xbf16>, vector<32x32xbf16>, vector<8x32xf32> -> vector<8x32xf32>
    %270 = vector.broadcast %267 : vector<1x32xf32> to vector<8x32xf32>
    %271 = arith.addf %269, %270 : vector<8x32xf32>
    %272 = arith.addf %171, %271 : vector<8x32xf32>
    %c1_107 = arith.constant 1 : index
    %c0_108 = arith.constant 0 : index
    %c0_109 = arith.constant 0 : index
    %273 = vector.load %arg9[%c1_107, %c0_108, %c0_109] : memref<2x1x32xf32, #tpu.memory_space<vmem>>, vector<1x1x32xf32>
    %274 = vector.shape_cast %273 : vector<1x1x32xf32> to vector<1x32xf32>
    %c1_110 = arith.constant 1 : index
    %c0_111 = arith.constant 0 : index
    %c0_112 = arith.constant 0 : index
    %275 = vector.load %arg10[%c1_110, %c0_111, %c0_112] : memref<2x1x32xf32, #tpu.memory_space<vmem>>, vector<1x1x32xf32>
    %276 = vector.shape_cast %275 : vector<1x1x32xf32> to vector<1x32xf32>
    %cst_113 = arith.constant dense<0.000000e+00> : vector<8xf32>
    %277 = vector.multi_reduction <add>, %272, %cst_113 [1] : vector<8x32xf32> to vector<8xf32>
    %278 = vector.shape_cast %277 : vector<8xf32> to vector<8x1xf32>
    %cst_114 = arith.constant 3.200000e+01 : f32
    %279 = vector.broadcast %cst_114 : f32 to vector<8x1xf32>
    %280 = arith.divf %278, %279 : vector<8x1xf32>
    %281 = vector.broadcast %280 : vector<8x1xf32> to vector<8x32xf32>
    %282 = arith.subf %272, %281 : vector<8x32xf32>
    %283 = arith.mulf %282, %282 : vector<8x32xf32>
    %cst_115 = arith.constant dense<0.000000e+00> : vector<8xf32>
    %284 = vector.multi_reduction <add>, %283, %cst_115 [1] : vector<8x32xf32> to vector<8xf32>
    %285 = vector.shape_cast %284 : vector<8xf32> to vector<8x1xf32>
    %cst_116 = arith.constant 3.200000e+01 : f32
    %286 = vector.broadcast %cst_116 : f32 to vector<8x1xf32>
    %287 = arith.divf %285, %286 : vector<8x1xf32>
    %cst_117 = arith.constant 9.99999974E-6 : f32
    %288 = vector.broadcast %cst_117 : f32 to vector<8x1xf32>
    %289 = arith.addf %287, %288 : vector<8x1xf32>
    %290 = math.rsqrt %289 : vector<8x1xf32>
    %291 = vector.broadcast %290 : vector<8x1xf32> to vector<8x32xf32>
    %292 = arith.mulf %282, %291 : vector<8x32xf32>
    %293 = vector.broadcast %274 : vector<1x32xf32> to vector<8x32xf32>
    %294 = arith.mulf %292, %293 : vector<8x32xf32>
    %295 = vector.broadcast %276 : vector<1x32xf32> to vector<8x32xf32>
    %296 = arith.addf %294, %295 : vector<8x32xf32>
    %c1_118 = arith.constant 1 : index
    %c0_119 = arith.constant 0 : index
    %c0_120 = arith.constant 0 : index
    %297 = vector.load %arg11[%c1_118, %c0_119, %c0_120] : memref<2x32x2048xbf16, #tpu.memory_space<vmem>>, vector<1x32x2048xbf16>
    %298 = vector.shape_cast %297 : vector<1x32x2048xbf16> to vector<32x2048xbf16>
    %c1_121 = arith.constant 1 : index
    %c0_122 = arith.constant 0 : index
    %c0_123 = arith.constant 0 : index
    %299 = vector.load %arg12[%c1_121, %c0_122, %c0_123] : memref<2x1x2048xf32, #tpu.memory_space<vmem>>, vector<1x1x2048xf32>
    %300 = vector.shape_cast %299 : vector<1x1x2048xf32> to vector<1x2048xf32>
    %301 = arith.truncf %296 : vector<8x32xf32> to vector<8x32xbf16>
    %cst_124 = arith.constant dense<0.000000e+00> : vector<8x2048xf32>
    %302 = tpu.matmul %301, %298, %cst_124 {dimension_numbers = #tpu.dot_dimension_numbers<[1], [0], [0], [1], [0, 0, 1, 1], [], []>} : vector<8x32xbf16>, vector<32x2048xbf16>, vector<8x2048xf32> -> vector<8x2048xf32>
    %303 = vector.broadcast %300 : vector<1x2048xf32> to vector<8x2048xf32>
    %304 = arith.addf %302, %303 : vector<8x2048xf32>
    %cst_125 = arith.constant 0.000000e+00 : f32
    %305 = vector.broadcast %cst_125 : f32 to vector<8x2048xf32>
    %306 = arith.maximumf %304, %305 : vector<8x2048xf32>
    %c1_126 = arith.constant 1 : index
    %c0_127 = arith.constant 0 : index
    %c0_128 = arith.constant 0 : index
    %307 = vector.load %arg13[%c1_126, %c0_127, %c0_128] : memref<2x2048x32xbf16, #tpu.memory_space<vmem>>, vector<1x2048x32xbf16>
    %308 = vector.shape_cast %307 : vector<1x2048x32xbf16> to vector<2048x32xbf16>
    %c1_129 = arith.constant 1 : index
    %c0_130 = arith.constant 0 : index
    %c0_131 = arith.constant 0 : index
    %309 = vector.load %arg14[%c1_129, %c0_130, %c0_131] : memref<2x1x32xf32, #tpu.memory_space<vmem>>, vector<1x1x32xf32>
    %310 = vector.shape_cast %309 : vector<1x1x32xf32> to vector<1x32xf32>
    %311 = arith.truncf %306 : vector<8x2048xf32> to vector<8x2048xbf16>
    %cst_132 = arith.constant dense<0.000000e+00> : vector<8x32xf32>
    %312 = tpu.matmul %311, %308, %cst_132 {dimension_numbers = #tpu.dot_dimension_numbers<[1], [0], [0], [1], [0, 0, 1, 1], [], []>} : vector<8x2048xbf16>, vector<2048x32xbf16>, vector<8x32xf32> -> vector<8x32xf32>
    %313 = vector.broadcast %310 : vector<1x32xf32> to vector<8x32xf32>
    %314 = arith.addf %312, %313 : vector<8x32xf32>
    %315 = arith.addf %296, %314 : vector<8x32xf32>
    %c1_133 = arith.constant 1 : index
    %c0_134 = arith.constant 0 : index
    %c0_135 = arith.constant 0 : index
    %316 = vector.load %arg15[%c1_133, %c0_134, %c0_135] : memref<2x1x32xf32, #tpu.memory_space<vmem>>, vector<1x1x32xf32>
    %317 = vector.shape_cast %316 : vector<1x1x32xf32> to vector<1x32xf32>
    %c1_136 = arith.constant 1 : index
    %c0_137 = arith.constant 0 : index
    %c0_138 = arith.constant 0 : index
    %318 = vector.load %arg16[%c1_136, %c0_137, %c0_138] : memref<2x1x32xf32, #tpu.memory_space<vmem>>, vector<1x1x32xf32>
    %319 = vector.shape_cast %318 : vector<1x1x32xf32> to vector<1x32xf32>
    %cst_139 = arith.constant dense<0.000000e+00> : vector<8xf32>
    %320 = vector.multi_reduction <add>, %315, %cst_139 [1] : vector<8x32xf32> to vector<8xf32>
    %321 = vector.shape_cast %320 : vector<8xf32> to vector<8x1xf32>
    %cst_140 = arith.constant 3.200000e+01 : f32
    %322 = vector.broadcast %cst_140 : f32 to vector<8x1xf32>
    %323 = arith.divf %321, %322 : vector<8x1xf32>
    %324 = vector.broadcast %323 : vector<8x1xf32> to vector<8x32xf32>
    %325 = arith.subf %315, %324 : vector<8x32xf32>
    %326 = arith.mulf %325, %325 : vector<8x32xf32>
    %cst_141 = arith.constant dense<0.000000e+00> : vector<8xf32>
    %327 = vector.multi_reduction <add>, %326, %cst_141 [1] : vector<8x32xf32> to vector<8xf32>
    %328 = vector.shape_cast %327 : vector<8xf32> to vector<8x1xf32>
    %cst_142 = arith.constant 3.200000e+01 : f32
    %329 = vector.broadcast %cst_142 : f32 to vector<8x1xf32>
    %330 = arith.divf %328, %329 : vector<8x1xf32>
    %cst_143 = arith.constant 9.99999974E-6 : f32
    %331 = vector.broadcast %cst_143 : f32 to vector<8x1xf32>
    %332 = arith.addf %330, %331 : vector<8x1xf32>
    %333 = math.rsqrt %332 : vector<8x1xf32>
    %334 = vector.broadcast %333 : vector<8x1xf32> to vector<8x32xf32>
    %335 = arith.mulf %325, %334 : vector<8x32xf32>
    %336 = vector.broadcast %317 : vector<1x32xf32> to vector<8x32xf32>
    %337 = arith.mulf %335, %336 : vector<8x32xf32>
    %338 = vector.broadcast %319 : vector<1x32xf32> to vector<8x32xf32>
    %339 = arith.addf %337, %338 : vector<8x32xf32>
    %c0_144 = arith.constant 0 : index
    %c0_145 = arith.constant 0 : index
    %340 = vector.load %arg17[%c0_144, %c0_145] : memref<1x32xf32, #tpu.memory_space<vmem>>, vector<1x32xf32>
    %c0_146 = arith.constant 0 : index
    %c0_147 = arith.constant 0 : index
    %341 = vector.load %arg18[%c0_146, %c0_147] : memref<1x32xf32, #tpu.memory_space<vmem>>, vector<1x32xf32>
    %cst_148 = arith.constant dense<0.000000e+00> : vector<8xf32>
    %342 = vector.multi_reduction <add>, %339, %cst_148 [1] : vector<8x32xf32> to vector<8xf32>
    %343 = vector.shape_cast %342 : vector<8xf32> to vector<8x1xf32>
    %cst_149 = arith.constant 3.200000e+01 : f32
    %344 = vector.broadcast %cst_149 : f32 to vector<8x1xf32>
    %345 = arith.divf %343, %344 : vector<8x1xf32>
    %346 = vector.broadcast %345 : vector<8x1xf32> to vector<8x32xf32>
    %347 = arith.subf %339, %346 : vector<8x32xf32>
    %348 = arith.mulf %347, %347 : vector<8x32xf32>
    %cst_150 = arith.constant dense<0.000000e+00> : vector<8xf32>
    %349 = vector.multi_reduction <add>, %348, %cst_150 [1] : vector<8x32xf32> to vector<8xf32>
    %350 = vector.shape_cast %349 : vector<8xf32> to vector<8x1xf32>
    %cst_151 = arith.constant 3.200000e+01 : f32
    %351 = vector.broadcast %cst_151 : f32 to vector<8x1xf32>
    %352 = arith.divf %350, %351 : vector<8x1xf32>
    %cst_152 = arith.constant 9.99999974E-6 : f32
    %353 = vector.broadcast %cst_152 : f32 to vector<8x1xf32>
    %354 = arith.addf %352, %353 : vector<8x1xf32>
    %355 = math.rsqrt %354 : vector<8x1xf32>
    %356 = vector.broadcast %355 : vector<8x1xf32> to vector<8x32xf32>
    %357 = arith.mulf %347, %356 : vector<8x32xf32>
    %358 = vector.broadcast %340 : vector<1x32xf32> to vector<8x32xf32>
    %359 = arith.mulf %357, %358 : vector<8x32xf32>
    %360 = vector.broadcast %341 : vector<1x32xf32> to vector<8x32xf32>
    %361 = arith.addf %359, %360 : vector<8x32xf32>
    %c0_153 = arith.constant 0 : index
    %c0_154 = arith.constant 0 : index
    %c0_155 = arith.constant 0 : index
    %362 = vector.load %arg2[%c0_153, %c0_154, %c0_155] : memref<1x8x32xf32, #tpu.memory_space<vmem>>, vector<1x8x32xf32>
    %363 = vector.shape_cast %362 : vector<1x8x32xf32> to vector<8x32xf32>
    %c0_156 = arith.constant 0 : index
    %c0_157 = arith.constant 0 : index
    %364 = vector.load %arg4[%c0_156, %c0_157] : memref<8x32xf32, #tpu.memory_space<vmem>>, vector<8x32xf32>
    %365 = arith.addf %363, %364 : vector<8x32xf32>
    %366 = tpu.iota {dimensions = array<i32: 0>} : vector<8x8xi32>
    %367 = tpu.iota {dimensions = array<i32: 1>} : vector<8x8xi32>
    %368 = arith.cmpi sgt, %367, %366 : vector<8x8xi32>
    %cst_158 = arith.constant -1.000000e+30 : f32
    %cst_159 = arith.constant 0.000000e+00 : f32
    %369 = vector.broadcast %cst_158 : f32 to vector<8x8xf32>
    %370 = vector.broadcast %cst_159 : f32 to vector<8x8xf32>
    %371 = arith.select %368, %369, %370 : vector<8x8xi1>, vector<8x8xf32>
    %c0_160 = arith.constant 0 : index
    %c0_161 = arith.constant 0 : index
    %c0_162 = arith.constant 0 : index
    %372 = vector.load %arg19[%c0_160, %c0_161, %c0_162] : memref<2x32x96xbf16, #tpu.memory_space<vmem>>, vector<1x32x96xbf16>
    %373 = vector.shape_cast %372 : vector<1x32x96xbf16> to vector<32x96xbf16>
    %c0_163 = arith.constant 0 : index
    %c0_164 = arith.constant 0 : index
    %c0_165 = arith.constant 0 : index
    %374 = vector.load %arg20[%c0_163, %c0_164, %c0_165] : memref<2x1x96xf32, #tpu.memory_space<vmem>>, vector<1x1x96xf32>
    %375 = vector.shape_cast %374 : vector<1x1x96xf32> to vector<1x96xf32>
    %376 = arith.truncf %365 : vector<8x32xf32> to vector<8x32xbf16>
    %cst_166 = arith.constant dense<0.000000e+00> : vector<8x96xf32>
    %377 = tpu.matmul %376, %373, %cst_166 {dimension_numbers = #tpu.dot_dimension_numbers<[1], [0], [0], [1], [0, 0, 1, 1], [], []>} : vector<8x32xbf16>, vector<32x96xbf16>, vector<8x96xf32> -> vector<8x96xf32>
    %378 = vector.broadcast %375 : vector<1x96xf32> to vector<8x96xf32>
    %379 = arith.addf %377, %378 : vector<8x96xf32>
    %380 = vector.extract_strided_slice %379 {offsets = [0, 0], sizes = [8, 32], strides = [1, 1]} : vector<8x96xf32> to vector<8x32xf32>
    %381 = vector.extract_strided_slice %379 {offsets = [0, 32], sizes = [8, 32], strides = [1, 1]} : vector<8x96xf32> to vector<8x32xf32>
    %382 = vector.extract_strided_slice %379 {offsets = [0, 64], sizes = [8, 32], strides = [1, 1]} : vector<8x96xf32> to vector<8x32xf32>
    %383 = vector.extract_strided_slice %380 {offsets = [0, 0], sizes = [8, 8], strides = [1, 1]} : vector<8x32xf32> to vector<8x8xf32>
    %384 = arith.truncf %383 : vector<8x8xf32> to vector<8x8xbf16>
    %385 = vector.extract_strided_slice %381 {offsets = [0, 0], sizes = [8, 8], strides = [1, 1]} : vector<8x32xf32> to vector<8x8xf32>
    %386 = arith.truncf %385 : vector<8x8xf32> to vector<8x8xbf16>
    %387 = vector.extract_strided_slice %382 {offsets = [0, 0], sizes = [8, 8], strides = [1, 1]} : vector<8x32xf32> to vector<8x8xf32>
    %388 = arith.truncf %387 : vector<8x8xf32> to vector<8x8xbf16>
    %cst_167 = arith.constant dense<0.000000e+00> : vector<8x8xf32>
    %389 = tpu.matmul %384, %386, %cst_167 {dimension_numbers = #tpu.dot_dimension_numbers<[1], [1], [0], [0], [0, 0, 1, 0], [], []>} : vector<8x8xbf16>, vector<8x8xbf16>, vector<8x8xf32> -> vector<8x8xf32>
    %cst_168 = arith.constant 0.353553385 : f32
    %390 = vector.broadcast %cst_168 : f32 to vector<8x8xf32>
    %391 = arith.mulf %389, %390 : vector<8x8xf32>
    %392 = arith.addf %391, %371 : vector<8x8xf32>
    %cst_169 = arith.constant dense<0xFF800000> : vector<8xf32>
    %393 = vector.multi_reduction <maximumf>, %392, %cst_169 [1] : vector<8x8xf32> to vector<8xf32>
    %394 = vector.shape_cast %393 : vector<8xf32> to vector<8x1xf32>
    %395 = vector.broadcast %394 : vector<8x1xf32> to vector<8x8xf32>
    %396 = arith.subf %392, %395 : vector<8x8xf32>
    %397 = math.exp %396 : vector<8x8xf32>
    %cst_170 = arith.constant dense<0.000000e+00> : vector<8xf32>
    %398 = vector.multi_reduction <add>, %397, %cst_170 [1] : vector<8x8xf32> to vector<8xf32>
    %399 = vector.shape_cast %398 : vector<8xf32> to vector<8x1xf32>
    %400 = vector.broadcast %399 : vector<8x1xf32> to vector<8x8xf32>
    %401 = arith.divf %397, %400 : vector<8x8xf32>
    %402 = arith.truncf %401 : vector<8x8xf32> to vector<8x8xbf16>
    %cst_171 = arith.constant dense<0.000000e+00> : vector<8x8xf32>
    %403 = tpu.matmul %402, %388, %cst_171 {dimension_numbers = #tpu.dot_dimension_numbers<[1], [0], [0], [1], [0, 0, 1, 1], [], []>} : vector<8x8xbf16>, vector<8x8xbf16>, vector<8x8xf32> -> vector<8x8xf32>
    %404 = vector.extract_strided_slice %380 {offsets = [0, 8], sizes = [8, 8], strides = [1, 1]} : vector<8x32xf32> to vector<8x8xf32>
    %405 = arith.truncf %404 : vector<8x8xf32> to vector<8x8xbf16>
    %406 = vector.extract_strided_slice %381 {offsets = [0, 8], sizes = [8, 8], strides = [1, 1]} : vector<8x32xf32> to vector<8x8xf32>
    %407 = arith.truncf %406 : vector<8x8xf32> to vector<8x8xbf16>
    %408 = vector.extract_strided_slice %382 {offsets = [0, 8], sizes = [8, 8], strides = [1, 1]} : vector<8x32xf32> to vector<8x8xf32>
    %409 = arith.truncf %408 : vector<8x8xf32> to vector<8x8xbf16>
    %cst_172 = arith.constant dense<0.000000e+00> : vector<8x8xf32>
    %410 = tpu.matmul %405, %407, %cst_172 {dimension_numbers = #tpu.dot_dimension_numbers<[1], [1], [0], [0], [0, 0, 1, 0], [], []>} : vector<8x8xbf16>, vector<8x8xbf16>, vector<8x8xf32> -> vector<8x8xf32>
    %cst_173 = arith.constant 0.353553385 : f32
    %411 = vector.broadcast %cst_173 : f32 to vector<8x8xf32>
    %412 = arith.mulf %410, %411 : vector<8x8xf32>
    %413 = arith.addf %412, %371 : vector<8x8xf32>
    %cst_174 = arith.constant dense<0xFF800000> : vector<8xf32>
    %414 = vector.multi_reduction <maximumf>, %413, %cst_174 [1] : vector<8x8xf32> to vector<8xf32>
    %415 = vector.shape_cast %414 : vector<8xf32> to vector<8x1xf32>
    %416 = vector.broadcast %415 : vector<8x1xf32> to vector<8x8xf32>
    %417 = arith.subf %413, %416 : vector<8x8xf32>
    %418 = math.exp %417 : vector<8x8xf32>
    %cst_175 = arith.constant dense<0.000000e+00> : vector<8xf32>
    %419 = vector.multi_reduction <add>, %418, %cst_175 [1] : vector<8x8xf32> to vector<8xf32>
    %420 = vector.shape_cast %419 : vector<8xf32> to vector<8x1xf32>
    %421 = vector.broadcast %420 : vector<8x1xf32> to vector<8x8xf32>
    %422 = arith.divf %418, %421 : vector<8x8xf32>
    %423 = arith.truncf %422 : vector<8x8xf32> to vector<8x8xbf16>
    %cst_176 = arith.constant dense<0.000000e+00> : vector<8x8xf32>
    %424 = tpu.matmul %423, %409, %cst_176 {dimension_numbers = #tpu.dot_dimension_numbers<[1], [0], [0], [1], [0, 0, 1, 1], [], []>} : vector<8x8xbf16>, vector<8x8xbf16>, vector<8x8xf32> -> vector<8x8xf32>
    %425 = vector.extract_strided_slice %380 {offsets = [0, 16], sizes = [8, 8], strides = [1, 1]} : vector<8x32xf32> to vector<8x8xf32>
    %426 = arith.truncf %425 : vector<8x8xf32> to vector<8x8xbf16>
    %427 = vector.extract_strided_slice %381 {offsets = [0, 16], sizes = [8, 8], strides = [1, 1]} : vector<8x32xf32> to vector<8x8xf32>
    %428 = arith.truncf %427 : vector<8x8xf32> to vector<8x8xbf16>
    %429 = vector.extract_strided_slice %382 {offsets = [0, 16], sizes = [8, 8], strides = [1, 1]} : vector<8x32xf32> to vector<8x8xf32>
    %430 = arith.truncf %429 : vector<8x8xf32> to vector<8x8xbf16>
    %cst_177 = arith.constant dense<0.000000e+00> : vector<8x8xf32>
    %431 = tpu.matmul %426, %428, %cst_177 {dimension_numbers = #tpu.dot_dimension_numbers<[1], [1], [0], [0], [0, 0, 1, 0], [], []>} : vector<8x8xbf16>, vector<8x8xbf16>, vector<8x8xf32> -> vector<8x8xf32>
    %cst_178 = arith.constant 0.353553385 : f32
    %432 = vector.broadcast %cst_178 : f32 to vector<8x8xf32>
    %433 = arith.mulf %431, %432 : vector<8x8xf32>
    %434 = arith.addf %433, %371 : vector<8x8xf32>
    %cst_179 = arith.constant dense<0xFF800000> : vector<8xf32>
    %435 = vector.multi_reduction <maximumf>, %434, %cst_179 [1] : vector<8x8xf32> to vector<8xf32>
    %436 = vector.shape_cast %435 : vector<8xf32> to vector<8x1xf32>
    %437 = vector.broadcast %436 : vector<8x1xf32> to vector<8x8xf32>
    %438 = arith.subf %434, %437 : vector<8x8xf32>
    %439 = math.exp %438 : vector<8x8xf32>
    %cst_180 = arith.constant dense<0.000000e+00> : vector<8xf32>
    %440 = vector.multi_reduction <add>, %439, %cst_180 [1] : vector<8x8xf32> to vector<8xf32>
    %441 = vector.shape_cast %440 : vector<8xf32> to vector<8x1xf32>
    %442 = vector.broadcast %441 : vector<8x1xf32> to vector<8x8xf32>
    %443 = arith.divf %439, %442 : vector<8x8xf32>
    %444 = arith.truncf %443 : vector<8x8xf32> to vector<8x8xbf16>
    %cst_181 = arith.constant dense<0.000000e+00> : vector<8x8xf32>
    %445 = tpu.matmul %444, %430, %cst_181 {dimension_numbers = #tpu.dot_dimension_numbers<[1], [0], [0], [1], [0, 0, 1, 1], [], []>} : vector<8x8xbf16>, vector<8x8xbf16>, vector<8x8xf32> -> vector<8x8xf32>
    %446 = vector.extract_strided_slice %380 {offsets = [0, 24], sizes = [8, 8], strides = [1, 1]} : vector<8x32xf32> to vector<8x8xf32>
    %447 = arith.truncf %446 : vector<8x8xf32> to vector<8x8xbf16>
    %448 = vector.extract_strided_slice %381 {offsets = [0, 24], sizes = [8, 8], strides = [1, 1]} : vector<8x32xf32> to vector<8x8xf32>
    %449 = arith.truncf %448 : vector<8x8xf32> to vector<8x8xbf16>
    %450 = vector.extract_strided_slice %382 {offsets = [0, 24], sizes = [8, 8], strides = [1, 1]} : vector<8x32xf32> to vector<8x8xf32>
    %451 = arith.truncf %450 : vector<8x8xf32> to vector<8x8xbf16>
    %cst_182 = arith.constant dense<0.000000e+00> : vector<8x8xf32>
    %452 = tpu.matmul %447, %449, %cst_182 {dimension_numbers = #tpu.dot_dimension_numbers<[1], [1], [0], [0], [0, 0, 1, 0], [], []>} : vector<8x8xbf16>, vector<8x8xbf16>, vector<8x8xf32> -> vector<8x8xf32>
    %cst_183 = arith.constant 0.353553385 : f32
    %453 = vector.broadcast %cst_183 : f32 to vector<8x8xf32>
    %454 = arith.mulf %452, %453 : vector<8x8xf32>
    %455 = arith.addf %454, %371 : vector<8x8xf32>
    %cst_184 = arith.constant dense<0xFF800000> : vector<8xf32>
    %456 = vector.multi_reduction <maximumf>, %455, %cst_184 [1] : vector<8x8xf32> to vector<8xf32>
    %457 = vector.shape_cast %456 : vector<8xf32> to vector<8x1xf32>
    %458 = vector.broadcast %457 : vector<8x1xf32> to vector<8x8xf32>
    %459 = arith.subf %455, %458 : vector<8x8xf32>
    %460 = math.exp %459 : vector<8x8xf32>
    %cst_185 = arith.constant dense<0.000000e+00> : vector<8xf32>
    %461 = vector.multi_reduction <add>, %460, %cst_185 [1] : vector<8x8xf32> to vector<8xf32>
    %462 = vector.shape_cast %461 : vector<8xf32> to vector<8x1xf32>
    %463 = vector.broadcast %462 : vector<8x1xf32> to vector<8x8xf32>
    %464 = arith.divf %460, %463 : vector<8x8xf32>
    %465 = arith.truncf %464 : vector<8x8xf32> to vector<8x8xbf16>
    %cst_186 = arith.constant dense<0.000000e+00> : vector<8x8xf32>
    %466 = tpu.matmul %465, %451, %cst_186 {dimension_numbers = #tpu.dot_dimension_numbers<[1], [0], [0], [1], [0, 0, 1, 1], [], []>} : vector<8x8xbf16>, vector<8x8xbf16>, vector<8x8xf32> -> vector<8x8xf32>
    %467 = tpu.concatenate %403, %424, %445, %466 in 1 : vector<8x8xf32>, vector<8x8xf32>, vector<8x8xf32>, vector<8x8xf32> -> vector<8x32xf32>
    %c0_187 = arith.constant 0 : index
    %c0_188 = arith.constant 0 : index
    %c0_189 = arith.constant 0 : index
    %468 = vector.load %arg21[%c0_187, %c0_188, %c0_189] : memref<2x32x32xbf16, #tpu.memory_space<vmem>>, vector<1x32x32xbf16>
    %469 = vector.shape_cast %468 : vector<1x32x32xbf16> to vector<32x32xbf16>
    %c0_190 = arith.constant 0 : index
    %c0_191 = arith.constant 0 : index
    %c0_192 = arith.constant 0 : index
    %470 = vector.load %arg22[%c0_190, %c0_191, %c0_192] : memref<2x1x32xf32, #tpu.memory_space<vmem>>, vector<1x1x32xf32>
    %471 = vector.shape_cast %470 : vector<1x1x32xf32> to vector<1x32xf32>
    %472 = arith.truncf %467 : vector<8x32xf32> to vector<8x32xbf16>
    %cst_193 = arith.constant dense<0.000000e+00> : vector<8x32xf32>
    %473 = tpu.matmul %472, %469, %cst_193 {dimension_numbers = #tpu.dot_dimension_numbers<[1], [0], [0], [1], [0, 0, 1, 1], [], []>} : vector<8x32xbf16>, vector<32x32xbf16>, vector<8x32xf32> -> vector<8x32xf32>
    %474 = vector.broadcast %471 : vector<1x32xf32> to vector<8x32xf32>
    %475 = arith.addf %473, %474 : vector<8x32xf32>
    %476 = arith.addf %365, %475 : vector<8x32xf32>
    %c0_194 = arith.constant 0 : index
    %c0_195 = arith.constant 0 : index
    %c0_196 = arith.constant 0 : index
    %477 = vector.load %arg23[%c0_194, %c0_195, %c0_196] : memref<2x1x32xf32, #tpu.memory_space<vmem>>, vector<1x1x32xf32>
    %478 = vector.shape_cast %477 : vector<1x1x32xf32> to vector<1x32xf32>
    %c0_197 = arith.constant 0 : index
    %c0_198 = arith.constant 0 : index
    %c0_199 = arith.constant 0 : index
    %479 = vector.load %arg24[%c0_197, %c0_198, %c0_199] : memref<2x1x32xf32, #tpu.memory_space<vmem>>, vector<1x1x32xf32>
    %480 = vector.shape_cast %479 : vector<1x1x32xf32> to vector<1x32xf32>
    %cst_200 = arith.constant dense<0.000000e+00> : vector<8xf32>
    %481 = vector.multi_reduction <add>, %476, %cst_200 [1] : vector<8x32xf32> to vector<8xf32>
    %482 = vector.shape_cast %481 : vector<8xf32> to vector<8x1xf32>
    %cst_201 = arith.constant 3.200000e+01 : f32
    %483 = vector.broadcast %cst_201 : f32 to vector<8x1xf32>
    %484 = arith.divf %482, %483 : vector<8x1xf32>
    %485 = vector.broadcast %484 : vector<8x1xf32> to vector<8x32xf32>
    %486 = arith.subf %476, %485 : vector<8x32xf32>
    %487 = arith.mulf %486, %486 : vector<8x32xf32>
    %cst_202 = arith.constant dense<0.000000e+00> : vector<8xf32>
    %488 = vector.multi_reduction <add>, %487, %cst_202 [1] : vector<8x32xf32> to vector<8xf32>
    %489 = vector.shape_cast %488 : vector<8xf32> to vector<8x1xf32>
    %cst_203 = arith.constant 3.200000e+01 : f32
    %490 = vector.broadcast %cst_203 : f32 to vector<8x1xf32>
    %491 = arith.divf %489, %490 : vector<8x1xf32>
    %cst_204 = arith.constant 9.99999974E-6 : f32
    %492 = vector.broadcast %cst_204 : f32 to vector<8x1xf32>
    %493 = arith.addf %491, %492 : vector<8x1xf32>
    %494 = math.rsqrt %493 : vector<8x1xf32>
    %495 = vector.broadcast %494 : vector<8x1xf32> to vector<8x32xf32>
    %496 = arith.mulf %486, %495 : vector<8x32xf32>
    %497 = vector.broadcast %478 : vector<1x32xf32> to vector<8x32xf32>
    %498 = arith.mulf %496, %497 : vector<8x32xf32>
    %499 = vector.broadcast %480 : vector<1x32xf32> to vector<8x32xf32>
    %500 = arith.addf %498, %499 : vector<8x32xf32>
    %c0_205 = arith.constant 0 : index
    %c0_206 = arith.constant 0 : index
    %c0_207 = arith.constant 0 : index
    %501 = vector.load %arg25[%c0_205, %c0_206, %c0_207] : memref<2x32x32xbf16, #tpu.memory_space<vmem>>, vector<1x32x32xbf16>
    %502 = vector.shape_cast %501 : vector<1x32x32xbf16> to vector<32x32xbf16>
    %c0_208 = arith.constant 0 : index
    %c0_209 = arith.constant 0 : index
    %c0_210 = arith.constant 0 : index
    %503 = vector.load %arg26[%c0_208, %c0_209, %c0_210] : memref<2x1x32xf32, #tpu.memory_space<vmem>>, vector<1x1x32xf32>
    %504 = vector.shape_cast %503 : vector<1x1x32xf32> to vector<1x32xf32>
    %505 = arith.truncf %500 : vector<8x32xf32> to vector<8x32xbf16>
    %cst_211 = arith.constant dense<0.000000e+00> : vector<8x32xf32>
    %506 = tpu.matmul %505, %502, %cst_211 {dimension_numbers = #tpu.dot_dimension_numbers<[1], [0], [0], [1], [0, 0, 1, 1], [], []>} : vector<8x32xbf16>, vector<32x32xbf16>, vector<8x32xf32> -> vector<8x32xf32>
    %507 = vector.broadcast %504 : vector<1x32xf32> to vector<8x32xf32>
    %508 = arith.addf %506, %507 : vector<8x32xf32>
    %c0_212 = arith.constant 0 : index
    %c0_213 = arith.constant 0 : index
    %c0_214 = arith.constant 0 : index
    %509 = vector.load %arg27[%c0_212, %c0_213, %c0_214] : memref<2x32x64xbf16, #tpu.memory_space<vmem>>, vector<1x32x64xbf16>
    %510 = vector.shape_cast %509 : vector<1x32x64xbf16> to vector<32x64xbf16>
    %c0_215 = arith.constant 0 : index
    %c0_216 = arith.constant 0 : index
    %c0_217 = arith.constant 0 : index
    %511 = vector.load %arg28[%c0_215, %c0_216, %c0_217] : memref<2x1x64xf32, #tpu.memory_space<vmem>>, vector<1x1x64xf32>
    %512 = vector.shape_cast %511 : vector<1x1x64xf32> to vector<1x64xf32>
    %513 = arith.truncf %361 : vector<8x32xf32> to vector<8x32xbf16>
    %cst_218 = arith.constant dense<0.000000e+00> : vector<8x64xf32>
    %514 = tpu.matmul %513, %510, %cst_218 {dimension_numbers = #tpu.dot_dimension_numbers<[1], [0], [0], [1], [0, 0, 1, 1], [], []>} : vector<8x32xbf16>, vector<32x64xbf16>, vector<8x64xf32> -> vector<8x64xf32>
    %515 = vector.broadcast %512 : vector<1x64xf32> to vector<8x64xf32>
    %516 = arith.addf %514, %515 : vector<8x64xf32>
    %517 = vector.extract_strided_slice %516 {offsets = [0, 0], sizes = [8, 32], strides = [1, 1]} : vector<8x64xf32> to vector<8x32xf32>
    %518 = vector.extract_strided_slice %516 {offsets = [0, 32], sizes = [8, 32], strides = [1, 1]} : vector<8x64xf32> to vector<8x32xf32>
    %519 = vector.extract_strided_slice %508 {offsets = [0, 0], sizes = [8, 8], strides = [1, 1]} : vector<8x32xf32> to vector<8x8xf32>
    %520 = arith.truncf %519 : vector<8x8xf32> to vector<8x8xbf16>
    %521 = vector.extract_strided_slice %517 {offsets = [0, 0], sizes = [8, 8], strides = [1, 1]} : vector<8x32xf32> to vector<8x8xf32>
    %522 = arith.truncf %521 : vector<8x8xf32> to vector<8x8xbf16>
    %523 = vector.extract_strided_slice %518 {offsets = [0, 0], sizes = [8, 8], strides = [1, 1]} : vector<8x32xf32> to vector<8x8xf32>
    %524 = arith.truncf %523 : vector<8x8xf32> to vector<8x8xbf16>
    %cst_219 = arith.constant dense<0.000000e+00> : vector<8x8xf32>
    %525 = tpu.matmul %520, %522, %cst_219 {dimension_numbers = #tpu.dot_dimension_numbers<[1], [1], [0], [0], [0, 0, 1, 0], [], []>} : vector<8x8xbf16>, vector<8x8xbf16>, vector<8x8xf32> -> vector<8x8xf32>
    %cst_220 = arith.constant 0.353553385 : f32
    %526 = vector.broadcast %cst_220 : f32 to vector<8x8xf32>
    %527 = arith.mulf %525, %526 : vector<8x8xf32>
    %cst_221 = arith.constant dense<0xFF800000> : vector<8xf32>
    %528 = vector.multi_reduction <maximumf>, %527, %cst_221 [1] : vector<8x8xf32> to vector<8xf32>
    %529 = vector.shape_cast %528 : vector<8xf32> to vector<8x1xf32>
    %530 = vector.broadcast %529 : vector<8x1xf32> to vector<8x8xf32>
    %531 = arith.subf %527, %530 : vector<8x8xf32>
    %532 = math.exp %531 : vector<8x8xf32>
    %cst_222 = arith.constant dense<0.000000e+00> : vector<8xf32>
    %533 = vector.multi_reduction <add>, %532, %cst_222 [1] : vector<8x8xf32> to vector<8xf32>
    %534 = vector.shape_cast %533 : vector<8xf32> to vector<8x1xf32>
    %535 = vector.broadcast %534 : vector<8x1xf32> to vector<8x8xf32>
    %536 = arith.divf %532, %535 : vector<8x8xf32>
    %537 = arith.truncf %536 : vector<8x8xf32> to vector<8x8xbf16>
    %cst_223 = arith.constant dense<0.000000e+00> : vector<8x8xf32>
    %538 = tpu.matmul %537, %524, %cst_223 {dimension_numbers = #tpu.dot_dimension_numbers<[1], [0], [0], [1], [0, 0, 1, 1], [], []>} : vector<8x8xbf16>, vector<8x8xbf16>, vector<8x8xf32> -> vector<8x8xf32>
    %539 = vector.extract_strided_slice %508 {offsets = [0, 8], sizes = [8, 8], strides = [1, 1]} : vector<8x32xf32> to vector<8x8xf32>
    %540 = arith.truncf %539 : vector<8x8xf32> to vector<8x8xbf16>
    %541 = vector.extract_strided_slice %517 {offsets = [0, 8], sizes = [8, 8], strides = [1, 1]} : vector<8x32xf32> to vector<8x8xf32>
    %542 = arith.truncf %541 : vector<8x8xf32> to vector<8x8xbf16>
    %543 = vector.extract_strided_slice %518 {offsets = [0, 8], sizes = [8, 8], strides = [1, 1]} : vector<8x32xf32> to vector<8x8xf32>
    %544 = arith.truncf %543 : vector<8x8xf32> to vector<8x8xbf16>
    %cst_224 = arith.constant dense<0.000000e+00> : vector<8x8xf32>
    %545 = tpu.matmul %540, %542, %cst_224 {dimension_numbers = #tpu.dot_dimension_numbers<[1], [1], [0], [0], [0, 0, 1, 0], [], []>} : vector<8x8xbf16>, vector<8x8xbf16>, vector<8x8xf32> -> vector<8x8xf32>
    %cst_225 = arith.constant 0.353553385 : f32
    %546 = vector.broadcast %cst_225 : f32 to vector<8x8xf32>
    %547 = arith.mulf %545, %546 : vector<8x8xf32>
    %cst_226 = arith.constant dense<0xFF800000> : vector<8xf32>
    %548 = vector.multi_reduction <maximumf>, %547, %cst_226 [1] : vector<8x8xf32> to vector<8xf32>
    %549 = vector.shape_cast %548 : vector<8xf32> to vector<8x1xf32>
    %550 = vector.broadcast %549 : vector<8x1xf32> to vector<8x8xf32>
    %551 = arith.subf %547, %550 : vector<8x8xf32>
    %552 = math.exp %551 : vector<8x8xf32>
    %cst_227 = arith.constant dense<0.000000e+00> : vector<8xf32>
    %553 = vector.multi_reduction <add>, %552, %cst_227 [1] : vector<8x8xf32> to vector<8xf32>
    %554 = vector.shape_cast %553 : vector<8xf32> to vector<8x1xf32>
    %555 = vector.broadcast %554 : vector<8x1xf32> to vector<8x8xf32>
    %556 = arith.divf %552, %555 : vector<8x8xf32>
    %557 = arith.truncf %556 : vector<8x8xf32> to vector<8x8xbf16>
    %cst_228 = arith.constant dense<0.000000e+00> : vector<8x8xf32>
    %558 = tpu.matmul %557, %544, %cst_228 {dimension_numbers = #tpu.dot_dimension_numbers<[1], [0], [0], [1], [0, 0, 1, 1], [], []>} : vector<8x8xbf16>, vector<8x8xbf16>, vector<8x8xf32> -> vector<8x8xf32>
    %559 = vector.extract_strided_slice %508 {offsets = [0, 16], sizes = [8, 8], strides = [1, 1]} : vector<8x32xf32> to vector<8x8xf32>
    %560 = arith.truncf %559 : vector<8x8xf32> to vector<8x8xbf16>
    %561 = vector.extract_strided_slice %517 {offsets = [0, 16], sizes = [8, 8], strides = [1, 1]} : vector<8x32xf32> to vector<8x8xf32>
    %562 = arith.truncf %561 : vector<8x8xf32> to vector<8x8xbf16>
    %563 = vector.extract_strided_slice %518 {offsets = [0, 16], sizes = [8, 8], strides = [1, 1]} : vector<8x32xf32> to vector<8x8xf32>
    %564 = arith.truncf %563 : vector<8x8xf32> to vector<8x8xbf16>
    %cst_229 = arith.constant dense<0.000000e+00> : vector<8x8xf32>
    %565 = tpu.matmul %560, %562, %cst_229 {dimension_numbers = #tpu.dot_dimension_numbers<[1], [1], [0], [0], [0, 0, 1, 0], [], []>} : vector<8x8xbf16>, vector<8x8xbf16>, vector<8x8xf32> -> vector<8x8xf32>
    %cst_230 = arith.constant 0.353553385 : f32
    %566 = vector.broadcast %cst_230 : f32 to vector<8x8xf32>
    %567 = arith.mulf %565, %566 : vector<8x8xf32>
    %cst_231 = arith.constant dense<0xFF800000> : vector<8xf32>
    %568 = vector.multi_reduction <maximumf>, %567, %cst_231 [1] : vector<8x8xf32> to vector<8xf32>
    %569 = vector.shape_cast %568 : vector<8xf32> to vector<8x1xf32>
    %570 = vector.broadcast %569 : vector<8x1xf32> to vector<8x8xf32>
    %571 = arith.subf %567, %570 : vector<8x8xf32>
    %572 = math.exp %571 : vector<8x8xf32>
    %cst_232 = arith.constant dense<0.000000e+00> : vector<8xf32>
    %573 = vector.multi_reduction <add>, %572, %cst_232 [1] : vector<8x8xf32> to vector<8xf32>
    %574 = vector.shape_cast %573 : vector<8xf32> to vector<8x1xf32>
    %575 = vector.broadcast %574 : vector<8x1xf32> to vector<8x8xf32>
    %576 = arith.divf %572, %575 : vector<8x8xf32>
    %577 = arith.truncf %576 : vector<8x8xf32> to vector<8x8xbf16>
    %cst_233 = arith.constant dense<0.000000e+00> : vector<8x8xf32>
    %578 = tpu.matmul %577, %564, %cst_233 {dimension_numbers = #tpu.dot_dimension_numbers<[1], [0], [0], [1], [0, 0, 1, 1], [], []>} : vector<8x8xbf16>, vector<8x8xbf16>, vector<8x8xf32> -> vector<8x8xf32>
    %579 = vector.extract_strided_slice %508 {offsets = [0, 24], sizes = [8, 8], strides = [1, 1]} : vector<8x32xf32> to vector<8x8xf32>
    %580 = arith.truncf %579 : vector<8x8xf32> to vector<8x8xbf16>
    %581 = vector.extract_strided_slice %517 {offsets = [0, 24], sizes = [8, 8], strides = [1, 1]} : vector<8x32xf32> to vector<8x8xf32>
    %582 = arith.truncf %581 : vector<8x8xf32> to vector<8x8xbf16>
    %583 = vector.extract_strided_slice %518 {offsets = [0, 24], sizes = [8, 8], strides = [1, 1]} : vector<8x32xf32> to vector<8x8xf32>
    %584 = arith.truncf %583 : vector<8x8xf32> to vector<8x8xbf16>
    %cst_234 = arith.constant dense<0.000000e+00> : vector<8x8xf32>
    %585 = tpu.matmul %580, %582, %cst_234 {dimension_numbers = #tpu.dot_dimension_numbers<[1], [1], [0], [0], [0, 0, 1, 0], [], []>} : vector<8x8xbf16>, vector<8x8xbf16>, vector<8x8xf32> -> vector<8x8xf32>
    %cst_235 = arith.constant 0.353553385 : f32
    %586 = vector.broadcast %cst_235 : f32 to vector<8x8xf32>
    %587 = arith.mulf %585, %586 : vector<8x8xf32>
    %cst_236 = arith.constant dense<0xFF800000> : vector<8xf32>
    %588 = vector.multi_reduction <maximumf>, %587, %cst_236 [1] : vector<8x8xf32> to vector<8xf32>
    %589 = vector.shape_cast %588 : vector<8xf32> to vector<8x1xf32>
    %590 = vector.broadcast %589 : vector<8x1xf32> to vector<8x8xf32>
    %591 = arith.subf %587, %590 : vector<8x8xf32>
    %592 = math.exp %591 : vector<8x8xf32>
    %cst_237 = arith.constant dense<0.000000e+00> : vector<8xf32>
    %593 = vector.multi_reduction <add>, %592, %cst_237 [1] : vector<8x8xf32> to vector<8xf32>
    %594 = vector.shape_cast %593 : vector<8xf32> to vector<8x1xf32>
    %595 = vector.broadcast %594 : vector<8x1xf32> to vector<8x8xf32>
    %596 = arith.divf %592, %595 : vector<8x8xf32>
    %597 = arith.truncf %596 : vector<8x8xf32> to vector<8x8xbf16>
    %cst_238 = arith.constant dense<0.000000e+00> : vector<8x8xf32>
    %598 = tpu.matmul %597, %584, %cst_238 {dimension_numbers = #tpu.dot_dimension_numbers<[1], [0], [0], [1], [0, 0, 1, 1], [], []>} : vector<8x8xbf16>, vector<8x8xbf16>, vector<8x8xf32> -> vector<8x8xf32>
    %599 = tpu.concatenate %538, %558, %578, %598 in 1 : vector<8x8xf32>, vector<8x8xf32>, vector<8x8xf32>, vector<8x8xf32> -> vector<8x32xf32>
    %c0_239 = arith.constant 0 : index
    %c0_240 = arith.constant 0 : index
    %c0_241 = arith.constant 0 : index
    %600 = vector.load %arg29[%c0_239, %c0_240, %c0_241] : memref<2x32x32xbf16, #tpu.memory_space<vmem>>, vector<1x32x32xbf16>
    %601 = vector.shape_cast %600 : vector<1x32x32xbf16> to vector<32x32xbf16>
    %c0_242 = arith.constant 0 : index
    %c0_243 = arith.constant 0 : index
    %c0_244 = arith.constant 0 : index
    %602 = vector.load %arg30[%c0_242, %c0_243, %c0_244] : memref<2x1x32xf32, #tpu.memory_space<vmem>>, vector<1x1x32xf32>
    %603 = vector.shape_cast %602 : vector<1x1x32xf32> to vector<1x32xf32>
    %604 = arith.truncf %599 : vector<8x32xf32> to vector<8x32xbf16>
    %cst_245 = arith.constant dense<0.000000e+00> : vector<8x32xf32>
    %605 = tpu.matmul %604, %601, %cst_245 {dimension_numbers = #tpu.dot_dimension_numbers<[1], [0], [0], [1], [0, 0, 1, 1], [], []>} : vector<8x32xbf16>, vector<32x32xbf16>, vector<8x32xf32> -> vector<8x32xf32>
    %606 = vector.broadcast %603 : vector<1x32xf32> to vector<8x32xf32>
    %607 = arith.addf %605, %606 : vector<8x32xf32>
    %608 = arith.addf %500, %607 : vector<8x32xf32>
    %c0_246 = arith.constant 0 : index
    %c0_247 = arith.constant 0 : index
    %c0_248 = arith.constant 0 : index
    %609 = vector.load %arg31[%c0_246, %c0_247, %c0_248] : memref<2x1x32xf32, #tpu.memory_space<vmem>>, vector<1x1x32xf32>
    %610 = vector.shape_cast %609 : vector<1x1x32xf32> to vector<1x32xf32>
    %c0_249 = arith.constant 0 : index
    %c0_250 = arith.constant 0 : index
    %c0_251 = arith.constant 0 : index
    %611 = vector.load %arg32[%c0_249, %c0_250, %c0_251] : memref<2x1x32xf32, #tpu.memory_space<vmem>>, vector<1x1x32xf32>
    %612 = vector.shape_cast %611 : vector<1x1x32xf32> to vector<1x32xf32>
    %cst_252 = arith.constant dense<0.000000e+00> : vector<8xf32>
    %613 = vector.multi_reduction <add>, %608, %cst_252 [1] : vector<8x32xf32> to vector<8xf32>
    %614 = vector.shape_cast %613 : vector<8xf32> to vector<8x1xf32>
    %cst_253 = arith.constant 3.200000e+01 : f32
    %615 = vector.broadcast %cst_253 : f32 to vector<8x1xf32>
    %616 = arith.divf %614, %615 : vector<8x1xf32>
    %617 = vector.broadcast %616 : vector<8x1xf32> to vector<8x32xf32>
    %618 = arith.subf %608, %617 : vector<8x32xf32>
    %619 = arith.mulf %618, %618 : vector<8x32xf32>
    %cst_254 = arith.constant dense<0.000000e+00> : vector<8xf32>
    %620 = vector.multi_reduction <add>, %619, %cst_254 [1] : vector<8x32xf32> to vector<8xf32>
    %621 = vector.shape_cast %620 : vector<8xf32> to vector<8x1xf32>
    %cst_255 = arith.constant 3.200000e+01 : f32
    %622 = vector.broadcast %cst_255 : f32 to vector<8x1xf32>
    %623 = arith.divf %621, %622 : vector<8x1xf32>
    %cst_256 = arith.constant 9.99999974E-6 : f32
    %624 = vector.broadcast %cst_256 : f32 to vector<8x1xf32>
    %625 = arith.addf %623, %624 : vector<8x1xf32>
    %626 = math.rsqrt %625 : vector<8x1xf32>
    %627 = vector.broadcast %626 : vector<8x1xf32> to vector<8x32xf32>
    %628 = arith.mulf %618, %627 : vector<8x32xf32>
    %629 = vector.broadcast %610 : vector<1x32xf32> to vector<8x32xf32>
    %630 = arith.mulf %628, %629 : vector<8x32xf32>
    %631 = vector.broadcast %612 : vector<1x32xf32> to vector<8x32xf32>
    %632 = arith.addf %630, %631 : vector<8x32xf32>
    %c0_257 = arith.constant 0 : index
    %c0_258 = arith.constant 0 : index
    %c0_259 = arith.constant 0 : index
    %633 = vector.load %arg33[%c0_257, %c0_258, %c0_259] : memref<2x32x2048xbf16, #tpu.memory_space<vmem>>, vector<1x32x2048xbf16>
    %634 = vector.shape_cast %633 : vector<1x32x2048xbf16> to vector<32x2048xbf16>
    %c0_260 = arith.constant 0 : index
    %c0_261 = arith.constant 0 : index
    %c0_262 = arith.constant 0 : index
    %635 = vector.load %arg34[%c0_260, %c0_261, %c0_262] : memref<2x1x2048xf32, #tpu.memory_space<vmem>>, vector<1x1x2048xf32>
    %636 = vector.shape_cast %635 : vector<1x1x2048xf32> to vector<1x2048xf32>
    %637 = arith.truncf %632 : vector<8x32xf32> to vector<8x32xbf16>
    %cst_263 = arith.constant dense<0.000000e+00> : vector<8x2048xf32>
    %638 = tpu.matmul %637, %634, %cst_263 {dimension_numbers = #tpu.dot_dimension_numbers<[1], [0], [0], [1], [0, 0, 1, 1], [], []>} : vector<8x32xbf16>, vector<32x2048xbf16>, vector<8x2048xf32> -> vector<8x2048xf32>
    %639 = vector.broadcast %636 : vector<1x2048xf32> to vector<8x2048xf32>
    %640 = arith.addf %638, %639 : vector<8x2048xf32>
    %cst_264 = arith.constant 0.000000e+00 : f32
    %641 = vector.broadcast %cst_264 : f32 to vector<8x2048xf32>
    %642 = arith.maximumf %640, %641 : vector<8x2048xf32>
    %c0_265 = arith.constant 0 : index
    %c0_266 = arith.constant 0 : index
    %c0_267 = arith.constant 0 : index
    %643 = vector.load %arg35[%c0_265, %c0_266, %c0_267] : memref<2x2048x32xbf16, #tpu.memory_space<vmem>>, vector<1x2048x32xbf16>
    %644 = vector.shape_cast %643 : vector<1x2048x32xbf16> to vector<2048x32xbf16>
    %c0_268 = arith.constant 0 : index
    %c0_269 = arith.constant 0 : index
    %c0_270 = arith.constant 0 : index
    %645 = vector.load %arg36[%c0_268, %c0_269, %c0_270] : memref<2x1x32xf32, #tpu.memory_space<vmem>>, vector<1x1x32xf32>
    %646 = vector.shape_cast %645 : vector<1x1x32xf32> to vector<1x32xf32>
    %647 = arith.truncf %642 : vector<8x2048xf32> to vector<8x2048xbf16>
    %cst_271 = arith.constant dense<0.000000e+00> : vector<8x32xf32>
    %648 = tpu.matmul %647, %644, %cst_271 {dimension_numbers = #tpu.dot_dimension_numbers<[1], [0], [0], [1], [0, 0, 1, 1], [], []>} : vector<8x2048xbf16>, vector<2048x32xbf16>, vector<8x32xf32> -> vector<8x32xf32>
    %649 = vector.broadcast %646 : vector<1x32xf32> to vector<8x32xf32>
    %650 = arith.addf %648, %649 : vector<8x32xf32>
    %651 = arith.addf %632, %650 : vector<8x32xf32>
    %c0_272 = arith.constant 0 : index
    %c0_273 = arith.constant 0 : index
    %c0_274 = arith.constant 0 : index
    %652 = vector.load %arg37[%c0_272, %c0_273, %c0_274] : memref<2x1x32xf32, #tpu.memory_space<vmem>>, vector<1x1x32xf32>
    %653 = vector.shape_cast %652 : vector<1x1x32xf32> to vector<1x32xf32>
    %c0_275 = arith.constant 0 : index
    %c0_276 = arith.constant 0 : index
    %c0_277 = arith.constant 0 : index
    %654 = vector.load %arg38[%c0_275, %c0_276, %c0_277] : memref<2x1x32xf32, #tpu.memory_space<vmem>>, vector<1x1x32xf32>
    %655 = vector.shape_cast %654 : vector<1x1x32xf32> to vector<1x32xf32>
    %cst_278 = arith.constant dense<0.000000e+00> : vector<8xf32>
    %656 = vector.multi_reduction <add>, %651, %cst_278 [1] : vector<8x32xf32> to vector<8xf32>
    %657 = vector.shape_cast %656 : vector<8xf32> to vector<8x1xf32>
    %cst_279 = arith.constant 3.200000e+01 : f32
    %658 = vector.broadcast %cst_279 : f32 to vector<8x1xf32>
    %659 = arith.divf %657, %658 : vector<8x1xf32>
    %660 = vector.broadcast %659 : vector<8x1xf32> to vector<8x32xf32>
    %661 = arith.subf %651, %660 : vector<8x32xf32>
    %662 = arith.mulf %661, %661 : vector<8x32xf32>
    %cst_280 = arith.constant dense<0.000000e+00> : vector<8xf32>
    %663 = vector.multi_reduction <add>, %662, %cst_280 [1] : vector<8x32xf32> to vector<8xf32>
    %664 = vector.shape_cast %663 : vector<8xf32> to vector<8x1xf32>
    %cst_281 = arith.constant 3.200000e+01 : f32
    %665 = vector.broadcast %cst_281 : f32 to vector<8x1xf32>
    %666 = arith.divf %664, %665 : vector<8x1xf32>
    %cst_282 = arith.constant 9.99999974E-6 : f32
    %667 = vector.broadcast %cst_282 : f32 to vector<8x1xf32>
    %668 = arith.addf %666, %667 : vector<8x1xf32>
    %669 = math.rsqrt %668 : vector<8x1xf32>
    %670 = vector.broadcast %669 : vector<8x1xf32> to vector<8x32xf32>
    %671 = arith.mulf %661, %670 : vector<8x32xf32>
    %672 = vector.broadcast %653 : vector<1x32xf32> to vector<8x32xf32>
    %673 = arith.mulf %671, %672 : vector<8x32xf32>
    %674 = vector.broadcast %655 : vector<1x32xf32> to vector<8x32xf32>
    %675 = arith.addf %673, %674 : vector<8x32xf32>
    %c1_283 = arith.constant 1 : index
    %c0_284 = arith.constant 0 : index
    %c0_285 = arith.constant 0 : index
    %676 = vector.load %arg19[%c1_283, %c0_284, %c0_285] : memref<2x32x96xbf16, #tpu.memory_space<vmem>>, vector<1x32x96xbf16>
    %677 = vector.shape_cast %676 : vector<1x32x96xbf16> to vector<32x96xbf16>
    %c1_286 = arith.constant 1 : index
    %c0_287 = arith.constant 0 : index
    %c0_288 = arith.constant 0 : index
    %678 = vector.load %arg20[%c1_286, %c0_287, %c0_288] : memref<2x1x96xf32, #tpu.memory_space<vmem>>, vector<1x1x96xf32>
    %679 = vector.shape_cast %678 : vector<1x1x96xf32> to vector<1x96xf32>
    %680 = arith.truncf %675 : vector<8x32xf32> to vector<8x32xbf16>
    %cst_289 = arith.constant dense<0.000000e+00> : vector<8x96xf32>
    %681 = tpu.matmul %680, %677, %cst_289 {dimension_numbers = #tpu.dot_dimension_numbers<[1], [0], [0], [1], [0, 0, 1, 1], [], []>} : vector<8x32xbf16>, vector<32x96xbf16>, vector<8x96xf32> -> vector<8x96xf32>
    %682 = vector.broadcast %679 : vector<1x96xf32> to vector<8x96xf32>
    %683 = arith.addf %681, %682 : vector<8x96xf32>
    %684 = vector.extract_strided_slice %683 {offsets = [0, 0], sizes = [8, 32], strides = [1, 1]} : vector<8x96xf32> to vector<8x32xf32>
    %685 = vector.extract_strided_slice %683 {offsets = [0, 32], sizes = [8, 32], strides = [1, 1]} : vector<8x96xf32> to vector<8x32xf32>
    %686 = vector.extract_strided_slice %683 {offsets = [0, 64], sizes = [8, 32], strides = [1, 1]} : vector<8x96xf32> to vector<8x32xf32>
    %687 = vector.extract_strided_slice %684 {offsets = [0, 0], sizes = [8, 8], strides = [1, 1]} : vector<8x32xf32> to vector<8x8xf32>
    %688 = arith.truncf %687 : vector<8x8xf32> to vector<8x8xbf16>
    %689 = vector.extract_strided_slice %685 {offsets = [0, 0], sizes = [8, 8], strides = [1, 1]} : vector<8x32xf32> to vector<8x8xf32>
    %690 = arith.truncf %689 : vector<8x8xf32> to vector<8x8xbf16>
    %691 = vector.extract_strided_slice %686 {offsets = [0, 0], sizes = [8, 8], strides = [1, 1]} : vector<8x32xf32> to vector<8x8xf32>
    %692 = arith.truncf %691 : vector<8x8xf32> to vector<8x8xbf16>
    %cst_290 = arith.constant dense<0.000000e+00> : vector<8x8xf32>
    %693 = tpu.matmul %688, %690, %cst_290 {dimension_numbers = #tpu.dot_dimension_numbers<[1], [1], [0], [0], [0, 0, 1, 0], [], []>} : vector<8x8xbf16>, vector<8x8xbf16>, vector<8x8xf32> -> vector<8x8xf32>
    %cst_291 = arith.constant 0.353553385 : f32
    %694 = vector.broadcast %cst_291 : f32 to vector<8x8xf32>
    %695 = arith.mulf %693, %694 : vector<8x8xf32>
    %696 = arith.addf %695, %371 : vector<8x8xf32>
    %cst_292 = arith.constant dense<0xFF800000> : vector<8xf32>
    %697 = vector.multi_reduction <maximumf>, %696, %cst_292 [1] : vector<8x8xf32> to vector<8xf32>
    %698 = vector.shape_cast %697 : vector<8xf32> to vector<8x1xf32>
    %699 = vector.broadcast %698 : vector<8x1xf32> to vector<8x8xf32>
    %700 = arith.subf %696, %699 : vector<8x8xf32>
    %701 = math.exp %700 : vector<8x8xf32>
    %cst_293 = arith.constant dense<0.000000e+00> : vector<8xf32>
    %702 = vector.multi_reduction <add>, %701, %cst_293 [1] : vector<8x8xf32> to vector<8xf32>
    %703 = vector.shape_cast %702 : vector<8xf32> to vector<8x1xf32>
    %704 = vector.broadcast %703 : vector<8x1xf32> to vector<8x8xf32>
    %705 = arith.divf %701, %704 : vector<8x8xf32>
    %706 = arith.truncf %705 : vector<8x8xf32> to vector<8x8xbf16>
    %cst_294 = arith.constant dense<0.000000e+00> : vector<8x8xf32>
    %707 = tpu.matmul %706, %692, %cst_294 {dimension_numbers = #tpu.dot_dimension_numbers<[1], [0], [0], [1], [0, 0, 1, 1], [], []>} : vector<8x8xbf16>, vector<8x8xbf16>, vector<8x8xf32> -> vector<8x8xf32>
    %708 = vector.extract_strided_slice %684 {offsets = [0, 8], sizes = [8, 8], strides = [1, 1]} : vector<8x32xf32> to vector<8x8xf32>
    %709 = arith.truncf %708 : vector<8x8xf32> to vector<8x8xbf16>
    %710 = vector.extract_strided_slice %685 {offsets = [0, 8], sizes = [8, 8], strides = [1, 1]} : vector<8x32xf32> to vector<8x8xf32>
    %711 = arith.truncf %710 : vector<8x8xf32> to vector<8x8xbf16>
    %712 = vector.extract_strided_slice %686 {offsets = [0, 8], sizes = [8, 8], strides = [1, 1]} : vector<8x32xf32> to vector<8x8xf32>
    %713 = arith.truncf %712 : vector<8x8xf32> to vector<8x8xbf16>
    %cst_295 = arith.constant dense<0.000000e+00> : vector<8x8xf32>
    %714 = tpu.matmul %709, %711, %cst_295 {dimension_numbers = #tpu.dot_dimension_numbers<[1], [1], [0], [0], [0, 0, 1, 0], [], []>} : vector<8x8xbf16>, vector<8x8xbf16>, vector<8x8xf32> -> vector<8x8xf32>
    %cst_296 = arith.constant 0.353553385 : f32
    %715 = vector.broadcast %cst_296 : f32 to vector<8x8xf32>
    %716 = arith.mulf %714, %715 : vector<8x8xf32>
    %717 = arith.addf %716, %371 : vector<8x8xf32>
    %cst_297 = arith.constant dense<0xFF800000> : vector<8xf32>
    %718 = vector.multi_reduction <maximumf>, %717, %cst_297 [1] : vector<8x8xf32> to vector<8xf32>
    %719 = vector.shape_cast %718 : vector<8xf32> to vector<8x1xf32>
    %720 = vector.broadcast %719 : vector<8x1xf32> to vector<8x8xf32>
    %721 = arith.subf %717, %720 : vector<8x8xf32>
    %722 = math.exp %721 : vector<8x8xf32>
    %cst_298 = arith.constant dense<0.000000e+00> : vector<8xf32>
    %723 = vector.multi_reduction <add>, %722, %cst_298 [1] : vector<8x8xf32> to vector<8xf32>
    %724 = vector.shape_cast %723 : vector<8xf32> to vector<8x1xf32>
    %725 = vector.broadcast %724 : vector<8x1xf32> to vector<8x8xf32>
    %726 = arith.divf %722, %725 : vector<8x8xf32>
    %727 = arith.truncf %726 : vector<8x8xf32> to vector<8x8xbf16>
    %cst_299 = arith.constant dense<0.000000e+00> : vector<8x8xf32>
    %728 = tpu.matmul %727, %713, %cst_299 {dimension_numbers = #tpu.dot_dimension_numbers<[1], [0], [0], [1], [0, 0, 1, 1], [], []>} : vector<8x8xbf16>, vector<8x8xbf16>, vector<8x8xf32> -> vector<8x8xf32>
    %729 = vector.extract_strided_slice %684 {offsets = [0, 16], sizes = [8, 8], strides = [1, 1]} : vector<8x32xf32> to vector<8x8xf32>
    %730 = arith.truncf %729 : vector<8x8xf32> to vector<8x8xbf16>
    %731 = vector.extract_strided_slice %685 {offsets = [0, 16], sizes = [8, 8], strides = [1, 1]} : vector<8x32xf32> to vector<8x8xf32>
    %732 = arith.truncf %731 : vector<8x8xf32> to vector<8x8xbf16>
    %733 = vector.extract_strided_slice %686 {offsets = [0, 16], sizes = [8, 8], strides = [1, 1]} : vector<8x32xf32> to vector<8x8xf32>
    %734 = arith.truncf %733 : vector<8x8xf32> to vector<8x8xbf16>
    %cst_300 = arith.constant dense<0.000000e+00> : vector<8x8xf32>
    %735 = tpu.matmul %730, %732, %cst_300 {dimension_numbers = #tpu.dot_dimension_numbers<[1], [1], [0], [0], [0, 0, 1, 0], [], []>} : vector<8x8xbf16>, vector<8x8xbf16>, vector<8x8xf32> -> vector<8x8xf32>
    %cst_301 = arith.constant 0.353553385 : f32
    %736 = vector.broadcast %cst_301 : f32 to vector<8x8xf32>
    %737 = arith.mulf %735, %736 : vector<8x8xf32>
    %738 = arith.addf %737, %371 : vector<8x8xf32>
    %cst_302 = arith.constant dense<0xFF800000> : vector<8xf32>
    %739 = vector.multi_reduction <maximumf>, %738, %cst_302 [1] : vector<8x8xf32> to vector<8xf32>
    %740 = vector.shape_cast %739 : vector<8xf32> to vector<8x1xf32>
    %741 = vector.broadcast %740 : vector<8x1xf32> to vector<8x8xf32>
    %742 = arith.subf %738, %741 : vector<8x8xf32>
    %743 = math.exp %742 : vector<8x8xf32>
    %cst_303 = arith.constant dense<0.000000e+00> : vector<8xf32>
    %744 = vector.multi_reduction <add>, %743, %cst_303 [1] : vector<8x8xf32> to vector<8xf32>
    %745 = vector.shape_cast %744 : vector<8xf32> to vector<8x1xf32>
    %746 = vector.broadcast %745 : vector<8x1xf32> to vector<8x8xf32>
    %747 = arith.divf %743, %746 : vector<8x8xf32>
    %748 = arith.truncf %747 : vector<8x8xf32> to vector<8x8xbf16>
    %cst_304 = arith.constant dense<0.000000e+00> : vector<8x8xf32>
    %749 = tpu.matmul %748, %734, %cst_304 {dimension_numbers = #tpu.dot_dimension_numbers<[1], [0], [0], [1], [0, 0, 1, 1], [], []>} : vector<8x8xbf16>, vector<8x8xbf16>, vector<8x8xf32> -> vector<8x8xf32>
    %750 = vector.extract_strided_slice %684 {offsets = [0, 24], sizes = [8, 8], strides = [1, 1]} : vector<8x32xf32> to vector<8x8xf32>
    %751 = arith.truncf %750 : vector<8x8xf32> to vector<8x8xbf16>
    %752 = vector.extract_strided_slice %685 {offsets = [0, 24], sizes = [8, 8], strides = [1, 1]} : vector<8x32xf32> to vector<8x8xf32>
    %753 = arith.truncf %752 : vector<8x8xf32> to vector<8x8xbf16>
    %754 = vector.extract_strided_slice %686 {offsets = [0, 24], sizes = [8, 8], strides = [1, 1]} : vector<8x32xf32> to vector<8x8xf32>
    %755 = arith.truncf %754 : vector<8x8xf32> to vector<8x8xbf16>
    %cst_305 = arith.constant dense<0.000000e+00> : vector<8x8xf32>
    %756 = tpu.matmul %751, %753, %cst_305 {dimension_numbers = #tpu.dot_dimension_numbers<[1], [1], [0], [0], [0, 0, 1, 0], [], []>} : vector<8x8xbf16>, vector<8x8xbf16>, vector<8x8xf32> -> vector<8x8xf32>
    %cst_306 = arith.constant 0.353553385 : f32
    %757 = vector.broadcast %cst_306 : f32 to vector<8x8xf32>
    %758 = arith.mulf %756, %757 : vector<8x8xf32>
    %759 = arith.addf %758, %371 : vector<8x8xf32>
    %cst_307 = arith.constant dense<0xFF800000> : vector<8xf32>
    %760 = vector.multi_reduction <maximumf>, %759, %cst_307 [1] : vector<8x8xf32> to vector<8xf32>
    %761 = vector.shape_cast %760 : vector<8xf32> to vector<8x1xf32>
    %762 = vector.broadcast %761 : vector<8x1xf32> to vector<8x8xf32>
    %763 = arith.subf %759, %762 : vector<8x8xf32>
    %764 = math.exp %763 : vector<8x8xf32>
    %cst_308 = arith.constant dense<0.000000e+00> : vector<8xf32>
    %765 = vector.multi_reduction <add>, %764, %cst_308 [1] : vector<8x8xf32> to vector<8xf32>
    %766 = vector.shape_cast %765 : vector<8xf32> to vector<8x1xf32>
    %767 = vector.broadcast %766 : vector<8x1xf32> to vector<8x8xf32>
    %768 = arith.divf %764, %767 : vector<8x8xf32>
    %769 = arith.truncf %768 : vector<8x8xf32> to vector<8x8xbf16>
    %cst_309 = arith.constant dense<0.000000e+00> : vector<8x8xf32>
    %770 = tpu.matmul %769, %755, %cst_309 {dimension_numbers = #tpu.dot_dimension_numbers<[1], [0], [0], [1], [0, 0, 1, 1], [], []>} : vector<8x8xbf16>, vector<8x8xbf16>, vector<8x8xf32> -> vector<8x8xf32>
    %771 = tpu.concatenate %707, %728, %749, %770 in 1 : vector<8x8xf32>, vector<8x8xf32>, vector<8x8xf32>, vector<8x8xf32> -> vector<8x32xf32>
    %c1_310 = arith.constant 1 : index
    %c0_311 = arith.constant 0 : index
    %c0_312 = arith.constant 0 : index
    %772 = vector.load %arg21[%c1_310, %c0_311, %c0_312] : memref<2x32x32xbf16, #tpu.memory_space<vmem>>, vector<1x32x32xbf16>
    %773 = vector.shape_cast %772 : vector<1x32x32xbf16> to vector<32x32xbf16>
    %c1_313 = arith.constant 1 : index
    %c0_314 = arith.constant 0 : index
    %c0_315 = arith.constant 0 : index
    %774 = vector.load %arg22[%c1_313, %c0_314, %c0_315] : memref<2x1x32xf32, #tpu.memory_space<vmem>>, vector<1x1x32xf32>
    %775 = vector.shape_cast %774 : vector<1x1x32xf32> to vector<1x32xf32>
    %776 = arith.truncf %771 : vector<8x32xf32> to vector<8x32xbf16>
    %cst_316 = arith.constant dense<0.000000e+00> : vector<8x32xf32>
    %777 = tpu.matmul %776, %773, %cst_316 {dimension_numbers = #tpu.dot_dimension_numbers<[1], [0], [0], [1], [0, 0, 1, 1], [], []>} : vector<8x32xbf16>, vector<32x32xbf16>, vector<8x32xf32> -> vector<8x32xf32>
    %778 = vector.broadcast %775 : vector<1x32xf32> to vector<8x32xf32>
    %779 = arith.addf %777, %778 : vector<8x32xf32>
    %780 = arith.addf %675, %779 : vector<8x32xf32>
    %c1_317 = arith.constant 1 : index
    %c0_318 = arith.constant 0 : index
    %c0_319 = arith.constant 0 : index
    %781 = vector.load %arg23[%c1_317, %c0_318, %c0_319] : memref<2x1x32xf32, #tpu.memory_space<vmem>>, vector<1x1x32xf32>
    %782 = vector.shape_cast %781 : vector<1x1x32xf32> to vector<1x32xf32>
    %c1_320 = arith.constant 1 : index
    %c0_321 = arith.constant 0 : index
    %c0_322 = arith.constant 0 : index
    %783 = vector.load %arg24[%c1_320, %c0_321, %c0_322] : memref<2x1x32xf32, #tpu.memory_space<vmem>>, vector<1x1x32xf32>
    %784 = vector.shape_cast %783 : vector<1x1x32xf32> to vector<1x32xf32>
    %cst_323 = arith.constant dense<0.000000e+00> : vector<8xf32>
    %785 = vector.multi_reduction <add>, %780, %cst_323 [1] : vector<8x32xf32> to vector<8xf32>
    %786 = vector.shape_cast %785 : vector<8xf32> to vector<8x1xf32>
    %cst_324 = arith.constant 3.200000e+01 : f32
    %787 = vector.broadcast %cst_324 : f32 to vector<8x1xf32>
    %788 = arith.divf %786, %787 : vector<8x1xf32>
    %789 = vector.broadcast %788 : vector<8x1xf32> to vector<8x32xf32>
    %790 = arith.subf %780, %789 : vector<8x32xf32>
    %791 = arith.mulf %790, %790 : vector<8x32xf32>
    %cst_325 = arith.constant dense<0.000000e+00> : vector<8xf32>
    %792 = vector.multi_reduction <add>, %791, %cst_325 [1] : vector<8x32xf32> to vector<8xf32>
    %793 = vector.shape_cast %792 : vector<8xf32> to vector<8x1xf32>
    %cst_326 = arith.constant 3.200000e+01 : f32
    %794 = vector.broadcast %cst_326 : f32 to vector<8x1xf32>
    %795 = arith.divf %793, %794 : vector<8x1xf32>
    %cst_327 = arith.constant 9.99999974E-6 : f32
    %796 = vector.broadcast %cst_327 : f32 to vector<8x1xf32>
    %797 = arith.addf %795, %796 : vector<8x1xf32>
    %798 = math.rsqrt %797 : vector<8x1xf32>
    %799 = vector.broadcast %798 : vector<8x1xf32> to vector<8x32xf32>
    %800 = arith.mulf %790, %799 : vector<8x32xf32>
    %801 = vector.broadcast %782 : vector<1x32xf32> to vector<8x32xf32>
    %802 = arith.mulf %800, %801 : vector<8x32xf32>
    %803 = vector.broadcast %784 : vector<1x32xf32> to vector<8x32xf32>
    %804 = arith.addf %802, %803 : vector<8x32xf32>
    %c1_328 = arith.constant 1 : index
    %c0_329 = arith.constant 0 : index
    %c0_330 = arith.constant 0 : index
    %805 = vector.load %arg25[%c1_328, %c0_329, %c0_330] : memref<2x32x32xbf16, #tpu.memory_space<vmem>>, vector<1x32x32xbf16>
    %806 = vector.shape_cast %805 : vector<1x32x32xbf16> to vector<32x32xbf16>
    %c1_331 = arith.constant 1 : index
    %c0_332 = arith.constant 0 : index
    %c0_333 = arith.constant 0 : index
    %807 = vector.load %arg26[%c1_331, %c0_332, %c0_333] : memref<2x1x32xf32, #tpu.memory_space<vmem>>, vector<1x1x32xf32>
    %808 = vector.shape_cast %807 : vector<1x1x32xf32> to vector<1x32xf32>
    %809 = arith.truncf %804 : vector<8x32xf32> to vector<8x32xbf16>
    %cst_334 = arith.constant dense<0.000000e+00> : vector<8x32xf32>
    %810 = tpu.matmul %809, %806, %cst_334 {dimension_numbers = #tpu.dot_dimension_numbers<[1], [0], [0], [1], [0, 0, 1, 1], [], []>} : vector<8x32xbf16>, vector<32x32xbf16>, vector<8x32xf32> -> vector<8x32xf32>
    %811 = vector.broadcast %808 : vector<1x32xf32> to vector<8x32xf32>
    %812 = arith.addf %810, %811 : vector<8x32xf32>
    %c1_335 = arith.constant 1 : index
    %c0_336 = arith.constant 0 : index
    %c0_337 = arith.constant 0 : index
    %813 = vector.load %arg27[%c1_335, %c0_336, %c0_337] : memref<2x32x64xbf16, #tpu.memory_space<vmem>>, vector<1x32x64xbf16>
    %814 = vector.shape_cast %813 : vector<1x32x64xbf16> to vector<32x64xbf16>
    %c1_338 = arith.constant 1 : index
    %c0_339 = arith.constant 0 : index
    %c0_340 = arith.constant 0 : index
    %815 = vector.load %arg28[%c1_338, %c0_339, %c0_340] : memref<2x1x64xf32, #tpu.memory_space<vmem>>, vector<1x1x64xf32>
    %816 = vector.shape_cast %815 : vector<1x1x64xf32> to vector<1x64xf32>
    %817 = arith.truncf %361 : vector<8x32xf32> to vector<8x32xbf16>
    %cst_341 = arith.constant dense<0.000000e+00> : vector<8x64xf32>
    %818 = tpu.matmul %817, %814, %cst_341 {dimension_numbers = #tpu.dot_dimension_numbers<[1], [0], [0], [1], [0, 0, 1, 1], [], []>} : vector<8x32xbf16>, vector<32x64xbf16>, vector<8x64xf32> -> vector<8x64xf32>
    %819 = vector.broadcast %816 : vector<1x64xf32> to vector<8x64xf32>
    %820 = arith.addf %818, %819 : vector<8x64xf32>
    %821 = vector.extract_strided_slice %820 {offsets = [0, 0], sizes = [8, 32], strides = [1, 1]} : vector<8x64xf32> to vector<8x32xf32>
    %822 = vector.extract_strided_slice %820 {offsets = [0, 32], sizes = [8, 32], strides = [1, 1]} : vector<8x64xf32> to vector<8x32xf32>
    %823 = vector.extract_strided_slice %812 {offsets = [0, 0], sizes = [8, 8], strides = [1, 1]} : vector<8x32xf32> to vector<8x8xf32>
    %824 = arith.truncf %823 : vector<8x8xf32> to vector<8x8xbf16>
    %825 = vector.extract_strided_slice %821 {offsets = [0, 0], sizes = [8, 8], strides = [1, 1]} : vector<8x32xf32> to vector<8x8xf32>
    %826 = arith.truncf %825 : vector<8x8xf32> to vector<8x8xbf16>
    %827 = vector.extract_strided_slice %822 {offsets = [0, 0], sizes = [8, 8], strides = [1, 1]} : vector<8x32xf32> to vector<8x8xf32>
    %828 = arith.truncf %827 : vector<8x8xf32> to vector<8x8xbf16>
    %cst_342 = arith.constant dense<0.000000e+00> : vector<8x8xf32>
    %829 = tpu.matmul %824, %826, %cst_342 {dimension_numbers = #tpu.dot_dimension_numbers<[1], [1], [0], [0], [0, 0, 1, 0], [], []>} : vector<8x8xbf16>, vector<8x8xbf16>, vector<8x8xf32> -> vector<8x8xf32>
    %cst_343 = arith.constant 0.353553385 : f32
    %830 = vector.broadcast %cst_343 : f32 to vector<8x8xf32>
    %831 = arith.mulf %829, %830 : vector<8x8xf32>
    %cst_344 = arith.constant dense<0xFF800000> : vector<8xf32>
    %832 = vector.multi_reduction <maximumf>, %831, %cst_344 [1] : vector<8x8xf32> to vector<8xf32>
    %833 = vector.shape_cast %832 : vector<8xf32> to vector<8x1xf32>
    %834 = vector.broadcast %833 : vector<8x1xf32> to vector<8x8xf32>
    %835 = arith.subf %831, %834 : vector<8x8xf32>
    %836 = math.exp %835 : vector<8x8xf32>
    %cst_345 = arith.constant dense<0.000000e+00> : vector<8xf32>
    %837 = vector.multi_reduction <add>, %836, %cst_345 [1] : vector<8x8xf32> to vector<8xf32>
    %838 = vector.shape_cast %837 : vector<8xf32> to vector<8x1xf32>
    %839 = vector.broadcast %838 : vector<8x1xf32> to vector<8x8xf32>
    %840 = arith.divf %836, %839 : vector<8x8xf32>
    %841 = arith.truncf %840 : vector<8x8xf32> to vector<8x8xbf16>
    %cst_346 = arith.constant dense<0.000000e+00> : vector<8x8xf32>
    %842 = tpu.matmul %841, %828, %cst_346 {dimension_numbers = #tpu.dot_dimension_numbers<[1], [0], [0], [1], [0, 0, 1, 1], [], []>} : vector<8x8xbf16>, vector<8x8xbf16>, vector<8x8xf32> -> vector<8x8xf32>
    %843 = vector.extract_strided_slice %812 {offsets = [0, 8], sizes = [8, 8], strides = [1, 1]} : vector<8x32xf32> to vector<8x8xf32>
    %844 = arith.truncf %843 : vector<8x8xf32> to vector<8x8xbf16>
    %845 = vector.extract_strided_slice %821 {offsets = [0, 8], sizes = [8, 8], strides = [1, 1]} : vector<8x32xf32> to vector<8x8xf32>
    %846 = arith.truncf %845 : vector<8x8xf32> to vector<8x8xbf16>
    %847 = vector.extract_strided_slice %822 {offsets = [0, 8], sizes = [8, 8], strides = [1, 1]} : vector<8x32xf32> to vector<8x8xf32>
    %848 = arith.truncf %847 : vector<8x8xf32> to vector<8x8xbf16>
    %cst_347 = arith.constant dense<0.000000e+00> : vector<8x8xf32>
    %849 = tpu.matmul %844, %846, %cst_347 {dimension_numbers = #tpu.dot_dimension_numbers<[1], [1], [0], [0], [0, 0, 1, 0], [], []>} : vector<8x8xbf16>, vector<8x8xbf16>, vector<8x8xf32> -> vector<8x8xf32>
    %cst_348 = arith.constant 0.353553385 : f32
    %850 = vector.broadcast %cst_348 : f32 to vector<8x8xf32>
    %851 = arith.mulf %849, %850 : vector<8x8xf32>
    %cst_349 = arith.constant dense<0xFF800000> : vector<8xf32>
    %852 = vector.multi_reduction <maximumf>, %851, %cst_349 [1] : vector<8x8xf32> to vector<8xf32>
    %853 = vector.shape_cast %852 : vector<8xf32> to vector<8x1xf32>
    %854 = vector.broadcast %853 : vector<8x1xf32> to vector<8x8xf32>
    %855 = arith.subf %851, %854 : vector<8x8xf32>
    %856 = math.exp %855 : vector<8x8xf32>
    %cst_350 = arith.constant dense<0.000000e+00> : vector<8xf32>
    %857 = vector.multi_reduction <add>, %856, %cst_350 [1] : vector<8x8xf32> to vector<8xf32>
    %858 = vector.shape_cast %857 : vector<8xf32> to vector<8x1xf32>
    %859 = vector.broadcast %858 : vector<8x1xf32> to vector<8x8xf32>
    %860 = arith.divf %856, %859 : vector<8x8xf32>
    %861 = arith.truncf %860 : vector<8x8xf32> to vector<8x8xbf16>
    %cst_351 = arith.constant dense<0.000000e+00> : vector<8x8xf32>
    %862 = tpu.matmul %861, %848, %cst_351 {dimension_numbers = #tpu.dot_dimension_numbers<[1], [0], [0], [1], [0, 0, 1, 1], [], []>} : vector<8x8xbf16>, vector<8x8xbf16>, vector<8x8xf32> -> vector<8x8xf32>
    %863 = vector.extract_strided_slice %812 {offsets = [0, 16], sizes = [8, 8], strides = [1, 1]} : vector<8x32xf32> to vector<8x8xf32>
    %864 = arith.truncf %863 : vector<8x8xf32> to vector<8x8xbf16>
    %865 = vector.extract_strided_slice %821 {offsets = [0, 16], sizes = [8, 8], strides = [1, 1]} : vector<8x32xf32> to vector<8x8xf32>
    %866 = arith.truncf %865 : vector<8x8xf32> to vector<8x8xbf16>
    %867 = vector.extract_strided_slice %822 {offsets = [0, 16], sizes = [8, 8], strides = [1, 1]} : vector<8x32xf32> to vector<8x8xf32>
    %868 = arith.truncf %867 : vector<8x8xf32> to vector<8x8xbf16>
    %cst_352 = arith.constant dense<0.000000e+00> : vector<8x8xf32>
    %869 = tpu.matmul %864, %866, %cst_352 {dimension_numbers = #tpu.dot_dimension_numbers<[1], [1], [0], [0], [0, 0, 1, 0], [], []>} : vector<8x8xbf16>, vector<8x8xbf16>, vector<8x8xf32> -> vector<8x8xf32>
    %cst_353 = arith.constant 0.353553385 : f32
    %870 = vector.broadcast %cst_353 : f32 to vector<8x8xf32>
    %871 = arith.mulf %869, %870 : vector<8x8xf32>
    %cst_354 = arith.constant dense<0xFF800000> : vector<8xf32>
    %872 = vector.multi_reduction <maximumf>, %871, %cst_354 [1] : vector<8x8xf32> to vector<8xf32>
    %873 = vector.shape_cast %872 : vector<8xf32> to vector<8x1xf32>
    %874 = vector.broadcast %873 : vector<8x1xf32> to vector<8x8xf32>
    %875 = arith.subf %871, %874 : vector<8x8xf32>
    %876 = math.exp %875 : vector<8x8xf32>
    %cst_355 = arith.constant dense<0.000000e+00> : vector<8xf32>
    %877 = vector.multi_reduction <add>, %876, %cst_355 [1] : vector<8x8xf32> to vector<8xf32>
    %878 = vector.shape_cast %877 : vector<8xf32> to vector<8x1xf32>
    %879 = vector.broadcast %878 : vector<8x1xf32> to vector<8x8xf32>
    %880 = arith.divf %876, %879 : vector<8x8xf32>
    %881 = arith.truncf %880 : vector<8x8xf32> to vector<8x8xbf16>
    %cst_356 = arith.constant dense<0.000000e+00> : vector<8x8xf32>
    %882 = tpu.matmul %881, %868, %cst_356 {dimension_numbers = #tpu.dot_dimension_numbers<[1], [0], [0], [1], [0, 0, 1, 1], [], []>} : vector<8x8xbf16>, vector<8x8xbf16>, vector<8x8xf32> -> vector<8x8xf32>
    %883 = vector.extract_strided_slice %812 {offsets = [0, 24], sizes = [8, 8], strides = [1, 1]} : vector<8x32xf32> to vector<8x8xf32>
    %884 = arith.truncf %883 : vector<8x8xf32> to vector<8x8xbf16>
    %885 = vector.extract_strided_slice %821 {offsets = [0, 24], sizes = [8, 8], strides = [1, 1]} : vector<8x32xf32> to vector<8x8xf32>
    %886 = arith.truncf %885 : vector<8x8xf32> to vector<8x8xbf16>
    %887 = vector.extract_strided_slice %822 {offsets = [0, 24], sizes = [8, 8], strides = [1, 1]} : vector<8x32xf32> to vector<8x8xf32>
    %888 = arith.truncf %887 : vector<8x8xf32> to vector<8x8xbf16>
    %cst_357 = arith.constant dense<0.000000e+00> : vector<8x8xf32>
    %889 = tpu.matmul %884, %886, %cst_357 {dimension_numbers = #tpu.dot_dimension_numbers<[1], [1], [0], [0], [0, 0, 1, 0], [], []>} : vector<8x8xbf16>, vector<8x8xbf16>, vector<8x8xf32> -> vector<8x8xf32>
    %cst_358 = arith.constant 0.353553385 : f32
    %890 = vector.broadcast %cst_358 : f32 to vector<8x8xf32>
    %891 = arith.mulf %889, %890 : vector<8x8xf32>
    %cst_359 = arith.constant dense<0xFF800000> : vector<8xf32>
    %892 = vector.multi_reduction <maximumf>, %891, %cst_359 [1] : vector<8x8xf32> to vector<8xf32>
    %893 = vector.shape_cast %892 : vector<8xf32> to vector<8x1xf32>
    %894 = vector.broadcast %893 : vector<8x1xf32> to vector<8x8xf32>
    %895 = arith.subf %891, %894 : vector<8x8xf32>
    %896 = math.exp %895 : vector<8x8xf32>
    %cst_360 = arith.constant dense<0.000000e+00> : vector<8xf32>
    %897 = vector.multi_reduction <add>, %896, %cst_360 [1] : vector<8x8xf32> to vector<8xf32>
    %898 = vector.shape_cast %897 : vector<8xf32> to vector<8x1xf32>
    %899 = vector.broadcast %898 : vector<8x1xf32> to vector<8x8xf32>
    %900 = arith.divf %896, %899 : vector<8x8xf32>
    %901 = arith.truncf %900 : vector<8x8xf32> to vector<8x8xbf16>
    %cst_361 = arith.constant dense<0.000000e+00> : vector<8x8xf32>
    %902 = tpu.matmul %901, %888, %cst_361 {dimension_numbers = #tpu.dot_dimension_numbers<[1], [0], [0], [1], [0, 0, 1, 1], [], []>} : vector<8x8xbf16>, vector<8x8xbf16>, vector<8x8xf32> -> vector<8x8xf32>
    %903 = tpu.concatenate %842, %862, %882, %902 in 1 : vector<8x8xf32>, vector<8x8xf32>, vector<8x8xf32>, vector<8x8xf32> -> vector<8x32xf32>
    %c1_362 = arith.constant 1 : index
    %c0_363 = arith.constant 0 : index
    %c0_364 = arith.constant 0 : index
    %904 = vector.load %arg29[%c1_362, %c0_363, %c0_364] : memref<2x32x32xbf16, #tpu.memory_space<vmem>>, vector<1x32x32xbf16>
    %905 = vector.shape_cast %904 : vector<1x32x32xbf16> to vector<32x32xbf16>
    %c1_365 = arith.constant 1 : index
    %c0_366 = arith.constant 0 : index
    %c0_367 = arith.constant 0 : index
    %906 = vector.load %arg30[%c1_365, %c0_366, %c0_367] : memref<2x1x32xf32, #tpu.memory_space<vmem>>, vector<1x1x32xf32>
    %907 = vector.shape_cast %906 : vector<1x1x32xf32> to vector<1x32xf32>
    %908 = arith.truncf %903 : vector<8x32xf32> to vector<8x32xbf16>
    %cst_368 = arith.constant dense<0.000000e+00> : vector<8x32xf32>
    %909 = tpu.matmul %908, %905, %cst_368 {dimension_numbers = #tpu.dot_dimension_numbers<[1], [0], [0], [1], [0, 0, 1, 1], [], []>} : vector<8x32xbf16>, vector<32x32xbf16>, vector<8x32xf32> -> vector<8x32xf32>
    %910 = vector.broadcast %907 : vector<1x32xf32> to vector<8x32xf32>
    %911 = arith.addf %909, %910 : vector<8x32xf32>
    %912 = arith.addf %804, %911 : vector<8x32xf32>
    %c1_369 = arith.constant 1 : index
    %c0_370 = arith.constant 0 : index
    %c0_371 = arith.constant 0 : index
    %913 = vector.load %arg31[%c1_369, %c0_370, %c0_371] : memref<2x1x32xf32, #tpu.memory_space<vmem>>, vector<1x1x32xf32>
    %914 = vector.shape_cast %913 : vector<1x1x32xf32> to vector<1x32xf32>
    %c1_372 = arith.constant 1 : index
    %c0_373 = arith.constant 0 : index
    %c0_374 = arith.constant 0 : index
    %915 = vector.load %arg32[%c1_372, %c0_373, %c0_374] : memref<2x1x32xf32, #tpu.memory_space<vmem>>, vector<1x1x32xf32>
    %916 = vector.shape_cast %915 : vector<1x1x32xf32> to vector<1x32xf32>
    %cst_375 = arith.constant dense<0.000000e+00> : vector<8xf32>
    %917 = vector.multi_reduction <add>, %912, %cst_375 [1] : vector<8x32xf32> to vector<8xf32>
    %918 = vector.shape_cast %917 : vector<8xf32> to vector<8x1xf32>
    %cst_376 = arith.constant 3.200000e+01 : f32
    %919 = vector.broadcast %cst_376 : f32 to vector<8x1xf32>
    %920 = arith.divf %918, %919 : vector<8x1xf32>
    %921 = vector.broadcast %920 : vector<8x1xf32> to vector<8x32xf32>
    %922 = arith.subf %912, %921 : vector<8x32xf32>
    %923 = arith.mulf %922, %922 : vector<8x32xf32>
    %cst_377 = arith.constant dense<0.000000e+00> : vector<8xf32>
    %924 = vector.multi_reduction <add>, %923, %cst_377 [1] : vector<8x32xf32> to vector<8xf32>
    %925 = vector.shape_cast %924 : vector<8xf32> to vector<8x1xf32>
    %cst_378 = arith.constant 3.200000e+01 : f32
    %926 = vector.broadcast %cst_378 : f32 to vector<8x1xf32>
    %927 = arith.divf %925, %926 : vector<8x1xf32>
    %cst_379 = arith.constant 9.99999974E-6 : f32
    %928 = vector.broadcast %cst_379 : f32 to vector<8x1xf32>
    %929 = arith.addf %927, %928 : vector<8x1xf32>
    %930 = math.rsqrt %929 : vector<8x1xf32>
    %931 = vector.broadcast %930 : vector<8x1xf32> to vector<8x32xf32>
    %932 = arith.mulf %922, %931 : vector<8x32xf32>
    %933 = vector.broadcast %914 : vector<1x32xf32> to vector<8x32xf32>
    %934 = arith.mulf %932, %933 : vector<8x32xf32>
    %935 = vector.broadcast %916 : vector<1x32xf32> to vector<8x32xf32>
    %936 = arith.addf %934, %935 : vector<8x32xf32>
    %c1_380 = arith.constant 1 : index
    %c0_381 = arith.constant 0 : index
    %c0_382 = arith.constant 0 : index
    %937 = vector.load %arg33[%c1_380, %c0_381, %c0_382] : memref<2x32x2048xbf16, #tpu.memory_space<vmem>>, vector<1x32x2048xbf16>
    %938 = vector.shape_cast %937 : vector<1x32x2048xbf16> to vector<32x2048xbf16>
    %c1_383 = arith.constant 1 : index
    %c0_384 = arith.constant 0 : index
    %c0_385 = arith.constant 0 : index
    %939 = vector.load %arg34[%c1_383, %c0_384, %c0_385] : memref<2x1x2048xf32, #tpu.memory_space<vmem>>, vector<1x1x2048xf32>
    %940 = vector.shape_cast %939 : vector<1x1x2048xf32> to vector<1x2048xf32>
    %941 = arith.truncf %936 : vector<8x32xf32> to vector<8x32xbf16>
    %cst_386 = arith.constant dense<0.000000e+00> : vector<8x2048xf32>
    %942 = tpu.matmul %941, %938, %cst_386 {dimension_numbers = #tpu.dot_dimension_numbers<[1], [0], [0], [1], [0, 0, 1, 1], [], []>} : vector<8x32xbf16>, vector<32x2048xbf16>, vector<8x2048xf32> -> vector<8x2048xf32>
    %943 = vector.broadcast %940 : vector<1x2048xf32> to vector<8x2048xf32>
    %944 = arith.addf %942, %943 : vector<8x2048xf32>
    %cst_387 = arith.constant 0.000000e+00 : f32
    %945 = vector.broadcast %cst_387 : f32 to vector<8x2048xf32>
    %946 = arith.maximumf %944, %945 : vector<8x2048xf32>
    %c1_388 = arith.constant 1 : index
    %c0_389 = arith.constant 0 : index
    %c0_390 = arith.constant 0 : index
    %947 = vector.load %arg35[%c1_388, %c0_389, %c0_390] : memref<2x2048x32xbf16, #tpu.memory_space<vmem>>, vector<1x2048x32xbf16>
    %948 = vector.shape_cast %947 : vector<1x2048x32xbf16> to vector<2048x32xbf16>
    %c1_391 = arith.constant 1 : index
    %c0_392 = arith.constant 0 : index
    %c0_393 = arith.constant 0 : index
    %949 = vector.load %arg36[%c1_391, %c0_392, %c0_393] : memref<2x1x32xf32, #tpu.memory_space<vmem>>, vector<1x1x32xf32>
    %950 = vector.shape_cast %949 : vector<1x1x32xf32> to vector<1x32xf32>
    %951 = arith.truncf %946 : vector<8x2048xf32> to vector<8x2048xbf16>
    %cst_394 = arith.constant dense<0.000000e+00> : vector<8x32xf32>
    %952 = tpu.matmul %951, %948, %cst_394 {dimension_numbers = #tpu.dot_dimension_numbers<[1], [0], [0], [1], [0, 0, 1, 1], [], []>} : vector<8x2048xbf16>, vector<2048x32xbf16>, vector<8x32xf32> -> vector<8x32xf32>
    %953 = vector.broadcast %950 : vector<1x32xf32> to vector<8x32xf32>
    %954 = arith.addf %952, %953 : vector<8x32xf32>
    %955 = arith.addf %936, %954 : vector<8x32xf32>
    %c1_395 = arith.constant 1 : index
    %c0_396 = arith.constant 0 : index
    %c0_397 = arith.constant 0 : index
    %956 = vector.load %arg37[%c1_395, %c0_396, %c0_397] : memref<2x1x32xf32, #tpu.memory_space<vmem>>, vector<1x1x32xf32>
    %957 = vector.shape_cast %956 : vector<1x1x32xf32> to vector<1x32xf32>
    %c1_398 = arith.constant 1 : index
    %c0_399 = arith.constant 0 : index
    %c0_400 = arith.constant 0 : index
    %958 = vector.load %arg38[%c1_398, %c0_399, %c0_400] : memref<2x1x32xf32, #tpu.memory_space<vmem>>, vector<1x1x32xf32>
    %959 = vector.shape_cast %958 : vector<1x1x32xf32> to vector<1x32xf32>
    %cst_401 = arith.constant dense<0.000000e+00> : vector<8xf32>
    %960 = vector.multi_reduction <add>, %955, %cst_401 [1] : vector<8x32xf32> to vector<8xf32>
    %961 = vector.shape_cast %960 : vector<8xf32> to vector<8x1xf32>
    %cst_402 = arith.constant 3.200000e+01 : f32
    %962 = vector.broadcast %cst_402 : f32 to vector<8x1xf32>
    %963 = arith.divf %961, %962 : vector<8x1xf32>
    %964 = vector.broadcast %963 : vector<8x1xf32> to vector<8x32xf32>
    %965 = arith.subf %955, %964 : vector<8x32xf32>
    %966 = arith.mulf %965, %965 : vector<8x32xf32>
    %cst_403 = arith.constant dense<0.000000e+00> : vector<8xf32>
    %967 = vector.multi_reduction <add>, %966, %cst_403 [1] : vector<8x32xf32> to vector<8xf32>
    %968 = vector.shape_cast %967 : vector<8xf32> to vector<8x1xf32>
    %cst_404 = arith.constant 3.200000e+01 : f32
    %969 = vector.broadcast %cst_404 : f32 to vector<8x1xf32>
    %970 = arith.divf %968, %969 : vector<8x1xf32>
    %cst_405 = arith.constant 9.99999974E-6 : f32
    %971 = vector.broadcast %cst_405 : f32 to vector<8x1xf32>
    %972 = arith.addf %970, %971 : vector<8x1xf32>
    %973 = math.rsqrt %972 : vector<8x1xf32>
    %974 = vector.broadcast %973 : vector<8x1xf32> to vector<8x32xf32>
    %975 = arith.mulf %965, %974 : vector<8x32xf32>
    %976 = vector.broadcast %957 : vector<1x32xf32> to vector<8x32xf32>
    %977 = arith.mulf %975, %976 : vector<8x32xf32>
    %978 = vector.broadcast %959 : vector<1x32xf32> to vector<8x32xf32>
    %979 = arith.addf %977, %978 : vector<8x32xf32>
    %c0_406 = arith.constant 0 : index
    %c0_407 = arith.constant 0 : index
    %980 = vector.load %arg39[%c0_406, %c0_407] : memref<1x32xf32, #tpu.memory_space<vmem>>, vector<1x32xf32>
    %c0_408 = arith.constant 0 : index
    %c0_409 = arith.constant 0 : index
    %981 = vector.load %arg40[%c0_408, %c0_409] : memref<1x32xf32, #tpu.memory_space<vmem>>, vector<1x32xf32>
    %cst_410 = arith.constant dense<0.000000e+00> : vector<8xf32>
    %982 = vector.multi_reduction <add>, %979, %cst_410 [1] : vector<8x32xf32> to vector<8xf32>
    %983 = vector.shape_cast %982 : vector<8xf32> to vector<8x1xf32>
    %cst_411 = arith.constant 3.200000e+01 : f32
    %984 = vector.broadcast %cst_411 : f32 to vector<8x1xf32>
    %985 = arith.divf %983, %984 : vector<8x1xf32>
    %986 = vector.broadcast %985 : vector<8x1xf32> to vector<8x32xf32>
    %987 = arith.subf %979, %986 : vector<8x32xf32>
    %988 = arith.mulf %987, %987 : vector<8x32xf32>
    %cst_412 = arith.constant dense<0.000000e+00> : vector<8xf32>
    %989 = vector.multi_reduction <add>, %988, %cst_412 [1] : vector<8x32xf32> to vector<8xf32>
    %990 = vector.shape_cast %989 : vector<8xf32> to vector<8x1xf32>
    %cst_413 = arith.constant 3.200000e+01 : f32
    %991 = vector.broadcast %cst_413 : f32 to vector<8x1xf32>
    %992 = arith.divf %990, %991 : vector<8x1xf32>
    %cst_414 = arith.constant 9.99999974E-6 : f32
    %993 = vector.broadcast %cst_414 : f32 to vector<8x1xf32>
    %994 = arith.addf %992, %993 : vector<8x1xf32>
    %995 = math.rsqrt %994 : vector<8x1xf32>
    %996 = vector.broadcast %995 : vector<8x1xf32> to vector<8x32xf32>
    %997 = arith.mulf %987, %996 : vector<8x32xf32>
    %998 = vector.broadcast %980 : vector<1x32xf32> to vector<8x32xf32>
    %999 = arith.mulf %997, %998 : vector<8x32xf32>
    %1000 = vector.broadcast %981 : vector<1x32xf32> to vector<8x32xf32>
    %1001 = arith.addf %999, %1000 : vector<8x32xf32>
    %c0_415 = arith.constant 0 : index
    %c0_416 = arith.constant 0 : index
    %1002 = vector.load %arg41[%c0_415, %c0_416] : memref<32x128xbf16, #tpu.memory_space<vmem>>, vector<32x128xbf16>
    %c0_417 = arith.constant 0 : index
    %c0_418 = arith.constant 0 : index
    %1003 = vector.load %arg42[%c0_417, %c0_418] : memref<1x128xf32, #tpu.memory_space<vmem>>, vector<1x128xf32>
    %1004 = arith.truncf %1001 : vector<8x32xf32> to vector<8x32xbf16>
    %cst_419 = arith.constant dense<0.000000e+00> : vector<8x128xf32>
    %1005 = tpu.matmul %1004, %1002, %cst_419 {dimension_numbers = #tpu.dot_dimension_numbers<[1], [0], [0], [1], [0, 0, 1, 1], [], []>} : vector<8x32xbf16>, vector<32x128xbf16>, vector<8x128xf32> -> vector<8x128xf32>
    %1006 = vector.broadcast %1003 : vector<1x128xf32> to vector<8x128xf32>
    %1007 = arith.addf %1005, %1006 : vector<8x128xf32>
    %c0_420 = arith.constant 0 : index
    %c0_421 = arith.constant 0 : index
    %c0_422 = arith.constant 0 : index
    %1008 = vector.load %arg43[%c0_420, %c0_421, %c0_422] : memref<1x8x128xf32, #tpu.memory_space<vmem>>, vector<1x8x128xf32>
    %1009 = vector.shape_cast %1008 : vector<1x8x128xf32> to vector<8x128xf32>
    %1010 = vector.shape_cast %1007 : vector<8x128xf32> to vector<1x8x128xf32>
    tpu.vector_store %arg43[%c0_420, %c0_421, %c0_422], %1010 {strides = array<i32>} : memref<1x8x128xf32, #tpu.memory_space<vmem>>, vector<1x8x128xf32>,
    return
  }
  func.func @transform_0(%arg0: i32) -> (i32, i32, i32) {
    %c0_i32 = arith.constant 0 : i32
    %c0_i32_0 = arith.constant 0 : i32
    %c0_i32_1 = arith.constant 0 : i32
    return %arg0, %c0_i32, %c0_i32_0 : i32, i32, i32
  }
  func.func @transform_1(%arg0: i32) -> (i32, i32, i32) {
    %c0_i32 = arith.constant 0 : i32
    %c0_i32_0 = arith.constant 0 : i32
    %c0_i32_1 = arith.constant 0 : i32
    return %arg0, %c0_i32, %c0_i32_0 : i32, i32, i32
  }
  func.func @transform_2(%arg0: i32) -> (i32, i32) {
    %c0_i32 = arith.constant 0 : i32
    %c0_i32_0 = arith.constant 0 : i32
    %c0_i32_1 = arith.constant 0 : i32
    return %c0_i32, %c0_i32_0 : i32, i32
  }
  func.func @transform_3(%arg0: i32) -> (i32, i32) {
    %c0_i32 = arith.constant 0 : i32
    %c0_i32_0 = arith.constant 0 : i32
    %c0_i32_1 = arith.constant 0 : i32
    return %c0_i32, %c0_i32_0 : i32, i32
  }
  func.func @transform_4(%arg0: i32) -> (i32, i32, i32) {
    %c0_i32 = arith.constant 0 : i32
    %c0_i32_0 = arith.constant 0 : i32
    %c0_i32_1 = arith.constant 0 : i32
    %c0_i32_2 = arith.constant 0 : i32
    return %c0_i32, %c0_i32_0, %c0_i32_1 : i32, i32, i32
  }
  func.func @transform_5(%arg0: i32) -> (i32, i32, i32) {
    %c0_i32 = arith.constant 0 : i32
    %c0_i32_0 = arith.constant 0 : i32
    %c0_i32_1 = arith.constant 0 : i32
    %c0_i32_2 = arith.constant 0 : i32
    return %c0_i32, %c0_i32_0, %c0_i32_1 : i32, i32, i32
  }
  func.func @transform_6(%arg0: i32) -> (i32, i32, i32) {
    %c0_i32 = arith.constant 0 : i32
    %c0_i32_0 = arith.constant 0 : i32
    %c0_i32_1 = arith.constant 0 : i32
    %c0_i32_2 = arith.constant 0 : i32
    return %c0_i32, %c0_i32_0, %c0_i32_1 : i32, i32, i32
  }
  func.func @transform_7(%arg0: i32) -> (i32, i32, i32) {
    %c0_i32 = arith.constant 0 : i32
    %c0_i32_0 = arith.constant 0 : i32
    %c0_i32_1 = arith.constant 0 : i32
    %c0_i32_2 = arith.constant 0 : i32
    return %c0_i32, %c0_i32_0, %c0_i32_1 : i32, i32, i32
  }
  func.func @transform_8(%arg0: i32) -> (i32, i32, i32) {
    %c0_i32 = arith.constant 0 : i32
    %c0_i32_0 = arith.constant 0 : i32
    %c0_i32_1 = arith.constant 0 : i32
    %c0_i32_2 = arith.constant 0 : i32
    return %c0_i32, %c0_i32_0, %c0_i32_1 : i32, i32, i32
  }
  func.func @transform_9(%arg0: i32) -> (i32, i32, i32) {
    %c0_i32 = arith.constant 0 : i32
    %c0_i32_0 = arith.constant 0 : i32
    %c0_i32_1 = arith.constant 0 : i32
    %c0_i32_2 = arith.constant 0 : i32
    return %c0_i32, %c0_i32_0, %c0_i32_1 : i32, i32, i32
  }
  func.func @transform_10(%arg0: i32) -> (i32, i32, i32) {
    %c0_i32 = arith.constant 0 : i32
    %c0_i32_0 = arith.constant 0 : i32
    %c0_i32_1 = arith.constant 0 : i32
    %c0_i32_2 = arith.constant 0 : i32
    return %c0_i32, %c0_i32_0, %c0_i32_1 : i32, i32, i32
  }
  func.func @transform_11(%arg0: i32) -> (i32, i32, i32) {
    %c0_i32 = arith.constant 0 : i32
    %c0_i32_0 = arith.constant 0 : i32
    %c0_i32_1 = arith.constant 0 : i32
    %c0_i32_2 = arith.constant 0 : i32
    return %c0_i32, %c0_i32_0, %c0_i32_1 : i32, i32, i32
  }
  func.func @transform_12(%arg0: i32) -> (i32, i32, i32) {
    %c0_i32 = arith.constant 0 : i32
    %c0_i32_0 = arith.constant 0 : i32
    %c0_i32_1 = arith.constant 0 : i32
    %c0_i32_2 = arith.constant 0 : i32
    return %c0_i32, %c0_i32_0, %c0_i32_1 : i32, i32, i32
  }
  func.func @transform_13(%arg0: i32) -> (i32, i32, i32) {
    %c0_i32 = arith.constant 0 : i32
    %c0_i32_0 = arith.constant 0 : i32
    %c0_i32_1 = arith.constant 0 : i32
    %c0_i32_2 = arith.constant 0 : i32
    return %c0_i32, %c0_i32_0, %c0_i32_1 : i32, i32, i32
  }
  func.func @transform_14(%arg0: i32) -> (i32, i32, i32) {
    %c0_i32 = arith.constant 0 : i32
    %c0_i32_0 = arith.constant 0 : i32
    %c0_i32_1 = arith.constant 0 : i32
    %c0_i32_2 = arith.constant 0 : i32
    return %c0_i32, %c0_i32_0, %c0_i32_1 : i32, i32, i32
  }
  func.func @transform_15(%arg0: i32) -> (i32, i32, i32) {
    %c0_i32 = arith.constant 0 : i32
    %c0_i32_0 = arith.constant 0 : i32
    %c0_i32_1 = arith.constant 0 : i32
    %c0_i32_2 = arith.constant 0 : i32
    return %c0_i32, %c0_i32_0, %c0_i32_1 : i32, i32, i32
  }
  func.func @transform_16(%arg0: i32) -> (i32, i32) {
    %c0_i32 = arith.constant 0 : i32
    %c0_i32_0 = arith.constant 0 : i32
    %c0_i32_1 = arith.constant 0 : i32
    return %c0_i32, %c0_i32_0 : i32, i32
  }
  func.func @transform_17(%arg0: i32) -> (i32, i32) {
    %c0_i32 = arith.constant 0 : i32
    %c0_i32_0 = arith.constant 0 : i32
    %c0_i32_1 = arith.constant 0 : i32
    return %c0_i32, %c0_i32_0 : i32, i32
  }
  func.func @transform_18(%arg0: i32) -> (i32, i32, i32) {
    %c0_i32 = arith.constant 0 : i32
    %c0_i32_0 = arith.constant 0 : i32
    %c0_i32_1 = arith.constant 0 : i32
    %c0_i32_2 = arith.constant 0 : i32
    return %c0_i32, %c0_i32_0, %c0_i32_1 : i32, i32, i32
  }
  func.func @transform_19(%arg0: i32) -> (i32, i32, i32) {
    %c0_i32 = arith.constant 0 : i32
    %c0_i32_0 = arith.constant 0 : i32
    %c0_i32_1 = arith.constant 0 : i32
    %c0_i32_2 = arith.constant 0 : i32
    return %c0_i32, %c0_i32_0, %c0_i32_1 : i32, i32, i32
  }
  func.func @transform_20(%arg0: i32) -> (i32, i32, i32) {
    %c0_i32 = arith.constant 0 : i32
    %c0_i32_0 = arith.constant 0 : i32
    %c0_i32_1 = arith.constant 0 : i32
    %c0_i32_2 = arith.constant 0 : i32
    return %c0_i32, %c0_i32_0, %c0_i32_1 : i32, i32, i32
  }
  func.func @transform_21(%arg0: i32) -> (i32, i32, i32) {
    %c0_i32 = arith.constant 0 : i32
    %c0_i32_0 = arith.constant 0 : i32
    %c0_i32_1 = arith.constant 0 : i32
    %c0_i32_2 = arith.constant 0 : i32
    return %c0_i32, %c0_i32_0, %c0_i32_1 : i32, i32, i32
  }
  func.func @transform_22(%arg0: i32) -> (i32, i32, i32) {
    %c0_i32 = arith.constant 0 : i32
    %c0_i32_0 = arith.constant 0 : i32
    %c0_i32_1 = arith.constant 0 : i32
    %c0_i32_2 = arith.constant 0 : i32
    return %c0_i32, %c0_i32_0, %c0_i32_1 : i32, i32, i32
  }
  func.func @transform_23(%arg0: i32) -> (i32, i32, i32) {
    %c0_i32 = arith.constant 0 : i32
    %c0_i32_0 = arith.constant 0 : i32
    %c0_i32_1 = arith.constant 0 : i32
    %c0_i32_2 = arith.constant 0 : i32
    return %c0_i32, %c0_i32_0, %c0_i32_1 : i32, i32, i32
  }
  func.func @transform_24(%arg0: i32) -> (i32, i32, i32) {
    %c0_i32 = arith.constant 0 : i32
    %c0_i32_0 = arith.constant 0 : i32
    %c0_i32_1 = arith.constant 0 : i32
    %c0_i32_2 = arith.constant 0 : i32
    return %c0_i32, %c0_i32_0, %c0_i32_1 : i32, i32, i32
  }
  func.func @transform_25(%arg0: i32) -> (i32, i32, i32) {
    %c0_i32 = arith.constant 0 : i32
    %c0_i32_0 = arith.constant 0 : i32
    %c0_i32_1 = arith.constant 0 : i32
    %c0_i32_2 = arith.constant 0 : i32
    return %c0_i32, %c0_i32_0, %c0_i32_1 : i32, i32, i32
  }
  func.func @transform_26(%arg0: i32) -> (i32, i32, i32) {
    %c0_i32 = arith.constant 0 : i32
    %c0_i32_0 = arith.constant 0 : i32
    %c0_i32_1 = arith.constant 0 : i32
    %c0_i32_2 = arith.constant 0 : i32
    return %c0_i32, %c0_i32_0, %c0_i32_1 : i32, i32, i32
  }
  func.func @transform_27(%arg0: i32) -> (i32, i32, i32) {
    %c0_i32 = arith.constant 0 : i32
    %c0_i32_0 = arith.constant 0 : i32
    %c0_i32_1 = arith.constant 0 : i32
    %c0_i32_2 = arith.constant 0 : i32
    return %c0_i32, %c0_i32_0, %c0_i32_1 : i32, i32, i32
  }
  func.func @transform_28(%arg0: i32) -> (i32, i32, i32) {
    %c0_i32 = arith.constant 0 : i32
    %c0_i32_0 = arith.constant 0 : i32
    %c0_i32_1 = arith.constant 0 : i32
    %c0_i32_2 = arith.constant 0 : i32
    return %c0_i32, %c0_i32_0, %c0_i32_1 : i32, i32, i32
  }
  func.func @transform_29(%arg0: i32) -> (i32, i32, i32) {
    %c0_i32 = arith.constant 0 : i32
    %c0_i32_0 = arith.constant 0 : i32
    %c0_i32_1 = arith.constant 0 : i32
    %c0_i32_2 = arith.constant 0 : i32
    return %c0_i32, %c0_i32_0, %c0_i32_1 : i32, i32, i32
  }
  func.func @transform_30(%arg0: i32) -> (i32, i32, i32) {
    %c0_i32 = arith.constant 0 : i32
    %c0_i32_0 = arith.constant 0 : i32
    %c0_i32_1 = arith.constant 0 : i32
    %c0_i32_2 = arith.constant 0 : i32
    return %c0_i32, %c0_i32_0, %c0_i32_1 : i32, i32, i32
  }
  func.func @transform_31(%arg0: i32) -> (i32, i32, i32) {
    %c0_i32 = arith.constant 0 : i32
    %c0_i32_0 = arith.constant 0 : i32
    %c0_i32_1 = arith.constant 0 : i32
    %c0_i32_2 = arith.constant 0 : i32
    return %c0_i32, %c0_i32_0, %c0_i32_1 : i32, i32, i32
  }
  func.func @transform_32(%arg0: i32) -> (i32, i32, i32) {
    %c0_i32 = arith.constant 0 : i32
    %c0_i32_0 = arith.constant 0 : i32
    %c0_i32_1 = arith.constant 0 : i32
    %c0_i32_2 = arith.constant 0 : i32
    return %c0_i32, %c0_i32_0, %c0_i32_1 : i32, i32, i32
  }
  func.func @transform_33(%arg0: i32) -> (i32, i32, i32) {
    %c0_i32 = arith.constant 0 : i32
    %c0_i32_0 = arith.constant 0 : i32
    %c0_i32_1 = arith.constant 0 : i32
    %c0_i32_2 = arith.constant 0 : i32
    return %c0_i32, %c0_i32_0, %c0_i32_1 : i32, i32, i32
  }
  func.func @transform_34(%arg0: i32) -> (i32, i32, i32) {
    %c0_i32 = arith.constant 0 : i32
    %c0_i32_0 = arith.constant 0 : i32
    %c0_i32_1 = arith.constant 0 : i32
    %c0_i32_2 = arith.constant 0 : i32
    return %c0_i32, %c0_i32_0, %c0_i32_1 : i32, i32, i32
  }
  func.func @transform_35(%arg0: i32) -> (i32, i32, i32) {
    %c0_i32 = arith.constant 0 : i32
    %c0_i32_0 = arith.constant 0 : i32
    %c0_i32_1 = arith.constant 0 : i32
    %c0_i32_2 = arith.constant 0 : i32
    return %c0_i32, %c0_i32_0, %c0_i32_1 : i32, i32, i32
  }
  func.func @transform_36(%arg0: i32) -> (i32, i32, i32) {
    %c0_i32 = arith.constant 0 : i32
    %c0_i32_0 = arith.constant 0 : i32
    %c0_i32_1 = arith.constant 0 : i32
    %c0_i32_2 = arith.constant 0 : i32
    return %c0_i32, %c0_i32_0, %c0_i32_1 : i32, i32, i32
  }
  func.func @transform_37(%arg0: i32) -> (i32, i32, i32) {
    %c0_i32 = arith.constant 0 : i32
    %c0_i32_0 = arith.constant 0 : i32
    %c0_i32_1 = arith.constant 0 : i32
    %c0_i32_2 = arith.constant 0 : i32
    return %c0_i32, %c0_i32_0, %c0_i32_1 : i32, i32, i32
  }
  func.func @transform_38(%arg0: i32) -> (i32, i32) {
    %c0_i32 = arith.constant 0 : i32
    %c0_i32_0 = arith.constant 0 : i32
    %c0_i32_1 = arith.constant 0 : i32
    return %c0_i32, %c0_i32_0 : i32, i32
  }
  func.func @transform_39(%arg0: i32) -> (i32, i32) {
    %c0_i32 = arith.constant 0 : i32
    %c0_i32_0 = arith.constant 0 : i32
    %c0_i32_1 = arith.constant 0 : i32
    return %c0_i32, %c0_i32_0 : i32, i32
  }
  func.func @transform_40(%arg0: i32) -> (i32, i32) {
    %c0_i32 = arith.constant 0 : i32
    %c0_i32_0 = arith.constant 0 : i32
    %c0_i32_1 = arith.constant 0 : i32
    return %c0_i32, %c0_i32_0 : i32, i32
  }
  func.func @transform_41(%arg0: i32) -> (i32, i32) {
    %c0_i32 = arith.constant 0 : i32
    %c0_i32_0 = arith.constant 0 : i32
    %c0_i32_1 = arith.constant 0 : i32
    return %c0_i32, %c0_i32_0 : i32, i32
  }
  func.func @transform_42(%arg0: i32) -> (i32, i32, i32) {
    %c0_i32 = arith.constant 0 : i32
    %c0_i32_0 = arith.constant 0 : i32
    %c0_i32_1 = arith.constant 0 : i32
    return %arg0, %c0_i32, %c0_i32_0 : i32, i32, i32
  }
}

</mosaic_0001>

<bundles_post_ra>
// kernel: transformer_forward.1
= control target key start
LH: loop header
LB: loop body
LE: loop exit
PB: predicated region body
PF: predicated region fallthrough
CT: control target
= control target key end

     0   :  { %s19021_s6 = smov 1   ;;  %s19022_s10 = smov 2   ;;  %s21148_s0 = inlined_call_operand.smem [shape: u32[43], index: -1, kind: input, shape index: {}] }
   0x1   :  { %s19137_s5 = sld [smem:[%s21148_s0]]   ;;  %s19023_s14 = smov 3  }
   0x2   :  { %s19142_s9 = sld [smem:[%s21148_s0 + %s19021_s6]]   ;;  %s19024_s18 = smov 4  }
   0x3   :  { %s19147_s13 = sld [smem:[%s21148_s0 + %s19022_s10]]   ;;  %s19025_s22 = smov 5  }
   0x4   :  { %s19152_s17 = sld [smem:[%s21148_s0 + %s19023_s14]]   ;;  %s19026_s26 = smov 6  }
   0x5   :  { %s19157_s21 = sld [smem:[%s21148_s0 + %s19024_s18]]   ;;  %s19027_s30 = smov 7  }
   0x6   :  { %s19162_s25 = sld [smem:[%s21148_s0 + %s19025_s22]]   ;;  %s19028_s4 = smov 8  }
   0x7   :  { %21243 = sst [smem:[#allocation92_spill]] %s19137_s5  ;;  %s19029_s10 = smov 9  }
   0x8   :  { %21244 = sst [smem:[#allocation93_spill]] %s19142_s9  ;;  %s19030_s15 = smov 10  }
   0x9   :  { %21245 = sst [smem:[#allocation94_spill]] %s19147_s13  ;;  %s19031_s20 = smov 11  }
   0xa   :  { %21246 = sst [smem:[#allocation95_spill]] %s19152_s17  ;;  %s19033_s1 = smov 13  }
   0xb   :  { %21247 = sst [smem:[#allocation96_spill]] %s19157_s21  ;;  %s19034_s7 = smov 14  }
   0xc   :  { %s19167_s29 = sld [smem:[%s21148_s0 + %s19026_s26]]   ;;  %s19032_s26 = smov 12  }
   0xd   :  { %s19172_s3 = sld [smem:[%s21148_s0 + %s19027_s30]]   ;;  %s19036_s22 = smov 16  }
   0xe   :  { %s19177_s8 = sld [smem:[%s21148_s0 + %s19028_s4]]   ;;  %s19037_s28 = smov 17  }
   0xf   :  { %s19182_s14 = sld [smem:[%s21148_s0 + %s19029_s10]]  }
  0x10   :  { %s19187_s19 = sld [smem:[%s21148_s0 + %s19030_s15]]   ;;  %s19035_s15 = smov 15  }
  0x11   :  { %s19192_s24 = sld [smem:[%s21148_s0 + %s19031_s20]]  }
  0x12   :  { %21248 = sst [smem:[#allocation97_spill]] %s19167_s29 }
  0x13   :  { %21249 = sst [smem:[#allocation98_spill]] %s19172_s3 }
  0x14   :  { %21250 = sst [smem:[#allocation99_spill]] %s19177_s8 }
  0x15   :  { %21251 = sst [smem:[#allocation100_spill]] %s19182_s14 }
  0x16   :  { %21252 = sst [smem:[#allocation101_spill]] %s19187_s19 }
  0x17   :  { %s19197_s30 = sld [smem:[%s21148_s0 + %s19032_s26]]  }
  0x18   :  { %s19202_s6 = sld [smem:[%s21148_s0 + %s19033_s1]]  }
  0x19   :  { %s19207_s12 = sld [smem:[%s21148_s0 + %s19034_s7]]   ;;  %s19038_s7 = smov 18  }
  0x1a   :  { %s19212_s20 = sld [smem:[%s21148_s0 + %s19035_s15]]   ;;  %s19039_s15 = smov 19  }
  0x1b   :  { %s19217_s27 = sld [smem:[%s21148_s0 + %s19036_s22]]   ;;  %s19040_s22 = smov 20  }
  0x1c   :  { %s19222_s4 = sld [smem:[%s21148_s0 + %s19037_s28]]   ;;  %s19041_s28 = smov 21  }
  0x1d   :  { %21253 = sst [smem:[#allocation102_spill]] %s19197_s30 }
  0x1e   :  { %21254 = sst [smem:[#allocation103_spill]] %s19202_s6 }
  0x1f   :  { %21255 = sst [smem:[#allocation104_spill]] %s19207_s12 }
  0x20   :  { %s19227_s9 = sld [smem:[%s21148_s0 + %s19038_s7]]   ;;  %s19042_s7 = smov 22  }
  0x21   :  { %21256 = sst [smem:[#allocation105_spill]] %s19217_s27 }
  0x22   :  { %21257 = sst [smem:[#allocation106_spill]] %s19222_s4 }
  0x23   :  { %s19232_s5 = sld [smem:[%s21148_s0 + %s19039_s15]]   ;;  %s19043_s15 = smov 23  }
  0x24   :  { %s19237_s27 = sld [smem:[%s21148_s0 + %s19040_s22]]   ;;  %s19044_s22 = smov 24  }
  0x25   :  { %s19242_s12 = sld [smem:[%s21148_s0 + %s19041_s28]]   ;;  %s19045_s28 = smov 25  }
  0x26   :  { %21258 = sst [smem:[#allocation107_spill]] %s19227_s9 }
  0x27   :  { %s19247_s9 = sld [smem:[%s21148_s0 + %s19042_s7]]   ;;  %s19046_s7 = smov 26  }
  0x28   :  { %s19252_s30 = sld [smem:[%s21148_s0 + %s19043_s15]]   ;;  %s19047_s15 = smov 27  }
  0x29   :  { %21259 = sst [smem:[#allocation108_spill]] %s19232_s5 }
  0x2a   :  { %21260 = sst [smem:[#allocation109_spill]] %s19237_s27 }
  0x2b   :  { %21261 = sst [smem:[#allocation110_spill]] %s19242_s12 }
  0x2c   :  { %s19257_s27 = sld [smem:[%s21148_s0 + %s19044_s22]]   ;;  %s19048_s22 = smov 28  }
  0x2d   :  { %21262 = sst [smem:[#allocation111_spill]] %s19247_s9 }
  0x2e   :  { %s19262_s19 = sld [smem:[%s21148_s0 + %s19045_s28]]   ;;  %s19049_s28 = smov 29  }
  0x2f   :  { %s19267_s9 = sld [smem:[%s21148_s0 + %s19046_s7]]   ;;  %s19050_s7 = smov 30  }
  0x30   :  { %s19272_s8 = sld [smem:[%s21148_s0 + %s19047_s15]]   ;;  %s19051_s15 = smov 31  }
  0x31   :  { %s19282_s29 = sld [smem:[%s21148_s0 + %s19049_s28]]   ;;  %s19053_s28 = smov 33  }
  0x32   :  { %21263 = sst [smem:[#allocation112_spill]] %s19257_s27 }
  0x33   :  { %s19277_s27 = sld [smem:[%s21148_s0 + %s19048_s22]]   ;;  %s19052_s22 = smov 32  }
  0x34   :  { %s19292_s21 = sld [smem:[%s21148_s0 + %s19051_s15]]   ;;  %s19055_s15 = smov 35  }
  0x35   :  { %21264 = sst [smem:[#allocation113_spill]] %s19267_s9 }
  0x36   :  { %21265 = sst [smem:[#allocation114_spill]] %s19272_s8 }
  0x37   :  { %s19287_s9 = sld [smem:[%s21148_s0 + %s19050_s7]]   ;;  %s19054_s7 = smov 34  }
  0x38   :  { %s19302_s13 = sld [smem:[%s21148_s0 + %s19053_s28]]   ;;  %s19057_s28 = smov 37  }
  0x39   :  { %21266 = sst [smem:[#allocation115_spill]] %s19277_s27 }
  0x3a   :  { %21268 = sst [smem:[#allocation117_spill]] %s19292_s21 }
  0x3b   :  { %s19297_s27 = sld [smem:[%s21148_s0 + %s19052_s22]]   ;;  %s19056_s22 = smov 36  }
  0x3c   :  { %s19312_s21 = sld [smem:[%s21148_s0 + %s19055_s15]]   ;;  %s19059_s15 = smov 39  }
  0x3d   :  { %21267 = sst [smem:[#allocation116_spill]] %s19287_s9 }
  0x3e   :  { %21270 = sst [smem:[#allocation119_spill]] %s19302_s13 }
  0x3f   :  { %s19307_s9 = sld [smem:[%s21148_s0 + %s19054_s7]]   ;;  %s19058_s7 = smov 38  }
  0x40   :  { %s19322_s13 = sld [smem:[%s21148_s0 + %s19057_s28]]   ;;  %s19061_s28 = smov 41  }
  0x41   :  { %21269 = sst [smem:[#allocation118_spill]] %s19297_s27 }
  0x42   :  { %21272 = sst [smem:[#allocation121_spill]] %s19312_s21 }
  0x43   :  { %s19317_s27 = sld [smem:[%s21148_s0 + %s19056_s22]]   ;;  %s19060_s22 = smov 40  }
  0x44   :  { %s19332_s21 = sld [smem:[%s21148_s0 + %s19059_s15]]  }
  0x45   :  { %21271 = sst [smem:[#allocation120_spill]] %s19307_s9 }
  0x46   :  { %21274 = sst [smem:[#allocation123_spill]] %s19322_s13 }
  0x47   :  { %s19327_s9 = sld [smem:[%s21148_s0 + %s19058_s7]]   ;;  %s19062_s7 = smov 42  }
  0x48   :  { %s19342_s13 = sld [smem:[%s21148_s0 + %s19061_s28]]  }
  0x49   :  { %21273 = sst [smem:[#allocation122_spill]] %s19317_s27 }
  0x4a   :  { %s19337_s27 = sld [smem:[%s21148_s0 + %s19060_s22]]  }
  0x4d   :  { %21275 = sst [smem:[#allocation124_spill]] %s19327_s9 }
  0x4e   :  { %s19347_s9 = sld [smem:[%s21148_s0 + %s19062_s7]]  }
  0x54   :  { %21276 = sst [smem:[#allocation125_spill]] %s19347_s9 }
  0x55   :  { %90 = vsyncpa [#allocation3], 0 }
  0x56   :  { %92 = vsyncpa [#allocation3 + $0x1], 0 }
  0x57   :  { %93 = vsyncpa [#allocation6], 0 }
  0x58   :  { %95 = vsyncpa [#allocation6 + $0x1], 0 }
  0x59   :  { %96 = vsyncpa [#allocation9], 0 }
  0x5a   :  { %97 = vsyncpa [#allocation12], 0 }
  0x5b   :  { %98 = vsyncpa [#allocation15], 0 }
  0x5c   :  { %99 = vsyncpa [#allocation18], 0 }
  0x5d   :  { %100 = vsyncpa [#allocation21], 0 }
  0x5e   :  { %101 = vsyncpa [#allocation24], 0 }
  0x5f   :  { %102 = vsyncpa [#allocation27], 0 }
  0x60   :  { %103 = vsyncpa [#allocation30], 0 }
  0x61   :  { %104 = vsyncpa [#allocation33], 0 }
  0x62   :  { %105 = vsyncpa [#allocation36], 0 }
  0x63   :  { %106 = vsyncpa [#allocation39], 0 }
  0x64   :  { %107 = vsyncpa [#allocation42], 0 }
  0x65   :  { %108 = vsyncpa [#allocation45], 0 }
  0x66   :  { %109 = vsyncpa [#allocation48], 0 }
  0x67   :  { %110 = vsyncpa [#allocation51], 0 }
  0x68   :  { %111 = vsyncpa [#allocation54], 0 }
  0x69   :  { %112 = vsyncpa [#allocation57], 0 }
  0x6a   :  { %113 = vsyncpa [#allocation60], 0 }
  0x6b   :  { %114 = vsyncpa [#allocation63], 0 }
  0x6c   :  { %115 = vsyncpa [#allocation66], 0 }
  0x6d   :  { %116 = vsyncpa [#allocation4], 0 }
  0x6e   :  { %118 = vsyncpa [#allocation4 + $0x1], 0  ;;  %s19349_s0 = smov 0   ;;  %s19351_s15 = smov 0  }
  0x6f   :  { %s19353_s16 = smov 0   ;;  %s19355_s18 = smov 0  }
  0x70 LB: > { %s21277_s14 = sld [smem:[#allocation100_spill]]  ;;  %s21278_s12 = sld [smem:[#allocation110_spill]]  ;;  %s19019_s18 = sphi %s19355_s18, %s21394_s18   ;;  %s19015_s16 = sphi %s19353_s16, %s21398_s16   ;;  %s19011_s15 = sphi %s19351_s15, %s21397_s15   ;;  %s19007_s0 = sphi %s19349_s0, %s21396_s0  }
  0x71   : > { %s21279_s8 = sld [smem:[#allocation114_spill]]  ;;  %s21280_s6 = sld [smem:[#allocation103_spill]] }
  0x72   : > { %s21281_s5 = sld [smem:[#allocation108_spill]]  ;;  %s21282_s4 = sld [smem:[#allocation106_spill]] }
  0x73   : > { %s21283_s3 = sld [smem:[#allocation98_spill]]  ;;  %s21284_s17 = sld [smem:[#allocation95_spill]] }
  0x74   : > { %21285 = sst [smem:[#allocation126_spill]] %s19007_s0  ;;  %s19370_s22 = sadd.s32 4294967295, %s19019_s18  }
  0x75   : > { %s14551_s23 = sadd.s32 4294967294, %s19019_s18   ;;  %s19374_s26 = sadd.s32 1, %s19019_s18  }
  0x76   : > { %21286 = sst [smem:[#allocation127_spill]] %s19374_s26  ;;  %s131_s28 = sadd.s32 1, %s19015_s16 }
  0x77   : > { %s128_s1 = ssub.s32 %s19019_s18, %s19374_s26  ;;  %p138_p0 = scmp.ne.s32.totalorder %s19015_s16, %s19011_s15 }
  0x78   : > { %p129_p1 = scmp.eq.s32.totalorder %s128_s1, 0  ;;  %p139_p2 = scmp.eq.s32.totalorder %s19019_s18, 0 }
  0x79   : > { %p144_p3 = scmp.ne.s32.totalorder %s19011_s15, %s19007_s0  ;;  %p21222_p4 = scmp.eq.s32.totalorder %s19370_s22, 0 }
  0x7a   : > { %s19386_s2 = scalar_select %p129_p1, %s19015_s16, %s131_s28  }
  0x7b   : > { %p19388_p5 = por %p139_p2, %p138_p0  ;;  %p19394_p6 = por %p21222_p4, %p144_p3 }
  0x7c   : > { %21287 = sst [smem:[#allocation128_spill]] %s19386_s2  ;;  %p1034_p7 = scmp.eq.s32.totalorder %s19370_s22, 1 }
  0x7d   : > { %s21289_s10 = scalar_select %p19394_p6, 1, 0 }
  0x7e   : > { %p1040_p8 = scmp.eq.s32.totalorder %s14551_s23, 1  ;;  %p14552_p9 = scmp.ge.s32.totalorder %s19019_s18, 1 }
  0x7f   : > { %21290 = sst [smem:[#allocation129_spill]] %s21289_s10  ;;  %p1047_p10 = scmp.lt.s32.totalorder %s19019_s18, 3 }
  0x80   : > { %p19401_p11 = por %p1034_p7, %p138_p0  ;;  %p19405_p12 = por %p1040_p8, %p144_p3 }
  0x81   : > { %p19409_p13 = pnand %p14552_p9, %p1047_p10 }
  0x82   : > { %s21291_s11 = scalar_select %p19401_p11, 1, 0 }
  0x83   : > { %s21293_s28 = scalar_select %p19405_p12, 1, 0 }
  0x84   : > { %21292 = sst [smem:[#allocation130_spill]] %s21291_s11  ;;  %1051 = sbr.rel (%p19409_p13) target bundleno = 1106 (0x452), region = 12 }
  0x85   : > { %21294 = sst [smem:[#allocation131_spill]] %s21293_s28  ;;  %s19063_s2 = smov (!%p19409_p13), [#allocation8]  }
  0x86   : > { %s21295_s1 = scalar_select %p19409_p13, 1, 0 }
  0x87   : > { %s1071_s23 = sshll.u32 (!%p19409_p13), %s19063_s2, 4  ;;  %s19064_s26 = smov (!%p19409_p13), [#allocation11]   ;;  %s1072_s23 = int_to_ptr.vmem [resolvable:$true] %s1071_s23 }
  0x88   : > { %s1094_s0 = sshll.u32 (!%p19409_p13), %s19064_s26, 4  ;;  %s17765_s11 = scalar_lea.hbm (!%p19409_p13), %s21284_s17, 128  ;;  %s19415_s0 = int_to_ptr.vmem [resolvable:$true] %s1094_s0 }
  0x89   : > { %p17766_p0 = scmp.ne.s32.totalorder (!%p19409_p13), %s21284_s17, %s17765_s11  ;;  %p17771_p3 = scmp.lt.u32.totalorder (!%p19409_p13), %s17765_s11, %s21284_s17 }
  0x8b   : > { %p17767_p1 = pnand %p17766_p0, %p21222_p4 }
  0x8d   : > { %p17768_p2 = pneg %p17767_p1 }
  0x8f   : > { %p17773_p7 = pnand %p17771_p3, %p17768_p2 }
  0x91   : > { %17776 = shalt.err (!%p17773_p7)
}
  0x92   : > { %s17777_s28 = scalar_lea.vmem %s1072_s23, 128  ;;  %p17784_p12 = scmp.lt.s32.totalorder %s1072_s23, %s1072_s23 }
  0x93   : > { %p17778_p8 = scmp.ne.s32.totalorder %s1072_s23, %s17777_s28  ;;  %p17785_p11 = scmp.lt.s32.totalorder %s17777_s28, %s17777_s28 }
  0x95   : > { %p17779_p9 = pnand %p17778_p8, %p21222_p4  ;;  %p17786_p6 = por %p17785_p11, %p17784_p12 }
  0x97   : > { %p17780_p10 = pneg %p17779_p9 }
  0x99   : > { %p17787_p13 = pnand %p17786_p6, %p17780_p10 }
  0x9b   : > { %17790 = shalt.err (!%p17787_p13)
}
  0x9c   : > { %16710 = dma.hbm_to_vmem [thread:$0]  (%p21222_p4), %s21284_s17, 128, %s1072_s23, [#allocation9]  }
  0x9d   : > { %s17791_s26 = scalar_lea.hbm %s19162_s25, 32 }
  0x9e   : > { %p17792_p0 = scmp.ne.s32.totalorder %s19162_s25, %s17791_s26  ;;  %p17797_p3 = scmp.lt.u32.totalorder %s17791_s26, %s19162_s25 }
  0xa0   : > { %p17793_p1 = pnand %p17792_p0, %p21222_p4 }
  0xa2   : > { %p17794_p2 = pneg %p17793_p1 }
  0xa4   : > { %p17799_p7 = pnand %p17797_p3, %p17794_p2 }
  0xa6   : > { %17802 = shalt.err (!%p17799_p7)
}
  0xa7   : > { %s17803_s2 = scalar_lea.vmem %s19415_s0, 32  ;;  %p17810_p13 = scmp.lt.s32.totalorder %s19415_s0, %s19415_s0 }
  0xa8   : > { %p17804_p6 = scmp.ne.s32.totalorder %s19415_s0, %s17803_s2  ;;  %p17811_p8 = scmp.lt.s32.totalorder %s17803_s2, %s17803_s2 }
  0xaa   : > { %p17805_p11 = pnand %p17804_p6, %p21222_p4  ;;  %p17812_p9 = por %p17811_p8, %p17810_p13 }
  0xac   : > { %p17806_p12 = pneg %p17805_p11 }
  0xae   : > { %p17813_p10 = pnand %p17812_p9, %p17806_p12 }
  0xb0   : > { %17816 = shalt.err (!%p17813_p10)
}
  0xb1   : > { %s21188_s11 = smov 16   ;;  %s21191_s28 = smov 1  }
  0xb2   : > { %16714 = dma.hbm_to_vmem [thread:$0]  (%p21222_p4), %s19162_s25, 32, %s19415_s0, [#allocation12], %s21188_s11, %s21188_s11, %s21191_s28  }
  0xb3   : > { %s19067_s23 = smov [#allocation14]   ;;  %s19068_s2 = smov [#allocation17]  }
  0xb4   : > { %s1120_s26 = sshll.u32 %s19067_s23, 4  ;;  %s1146_s17 = sshll.u32 %s19068_s2, 4  ;;  %s1121_s26 = int_to_ptr.vmem [resolvable:$true] %s1120_s26  ;;  %s19445_s17 = int_to_ptr.vmem [resolvable:$true] %s1146_s17 }
  0xb5   : > { %s17817_s9 = scalar_lea.hbm %s21283_s3, 32 }
  0xb6   : > { %p17818_p0 = scmp.ne.s32.totalorder %s21283_s3, %s17817_s9  ;;  %p17823_p3 = scmp.lt.u32.totalorder %s17817_s9, %s21283_s3 }
  0xb8   : > { %p17819_p1 = pnand %p17818_p0, %p21222_p4 }
  0xba   : > { %p17820_p2 = pneg %p17819_p1 }
  0xbc   : > { %p17825_p7 = pnand %p17823_p3, %p17820_p2 }
  0xbe   : > { %17828 = shalt.err (!%p17825_p7)
}
  0xbf   : > { %s17829_s10 = scalar_lea.vmem %s1121_s26, 32  ;;  %p17836_p13 = scmp.lt.s32.totalorder %s1121_s26, %s1121_s26 }
  0xc0   : > { %p17830_p6 = scmp.ne.s32.totalorder %s1121_s26, %s17829_s10  ;;  %p17837_p8 = scmp.lt.s32.totalorder %s17829_s10, %s17829_s10 }
  0xc2   : > { %p17831_p11 = pnand %p17830_p6, %p21222_p4  ;;  %p17838_p9 = por %p17837_p8, %p17836_p13 }
  0xc4   : > { %p17832_p12 = pneg %p17831_p11 }
  0xc6   : > { %p17839_p10 = pnand %p17838_p9, %p17832_p12 }
  0xc8   : > { %17842 = shalt.err (!%p17839_p10)
}
  0xc9   : > { %16718 = dma.hbm_to_vmem [thread:$0]  (%p21222_p4), %s21283_s3, 32, %s1121_s26, [#allocation15], %s21188_s11, %s21188_s11, %s21191_s28  }
  0xca   : > { %s17843_s9 = scalar_lea.hbm %s21277_s14, 32 }
  0xcb   : > { %p17844_p0 = scmp.ne.s32.totalorder %s21277_s14, %s17843_s9  ;;  %p17849_p3 = scmp.lt.u32.totalorder %s17843_s9, %s21277_s14 }
  0xcd   : > { %p17845_p1 = pnand %p17844_p0, %p21222_p4 }
  0xcf   : > { %p17846_p2 = pneg %p17845_p1 }
  0xd1   : > { %p17851_p7 = pnand %p17849_p3, %p17846_p2 }
  0xd3   : > { %17854 = shalt.err (!%p17851_p7)
}
  0xd4   : > { %s17855_s0 = scalar_lea.vmem %s19445_s17, 32  ;;  %p17862_p13 = scmp.lt.s32.totalorder %s19445_s17, %s19445_s17 }
  0xd5   : > { %p17856_p6 = scmp.ne.s32.totalorder %s19445_s17, %s17855_s0  ;;  %p17863_p8 = scmp.lt.s32.totalorder %s17855_s0, %s17855_s0 }
  0xd7   : > { %p17857_p11 = pnand %p17856_p6, %p21222_p4  ;;  %p17864_p9 = por %p17863_p8, %p17862_p13 }
  0xd9   : > { %p17858_p12 = pneg %p17857_p11 }
  0xdb   : > { %p17865_p10 = pnand %p17864_p9, %p17858_p12 }
  0xdd   : > { %17868 = shalt.err (!%p17865_p10)
}
  0xde   : > { %16722 = dma.hbm_to_vmem [thread:$0]  (%p21222_p4), %s21277_s14, 32, %s19445_s17, [#allocation18], %s21188_s11, %s21188_s11, %s21191_s28  }
  0xdf   : > { %s19069_s10 = smov [#allocation20]   ;;  %s19070_s26 = smov [#allocation23]  }
  0xe0   : > { %s1172_s23 = sshll.u32 %s19069_s10, 4  ;;  %s1198_s2 = sshll.u32 %s19070_s26, 4  ;;  %s1173_s23 = int_to_ptr.vmem [resolvable:$true] %s1172_s23  ;;  %s1199_s2 = int_to_ptr.vmem [resolvable:$true] %s1198_s2 }
  0xe1   : > { %s17869_s9 = scalar_lea.hbm %s19192_s24, 512 }
  0xe2   : > { %p17870_p0 = scmp.ne.s32.totalorder %s19192_s24, %s17869_s9  ;;  %p17875_p3 = scmp.lt.u32.totalorder %s17869_s9, %s19192_s24 }
  0xe4   : > { %p17871_p1 = pnand %p17870_p0, %p21222_p4 }
  0xe6   : > { %p17872_p2 = pneg %p17871_p1 }
  0xe8   : > { %p17877_p7 = pnand %p17875_p3, %p17872_p2 }
  0xea   : > { %17880 = shalt.err (!%p17877_p7)
}
  0xeb   : > { %s17881_s0 = scalar_lea.vmem %s1173_s23, 512  ;;  %p17888_p13 = scmp.lt.s32.totalorder %s1173_s23, %s1173_s23 }
  0xec   : > { %p17882_p6 = scmp.ne.s32.totalorder %s1173_s23, %s17881_s0  ;;  %p17889_p8 = scmp.lt.s32.totalorder %s17881_s0, %s17881_s0 }
  0xee   : > { %p17883_p11 = pnand %p17882_p6, %p21222_p4  ;;  %p17890_p9 = por %p17889_p8, %p17888_p13 }
  0xf0   : > { %p17884_p12 = pneg %p17883_p11 }
  0xf2   : > { %p17891_p10 = pnand %p17890_p9, %p17884_p12 }
  0xf4   : > { %17894 = shalt.err (!%p17891_p10)
}
  0xf5   : > { %s21187_s17 = smov 256   ;;  %s17895_s10 = scalar_lea.hbm %s21280_s6, 32 }
  0xf6   : > { %16726 = dma.hbm_to_vmem [thread:$0]  (%p21222_p4), %s19192_s24, 512, %s1173_s23, [#allocation21], %s21187_s17, %s21187_s17, %s21188_s11  }
  0xf7   : > { %p17896_p0 = scmp.ne.s32.totalorder %s21280_s6, %s17895_s10  ;;  %p17901_p3 = scmp.lt.u32.totalorder %s17895_s10, %s21280_s6 }
  0xf9   : > { %p17897_p1 = pnand %p17896_p0, %p21222_p4 }
  0xfb   : > { %p17898_p2 = pneg %p17897_p1 }
  0xfd   : > { %p17903_p7 = pnand %p17901_p3, %p17898_p2 }
  0xff   : > { %17906 = shalt.err (!%p17903_p7)
}
 0x100   : > { %s17907_s26 = scalar_lea.vmem %s1199_s2, 32  ;;  %p17914_p13 = scmp.lt.s32.totalorder %s1199_s2, %s1199_s2 }
 0x101   : > { %p17908_p6 = scmp.ne.s32.totalorder %s1199_s2, %s17907_s26  ;;  %p17915_p8 = scmp.lt.s32.totalorder %s17907_s26, %s17907_s26 }
 0x103   : > { %p17909_p11 = pnand %p17908_p6, %p21222_p4  ;;  %p17916_p9 = por %p17915_p8, %p17914_p13 }
 0x105   : > { %p17910_p12 = pneg %p17909_p11 }
 0x107   : > { %p17917_p10 = pnand %p17916_p9, %p17910_p12 }
 0x109   : > { %17920 = shalt.err (!%p17917_p10)
}
 0x10a   : > { %16730 = dma.hbm_to_vmem [thread:$0]  (%p21222_p4), %s21280_s6, 32, %s1199_s2, [#allocation24], %s21188_s11, %s21188_s11, %s21191_s28  }
 0x10b   : > { %s19072_s23 = smov [#allocation26]   ;;  %s19073_s0 = smov [#allocation29]  }
 0x10c   : > { %s1224_s9 = sshll.u32 %s19072_s23, 4  ;;  %s1249_s10 = sshll.u32 %s19073_s0, 4  ;;  %s1225_s9 = int_to_ptr.vmem [resolvable:$true] %s1224_s9  ;;  %s1250_s10 = int_to_ptr.vmem [resolvable:$true] %s1249_s10 }
 0x10d   : > { %s17921_s26 = scalar_lea.hbm %s19212_s20, 32 }
 0x10e   : > { %p17922_p0 = scmp.ne.s32.totalorder %s19212_s20, %s17921_s26  ;;  %p17927_p3 = scmp.lt.u32.totalorder %s17921_s26, %s19212_s20 }
 0x110   : > { %p17923_p1 = pnand %p17922_p0, %p21222_p4 }
 0x112   : > { %p17924_p2 = pneg %p17923_p1 }
 0x114   : > { %p17929_p7 = pnand %p17927_p3, %p17924_p2 }
 0x116   : > { %17932 = shalt.err (!%p17929_p7)
}
 0x117   : > { %s17933_s17 = scalar_lea.vmem %s1225_s9, 32  ;;  %p17940_p13 = scmp.lt.s32.totalorder %s1225_s9, %s1225_s9 }
 0x118   : > { %p17934_p6 = scmp.ne.s32.totalorder %s1225_s9, %s17933_s17  ;;  %p17941_p8 = scmp.lt.s32.totalorder %s17933_s17, %s17933_s17 }
 0x11a   : > { %p17935_p11 = pnand %p17934_p6, %p21222_p4  ;;  %p17942_p9 = por %p17941_p8, %p17940_p13 }
 0x11c   : > { %p17936_p12 = pneg %p17935_p11 }
 0x11e   : > { %p17943_p10 = pnand %p17942_p9, %p17936_p12 }
 0x120   : > { %17946 = shalt.err (!%p17943_p10)
}
 0x121   : > { %16734 = dma.hbm_to_vmem [thread:$0]  (%p21222_p4), %s19212_s20, 32, %s1225_s9, [#allocation27], %s21188_s11, %s21188_s11, %s21191_s28  }
 0x122   : > { %s17947_s2 = scalar_lea.hbm %s21282_s4, 16 }
 0x123   : > { %p17948_p0 = scmp.ne.s32.totalorder %s21282_s4, %s17947_s2  ;;  %p17953_p3 = scmp.lt.u32.totalorder %s17947_s2, %s21282_s4 }
 0x125   : > { %p17949_p1 = pnand %p17948_p0, %p21222_p4 }
 0x127   : > { %p17950_p2 = pneg %p17949_p1 }
 0x129   : > { %p17955_p7 = pnand %p17953_p3, %p17950_p2 }
 0x12b   : > { %17958 = shalt.err (!%p17955_p7)
}
 0x12c   : > { %s17959_s17 = scalar_lea.vmem %s1250_s10, 16  ;;  %s17965_s23 = scalar_lea.vmem %s1250_s10, 32 }
 0x12d   : > { %p17960_p6 = scmp.ne.s32.totalorder %s1250_s10, %s17959_s17  ;;  %p17966_p13 = scmp.lt.s32.totalorder %s1250_s10, %s1250_s10 }
 0x12e   : > { %p17967_p8 = scmp.lt.s32.totalorder %s17965_s23, %s17959_s17 }
 0x12f   : > { %p17961_p11 = pnand %p17960_p6, %p21222_p4 }
 0x130   : > { %p17968_p9 = por %p17967_p8, %p17966_p13 }
 0x131   : > { %p17962_p12 = pneg %p17961_p11 }
 0x133   : > { %p17969_p10 = pnand %p17968_p9, %p17962_p12 }
 0x135   : > { %17972 = shalt.err (!%p17969_p10)
}
 0x136   : > { %16738 = dma.hbm_to_vmem [thread:$0]  (%p21222_p4), %s21282_s4, 16, %s1250_s10, [#allocation30]  }
 0x137   : > { %s19074_s9 = smov [#allocation32]   ;;  %s19075_s26 = smov [#allocation35]  }
 0x138   : > { %s1272_s0 = sshll.u32 %s19074_s9, 4  ;;  %s1298_s2 = sshll.u32 %s19075_s26, 4  ;;  %s1273_s0 = int_to_ptr.vmem [resolvable:$true] %s1272_s0  ;;  %s1299_s2 = int_to_ptr.vmem [resolvable:$true] %s1298_s2 }
 0x139   : > { %s17973_s11 = scalar_lea.hbm %s21281_s5, 32 }
 0x13a   : > { %p17974_p0 = scmp.ne.s32.totalorder %s21281_s5, %s17973_s11  ;;  %p17979_p3 = scmp.lt.u32.totalorder %s17973_s11, %s21281_s5 }
 0x13c   : > { %p17975_p1 = pnand %p17974_p0, %p21222_p4 }
 0x13e   : > { %p17976_p2 = pneg %p17975_p1 }
 0x140   : > { %p17981_p7 = pnand %p17979_p3, %p17976_p2 }
 0x142   : > { %17984 = shalt.err (!%p17981_p7)
}
 0x143   : > { %s17985_s17 = scalar_lea.vmem %s1273_s0, 32  ;;  %p17992_p13 = scmp.lt.s32.totalorder %s1273_s0, %s1273_s0 }
 0x144   : > { %p17986_p6 = scmp.ne.s32.totalorder %s1273_s0, %s17985_s17  ;;  %p17993_p8 = scmp.lt.s32.totalorder %s17985_s17, %s17985_s17 }
 0x146   : > { %p17987_p11 = pnand %p17986_p6, %p21222_p4  ;;  %p17994_p9 = por %p17993_p8, %p17992_p13 }
 0x148   : > { %p17988_p12 = pneg %p17987_p11 }
 0x14a   : > { %p17995_p10 = pnand %p17994_p9, %p17988_p12 }
 0x14c   : > { %17998 = shalt.err (!%p17995_p10)
}
 0x14d   : > { %s21296_s10 = smov 16   ;;  %s17999_s11 = scalar_lea.hbm %s21278_s12, 32 }
 0x14e   : > { %16742 = dma.hbm_to_vmem [thread:$0]  (%p21222_p4), %s21281_s5, 32, %s1273_s0, [#allocation33], %s21296_s10, %s21296_s10, %s21191_s28  }
 0x14f   : > { %p18000_p0 = scmp.ne.s32.totalorder %s21278_s12, %s17999_s11  ;;  %p18005_p3 = scmp.lt.u32.totalorder %s17999_s11, %s21278_s12 }
 0x151   : > { %p18001_p1 = pnand %p18000_p0, %p21222_p4 }
 0x153   : > { %p18002_p2 = pneg %p18001_p1 }
 0x155   : > { %p18007_p7 = pnand %p18005_p3, %p18002_p2 }
 0x157   : > { %18010 = shalt.err (!%p18007_p7)
}
 0x158   : > { %s18011_s23 = scalar_lea.vmem %s1299_s2, 32  ;;  %p18018_p13 = scmp.lt.s32.totalorder %s1299_s2, %s1299_s2 }
 0x159   : > { %p18012_p6 = scmp.ne.s32.totalorder %s1299_s2, %s18011_s23  ;;  %p18019_p8 = scmp.lt.s32.totalorder %s18011_s23, %s18011_s23 }
 0x15b   : > { %p18013_p11 = pnand %p18012_p6, %p21222_p4  ;;  %p18020_p9 = por %p18019_p8, %p18018_p13 }
 0x15d   : > { %p18014_p12 = pneg %p18013_p11 }
 0x15f   : > { %p18021_p10 = pnand %p18020_p9, %p18014_p12 }
 0x161   : > { %18024 = shalt.err (!%p18021_p10)
}
 0x162   : > { %16746 = dma.hbm_to_vmem [thread:$0]  (%p21222_p4), %s21278_s12, 32, %s1299_s2, [#allocation36], %s21296_s10, %s21296_s10, %s21191_s28  }
 0x163   : > { %s19076_s9 = smov [#allocation38]   ;;  %s19077_s26 = smov [#allocation41]  }
 0x164   : > { %s1324_s0 = sshll.u32 %s19076_s9, 4  ;;  %s1350_s17 = sshll.u32 %s19077_s26, 4  ;;  %s1325_s0 = int_to_ptr.vmem [resolvable:$true] %s1324_s0  ;;  %s1351_s17 = int_to_ptr.vmem [resolvable:$true] %s1350_s17 }
 0x165   : > { %s18025_s11 = scalar_lea.hbm %s19252_s30, 32 }
 0x166   : > { %p18026_p0 = scmp.ne.s32.totalorder %s19252_s30, %s18025_s11  ;;  %p18031_p3 = scmp.lt.u32.totalorder %s18025_s11, %s19252_s30 }
 0x168   : > { %p18027_p1 = pnand %p18026_p0, %p21222_p4 }
 0x16a   : > { %p18028_p2 = pneg %p18027_p1 }
 0x16c   : > { %p18033_p7 = pnand %p18031_p3, %p18028_p2 }
 0x16e   : > { %18036 = shalt.err (!%p18033_p7)
}
 0x16f   : > { %s18037_s23 = scalar_lea.vmem %s1325_s0, 32  ;;  %p18044_p13 = scmp.lt.s32.totalorder %s1325_s0, %s1325_s0 }
 0x170   : > { %p18038_p6 = scmp.ne.s32.totalorder %s1325_s0, %s18037_s23  ;;  %p18045_p8 = scmp.lt.s32.totalorder %s18037_s23, %s18037_s23 }
 0x172   : > { %p18039_p11 = pnand %p18038_p6, %p21222_p4  ;;  %p18046_p9 = por %p18045_p8, %p18044_p13 }
 0x174   : > { %p18040_p12 = pneg %p18039_p11 }
 0x176   : > { %p18047_p10 = pnand %p18046_p9, %p18040_p12 }
 0x178   : > { %18050 = shalt.err (!%p18047_p10)
}
 0x179   : > { %16750 = dma.hbm_to_vmem [thread:$0]  (%p21222_p4), %s19252_s30, 32, %s1325_s0, [#allocation39], %s21296_s10, %s21296_s10, %s21191_s28  }
 0x17a   : > { %s18051_s2 = scalar_lea.hbm %s19262_s19, 32 }
 0x17b   : > { %p18052_p0 = scmp.ne.s32.totalorder %s19262_s19, %s18051_s2  ;;  %p18057_p3 = scmp.lt.u32.totalorder %s18051_s2, %s19262_s19 }
 0x17d   : > { %p18053_p1 = pnand %p18052_p0, %p21222_p4 }
 0x17f   : > { %p18054_p2 = pneg %p18053_p1 }
 0x181   : > { %p18059_p7 = pnand %p18057_p3, %p18054_p2 }
 0x183   : > { %18062 = shalt.err (!%p18059_p7)
}
 0x184   : > { %s18063_s9 = scalar_lea.vmem %s1351_s17, 32  ;;  %p18070_p13 = scmp.lt.s32.totalorder %s1351_s17, %s1351_s17 }
 0x185   : > { %p18064_p6 = scmp.ne.s32.totalorder %s1351_s17, %s18063_s9  ;;  %p18071_p8 = scmp.lt.s32.totalorder %s18063_s9, %s18063_s9 }
 0x187   : > { %p18065_p11 = pnand %p18064_p6, %p21222_p4  ;;  %p18072_p9 = por %p18071_p8, %p18070_p13 }
 0x189   : > { %p18066_p12 = pneg %p18065_p11 }
 0x18b   : > { %p18073_p10 = pnand %p18072_p9, %p18066_p12 }
 0x18d   : > { %18076 = shalt.err (!%p18073_p10)
}
 0x18e   : > { %16754 = dma.hbm_to_vmem [thread:$0]  (%p21222_p4), %s19262_s19, 32, %s1351_s17, [#allocation42], %s21296_s10, %s21296_s10, %s21191_s28  }
 0x18f   : > { %s19078_s0 = smov [#allocation44]   ;;  %s19079_s11 = smov [#allocation47]  }
 0x190   : > { %s1376_s26 = sshll.u32 %s19078_s0, 4  ;;  %s1402_s23 = sshll.u32 %s19079_s11, 4  ;;  %s1377_s26 = int_to_ptr.vmem [resolvable:$true] %s1376_s26  ;;  %s1403_s23 = int_to_ptr.vmem [resolvable:$true] %s1402_s23 }
 0x191   : > { %s18077_s2 = scalar_lea.hbm %s21279_s8, 32 }
 0x192   : > { %p18078_p0 = scmp.ne.s32.totalorder %s21279_s8, %s18077_s2  ;;  %p18083_p3 = scmp.lt.u32.totalorder %s18077_s2, %s21279_s8 }
 0x194   : > { %p18079_p1 = pnand %p18078_p0, %p21222_p4 }
 0x196   : > { %p18080_p2 = pneg %p18079_p1 }
 0x198   : > { %p18085_p7 = pnand %p18083_p3, %p18080_p2 }
 0x19a   : > { %18088 = shalt.err (!%p18085_p7)
}
 0x19b   : > { %s18089_s9 = scalar_lea.vmem %s1377_s26, 32  ;;  %p18096_p13 = scmp.lt.s32.totalorder %s1377_s26, %s1377_s26 }
 0x19c   : > { %p18090_p6 = scmp.ne.s32.totalorder %s1377_s26, %s18089_s9  ;;  %p18097_p8 = scmp.lt.s32.totalorder %s18089_s9, %s18089_s9 }
 0x19e   : > { %p18091_p11 = pnand %p18090_p6, %p21222_p4  ;;  %p18098_p9 = por %p18097_p8, %p18096_p13 }
 0x1a0   : > { %p18092_p12 = pneg %p18091_p11 }
 0x1a2   : > { %p18099_p10 = pnand %p18098_p9, %p18092_p12 }
 0x1a4   : > { %18102 = shalt.err (!%p18099_p10)
}
 0x1a5   : > { %16758 = dma.hbm_to_vmem [thread:$0]  (%p21222_p4), %s21279_s8, 32, %s1377_s26, [#allocation45], %s21296_s10, %s21296_s10, %s21191_s28  }
 0x1a6   : > { %s18103_s17 = scalar_lea.hbm %s19282_s29, 32 }
 0x1a7   : > { %p18104_p0 = scmp.ne.s32.totalorder %s19282_s29, %s18103_s17  ;;  %p18109_p3 = scmp.lt.u32.totalorder %s18103_s17, %s19282_s29 }
 0x1a9   : > { %p18105_p1 = pnand %p18104_p0, %p21222_p4 }
 0x1ab   : > { %p18106_p2 = pneg %p18105_p1 }
 0x1ad   : > { %p18111_p7 = pnand %p18109_p3, %p18106_p2 }
 0x1af   : > { %18114 = shalt.err (!%p18111_p7)
}
 0x1b0   : > { %s18115_s0 = scalar_lea.vmem %s1403_s23, 32  ;;  %p18122_p13 = scmp.lt.s32.totalorder %s1403_s23, %s1403_s23 }
 0x1b1   : > { %p18116_p6 = scmp.ne.s32.totalorder %s1403_s23, %s18115_s0  ;;  %p18123_p8 = scmp.lt.s32.totalorder %s18115_s0, %s18115_s0 }
 0x1b3   : > { %p18117_p11 = pnand %p18116_p6, %p21222_p4  ;;  %p18124_p9 = por %p18123_p8, %p18122_p13 }
 0x1b5   : > { %p18118_p12 = pneg %p18117_p11 }
 0x1b7   : > { %p18125_p10 = pnand %p18124_p9, %p18118_p12 }
 0x1b9   : > { %18128 = shalt.err (!%p18125_p10)
}
 0x1ba   : > { %s21297_s26 = sld [smem:[#allocation117_spill]]  ;;  %s19080_s11 = smov [#allocation50]  }
 0x1bb   : > { %16762 = dma.hbm_to_vmem [thread:$0]  (%p21222_p4), %s19282_s29, 32, %s1403_s23, [#allocation48], %s21296_s10, %s21296_s10, %s21191_s28  }
 0x1bc   : > { %s1428_s2 = sshll.u32 %s19080_s11, 4  ;;  %s19081_s9 = smov [#allocation53]   ;;  %s1429_s2 = int_to_ptr.vmem [resolvable:$true] %s1428_s2 }
 0x1bd   : > { %s1454_s17 = sshll.u32 %s19081_s9, 4  ;;  %s1455_s17 = int_to_ptr.vmem [resolvable:$true] %s1454_s17 }
 0x1c0   : > { %s18129_s0 = scalar_lea.hbm %s21297_s26, 32 }
 0x1c1   : > { %p18130_p0 = scmp.ne.s32.totalorder %s21297_s26, %s18129_s0  ;;  %p18135_p3 = scmp.lt.u32.totalorder %s18129_s0, %s21297_s26 }
 0x1c3   : > { %p18131_p1 = pnand %p18130_p0, %p21222_p4 }
 0x1c5   : > { %p18132_p2 = pneg %p18131_p1 }
 0x1c7   : > { %p18137_p7 = pnand %p18135_p3, %p18132_p2 }
 0x1c9   : > { %18140 = shalt.err (!%p18137_p7)
}
 0x1ca   : > { %s18141_s3 = scalar_lea.vmem %s1429_s2, 32  ;;  %p18148_p13 = scmp.lt.s32.totalorder %s1429_s2, %s1429_s2 }
 0x1cb   : > { %p18142_p6 = scmp.ne.s32.totalorder %s1429_s2, %s18141_s3  ;;  %p18149_p8 = scmp.lt.s32.totalorder %s18141_s3, %s18141_s3 }
 0x1cd   : > { %p18143_p11 = pnand %p18142_p6, %p21222_p4  ;;  %p18150_p9 = por %p18149_p8, %p18148_p13 }
 0x1cf   : > { %p18144_p12 = pneg %p18143_p11 }
 0x1d1   : > { %p18151_p10 = pnand %p18150_p9, %p18144_p12 }
 0x1d3   : > { %18154 = shalt.err (!%p18151_p10)
}
 0x1d4   : > { %s21298_s23 = sld [smem:[#allocation119_spill]] }
 0x1d5   : > { %16766 = dma.hbm_to_vmem [thread:$0]  (%p21222_p4), %s21297_s26, 32, %s1429_s2, [#allocation51], %s21296_s10, %s21296_s10, %s21191_s28  }
 0x1da   : > { %s18155_s11 = scalar_lea.hbm %s21298_s23, 512 }
 0x1db   : > { %p18156_p0 = scmp.ne.s32.totalorder %s21298_s23, %s18155_s11  ;;  %p18161_p3 = scmp.lt.u32.totalorder %s18155_s11, %s21298_s23 }
 0x1dd   : > { %p18157_p1 = pnand %p18156_p0, %p21222_p4 }
 0x1df   : > { %p18158_p2 = pneg %p18157_p1 }
 0x1e1   : > { %p18163_p7 = pnand %p18161_p3, %p18158_p2 }
 0x1e3   : > { %18166 = shalt.err (!%p18163_p7)
}
 0x1e4   : > { %s18167_s3 = scalar_lea.vmem %s1455_s17, 512  ;;  %p18174_p13 = scmp.lt.s32.totalorder %s1455_s17, %s1455_s17 }
 0x1e5   : > { %p18168_p6 = scmp.ne.s32.totalorder %s1455_s17, %s18167_s3  ;;  %p18175_p8 = scmp.lt.s32.totalorder %s18167_s3, %s18167_s3 }
 0x1e7   : > { %p18169_p11 = pnand %p18168_p6, %p21222_p4  ;;  %p18176_p9 = por %p18175_p8, %p18174_p13 }
 0x1e9   : > { %p18170_p12 = pneg %p18169_p11 }
 0x1eb   : > { %p18177_p10 = pnand %p18176_p9, %p18170_p12 }
 0x1ed   : > { %18180 = shalt.err (!%p18177_p10)
}
 0x1ee   : > { %s21299_s2 = smov 256   ;;  %s21300_s9 = sld [smem:[#allocation121_spill]] }
 0x1ef   : > { %16770 = dma.hbm_to_vmem [thread:$0]  (%p21222_p4), %s21298_s23, 512, %s1455_s17, [#allocation54], %s21299_s2, %s21299_s2, %s21296_s10  }
 0x1f0   : > { %s19082_s0 = smov [#allocation56]   ;;  %s19083_s28 = smov [#allocation59]  }
 0x1f1   : > { %s1480_s11 = sshll.u32 %s19082_s0, 4  ;;  %s1506_s4 = sshll.u32 %s19083_s28, 4  ;;  %s1481_s11 = int_to_ptr.vmem [resolvable:$true] %s1480_s11  ;;  %s1507_s4 = int_to_ptr.vmem [resolvable:$true] %s1506_s4 }
 0x1f4   : > { %s18181_s3 = scalar_lea.hbm %s21300_s9, 32 }
 0x1f5   : > { %p18182_p0 = scmp.ne.s32.totalorder %s21300_s9, %s18181_s3  ;;  %p18187_p3 = scmp.lt.u32.totalorder %s18181_s3, %s21300_s9 }
 0x1f7   : > { %p18183_p1 = pnand %p18182_p0, %p21222_p4 }
 0x1f9   : > { %p18184_p2 = pneg %p18183_p1 }
 0x1fb   : > { %p18189_p7 = pnand %p18187_p3, %p18184_p2 }
 0x1fd   : > { %18192 = shalt.err (!%p18189_p7)
}
 0x1fe   : > { %s18193_s5 = scalar_lea.vmem %s1481_s11, 32  ;;  %p18200_p13 = scmp.lt.s32.totalorder %s1481_s11, %s1481_s11 }
 0x1ff   : > { %p18194_p6 = scmp.ne.s32.totalorder %s1481_s11, %s18193_s5  ;;  %p18201_p8 = scmp.lt.s32.totalorder %s18193_s5, %s18193_s5 }
 0x201   : > { %p18195_p11 = pnand %p18194_p6, %p21222_p4  ;;  %p18202_p9 = por %p18201_p8, %p18200_p13 }
 0x203   : > { %p18196_p12 = pneg %p18195_p11 }
 0x205   : > { %p18203_p10 = pnand %p18202_p9, %p18196_p12 }
 0x207   : > { %18206 = shalt.err (!%p18203_p10)
}
 0x208   : > { %s21301_s28 = smov 1   ;;  %s21302_s17 = sld [smem:[#allocation123_spill]] }
 0x209   : > { %16774 = dma.hbm_to_vmem [thread:$0]  (%p21222_p4), %s21300_s9, 32, %s1481_s11, [#allocation57], %s21296_s10, %s21296_s10, %s21301_s28  }
 0x20e   : > { %s18207_s2 = scalar_lea.hbm %s21302_s17, 32 }
 0x20f   : > { %p18208_p0 = scmp.ne.s32.totalorder %s21302_s17, %s18207_s2  ;;  %p18213_p3 = scmp.lt.u32.totalorder %s18207_s2, %s21302_s17 }
 0x211   : > { %p18209_p1 = pnand %p18208_p0, %p21222_p4 }
 0x213   : > { %p18210_p2 = pneg %p18209_p1 }
 0x215   : > { %p18215_p7 = pnand %p18213_p3, %p18210_p2 }
 0x217   : > { %18218 = shalt.err (!%p18215_p7)
}
 0x218   : > { %s18219_s5 = scalar_lea.vmem %s1507_s4, 32  ;;  %p18226_p13 = scmp.lt.s32.totalorder %s1507_s4, %s1507_s4 }
 0x219   : > { %p18220_p6 = scmp.ne.s32.totalorder %s1507_s4, %s18219_s5  ;;  %p18227_p8 = scmp.lt.s32.totalorder %s18219_s5, %s18219_s5 }
 0x21b   : > { %p18221_p11 = pnand %p18220_p6, %p21222_p4  ;;  %p18228_p9 = por %p18227_p8, %p18226_p13 }
 0x21d   : > { %p18222_p12 = pneg %p18221_p11 }
 0x21f   : > { %p18229_p10 = pnand %p18228_p9, %p18222_p12 }
 0x221   : > { %18232 = shalt.err (!%p18229_p10)
}
 0x222   : > { %16778 = dma.hbm_to_vmem [thread:$0]  (%p21222_p4), %s21302_s17, 32, %s1507_s4, [#allocation60], %s21296_s10, %s21296_s10, %s21301_s28  }
 0x223   : > { %s19084_s0 = smov [#allocation62]   ;;  %s18233_s3 = scalar_lea.hbm %s19332_s21, 16 }
 0x224   : > { %s1531_s11 = sshll.u32 %s19084_s0, 4  ;;  %p18234_p0 = scmp.ne.s32.totalorder %s19332_s21, %s18233_s3  ;;  %s1532_s11 = int_to_ptr.vmem [resolvable:$true] %s1531_s11 }
 0x225   : > { %p18239_p3 = scmp.lt.u32.totalorder %s18233_s3, %s19332_s21 }
 0x226   : > { %p18235_p1 = pnand %p18234_p0, %p21222_p4 }
 0x228   : > { %p18236_p2 = pneg %p18235_p1 }
 0x22a   : > { %p18241_p7 = pnand %p18239_p3, %p18236_p2 }
 0x22c   : > { %18244 = shalt.err (!%p18241_p7)
}
 0x22d   : > { %s18245_s2 = scalar_lea.vmem %s1532_s11, 16  ;;  %s18251_s5 = scalar_lea.vmem %s1532_s11, 32 }
 0x22e   : > { %p18246_p6 = scmp.ne.s32.totalorder %s1532_s11, %s18245_s2  ;;  %p18252_p13 = scmp.lt.s32.totalorder %s1532_s11, %s1532_s11 }
 0x22f   : > { %p18253_p8 = scmp.lt.s32.totalorder %s18251_s5, %s18245_s2 }
 0x230   : > { %p18247_p11 = pnand %p18246_p6, %p21222_p4 }
 0x231   : > { %p18254_p9 = por %p18253_p8, %p18252_p13 }
 0x232   : > { %p18248_p12 = pneg %p18247_p11 }
 0x234   : > { %p18255_p10 = pnand %p18254_p9, %p18248_p12 }
 0x236   : > { %18258 = shalt.err (!%p18255_p10)
}
 0x237   : > { %s21303_s4 = sld [smem:[#allocation94_spill]]  ;;  %s19085_s0 = smov [#allocation7]  }
 0x238   : > { %16782 = dma.hbm_to_vmem [thread:$0]  (%p21222_p4), %s19332_s21, 16, %s1532_s11, [#allocation63]  }
 0x239   : > { %s1060_s3 = sshll.u32 %s19085_s0, 4  ;;  %s19086_s6 = smov [#allocation10]   ;;  %s1061_s3 = int_to_ptr.vmem [resolvable:$true] %s1060_s3 }
 0x23a   : > { %s1081_s8 = sshll.u32 %s19086_s6, 4  ;;  %s1082_s8 = int_to_ptr.vmem [resolvable:$true] %s1081_s8 }
 0x23d   : > { %s18259_s9 = scalar_lea.hbm %s21303_s4, 128 }
 0x23e   : > { %p18260_p0 = scmp.ne.s32.totalorder %s21303_s4, %s18259_s9  ;;  %p18265_p3 = scmp.lt.u32.totalorder %s18259_s9, %s21303_s4 }
 0x240   : > { %p18261_p1 = pnand %p18260_p0, %p21222_p4 }
 0x242   : > { %p18262_p2 = pneg %p18261_p1 }
 0x244   : > { %p18267_p7 = pnand %p18265_p3, %p18262_p2 }
 0x246   : > { %18270 = shalt.err (!%p18267_p7)
}
 0x247   : > { %s18271_s2 = scalar_lea.vmem %s1061_s3, 128  ;;  %p18278_p13 = scmp.lt.s32.totalorder %s1061_s3, %s1061_s3 }
 0x248   : > { %p18272_p6 = scmp.ne.s32.totalorder %s1061_s3, %s18271_s2  ;;  %p18279_p8 = scmp.lt.s32.totalorder %s18271_s2, %s18271_s2 }
 0x24a   : > { %p18273_p11 = pnand %p18272_p6, %p21222_p4  ;;  %p18280_p9 = por %p18279_p8, %p18278_p13 }
 0x24c   : > { %p18274_p12 = pneg %p18273_p11 }
 0x24e   : > { %p18281_p10 = pnand %p18280_p9, %p18274_p12 }
 0x250   : > { %18284 = shalt.err (!%p18281_p10)
}
 0x251   : > { %s21304_s6 = sld [smem:[#allocation96_spill]] }
 0x252   : > { %16708 = dma.hbm_to_vmem [thread:$0]  (%p21222_p4), %s21303_s4, 128, %s1061_s3, [#allocation6]  }
 0x257   : > { %s18285_s9 = scalar_lea.hbm %s21304_s6, 512 }
 0x258   : > { %p18286_p0 = scmp.ne.s32.totalorder %s21304_s6, %s18285_s9  ;;  %p18291_p3 = scmp.lt.u32.totalorder %s18285_s9, %s21304_s6 }
 0x25a   : > { %p18287_p1 = pnand %p18286_p0, %p21222_p4 }
 0x25c   : > { %p18288_p2 = pneg %p18287_p1 }
 0x25e   : > { %p18293_p7 = pnand %p18291_p3, %p18288_p2 }
 0x260   : > { %18296 = shalt.err (!%p18293_p7)
}
 0x261   : > { %s18297_s11 = scalar_lea.vmem %s1082_s8, 512  ;;  %p18304_p13 = scmp.lt.s32.totalorder %s1082_s8, %s1082_s8 }
 0x262   : > { %p18298_p6 = scmp.ne.s32.totalorder %s1082_s8, %s18297_s11  ;;  %p18305_p8 = scmp.lt.s32.totalorder %s18297_s11, %s18297_s11 }
 0x264   : > { %p18299_p11 = pnand %p18298_p6, %p21222_p4  ;;  %p18306_p9 = por %p18305_p8, %p18304_p13 }
 0x266   : > { %p18300_p12 = pneg %p18299_p11 }
 0x268   : > { %p18307_p10 = pnand %p18306_p9, %p18300_p12 }
 0x26a   : > { %18310 = shalt.err (!%p18307_p10)
}
 0x26b   : > { %s21207_s5 = smov 64   ;;  %s21305_s0 = sld [smem:[#allocation97_spill]] }
 0x26c   : > { %s21202_s2 = smov 4   ;;  %s19089_s9 = smov [#allocation13]  }
 0x26d   : > { %16712 = dma.hbm_to_vmem [thread:$0]  (%p21222_p4), %s21304_s6, 512, %s1082_s8, [#allocation9], %s21207_s5, %s21207_s5, %s21202_s2  }
 0x26e   : > { %s1107_s4 = sshll.u32 %s19089_s9, 4  ;;  %s19090_s11 = smov [#allocation16]   ;;  %s1108_s4 = int_to_ptr.vmem [resolvable:$true] %s1107_s4 }
 0x26f   : > { %s1133_s12 = sshll.u32 %s19090_s11, 4  ;;  %s1134_s12 = int_to_ptr.vmem [resolvable:$true] %s1133_s12 }
 0x271   : > { %s21306_s3 = smov %s21305_s0  ;;  %s18311_s14 = scalar_lea.hbm %s21305_s0, 512 }
 0x272   : > { %p18312_p0 = scmp.ne.s32.totalorder %s21306_s3, %s18311_s14  ;;  %p18317_p3 = scmp.lt.u32.totalorder %s18311_s14, %s21306_s3 }
 0x274   : > { %p18313_p1 = pnand %p18312_p0, %p21222_p4 }
 0x276   : > { %p18314_p2 = pneg %p18313_p1 }
 0x278   : > { %p18319_p7 = pnand %p18317_p3, %p18314_p2 }
 0x27a   : > { %18322 = shalt.err (!%p18319_p7)
}
 0x27b   : > { %s18323_s17 = scalar_lea.vmem %s1108_s4, 512  ;;  %p18330_p13 = scmp.lt.s32.totalorder %s1108_s4, %s1108_s4 }
 0x27c   : > { %p18324_p6 = scmp.ne.s32.totalorder %s1108_s4, %s18323_s17  ;;  %p18331_p8 = scmp.lt.s32.totalorder %s18323_s17, %s18323_s17 }
 0x27e   : > { %p18325_p11 = pnand %p18324_p6, %p21222_p4  ;;  %p18332_p9 = por %p18331_p8, %p18330_p13 }
 0x280   : > { %p18326_p12 = pneg %p18325_p11 }
 0x282   : > { %p18333_p10 = pnand %p18332_p9, %p18326_p12 }
 0x284   : > { %18336 = shalt.err (!%p18333_p10)
}
 0x285   : > { %s21307_s8 = sld [smem:[#allocation99_spill]] }
 0x286   : > { %16716 = dma.hbm_to_vmem [thread:$0]  (%p21222_p4), %s21306_s3, 512, %s1108_s4, [#allocation12], %s21207_s5, %s21207_s5, %s21202_s2  }
 0x28b   : > { %s18337_s14 = scalar_lea.hbm %s21307_s8, 32 }
 0x28c   : > { %p18338_p0 = scmp.ne.s32.totalorder %s21307_s8, %s18337_s14  ;;  %p18343_p3 = scmp.lt.u32.totalorder %s18337_s14, %s21307_s8 }
 0x28e   : > { %p18339_p1 = pnand %p18338_p0, %p21222_p4 }
 0x290   : > { %p18340_p2 = pneg %p18339_p1 }
 0x292   : > { %p18345_p7 = pnand %p18343_p3, %p18340_p2 }
 0x294   : > { %18348 = shalt.err (!%p18345_p7)
}
 0x295   : > { %s18349_s17 = scalar_lea.vmem %s1134_s12, 32  ;;  %p18356_p13 = scmp.lt.s32.totalorder %s1134_s12, %s1134_s12 }
 0x296   : > { %p18350_p6 = scmp.ne.s32.totalorder %s1134_s12, %s18349_s17  ;;  %p18357_p8 = scmp.lt.s32.totalorder %s18349_s17, %s18349_s17 }
 0x298   : > { %p18351_p11 = pnand %p18350_p6, %p21222_p4  ;;  %p18358_p9 = por %p18357_p8, %p18356_p13 }
 0x29a   : > { %p18352_p12 = pneg %p18351_p11 }
 0x29c   : > { %p18359_p10 = pnand %p18358_p9, %p18352_p12 }
 0x29e   : > { %18362 = shalt.err (!%p18359_p10)
}
 0x29f   : > { %s21308_s4 = sld [smem:[#allocation101_spill]]  ;;  %s19091_s0 = smov [#allocation19]  }
 0x2a0   : > { %16720 = dma.hbm_to_vmem [thread:$0]  (%p21222_p4), %s21307_s8, 32, %s1134_s12, [#allocation15], %s21296_s10, %s21296_s10, %s21301_s28  }
 0x2a1   : > { %s1159_s9 = sshll.u32 %s19091_s0, 4  ;;  %s1160_s9 = int_to_ptr.vmem [resolvable:$true] %s1159_s9 }
 0x2a5   : > { %s18363_s11 = scalar_lea.hbm %s21308_s4, 8192 }
 0x2a6   : > { %p18364_p0 = scmp.ne.s32.totalorder %s21308_s4, %s18363_s11  ;;  %p18369_p3 = scmp.lt.u32.totalorder %s18363_s11, %s21308_s4 }
 0x2a8   : > { %p18365_p1 = pnand %p18364_p0, %p21222_p4 }
 0x2aa   : > { %p18366_p2 = pneg %p18365_p1 }
 0x2ac   : > { %p18371_p7 = pnand %p18369_p3, %p18366_p2 }
 0x2ae   : > { %18374 = shalt.err (!%p18371_p7)
}
 0x2af   : > { %s18375_s14 = scalar_lea.vmem %s1160_s9, 8192  ;;  %p18382_p13 = scmp.lt.s32.totalorder %s1160_s9, %s1160_s9 }
 0x2b0   : > { %p18376_p6 = scmp.ne.s32.totalorder %s1160_s9, %s18375_s14  ;;  %p18383_p8 = scmp.lt.s32.totalorder %s18375_s14, %s18375_s14 }
 0x2b2   : > { %p18377_p11 = pnand %p18376_p6, %p21222_p4  ;;  %p18384_p9 = por %p18383_p8, %p18382_p13 }
 0x2b4   : > { %p18378_p12 = pneg %p18377_p11 }
 0x2b6   : > { %p18385_p10 = pnand %p18384_p9, %p18378_p12 }
 0x2b8   : > { %18388 = shalt.err (!%p18385_p10)
}
 0x2b9   : > { %s21206_s12 = smov 1024   ;;  %s21309_s17 = sld [smem:[#allocation102_spill]] }
 0x2ba   : > { %16724 = dma.hbm_to_vmem [thread:$0]  (%p21222_p4), %s21308_s4, 8192, %s1160_s9, [#allocation18], %s21206_s12, %s21206_s12, %s21207_s5  }
 0x2bb   : > { %s19093_s0 = smov [#allocation22]   ;;  %s19094_s2 = smov [#allocation25]  }
 0x2bc   : > { %s1185_s11 = sshll.u32 %s19093_s0, 4  ;;  %s1211_s14 = sshll.u32 %s19094_s2, 4  ;;  %s1186_s11 = int_to_ptr.vmem [resolvable:$true] %s1185_s11  ;;  %s1212_s14 = int_to_ptr.vmem [resolvable:$true] %s1211_s14 }
 0x2bf   : > { %s18389_s3 = scalar_lea.hbm %s21309_s17, 32768 }
 0x2c0   : > { %p18390_p0 = scmp.ne.s32.totalorder %s21309_s17, %s18389_s3  ;;  %p18395_p3 = scmp.lt.u32.totalorder %s18389_s3, %s21309_s17 }
 0x2c2   : > { %p18391_p1 = pnand %p18390_p0, %p21222_p4 }
 0x2c4   : > { %p18392_p2 = pneg %p18391_p1 }
 0x2c6   : > { %p18397_p7 = pnand %p18395_p3, %p18392_p2 }
 0x2c8   : > { %18400 = shalt.err (!%p18397_p7)
}
 0x2c9   : > { %s18401_s6 = scalar_lea.vmem %s1186_s11, 32768  ;;  %p18408_p13 = scmp.lt.s32.totalorder %s1186_s11, %s1186_s11 }
 0x2ca   : > { %p18402_p6 = scmp.ne.s32.totalorder %s1186_s11, %s18401_s6  ;;  %p18409_p8 = scmp.lt.s32.totalorder %s18401_s6, %s18401_s6 }
 0x2cc   : > { %p18403_p11 = pnand %p18402_p6, %p21222_p4  ;;  %p18410_p9 = por %p18409_p8, %p18408_p13 }
 0x2ce   : > { %p18404_p12 = pneg %p18403_p11 }
 0x2d0   : > { %p18411_p10 = pnand %p18410_p9, %p18404_p12 }
 0x2d2   : > { %18414 = shalt.err (!%p18411_p10)
}
 0x2d3   : > { %s21310_s2 = smov 4   ;;  %s21311_s3 = sld [smem:[#allocation104_spill]] }
 0x2d4   : > { %16728 = dma.hbm_to_vmem [thread:$0]  (%p21222_p4), %s21309_s17, 32768, %s1186_s11, [#allocation21], %s21207_s5, %s21207_s5, %s21310_s2  }
 0x2d9   : > { %s18415_s9 = scalar_lea.hbm %s21311_s3, 32 }
 0x2da   : > { %p18416_p0 = scmp.ne.s32.totalorder %s21311_s3, %s18415_s9  ;;  %p18421_p3 = scmp.lt.u32.totalorder %s18415_s9, %s21311_s3 }
 0x2dc   : > { %p18417_p1 = pnand %p18416_p0, %p21222_p4 }
 0x2de   : > { %p18418_p2 = pneg %p18417_p1 }
 0x2e0   : > { %p18423_p7 = pnand %p18421_p3, %p18418_p2 }
 0x2e2   : > { %18426 = shalt.err (!%p18423_p7)
}
 0x2e3   : > { %s18427_s6 = scalar_lea.vmem %s1212_s14, 32  ;;  %p18434_p13 = scmp.lt.s32.totalorder %s1212_s14, %s1212_s14 }
 0x2e4   : > { %p18428_p6 = scmp.ne.s32.totalorder %s1212_s14, %s18427_s6  ;;  %p18435_p8 = scmp.lt.s32.totalorder %s18427_s6, %s18427_s6 }
 0x2e6   : > { %p18429_p11 = pnand %p18428_p6, %p21222_p4  ;;  %p18436_p9 = por %p18435_p8, %p18434_p13 }
 0x2e8   : > { %p18430_p12 = pneg %p18429_p11 }
 0x2ea   : > { %p18437_p10 = pnand %p18436_p9, %p18430_p12 }
 0x2ec   : > { %18440 = shalt.err (!%p18437_p10)
}
 0x2ed   : > { %s21312_s0 = sld [smem:[#allocation105_spill]]  ;;  %s19095_s9 = smov [#allocation28]  }
 0x2ee   : > { %16732 = dma.hbm_to_vmem [thread:$0]  (%p21222_p4), %s21311_s3, 32, %s1212_s14, [#allocation24], %s21296_s10, %s21296_s10, %s21301_s28  }
 0x2ef   : > { %s1238_s12 = sshll.u32 %s19095_s9, 4  ;;  %s19096_s5 = smov [#allocation31]   ;;  %s1239_s12 = int_to_ptr.vmem [resolvable:$true] %s1238_s12 }
 0x2f0   : > { %s1259_s4 = sshll.u32 %s19096_s5, 4  ;;  %s1260_s4 = int_to_ptr.vmem [resolvable:$true] %s1259_s4 }
 0x2f3   : > { %s21313_s11 = smov %s21312_s0  ;;  %s18441_s6 = scalar_lea.hbm %s21312_s0, 16 }
 0x2f4   : > { %p18442_p0 = scmp.ne.s32.totalorder %s21313_s11, %s18441_s6  ;;  %p18447_p3 = scmp.lt.u32.totalorder %s18441_s6, %s21313_s11 }
 0x2f6   : > { %p18443_p1 = pnand %p18442_p0, %p21222_p4 }
 0x2f8   : > { %p18444_p2 = pneg %p18443_p1 }
 0x2fa   : > { %p18449_p7 = pnand %p18447_p3, %p18444_p2 }
 0x2fc   : > { %18452 = shalt.err (!%p18449_p7)
}
 0x2fd   : > { %s18453_s8 = scalar_lea.vmem %s1239_s12, 16  ;;  %s18459_s14 = scalar_lea.vmem %s1239_s12, 32 }
 0x2fe   : > { %p18454_p6 = scmp.ne.s32.totalorder %s1239_s12, %s18453_s8  ;;  %p18460_p13 = scmp.lt.s32.totalorder %s1239_s12, %s1239_s12 }
 0x2ff   : > { %p18461_p8 = scmp.lt.s32.totalorder %s18459_s14, %s18453_s8 }
 0x300   : > { %p18455_p11 = pnand %p18454_p6, %p21222_p4 }
 0x301   : > { %p18462_p9 = por %p18461_p8, %p18460_p13 }
 0x302   : > { %p18456_p12 = pneg %p18455_p11 }
 0x304   : > { %p18463_p10 = pnand %p18462_p9, %p18456_p12 }
 0x306   : > { %18466 = shalt.err (!%p18463_p10)
}
 0x307   : > { %s21314_s5 = sld [smem:[#allocation107_spill]] }
 0x308   : > { %16736 = dma.hbm_to_vmem [thread:$0]  (%p21222_p4), %s21313_s11, 16, %s1239_s12, [#allocation27]  }
 0x30d   : > { %s18467_s0 = scalar_lea.hbm %s21314_s5, 512 }
 0x30e   : > { %p18468_p0 = scmp.ne.s32.totalorder %s21314_s5, %s18467_s0  ;;  %p18473_p3 = scmp.lt.u32.totalorder %s18467_s0, %s21314_s5 }
 0x310   : > { %p18469_p1 = pnand %p18468_p0, %p21222_p4 }
 0x312   : > { %p18470_p2 = pneg %p18469_p1 }
 0x314   : > { %p18475_p7 = pnand %p18473_p3, %p18470_p2 }
 0x316   : > { %18478 = shalt.err (!%p18475_p7)
}
 0x317   : > { %s18479_s8 = scalar_lea.vmem %s1260_s4, 512  ;;  %p18486_p13 = scmp.lt.s32.totalorder %s1260_s4, %s1260_s4 }
 0x318   : > { %p18480_p6 = scmp.ne.s32.totalorder %s1260_s4, %s18479_s8  ;;  %p18487_p8 = scmp.lt.s32.totalorder %s18479_s8, %s18479_s8 }
 0x31a   : > { %p18481_p11 = pnand %p18480_p6, %p21222_p4  ;;  %p18488_p9 = por %p18487_p8, %p18486_p13 }
 0x31c   : > { %p18482_p12 = pneg %p18481_p11 }
 0x31e   : > { %p18489_p10 = pnand %p18488_p9, %p18482_p12 }
 0x320   : > { %18492 = shalt.err (!%p18489_p10)
}
 0x321   : > { %s21315_s12 = smov 64   ;;  %s21316_s9 = sld [smem:[#allocation109_spill]] }
 0x322   : > { %16740 = dma.hbm_to_vmem [thread:$0]  (%p21222_p4), %s21314_s5, 512, %s1260_s4, [#allocation30], %s21315_s12, %s21315_s12, %s21310_s2  }
 0x323   : > { %s19097_s6 = smov [#allocation34]   ;;  %s19098_s0 = smov [#allocation37]  }
 0x324   : > { %s1285_s14 = sshll.u32 %s19097_s6, 4  ;;  %s1311_s3 = sshll.u32 %s19098_s0, 4  ;;  %s1286_s14 = int_to_ptr.vmem [resolvable:$true] %s1285_s14  ;;  %s1312_s3 = int_to_ptr.vmem [resolvable:$true] %s1311_s3 }
 0x327   : > { %s18493_s8 = scalar_lea.hbm %s21316_s9, 512 }
 0x328   : > { %p18494_p0 = scmp.ne.s32.totalorder %s21316_s9, %s18493_s8  ;;  %p18499_p3 = scmp.lt.u32.totalorder %s18493_s8, %s21316_s9 }
 0x32a   : > { %p18495_p1 = pnand %p18494_p0, %p21222_p4 }
 0x32c   : > { %p18496_p2 = pneg %p18495_p1 }
 0x32e   : > { %p18501_p7 = pnand %p18499_p3, %p18496_p2 }
 0x330   : > { %18504 = shalt.err (!%p18501_p7)
}
 0x331   : > { %s18505_s11 = scalar_lea.vmem %s1286_s14, 512  ;;  %p18512_p13 = scmp.lt.s32.totalorder %s1286_s14, %s1286_s14 }
 0x332   : > { %p18506_p6 = scmp.ne.s32.totalorder %s1286_s14, %s18505_s11  ;;  %p18513_p8 = scmp.lt.s32.totalorder %s18505_s11, %s18505_s11 }
 0x334   : > { %p18507_p11 = pnand %p18506_p6, %p21222_p4  ;;  %p18514_p9 = por %p18513_p8, %p18512_p13 }
 0x336   : > { %p18508_p12 = pneg %p18507_p11 }
 0x338   : > { %p18515_p10 = pnand %p18514_p9, %p18508_p12 }
 0x33a   : > { %18518 = shalt.err (!%p18515_p10)
}
 0x33b   : > { %s21317_s4 = sld [smem:[#allocation111_spill]] }
 0x33c   : > { %16744 = dma.hbm_to_vmem [thread:$0]  (%p21222_p4), %s21316_s9, 512, %s1286_s14, [#allocation33], %s21315_s12, %s21315_s12, %s21310_s2  }
 0x341   : > { %s18519_s6 = scalar_lea.hbm %s21317_s4, 32 }
 0x342   : > { %p18520_p0 = scmp.ne.s32.totalorder %s21317_s4, %s18519_s6  ;;  %p18525_p3 = scmp.lt.u32.totalorder %s18519_s6, %s21317_s4 }
 0x344   : > { %p18521_p1 = pnand %p18520_p0, %p21222_p4 }
 0x346   : > { %p18522_p2 = pneg %p18521_p1 }
 0x348   : > { %p18527_p7 = pnand %p18525_p3, %p18522_p2 }
 0x34a   : > { %18530 = shalt.err (!%p18527_p7)
}
 0x34b   : > { %s18531_s11 = scalar_lea.vmem %s1312_s3, 32  ;;  %p18538_p13 = scmp.lt.s32.totalorder %s1312_s3, %s1312_s3 }
 0x34c   : > { %p18532_p6 = scmp.ne.s32.totalorder %s1312_s3, %s18531_s11  ;;  %p18539_p8 = scmp.lt.s32.totalorder %s18531_s11, %s18531_s11 }
 0x34e   : > { %p18533_p11 = pnand %p18532_p6, %p21222_p4  ;;  %p18540_p9 = por %p18539_p8, %p18538_p13 }
 0x350   : > { %p18534_p12 = pneg %p18533_p11 }
 0x352   : > { %p18541_p10 = pnand %p18540_p9, %p18534_p12 }
 0x354   : > { %18544 = shalt.err (!%p18541_p10)
}
 0x355   : > { %s21318_s14 = sld [smem:[#allocation112_spill]]  ;;  %s19099_s0 = smov [#allocation40]  }
 0x356   : > { %16748 = dma.hbm_to_vmem [thread:$0]  (%p21222_p4), %s21317_s4, 32, %s1312_s3, [#allocation36], %s21296_s10, %s21296_s10, %s21301_s28  }
 0x357   : > { %s1337_s8 = sshll.u32 %s19099_s0, 4  ;;  %s19100_s6 = smov [#allocation43]   ;;  %s1338_s8 = int_to_ptr.vmem [resolvable:$true] %s1337_s8 }
 0x358   : > { %s1363_s5 = sshll.u32 %s19100_s6, 4  ;;  %s1364_s5 = int_to_ptr.vmem [resolvable:$true] %s1363_s5 }
 0x35b   : > { %s18545_s11 = scalar_lea.hbm %s21318_s14, 512 }
 0x35c   : > { %p18546_p0 = scmp.ne.s32.totalorder %s21318_s14, %s18545_s11  ;;  %p18551_p3 = scmp.lt.u32.totalorder %s18545_s11, %s21318_s14 }
 0x35e   : > { %p18547_p1 = pnand %p18546_p0, %p21222_p4 }
 0x360   : > { %p18548_p2 = pneg %p18547_p1 }
 0x362   : > { %p18553_p7 = pnand %p18551_p3, %p18548_p2 }
 0x364   : > { %18556 = shalt.err (!%p18553_p7)
}
 0x365   : > { %s18557_s9 = scalar_lea.vmem %s1338_s8, 512  ;;  %p18564_p13 = scmp.lt.s32.totalorder %s1338_s8, %s1338_s8 }
 0x366   : > { %p18558_p6 = scmp.ne.s32.totalorder %s1338_s8, %s18557_s9  ;;  %p18565_p8 = scmp.lt.s32.totalorder %s18557_s9, %s18557_s9 }
 0x368   : > { %p18559_p11 = pnand %p18558_p6, %p21222_p4  ;;  %p18566_p9 = por %p18565_p8, %p18564_p13 }
 0x36a   : > { %p18560_p12 = pneg %p18559_p11 }
 0x36c   : > { %p18567_p10 = pnand %p18566_p9, %p18560_p12 }
 0x36e   : > { %18570 = shalt.err (!%p18567_p10)
}
 0x36f   : > { %s21319_s3 = sld [smem:[#allocation113_spill]] }
 0x370   : > { %16752 = dma.hbm_to_vmem [thread:$0]  (%p21222_p4), %s21318_s14, 512, %s1338_s8, [#allocation39], %s21315_s12, %s21315_s12, %s21310_s2  }
 0x375   : > { %s18571_s0 = scalar_lea.hbm %s21319_s3, 512 }
 0x376   : > { %p18572_p0 = scmp.ne.s32.totalorder %s21319_s3, %s18571_s0  ;;  %p18577_p3 = scmp.lt.u32.totalorder %s18571_s0, %s21319_s3 }
 0x378   : > { %p18573_p1 = pnand %p18572_p0, %p21222_p4 }
 0x37a   : > { %p18574_p2 = pneg %p18573_p1 }
 0x37c   : > { %p18579_p7 = pnand %p18577_p3, %p18574_p2 }
 0x37e   : > { %18582 = shalt.err (!%p18579_p7)
}
 0x37f   : > { %s18583_s9 = scalar_lea.vmem %s1364_s5, 512  ;;  %p18590_p13 = scmp.lt.s32.totalorder %s1364_s5, %s1364_s5 }
 0x380   : > { %p18584_p6 = scmp.ne.s32.totalorder %s1364_s5, %s18583_s9  ;;  %p18591_p8 = scmp.lt.s32.totalorder %s18583_s9, %s18583_s9 }
 0x382   : > { %p18585_p11 = pnand %p18584_p6, %p21222_p4  ;;  %p18592_p9 = por %p18591_p8, %p18590_p13 }
 0x384   : > { %p18586_p12 = pneg %p18585_p11 }
 0x386   : > { %p18593_p10 = pnand %p18592_p9, %p18586_p12 }
 0x388   : > { %18596 = shalt.err (!%p18593_p10)
}
 0x389   : > { %s21320_s8 = sld [smem:[#allocation115_spill]]  ;;  %s19101_s6 = smov [#allocation46]  }
 0x38a   : > { %16756 = dma.hbm_to_vmem [thread:$0]  (%p21222_p4), %s21319_s3, 512, %s1364_s5, [#allocation42], %s21315_s12, %s21315_s12, %s21310_s2  }
 0x38b   : > { %s1389_s11 = sshll.u32 %s19101_s6, 4  ;;  %s19102_s0 = smov [#allocation49]   ;;  %s1390_s11 = int_to_ptr.vmem [resolvable:$true] %s1389_s11 }
 0x38c   : > { %s1415_s4 = sshll.u32 %s19102_s0, 4  ;;  %s1416_s4 = int_to_ptr.vmem [resolvable:$true] %s1415_s4 }
 0x38f   : > { %s18597_s9 = scalar_lea.hbm %s21320_s8, 512 }
 0x390   : > { %p18598_p0 = scmp.ne.s32.totalorder %s21320_s8, %s18597_s9  ;;  %p18603_p3 = scmp.lt.u32.totalorder %s18597_s9, %s21320_s8 }
 0x392   : > { %p18599_p1 = pnand %p18598_p0, %p21222_p4 }
 0x394   : > { %p18600_p2 = pneg %p18599_p1 }
 0x396   : > { %p18605_p7 = pnand %p18603_p3, %p18600_p2 }
 0x398   : > { %18608 = shalt.err (!%p18605_p7)
}
 0x399   : > { %s18609_s14 = scalar_lea.vmem %s1390_s11, 512  ;;  %p18616_p13 = scmp.lt.s32.totalorder %s1390_s11, %s1390_s11 }
 0x39a   : > { %p18610_p6 = scmp.ne.s32.totalorder %s1390_s11, %s18609_s14  ;;  %p18617_p8 = scmp.lt.s32.totalorder %s18609_s14, %s18609_s14 }
 0x39c   : > { %p18611_p11 = pnand %p18610_p6, %p21222_p4  ;;  %p18618_p9 = por %p18617_p8, %p18616_p13 }
 0x39e   : > { %p18612_p12 = pneg %p18611_p11 }
 0x3a0   : > { %p18619_p10 = pnand %p18618_p9, %p18612_p12 }
 0x3a2   : > { %18622 = shalt.err (!%p18619_p10)
}
 0x3a3   : > { %s21321_s5 = sld [smem:[#allocation116_spill]] }
 0x3a4   : > { %16760 = dma.hbm_to_vmem [thread:$0]  (%p21222_p4), %s21320_s8, 512, %s1390_s11, [#allocation45], %s21315_s12, %s21315_s12, %s21310_s2  }
 0x3a9   : > { %s18623_s6 = scalar_lea.hbm %s21321_s5, 32 }
 0x3aa   : > { %p18624_p0 = scmp.ne.s32.totalorder %s21321_s5, %s18623_s6  ;;  %p18629_p3 = scmp.lt.u32.totalorder %s18623_s6, %s21321_s5 }
 0x3ac   : > { %p18625_p1 = pnand %p18624_p0, %p21222_p4 }
 0x3ae   : > { %p18626_p2 = pneg %p18625_p1 }
 0x3b0   : > { %p18631_p7 = pnand %p18629_p3, %p18626_p2 }
 0x3b2   : > { %18634 = shalt.err (!%p18631_p7)
}
 0x3b3   : > { %s18635_s14 = scalar_lea.vmem %s1416_s4, 32  ;;  %p18642_p13 = scmp.lt.s32.totalorder %s1416_s4, %s1416_s4 }
 0x3b4   : > { %p18636_p6 = scmp.ne.s32.totalorder %s1416_s4, %s18635_s14  ;;  %p18643_p8 = scmp.lt.s32.totalorder %s18635_s14, %s18635_s14 }
 0x3b6   : > { %p18637_p11 = pnand %p18636_p6, %p21222_p4  ;;  %p18644_p9 = por %p18643_p8, %p18642_p13 }
 0x3b8   : > { %p18638_p12 = pneg %p18637_p11 }
 0x3ba   : > { %p18645_p10 = pnand %p18644_p9, %p18638_p12 }
 0x3bc   : > { %18648 = shalt.err (!%p18645_p10)
}
 0x3bd   : > { %s21322_s11 = sld [smem:[#allocation118_spill]]  ;;  %s19103_s0 = smov [#allocation52]  }
 0x3be   : > { %16764 = dma.hbm_to_vmem [thread:$0]  (%p21222_p4), %s21321_s5, 32, %s1416_s4, [#allocation48], %s21296_s10, %s21296_s10, %s21301_s28  }
 0x3bf   : > { %s1441_s9 = sshll.u32 %s19103_s0, 4  ;;  %s19104_s6 = smov [#allocation55]   ;;  %s1442_s9 = int_to_ptr.vmem [resolvable:$true] %s1441_s9 }
 0x3c0   : > { %s1467_s3 = sshll.u32 %s19104_s6, 4  ;;  %s1468_s3 = int_to_ptr.vmem [resolvable:$true] %s1467_s3 }
 0x3c3   : > { %s18649_s14 = scalar_lea.hbm %s21322_s11, 8192 }
 0x3c4   : > { %p18650_p0 = scmp.ne.s32.totalorder %s21322_s11, %s18649_s14  ;;  %p18655_p3 = scmp.lt.u32.totalorder %s18649_s14, %s21322_s11 }
 0x3c6   : > { %p18651_p1 = pnand %p18650_p0, %p21222_p4 }
 0x3c8   : > { %p18652_p2 = pneg %p18651_p1 }
 0x3ca   : > { %p18657_p7 = pnand %p18655_p3, %p18652_p2 }
 0x3cc   : > { %18660 = shalt.err (!%p18657_p7)
}
 0x3cd   : > { %s18661_s8 = scalar_lea.vmem %s1442_s9, 8192  ;;  %p18668_p13 = scmp.lt.s32.totalorder %s1442_s9, %s1442_s9 }
 0x3ce   : > { %p18662_p6 = scmp.ne.s32.totalorder %s1442_s9, %s18661_s8  ;;  %p18669_p8 = scmp.lt.s32.totalorder %s18661_s8, %s18661_s8 }
 0x3d0   : > { %p18663_p11 = pnand %p18662_p6, %p21222_p4  ;;  %p18670_p9 = por %p18669_p8, %p18668_p13 }
 0x3d2   : > { %p18664_p12 = pneg %p18663_p11 }
 0x3d4   : > { %p18671_p10 = pnand %p18670_p9, %p18664_p12 }
 0x3d6   : > { %18674 = shalt.err (!%p18671_p10)
}
 0x3d7   : > { %s21323_s4 = smov 1024   ;;  %s21324_s0 = sld [smem:[#allocation120_spill]] }
 0x3d8   : > { %16768 = dma.hbm_to_vmem [thread:$0]  (%p21222_p4), %s21322_s11, 8192, %s1442_s9, [#allocation51], %s21323_s4, %s21323_s4, %s21315_s12  }
 0x3dd   : > { %s21325_s6 = smov %s21324_s0  ;;  %s18675_s14 = scalar_lea.hbm %s21324_s0, 32768 }
 0x3de   : > { %p18676_p0 = scmp.ne.s32.totalorder %s21325_s6, %s18675_s14  ;;  %p18681_p3 = scmp.lt.u32.totalorder %s18675_s14, %s21325_s6 }
 0x3e0   : > { %p18677_p1 = pnand %p18676_p0, %p21222_p4 }
 0x3e2   : > { %p18678_p2 = pneg %p18677_p1 }
 0x3e4   : > { %p18683_p7 = pnand %p18681_p3, %p18678_p2 }
 0x3e6   : > { %18686 = shalt.err (!%p18683_p7)
}
 0x3e7   : > { %s18687_s8 = scalar_lea.vmem %s1468_s3, 32768  ;;  %p18694_p13 = scmp.lt.s32.totalorder %s1468_s3, %s1468_s3 }
 0x3e8   : > { %p18688_p6 = scmp.ne.s32.totalorder %s1468_s3, %s18687_s8  ;;  %p18695_p8 = scmp.lt.s32.totalorder %s18687_s8, %s18687_s8 }
 0x3ea   : > { %p18689_p11 = pnand %p18688_p6, %p21222_p4  ;;  %p18696_p9 = por %p18695_p8, %p18694_p13 }
 0x3ec   : > { %p18690_p12 = pneg %p18689_p11 }
 0x3ee   : > { %p18697_p10 = pnand %p18696_p9, %p18690_p12 }
 0x3f0   : > { %18700 = shalt.err (!%p18697_p10)
}
 0x3f1   : > { %s21326_s9 = sld [smem:[#allocation122_spill]]  ;;  %s19105_s4 = smov [#allocation58]  }
 0x3f2   : > { %16772 = dma.hbm_to_vmem [thread:$0]  (%p21222_p4), %s21325_s6, 32768, %s1468_s3, [#allocation54], %s21315_s12, %s21315_s12, %s21310_s2  }
 0x3f3   : > { %s1493_s0 = sshll.u32 %s19105_s4, 4  ;;  %s19106_s14 = smov [#allocation61]   ;;  %s1494_s0 = int_to_ptr.vmem [resolvable:$true] %s1493_s0 }
 0x3f4   : > { %s1520_s5 = sshll.u32 %s19106_s14, 4  ;;  %s1521_s5 = int_to_ptr.vmem [resolvable:$true] %s1520_s5 }
 0x3f7   : > { %s18701_s8 = scalar_lea.hbm %s21326_s9, 32 }
 0x3f8   : > { %p18702_p0 = scmp.ne.s32.totalorder %s21326_s9, %s18701_s8  ;;  %p18707_p3 = scmp.lt.u32.totalorder %s18701_s8, %s21326_s9 }
 0x3fa   : > { %p18703_p1 = pnand %p18702_p0, %p21222_p4 }
 0x3fc   : > { %p18704_p2 = pneg %p18703_p1 }
 0x3fe   : > { %p18709_p7 = pnand %p18707_p3, %p18704_p2 }
 0x400   : > { %18712 = shalt.err (!%p18709_p7)
}
 0x401   : > { %s18713_s11 = scalar_lea.vmem %s1494_s0, 32  ;;  %p18720_p13 = scmp.lt.s32.totalorder %s1494_s0, %s1494_s0 }
 0x402   : > { %p18714_p6 = scmp.ne.s32.totalorder %s1494_s0, %s18713_s11  ;;  %p18721_p8 = scmp.lt.s32.totalorder %s18713_s11, %s18713_s11 }
 0x404   : > { %p18715_p11 = pnand %p18714_p6, %p21222_p4  ;;  %p18722_p9 = por %p18721_p8, %p18720_p13 }
 0x406   : > { %p18716_p12 = pneg %p18715_p11 }
 0x408   : > { %p18723_p10 = pnand %p18722_p9, %p18716_p12 }
 0x40a   : > { %18726 = shalt.err (!%p18723_p10)
}
 0x40b   : > { %s21327_s3 = sld [smem:[#allocation124_spill]] }
 0x40c   : > { %16776 = dma.hbm_to_vmem [thread:$0]  (%p21222_p4), %s21326_s9, 32, %s1494_s0, [#allocation57], %s21296_s10, %s21296_s10, %s21301_s28  }
 0x411   : > { %s18727_s4 = scalar_lea.hbm %s21327_s3, 16 }
 0x412   : > { %p18728_p0 = scmp.ne.s32.totalorder %s21327_s3, %s18727_s4  ;;  %p18733_p3 = scmp.lt.u32.totalorder %s18727_s4, %s21327_s3 }
 0x414   : > { %p18729_p1 = pnand %p18728_p0, %p21222_p4 }
 0x416   : > { %p18730_p2 = pneg %p18729_p1 }
 0x418   : > { %p18735_p7 = pnand %p18733_p3, %p18730_p2 }
 0x41a   : > { %18738 = shalt.err (!%p18735_p7)
}
 0x41b   : > { %s18739_s11 = scalar_lea.vmem %s1521_s5, 16  ;;  %s18745_s14 = scalar_lea.vmem %s1521_s5, 32 }
 0x41c   : > { %p18740_p6 = scmp.ne.s32.totalorder %s1521_s5, %s18739_s11  ;;  %p18746_p13 = scmp.lt.s32.totalorder %s1521_s5, %s1521_s5 }
 0x41d   : > { %p18747_p8 = scmp.lt.s32.totalorder %s18745_s14, %s18739_s11 }
 0x41e   : > { %p18741_p11 = pnand %p18740_p6, %p21222_p4 }
 0x41f   : > { %p18748_p9 = por %p18747_p8, %p18746_p13 }
 0x420   : > { %p18742_p12 = pneg %p18741_p11 }
 0x422   : > { %p18749_p10 = pnand %p18748_p9, %p18742_p12 }
 0x424   : > { %18752 = shalt.err (!%p18749_p10)
}
 0x425   : > { %16780 = dma.hbm_to_vmem [thread:$0]  (%p21222_p4), %s21327_s3, 16, %s1521_s5, [#allocation60]  }
 0x426   : > { %s19107_s10 = smov [#allocation64]   ;;  %s19108_s0 = smov [#allocation65]  }
 0x427   : > { %s1541_s28 = sshll.u32 %s19107_s10, 4  ;;  %s1555_s8 = sshll.u32 %s19108_s0, 4  ;;  %s1542_s28 = int_to_ptr.vmem [resolvable:$true] %s1541_s28  ;;  %s1556_s8 = int_to_ptr.vmem [resolvable:$true] %s1555_s8 }
 0x428   : > { %s18753_s4 = scalar_lea.hbm %s19337_s27, 256 }
 0x429   : > { %p18754_p0 = scmp.ne.s32.totalorder %s19337_s27, %s18753_s4  ;;  %p18759_p3 = scmp.lt.u32.totalorder %s18753_s4, %s19337_s27 }
 0x42b   : > { %p18755_p1 = pnand %p18754_p0, %p21222_p4 }
 0x42d   : > { %p18756_p2 = pneg %p18755_p1 }
 0x42f   : > { %p18761_p7 = pnand %p18759_p3, %p18756_p2 }
 0x431   : > { %18764 = shalt.err (!%p18761_p7)
}
 0x432   : > { %s18765_s11 = scalar_lea.vmem %s1542_s28, 256  ;;  %p18772_p13 = scmp.lt.s32.totalorder %s1542_s28, %s1542_s28 }
 0x433   : > { %p18766_p6 = scmp.ne.s32.totalorder %s1542_s28, %s18765_s11  ;;  %p18773_p8 = scmp.lt.s32.totalorder %s18765_s11, %s18765_s11 }
 0x435   : > { %p18767_p11 = pnand %p18766_p6, %p21222_p4  ;;  %p18774_p9 = por %p18773_p8, %p18772_p13 }
 0x437   : > { %p18768_p12 = pneg %p18767_p11 }
 0x439   : > { %p18775_p10 = pnand %p18774_p9, %p18768_p12 }
 0x43b   : > { %18778 = shalt.err (!%p18775_p10)
}
 0x43c   : > { %16784 = dma.hbm_to_vmem [thread:$0]  (%p21222_p4), %s19337_s27, 256, %s1542_s28, [#allocation63], %s21315_s12, %s21315_s12, %s21310_s2  }
 0x43d   : > { %s18779_s5 = scalar_lea.hbm %s19342_s13, 16 }
 0x43e   : > { %p18780_p0 = scmp.ne.s32.totalorder %s19342_s13, %s18779_s5  ;;  %p18785_p3 = scmp.lt.u32.totalorder %s18779_s5, %s19342_s13 }
 0x440   : > { %p18781_p1 = pnand %p18780_p0, %p21222_p4 }
 0x442   : > { %p18782_p2 = pneg %p18781_p1 }
 0x444   : > { %p18787_p7 = pnand %p18785_p3, %p18782_p2 }
 0x446   : > { %18790 = shalt.err (!%p18787_p7)
}
 0x447   : > { %s18791_s14 = scalar_lea.vmem %s1556_s8, 16  ;;  %s18797_s10 = scalar_lea.vmem %s1556_s8, 32 }
 0x448   : > { %p18792_p6 = scmp.ne.s32.totalorder %s1556_s8, %s18791_s14  ;;  %p18798_p13 = scmp.lt.s32.totalorder %s1556_s8, %s1556_s8 }
 0x449   : > { %p18799_p8 = scmp.lt.s32.totalorder %s18797_s10, %s18791_s14 }
 0x44a   : > { %p18793_p11 = pnand %p18792_p6, %p21222_p4 }
 0x44b   : > { %p18800_p9 = por %p18799_p8, %p18798_p13 }
 0x44c   : > { %p18794_p12 = pneg %p18793_p11 }
 0x44e   : > { %p18801_p10 = pnand %p18800_p9, %p18794_p12 }
 0x450   : > { %18804 = shalt.err (!%p18801_p10)
}
 0x451   : > { %16786 = dma.hbm_to_vmem [thread:$0]  (%p21222_p4), %s19342_s13, 16, %s1556_s8, [#allocation66]  }
 0x452 PF: > { %s21328_s2 = sld [smem:[#allocation92_spill]]  ;;  %p16924_p1 = scmp.lt.s32.totalorder %s19019_s18, 2 }
 0x453   : > { %s1566_s12 = sand.u32 1, %s19015_s16   ;;  %s21223_s28 = sshll.u32 %s19019_s18, 7 }
 0x454   : > { %s19932_s0 = sshll.u32 %s1566_s12, 3  ;;  %p19942_p2 = pnand %p16924_p1, %p19388_p5 }
 0x455   : > { %s1570_s4 = scalar_lea.vmem [#allocation2], %s19932_s0  ;;  %s1567_s10 = scalar_lea.sflag [#allocation3], %s1566_s12 }
 0x456   : > { %s1577_s11 = sshll.u32 %s1570_s4, 4  ;;  %p18807_p7 = pneg %p19942_p2  ;;  %s19946_s11 = int_to_ptr.vmem [resolvable:$true] %s1577_s11 }
 0x458   : > { %s19937_s8 = scalar_lea.hbm %s21328_s2, %s21223_s28  ;;  %s18810_s4 = scalar_lea.hbm %s21328_s2, 256 }
 0x459   : > { %s18805_s3 = scalar_lea.hbm %s19937_s8, 128  ;;  %p18811_p12 = scmp.lt.u32.totalorder %s19937_s8, %s21328_s2 }
 0x45a   : > { %p18806_p3 = scmp.ne.s32.totalorder %s19937_s8, %s18805_s3  ;;  %p18812_p5 = scmp.lt.u32.totalorder %s18810_s4, %s18805_s3 }
 0x45b   : > { %p18814_p8 = scmp.lt.u32.totalorder %s18805_s3, %s19937_s8 }
 0x45c   : > { %p18808_p6 = pnand %p18807_p7, %p18806_p3  ;;  %p18813_p13 = por %p18812_p5, %p18811_p12 }
 0x45e   : > { %p18809_p11 = pneg %p18808_p6  ;;  %p18815_p9 = por %p18814_p8, %p18813_p13 }
 0x460   : > { %p18816_p10 = pnand %p18815_p9, %p18809_p11 }
 0x462   : > { %18819 = shalt.err (!%p18816_p10)
}
 0x463   : > { %s18820_s7 = scalar_lea.vmem %s19946_s11, 128  ;;  %s19109_s12 = smov [#allocation2]  }
 0x464   : > { %p18821_p1 = scmp.ne.s32.totalorder %s19946_s11, %s18820_s7  ;;  %s18825_s14 = sshll.u32 %s19109_s12, 4  ;;  %s18826_s14 = int_to_ptr.vmem [resolvable:$false] %s18825_s14 }
 0x465   : > { %s18827_s28 = scalar_lea.vmem %s18826_s14, 256  ;;  %p18828_p3 = scmp.lt.s32.totalorder %s19946_s11, %s18826_s14 }
 0x466   : > { %p18823_p0 = pnand %p18821_p1, %p18807_p7  ;;  %p18829_p6 = scmp.lt.s32.totalorder %s18827_s28, %s18820_s7 }
 0x468   : > { %p18824_p4 = pneg %p18823_p0  ;;  %p18830_p12 = por %p18829_p6, %p18828_p3 }
 0x46a   : > { %p18831_p5 = pnand %p18830_p12, %p18824_p4 }
 0x46c   : > { %18834 = shalt.err (!%p18831_p5)
}
 0x46d   : > { %s21330_s3 = sld [smem:[#allocation93_spill]]  ;;  %s21331_s4 = sshll.u32 %s19019_s18, 7 }
 0x46e   : > { %16876 = dma.hbm_to_vmem [thread:$0]  (!%p19942_p2), %s19937_s8, 128, %s19946_s11, %s1567_s10  }
 0x46f   : > { %s1588_s28 = scalar_lea.vmem [#allocation5], %s19932_s0  ;;  %s21332_s7 = sand.u32 1, %s19019_s18  }
 0x470   : > { %s1595_s14 = sshll.u32 %s1588_s28, 4  ;;  %s1585_s2 = scalar_lea.sflag [#allocation6], %s21332_s7  ;;  %s1596_s14 = int_to_ptr.vmem [resolvable:$true] %s1595_s14 }
 0x473   : > { %s19973_s12 = scalar_lea.hbm %s21330_s3, %s21331_s4  ;;  %s18840_s9 = scalar_lea.hbm %s21330_s3, 256 }
 0x474   : > { %s18835_s6 = scalar_lea.hbm %s19973_s12, 128  ;;  %p18841_p13 = scmp.lt.u32.totalorder %s19973_s12, %s21330_s3 }
 0x475   : > { %p18836_p4 = scmp.ne.s32.totalorder %s19973_s12, %s18835_s6  ;;  %p18842_p8 = scmp.lt.u32.totalorder %s18840_s9, %s18835_s6 }
 0x476   : > { %p18844_p10 = scmp.lt.u32.totalorder %s18835_s6, %s19973_s12 }
 0x477   : > { %p18838_p0 = pnand %p18836_p4, %p18807_p7  ;;  %p18843_p9 = por %p18842_p8, %p18841_p13 }
 0x479   : > { %p18839_p11 = pneg %p18838_p0  ;;  %p18845_p1 = por %p18844_p10, %p18843_p9 }
 0x47b   : > { %p18846_p3 = pnand %p18845_p1, %p18839_p11 }
 0x47d   : > { %18849 = shalt.err (!%p18846_p3)
}
 0x47e   : > { %s18850_s8 = scalar_lea.vmem %s1596_s14, 128  ;;  %s19110_s0 = smov [#allocation5]  }
 0x47f   : > { %p18851_p6 = scmp.ne.s32.totalorder %s1596_s14, %s18850_s8  ;;  %s18855_s11 = sshll.u32 %s19110_s0, 4  ;;  %s18856_s11 = int_to_ptr.vmem [resolvable:$false] %s18855_s11 }
 0x480   : > { %s18857_s10 = scalar_lea.vmem %s18856_s11, 256  ;;  %p18858_p4 = scmp.lt.s32.totalorder %s1596_s14, %s18856_s11 }
 0x481   : > { %p18853_p12 = pnand %p18851_p6, %p18807_p7  ;;  %p18859_p0 = scmp.lt.s32.totalorder %s18857_s10, %s18850_s8 }
 0x483   : > { %p18854_p5 = pneg %p18853_p12  ;;  %p18860_p8 = por %p18859_p0, %p18858_p4 }
 0x485   : > { %p18861_p13 = pnand %p18860_p8, %p18854_p5 }
 0x487   : > { %18864 = shalt.err (!%p18861_p13)
}
 0x488   : > { %16879 = dma.hbm_to_vmem [thread:$0]  (!%p19942_p2), %s19973_s12, 128, %s1596_s14, %s1585_s2  }
 0x489   : > { %p21333_p11 = scmp.ne.s32.totalorder %s21295_s1, 0 }
 0x48a   : > { %s21334_s6 = sld [smem:[#allocation129_spill]] (!%p21333_p11)  ;;  %s19996_s9 = sand.u32 (!%p21333_p11), 1, %s19011_s15  }
 0x48b   : > { %1604 = sbr.rel (%p21333_p11) target bundleno = 15372 (0x3c0c), region = 188  ;;  %s19999_s4 = sshll.u32 (!%p21333_p11), %s19996_s9, 3 }
 0x48c   : > { %s1607_s28 = scalar_lea.sflag (!%p21333_p11), [#allocation3], %s19996_s9  ;;  %s1610_s7 = scalar_lea.vmem (!%p21333_p11), [#allocation2], %s19999_s4 }
 0x490   : > { %p21335_p7 = scmp.ne.s32.totalorder (!%p21333_p11), %s21334_s6, 0 }
 0x492   : > { %18910 = dma.done.wait (%p21335_p7), %s1607_s28, 128  }
 0x493   : > { %18912 = vsyncadd (%p21335_p7), %s1607_s28, 4294967168  ;;  %s1615_s1 = sand.u32 1, %s19370_s22  }
 0x494   : > { %s1616_s2 = scalar_lea.sflag [#allocation6], %s1615_s1 }
 0x495   : > { %18914 = dma.done.wait (%p21335_p7), %s1616_s2, 128  }
 0x496   : > { %18916 = vsyncadd (%p21335_p7), %s1616_s2, 4294967168  ;;  %p21336_p2 = scmp.eq.s32.totalorder %s19370_s22, 0 }
 0x498   : > { %18918 = dma.done.wait (%p21336_p2), [#allocation6], 128   ;;  %p21337_p9 = pmov %p21336_p2 }
 0x499   : > { %p21338_p10 = pmov %p21336_p2 }
 0x49a   : > { %18920 = vsyncadd (%p21337_p9), [#allocation6], 4294967168 }
 0x49b   : > { %18922 = dma.done.wait (%p21338_p10), [#allocation9], 640   ;;  %p21339_p1 = pmov %p21336_p2 }
 0x49d   : > { %18924 = vsyncadd (%p21339_p1), [#allocation9], 4294966656  ;;  %p21340_p3 = pmov %p21339_p1 }
 0x49e   : > { %p21341_p6 = pmov %p21339_p1 }
 0x49f   : > { %18926 = dma.done.wait (%p21340_p3), [#allocation12], 544  }
 0x4a0   : > { %18928 = vsyncadd (%p21341_p6), [#allocation12], 4294966752  ;;  %p21342_p12 = pmov %p21339_p1 }
 0x4a1   : > { %p21343_p5 = pmov %p21339_p1 }
 0x4a2   : > { %18930 = dma.done.wait (%p21342_p12), [#allocation15], 64  }
 0x4a3   : > { %18932 = vsyncadd (%p21343_p5), [#allocation15], 4294967232  ;;  %p21344_p4 = pmov %p21339_p1 }
 0x4a4   : > { %p21345_p0 = pmov %p21339_p1 }
 0x4a5   : > { %18934 = dma.done.wait (%p21344_p4), [#allocation18], 8224  }
 0x4a6   : > { %18936 = vsyncadd (%p21345_p0), [#allocation18], 4294959072  ;;  %p21346_p8 = pmov %p21345_p0 }
 0x4a7   : > { %p21347_p13 = pmov %p21345_p0 }
 0x4a8   : > { %18938 = dma.done.wait (%p21346_p8), [#allocation21], 33280  }
 0x4a9   : > { %18940 = vsyncadd (%p21347_p13), [#allocation21], 4294934016  ;;  %p21348_p11 = pmov %p21345_p0 }
 0x4aa   : > { %p21349_p7 = pmov %p21345_p0 }
 0x4ab   : > { %18942 = dma.done.wait (%p21348_p11), [#allocation24], 64  }
 0x4ac   : > { %18944 = vsyncadd (%p21349_p7), [#allocation24], 4294967232  ;;  %p21350_p2 = pmov %p21345_p0 }
 0x4ad   : > { %p21351_p9 = pmov %p21345_p0 }
 0x4ae   : > { %18946 = dma.done.wait (%p21350_p2), [#allocation27], 48  }
 0x4af   : > { %18948 = vsyncadd (%p21351_p9), [#allocation27], 4294967248  ;;  %p21352_p10 = pmov %p21345_p0 }
 0x4b0   : > { %p21353_p1 = pmov %p21345_p0 }
 0x4b1   : > { %18950 = dma.done.wait (%p21352_p10), [#allocation30], 528  }
 0x4b2   : > { %18952 = vsyncadd (%p21353_p1), [#allocation30], 4294966768  ;;  %p21354_p3 = pmov %p21345_p0 }
 0x4b3   : > { %p21355_p6 = pmov %p21345_p0 }
 0x4b4   : > { %18954 = dma.done.wait (%p21354_p3), [#allocation33], 544  }
 0x4b5   : > { %18956 = vsyncadd (%p21355_p6), [#allocation33], 4294966752  ;;  %p21356_p12 = pmov %p21345_p0 }
 0x4b6   : > { %p21357_p5 = pmov %p21345_p0 }
 0x4b7   : > { %18958 = dma.done.wait (%p21356_p12), [#allocation36], 64  }
 0x4b8   : > { %18960 = vsyncadd (%p21357_p5), [#allocation36], 4294967232  ;;  %p21358_p4 = pmov %p21345_p0 }
 0x4ba   : > { %18962 = dma.done.wait (%p21358_p4), [#allocation39], 544  }
 0x4bb   : > { %18964 = vsyncadd (%p21345_p0), [#allocation39], 4294966752  ;;  %p21359_p8 = pmov %p21345_p0 }
 0x4bc   : > { %p21360_p13 = pmov %p21345_p0 }
 0x4bd   : > { %18966 = dma.done.wait (%p21359_p8), [#allocation42], 544  }
 0x4be   : > { %18968 = vsyncadd (%p21360_p13), [#allocation42], 4294966752  ;;  %p21361_p11 = pmov %p21345_p0 }
 0x4bf   : > { %p21362_p7 = pmov %p21345_p0 }
 0x4c0   : > { %18970 = dma.done.wait (%p21361_p11), [#allocation45], 544  }
 0x4c1   : > { %18972 = vsyncadd (%p21362_p7), [#allocation45], 4294966752  ;;  %p21363_p2 = pmov %p21345_p0 }
 0x4c2   : > { %p21364_p9 = pmov %p21345_p0 }
 0x4c3   : > { %18974 = dma.done.wait (%p21363_p2), [#allocation48], 64  }
 0x4c4   : > { %18976 = vsyncadd (%p21364_p9), [#allocation48], 4294967232  ;;  %p21365_p10 = pmov %p21345_p0 }
 0x4c5   : > { %p21366_p1 = pmov %p21345_p0 }
 0x4c6   : > { %18978 = dma.done.wait (%p21365_p10), [#allocation51], 8224  }
 0x4c7   : > { %18980 = vsyncadd (%p21366_p1), [#allocation51], 4294959072  ;;  %p21367_p3 = pmov %p21345_p0 }
 0x4c8   : > { %p21368_p6 = pmov %p21345_p0 }
 0x4c9   : > { %18982 = dma.done.wait (%p21367_p3), [#allocation54], 33280  }
 0x4ca   : > { %18984 = vsyncadd (%p21368_p6), [#allocation54], 4294934016  ;;  %p21369_p12 = pmov %p21345_p0 }
 0x4cb   : > { %p21370_p5 = pmov %p21345_p0 }
 0x4cc   : > { %18986 = dma.done.wait (%p21369_p12), [#allocation57], 64  }
 0x4cd   : > { %18988 = vsyncadd (%p21370_p5), [#allocation57], 4294967232  ;;  %p21371_p4 = pmov %p21345_p0 }
 0x4cf   : > { %18990 = dma.done.wait (%p21371_p4), [#allocation60], 48  }
 0x4d0   : > { %18992 = vsyncadd (%p21345_p0), [#allocation60], 4294967248  ;;  %p21372_p8 = pmov %p21345_p0 }
 0x4d1   : > { %p21373_p13 = pmov %p21345_p0 }
 0x4d2   : > { %18994 = dma.done.wait (%p21372_p8), [#allocation63], 272  }
 0x4d3   : > { %18996 = vsyncadd (%p21373_p13), [#allocation63], 4294967024  ;;  %p21374_p11 = pmov %p21345_p0 }
 0x4d4   : > { %p21375_p7 = pmov %p21345_p0 }
 0x4d5   : > { %18998 = dma.done.wait (%p21374_p11), [#allocation66], 16  }
 0x4d6   : > { %19000 = vsyncadd (%p21375_p7), [#allocation66], 4294967280  ;;  %v19111_v0 = vmov 0.0   ;;  %vm19112_vm0 = vmmov 0   ;;  %v17103_v1 = vld [vmem:[#allocation10] sm:$0xff]   ;;  %v17104_v2 = vld [vmem:[#allocation10 + $0x8] sm:$0xff]  }
 0x4d7   : > { %16299 = vmatprep.subr.bf16.mxu0 %v19111_v0  ;;  %16303 = vmatprep.mubr.msk.bf16.mxu0 %vm19112_vm0, %v19111_v0  ;;  %v1886_v3 = vld [vmem:[%s1610_s7] sm:$0xff]  ;;  %vm1913_vm1 = vcmask 261120   ;;  %v14642_v7 = vld [vmem:[#allocation11] ss:$0 sm:$0xff]  ;;  %s19113_s12 = smov 120   ;;  %s19114_s14 = smov 96  }
 0x4d8   : > { %16307 = vmatprep.subr.bf16.mxu1 %v19111_v0  ;;  %16309 = vmatprep.mubr.msk.bf16.mxu1 %vm19112_vm0, %v19111_v0  ;;  %v1887_v4 = vld [vmem:[#allocation7] sm:$0xff]  ;;  %s21241_s8 = smov 80   ;;  %s19116_s0 = smov 88   ;;  %vm1961_vm2 = vcmask 64512   ;;  %vm2026_vm3 = vcmask 1043456   ;;  %vm2416_vm4 = vcmask 130048  }
 0x4d9   : > { %16300 = vmatpush3.bf16.msra.mxu0 %v17103_v1  ;;  %v20106_v5 = vadd.f32 %v1887_v4, %v1886_v3  ;;  %s21242_s11 = smov 72   ;;  %s21233_s10 = smov 112   ;;  %vm2418_vm5 = vcmask 195584  }
 0x4da   : > { %16301 = vmatprep.subr.bf16.mxu0 %v19111_v0  ;;  %s21231_s6 = smov 104   ;;  %s21239_s28 = smov 56  }
 0x4db   : > { %v1894_v6 = vpack.c.bf16 %v20106_v5, %v20106_v5  ;;  %s21240_s7 = smov 64   ;;  %s21229_s1 = smov 40  }
 0x4dc   : > { %s21227_s2 = smov 48   ;;  %s19124_s5 = smov 8  }
 0x4dd   : > { %16302 = vmatpush3.bf16.msra.mxu0 %v17104_v2 }
 0x4de   : > { %16313 = vmatprep.subr.bf16.mxu0 %v19111_v0 }
 0x4e0   : > { %16304 = vmatmul.mubr.msk.bf16.vlgmr.msra.gmra.mrb[0].mxu0 %vm1913_vm1, %v1894_v6 }
 0x4e1   : > { %16315 = vmatprep.mubr.msk.bf16.mxu0 %vm19112_vm0, %v19111_v0 }
 0x5b3   : > { %v1951_v8 = vpop.f32.mrb[0].mxu0 }
 0x5b4   : > { %v1952_v9 = vadd.f32 %v14642_v7, %v1951_v8  ;;  %v16305_v10 = vpop.f32.mrb[1].mxu0 }
 0x5b5   : > { %v1954_v11 = vpop.f32.mrb[2].mxu0 }
 0x5b6   : > { %v20114_v12 = vpack.c.bf16 %v1952_v9, %v1952_v9  ;;  %v16306_v13 = vpop.f32.mrb[3].mxu0 }
 0x5b8   : > { %2070 = vrot.lane.b32.xlu1 %v20114_v12, %s19113_s12  ;;  %1959 = vrot.lane.b32.xlu0 %v20114_v12, %s19114_s14 }
 0x5bc   : > { %2183 = vrot.lane.b32.xlu1 %v20114_v12, %s21241_s8  ;;  %2072 = vrot.lane.b32.xlu0 %v20114_v12, %s19116_s0 }
 0x5c0   : > { %2294 = vrot.lane.b32.xlu1 %v20114_v12, %s21242_s11  ;;  %2181 = vrot.lane.b32.xlu0 %v20114_v12, %s21233_s10 }
 0x5c4   : > { %2292 = vrot.lane.b32.xlu0 %v20114_v12, %s21231_s6 }
 0x62a   : > { %v2071_v14 = vpop.permute.xlu1 %2070  ;;  %v1960_v15 = vpop.permute.xlu0 %1959 }
 0x62b   : > { %v1966_v16 = vsel %vm1961_vm2, %v1960_v15, 0 }
 0x62c   : > { %16308 = vmatpush3.bf16.xpose.msra.mxu1 %v1966_v16 }
 0x62d   : > { %16319 = vmatprep.subr.bf16.mxu1 %v19111_v0 }
 0x62e   : > { %v2184_v17 = vpop.permute.xlu1 %2183  ;;  %v2073_v19 = vpop.permute.xlu0 %2072 }
 0x62f   : > { %v2189_v18 = vsel %vm1961_vm2, %v2184_v17, 0  ;;  %v2078_v21 = vsel %vm1961_vm2, %v2073_v19, 0 }
 0x632   : > { %v2295_v20 = vpop.permute.xlu1 %2294  ;;  %v2182_v23 = vpop.permute.xlu0 %2181 }
 0x633   : > { %v2300_v22 = vsel %vm1961_vm2, %v2295_v20, 0  ;;  %16310 = vmatmul.mubr.msk.bf16.vlgmr.msra.gmra.mrb[0].mxu1 %vm1961_vm2, %v20114_v12 }
 0x634   : > { %16320 = vmatpush3.bf16.xpose.msra.mxu1 %v2078_v21  ;;  %16321 = vmatprep.mubr.msk.bf16.mxu1 %vm19112_vm0, %v19111_v0 }
 0x635   : > { %16331 = vmatprep.subr.bf16.mxu1 %v19111_v0 }
 0x636   : > { %v2293_v24 = vpop.permute.xlu0 %2292 }
 0x63b   : > { %16322 = vmatmul.mubr.msk.bf16.vlgmr.msra.gmra.mrb[4].mxu1 %vm1961_vm2, %v2071_v14 }
 0x63c   : > { %16332 = vmatpush3.bf16.xpose.msra.mxu1 %v2189_v18  ;;  %16333 = vmatprep.mubr.msk.bf16.mxu1 %vm19112_vm0, %v19111_v0 }
 0x63d   : > { %16343 = vmatprep.subr.bf16.mxu1 %v19111_v0 }
 0x643   : > { %16334 = vmatmul.mubr.msk.bf16.vlgmr.msra.gmra.mrb[8].mxu1 %vm1961_vm2, %v2182_v23 }
 0x644   : > { %16344 = vmatpush3.bf16.xpose.msra.mxu1 %v2300_v22  ;;  %16345 = vmatprep.mubr.msk.bf16.mxu1 %vm19112_vm0, %v19111_v0 }
 0x645   : > { %16355 = vmatprep.subr.bf16.mxu1 %v19111_v0 }
 0x64b   : > { %16346 = vmatmul.mubr.msk.bf16.vlgmr.msra.gmra.mrb[12].mxu1 %vm1961_vm2, %v2293_v24 }
 0x64c   : > { %16359 = vmatprep.mubr.msk.bf16.mxu1 %vm19112_vm0, %v19111_v0 }
 0x706   : > { %v2002_v25 = vpop.f32.mrb[0].mxu1 }
 0x707   : > { %v2008_v26 = vmul.f32 0.35355338, %v2002_v25  ;;  %v16311_v27 = vpop.f32.mrb[1].mxu1 }
 0x708   : > { %v2005_v28 = vpop.f32.mrb[2].mxu1 }
 0x709   : > { %v16312_v29 = vpop.f32.mrb[3].mxu1  ;;  %v2009_v30 = vsel %vm1961_vm2, %v2008_v26, -inf }
 0x70a   : > { %2010 = vmax.xlane.f32.xlu1 %v2009_v30 }
 0x70e   : > { %v2114_v31 = vpop.f32.mrb[4].mxu1 }
 0x70f   : > { %v2120_v32 = vmul.f32 0.35355338, %v2114_v31  ;;  %v16323_v33 = vpop.f32.mrb[5].mxu1 }
 0x710   : > { %v2117_v34 = vpop.f32.mrb[6].mxu1 }
 0x711   : > { %v16324_v35 = vpop.f32.mrb[7].mxu1  ;;  %v2121_v36 = vsel %vm1961_vm2, %v2120_v32, -inf }
 0x712   : > { %2122 = vmax.xlane.f32.xlu0 %v2121_v36 }
 0x716   : > { %v2225_v37 = vpop.f32.mrb[8].mxu1 }
 0x717   : > { %v2231_v38 = vmul.f32 0.35355338, %v2225_v37  ;;  %v16335_v39 = vpop.f32.mrb[9].mxu1 }
 0x718   : > { %v2228_v40 = vpop.f32.mrb[10].mxu1  ;;  %v17105_v39 = vld [vmem:[#allocation13] sm:$0xff]  }
 0x719   : > { %v16336_v41 = vpop.f32.mrb[11].mxu1  ;;  %v2232_v42 = vsel %vm1961_vm2, %v2231_v38, -inf  ;;  %16356 = vmatpush3.bf16.msra.mxu1 %v17105_v39  ;;  %v17106_v40 = vld [vmem:[#allocation13 + $0x8] sm:$0xff]   ;;  %v2536_v39 = vld [vmem:[#allocation19 + $0x90] sm:$0xff] }
 0x71a   : > { %2233 = vmax.xlane.f32.xlu0 %v2232_v42  ;;  %16357 = vmatprep.subr.bf16.mxu1 %v19111_v0 }
 0x71d   : > { %16358 = vmatpush3.bf16.msra.mxu1 %v17106_v40  ;;  %v2544_v40 = vld [vmem:[#allocation19 + $0xd0] sm:$0xff] }
 0x71e   : > { %v2336_v43 = vpop.f32.mrb[12].mxu1 }
 0x71f   : > { %v2342_v44 = vmul.f32 0.35355338, %v2336_v43  ;;  %v16347_v45 = vpop.f32.mrb[13].mxu1 }
 0x720   : > { %v2339_v46 = vpop.f32.mrb[14].mxu1 }
 0x721   : > { %v16348_v47 = vpop.f32.mrb[15].mxu1  ;;  %v2343_v48 = vsel %vm1961_vm2, %v2342_v44, -inf }
 0x722   : > { %2344 = vmax.xlane.f32.xlu1 %v2343_v48 }
 0x797   : > { %v2011_v49 = vpop.xlane.xlu1 %2010 }
 0x798   : > { %v2012_v50 = vsub.f32 %v2008_v26, %v2011_v49 }
 0x79a   : > { %v2013_v51 = vmul.f32 1.442695, %v2012_v50 }
 0x79c   : > { %17645 = vpow2.f32 %v2013_v51 }
 0x79f   : > { %v2123_v52 = vpop.xlane.xlu0 %2122 }
 0x7a0   : > { %v2124_v53 = vsub.f32 %v2120_v32, %v2123_v52 }
 0x7a2   : > { %v2125_v54 = vmul.f32 1.442695, %v2124_v53 }
 0x7a4   : > { %17647 = vpow2.f32 %v2125_v54 }
 0x7a6   : > { %v17646_v55 = vpop.eup %17645 }
 0x7a7   : > { %v2234_v56 = vpop.xlane.xlu0 %2233  ;;  %v2015_v57 = vsel %vm1961_vm2, %v17646_v55, 0.0 }
 0x7a8   : > { %v2235_v58 = vsub.f32 %v2231_v38, %v2234_v56  ;;  %2016 = vadd.xlane.f32.xlu0 %v2015_v57  ;;  %v14654_v56 = vld [vmem:[#allocation14] ss:$0 sm:$0xff] }
 0x7aa   : > { %v2236_v59 = vmul.f32 1.442695, %v2235_v58 }
 0x7ac   : > { %17649 = vpow2.f32 %v2236_v59 }
 0x7ae   : > { %v17648_v60 = vpop.eup %17647 }
 0x7af   : > { %v2127_v61 = vsel %vm1961_vm2, %v17648_v60, 0.0  ;;  %v2345_v1 = vpop.xlane.xlu1 %2344 }
 0x7b0   : > { %2128 = vadd.xlane.f32.xlu1 %v2127_v61  ;;  %v2346_v2 = vsub.f32 %v2342_v44, %v2345_v1 }
 0x7b2   : > { %v2347_v3 = vmul.f32 1.442695, %v2346_v2 }
 0x7b4   : > { %17651 = vpow2.f32 %v2347_v3 }
 0x7b6   : > { %v17650_v62 = vpop.eup %17649 }
 0x7b7   : > { %v2238_v63 = vsel %vm1961_vm2, %v17650_v62, 0.0 }
 0x7b8   : > { %2239 = vadd.xlane.f32.xlu0 %v2238_v63 }
 0x7be   : > { %v17652_v4 = vpop.eup %17651 }
 0x7bf   : > { %v2349_v6 = vsel %vm1961_vm2, %v17652_v4, 0.0 }
 0x7c1   : > { %2133 = vrot.lane.b32.xlu1 %v20114_v12, %s21239_s28 }
 0x7ce   : > { %2021 = vrot.lane.b32.xlu0 %v20114_v12, %s21240_s7 }
 0x7d2   : > { %2355 = vrot.lane.b32.xlu0 %v20114_v12, %s21229_s1  ;;  %s21235_s1 = smov 24  }
 0x7e5   : > { %2350 = vadd.xlane.f32.xlu1 %v2349_v6 }
 0x7f6   : > { %2244 = vrot.lane.b32.xlu1 %v20114_v12, %s21227_s2  ;;  %s21237_s2 = smov 16  }
 0x835   : > { %v2017_v7 = vpop.xlane.xlu0 %2016 }
 0x836   : > { %17653 = vrcp.f32 %v2017_v7  ;;  %v2518_v7 = vld [vmem:[#allocation19] sm:$0xff] }
 0x83d   : > { %v2129_v8 = vpop.xlane.xlu1 %2128 }
 0x83e   : > { %17655 = vrcp.f32 %v2129_v8  ;;  %v2526_v8 = vld [vmem:[#allocation19 + $0x40] sm:$0xff] }
 0x840   : > { %v17654_v9 = vpop.eup %17653 }
 0x841   : > { %v2019_v11 = vmul.f32 %v17654_v9, %v17646_v55  ;;  %v2134_v15 = vpop.permute.xlu1 %2133  ;;  %v2519_v9 = vld [vmem:[#allocation19 + $0x8] sm:$0xff] }
 0x842   : > { %v2139_v18 = vsel %vm2026_vm3, %v2134_v15, 0 }
 0x843   : > { %v2020_v16 = vpack.c.bf16 %v2019_v11, %v2019_v11  ;;  %v2527_v11 = vld [vmem:[#allocation19 + $0x48] sm:$0xff] }
 0x844   : > { %v14663_v15 = vcombine.high %v2519_v9, %v2527_v11 }
 0x845   : > { %v2240_v10 = vpop.xlane.xlu0 %2239 }
 0x846   : > { %17657 = vrcp.f32 %v2240_v10  ;;  %v14661_v10 = vcombine.high %v2518_v7, %v2526_v8  ;;  %2839 = vmatprep.subr.bf16.mxu1 %v14663_v15 }
 0x848   : > { %v17656_v17 = vpop.eup %17655 }
 0x849   : > { %v2022_v13 = vpop.permute.xlu0 %2021  ;;  %v2131_v12 = vmul.f32 %v17656_v17, %v17648_v60  ;;  %v2535_v17 = vld [vmem:[#allocation19 + $0x88] sm:$0xff] }
 0x84a   : > { %v2028_v14 = vsel %vm2026_vm3, %v2022_v13, 0  ;;  %v14660_v13 = vcombine.low %v2518_v7, %v2526_v8 }
 0x84b   : > { %16314 = vmatpush3.bf16.msra.mxu0 %v2028_v14  ;;  %v2132_v19 = vpack.c.bf16 %v2131_v12, %v2131_v12  ;;  %v14662_v14 = vcombine.low %v2519_v9, %v2527_v11  ;;  %v2543_v12 = vld [vmem:[#allocation19 + $0xc8] sm:$0xff]  ;;  %v2540_v9 = vld [vmem:[#allocation19 + $0xb0] sm:$0xff]  ;;  %v2541_v11 = vld [vmem:[#allocation19 + $0xb8] sm:$0xff] }
 0x84c   : > { %16325 = vmatprep.subr.bf16.mxu0 %v19111_v0 }
 0x84d   : > { %v2356_v25 = vpop.permute.xlu0 %2355 }
 0x84e   : > { %16316 = vmatmul.mubr.msk.bf16.vlgmr.msra.gmra.mrb[4].mxu0 %vm1961_vm2, %v2020_v16  ;;  %v2361_v27 = vsel %vm2026_vm3, %v2356_v25, 0  ;;  %v2542_v16 = vld [vmem:[#allocation19 + $0xc0] sm:$0xff] }
 0x84f   : > { %16326 = vmatpush3.bf16.msra.mxu0 %v2139_v18  ;;  %16327 = vmatprep.mubr.msk.bf16.mxu0 %vm19112_vm0, %v19111_v0 }
 0x850   : > { %16337 = vmatprep.subr.bf16.mxu0 %v19111_v0  ;;  %v17658_v20 = vpop.eup %17657 }
 0x851   : > { %v2242_v22 = vmul.f32 %v17658_v20, %v17650_v62  ;;  %v14678_v20 = vcombine.low %v2535_v17, %v2543_v12 }
 0x853   : > { %v2243_v26 = vpack.c.bf16 %v2242_v22, %v2242_v22  ;;  %v2520_v22 = vld [vmem:[#allocation19 + $0x10] sm:$0xff] }
 0x856   : > { %16328 = vmatmul.mubr.msk.bf16.vlgmr.msra.gmra.mrb[8].mxu0 %vm1961_vm2, %v2132_v19 }
 0x857   : > { %16339 = vmatprep.mubr.msk.bf16.mxu0 %vm19112_vm0, %v19111_v0 }
 0x872   : > { %v2351_v21 = vpop.xlane.xlu1 %2350 }
 0x873   : > { %17659 = vrcp.f32 %v2351_v21  ;;  %v14679_v21 = vcombine.high %v2535_v17, %v2543_v12  ;;  %v17107_v12 = vld [vmem:[#allocation22 + $0x40] sm:$0xff]  }
 0x876   : > { %v2245_v23 = vpop.permute.xlu1 %2244 }
 0x877   : > { %v2250_v24 = vsel %vm2026_vm3, %v2245_v23, 0  ;;  %v2528_v23 = vld [vmem:[#allocation19 + $0x50] sm:$0xff] }
 0x878   : > { %16338 = vmatpush3.bf16.msra.mxu0 %v2250_v24  ;;  %v2521_v24 = vld [vmem:[#allocation19 + $0x18] sm:$0xff]  ;;  %v14665_v25 = vcombine.high %v2520_v22, %v2528_v23 }
 0x879   : > { %16349 = vmatprep.subr.bf16.mxu0 %v19111_v0 }
 0x87b   : > { %16340 = vmatmul.mubr.msk.bf16.vlgmr.msra.gmra.mrb[12].mxu0 %vm1961_vm2, %v2243_v26  ;;  %v2529_v26 = vld [vmem:[#allocation19 + $0x58] sm:$0xff] }
 0x87c   : > { %16350 = vmatpush3.bf16.msra.mxu0 %v2361_v27  ;;  %16351 = vmatprep.mubr.msk.bf16.mxu0 %vm19112_vm0, %v19111_v0  ;;  %v19127_v27 = vmov 0  }
 0x87d   : > { %v17660_v28 = vpop.eup %17659  ;;  %2798 = vmatprep.subr.bf16.mxu0 %v14661_v10  ;;  %v2548_v10 = vld [vmem:[#allocation19 + $0xf0] sm:$0xff] }
 0x87e   : > { %v2353_v29 = vmul.f32 %v17660_v28, %v17652_v4  ;;  %v14664_v28 = vcombine.low %v2520_v22, %v2528_v23  ;;  %v14688_v17 = vcombine.low %v2540_v9, %v2548_v10  ;;  %v17111_v22 = vld [vmem:[#allocation22 + $0x48] sm:$0xff]  }
 0x87f   : > { %v17112_v23 = vld [vmem:[#allocation22 + $0xc8] sm:$0xff]  }
 0x880   : > { %v2354_v30 = vpack.c.bf16 %v2353_v29, %v2353_v29  ;;  %v14666_v29 = vcombine.low %v2521_v24, %v2529_v26 }
 0x883   : > { %16352 = vmatmul.mubr.msk.bf16.vlgmr.msra.gmra.mrb[16].mxu0 %vm1961_vm2, %v2354_v30  ;;  %v14667_v30 = vcombine.high %v2521_v24, %v2529_v26  ;;  %v17113_v24 = vld [vmem:[#allocation22 + $0x8] sm:$0xff]   ;;  %v17115_v26 = vld [vmem:[#allocation22 + $0x50] sm:$0xff]  }
 0x884   : > { %2799 = vmatpush1.bf16.msra.mxu0 %v14660_v13  ;;  %2830 = vmatprep.mubr.bf16.mxu0 %v19127_v27  ;;  %v2549_v13 = vld [vmem:[#allocation19 + $0xf8] sm:$0xff] }
 0x921   : > { %v2064_v31 = vpop.f32.mrb[4].mxu0 }
 0x922   : > { %v16317_v32 = vpop.f32.mrb[5].mxu0 }
 0x923   : > { %v2067_v33 = vpop.f32.mrb[6].mxu0 }
 0x924   : > { %v16318_v34 = vpop.f32.mrb[7].mxu0 }
 0x929   : > { %v2175_v35 = vpop.f32.mrb[8].mxu0 }
 0x92a   : > { %2404 = vrot.lane.b32.xlu1 %v2175_v35, %s19124_s5  ;;  %v16329_v36 = vpop.f32.mrb[9].mxu0  ;;  %v14658_v35 = vld [vmem:[#allocation16] ss:$0 sm:$0xff] }
 0x92b   : > { %v2178_v37 = vpop.f32.mrb[10].mxu0 }
 0x92c   : > { %v16330_v38 = vpop.f32.mrb[11].mxu0  ;;  %v14659_v37 = vld [vmem:[#allocation17] ss:$0 sm:$0xff] }
 0x94e   : > { %v2286_v41 = vpop.f32.mrb[12].mxu0 }
 0x94f   : > { %2408 = vrot.lane.b32.xlu0 %v2286_v41, %s21237_s2  ;;  %v16341_v42 = vpop.f32.mrb[13].mxu0  ;;  %v2537_v41 = vld [vmem:[#allocation19 + $0x98] sm:$0xff] }
 0x950   : > { %v2289_v43 = vpop.f32.mrb[14].mxu0  ;;  %v2545_v42 = vld [vmem:[#allocation19 + $0xd8] sm:$0xff] }
 0x951   : > { %v16342_v44 = vpop.f32.mrb[15].mxu0 }
 0x956   : > { %v2397_v45 = vpop.f32.mrb[16].mxu0 }
 0x957   : > { %2412 = vrot.lane.b32.xlu1 %v2397_v45, %s21235_s1  ;;  %v16353_v46 = vpop.f32.mrb[17].mxu0  ;;  %v14681_v45 = vcombine.high %v2536_v39, %v2544_v40 }
 0x958   : > { %v2400_v47 = vpop.f32.mrb[18].mxu0  ;;  %v14683_v46 = vcombine.high %v2537_v41, %v2545_v42 }
 0x959   : > { %v16354_v48 = vpop.f32.mrb[19].mxu0  ;;  %v2522_v47 = vld [vmem:[#allocation19 + $0x20] sm:$0xff] }
 0x95a   : > { %v2530_v48 = vld [vmem:[#allocation19 + $0x60] sm:$0xff] }
 0x99c   : > { %v2405_v49 = vpop.permute.xlu1 %2404 }
 0x99d   : > { %v2415_v51 = vsel %vm1961_vm2, %v2064_v31, %v2405_v49  ;;  %v2523_v49 = vld [vmem:[#allocation19 + $0x28] sm:$0xff] }
 0x9c1   : > { %v2409_v50 = vpop.permute.xlu0 %2408 }
 0x9c2   : > { %v2417_v52 = vsel %vm2416_vm4, %v2415_v51, %v2409_v50  ;;  %v2531_v50 = vld [vmem:[#allocation19 + $0x68] sm:$0xff]  ;;  %v14680_v51 = vcombine.low %v2536_v39, %v2544_v40 }
 0x9c3   : > { %v17127_v39 = vld [vmem:[#allocation22 + $0x68] sm:$0xff]  }
 0x9c4   : > { %v17128_v40 = vld [vmem:[#allocation22 + $0xe8] sm:$0xff]  }
 0x9c9   : > { %v2413_v53 = vpop.permute.xlu1 %2412 }
 0x9ca   : > { %v2419_v54 = vsel %vm2418_vm5, %v2417_v52, %v2413_v53  ;;  %v14682_v52 = vcombine.low %v2537_v41, %v2545_v42  ;;  %v14669_v53 = vcombine.high %v2522_v47, %v2530_v48  ;;  %v17129_v41 = vld [vmem:[#allocation22 + $0x28] sm:$0xff]  }
 0x9cb   : > { %v2425_v55 = vpack.c.bf16 %v2419_v54, %v2419_v54  ;;  %v14671_v54 = vcombine.high %v2523_v49, %v2531_v50  ;;  %v17130_v42 = vld [vmem:[#allocation22 + $0xa8] sm:$0xff]  }
 0x9cd   : > { %16360 = vmatmul.mubr.msk.bf16.vlgmr.msra.gmra.mrb[16].mxu1 %vm1913_vm1, %v2425_v55  ;;  %v2538_v55 = vld [vmem:[#allocation19 + $0xa0] sm:$0xff] }
 0x9ce   : > { %2840 = vmatpush1.bf16.msra.mxu1 %v14662_v14  ;;  %2871 = vmatprep.mubr.bf16.mxu1 %v19127_v27 }
 0x9cf   : > { %2841 = vmatprep.subr.bf16.mxu1 %v14679_v21  ;;  %v17110_v21 = vld [vmem:[#allocation22 + $0x80] sm:$0xff]  }
 0x9d2   : > { %2842 = vmatpush1.bf16.msra.mxu1 %v14678_v20  ;;  %v17109_v20 = vld [vmem:[#allocation22] sm:$0xff]  }
 0x9d3   : > { %2921 = vmatprep.subr.bf16.mxu1 %v14667_v30  ;;  %v17118_v30 = vld [vmem:[#allocation22 + $0x90] sm:$0xff]  }
 0xaa0   : > { %v2481_v57 = vpop.f32.mrb[16].mxu1 }
 0xaa1   : > { %v2482_v58 = vadd.f32 %v14654_v56, %v2481_v57  ;;  %v16361_v59 = vpop.f32.mrb[17].mxu1  ;;  %v2546_v56 = vld [vmem:[#allocation19 + $0xe0] sm:$0xff]  ;;  %v2539_v57 = vld [vmem:[#allocation19 + $0xa8] sm:$0xff] }
 0xaa2   : > { %v2484_v60 = vpop.f32.mrb[18].mxu1  ;;  %v14668_v59 = vcombine.low %v2522_v47, %v2530_v48  ;;  %v17134_v47 = vld [vmem:[#allocation22 + $0xb0] sm:$0xff]   ;;  %v17135_v48 = vld [vmem:[#allocation22 + $0x78] sm:$0xff]  }
 0xaa3   : > { %v16362_v61 = vpop.f32.mrb[19].mxu1  ;;  %v2487_v62 = vadd.f32 %v2482_v58, %v20106_v5  ;;  %v2534_v5 = vld [vmem:[#allocation19 + $0x80] sm:$0xff]  ;;  %v2547_v58 = vld [vmem:[#allocation19 + $0xe8] sm:$0xff]  ;;  %v14670_v60 = vcombine.low %v2523_v49, %v2531_v50  ;;  %v17136_v49 = vld [vmem:[#allocation22 + $0xf8] sm:$0xff]  }
 0xaa4   : > { %v14677_v18 = vcombine.high %v2534_v5, %v2542_v16  ;;  %v14676_v19 = vcombine.low %v2534_v5, %v2542_v16  ;;  %v14685_v61 = vcombine.high %v2538_v55, %v2546_v56  ;;  %v14689_v5 = vcombine.high %v2540_v9, %v2548_v10  ;;  %v17137_v50 = vld [vmem:[#allocation22 + $0x38] sm:$0xff]  }
 0xaa5   : > { %v2490_v63 = vsel %vm1913_vm1, %v2487_v62, 0.0  ;;  %v14691_v16 = vcombine.high %v2541_v11, %v2549_v13 }
 0xaa6   : > { %2491 = vadd.xlane.f32.xlu0 %v2490_v63  ;;  %2800 = vmatprep.subr.bf16.mxu0 %v14677_v18  ;;  %v2524_v63 = vld [vmem:[#allocation19 + $0x30] sm:$0xff]  ;;  %v14690_v18 = vcombine.low %v2541_v11, %v2549_v13 }
 0xaa7   : > { %2801 = vmatpush1.bf16.msra.mxu0 %v14676_v19  ;;  %v17108_v19 = vld [vmem:[#allocation22 + $0xc0] sm:$0xff]  }
 0xaa8   : > { %2880 = vmatprep.subr.bf16.mxu0 %v14665_v25  ;;  %v17114_v25 = vld [vmem:[#allocation22 + $0x88] sm:$0xff]  }
 0xb33   : > { %v2492_v1 = vpop.xlane.xlu0 %2491 }
 0xb34   : > { %v2494_v2 = vmul.f32 0.03125, %v2492_v1  ;;  %v2532_v1 = vld [vmem:[#allocation19 + $0x70] sm:$0xff] }
 0xb35   : > { %v14673_v7 = vcombine.high %v2524_v63, %v2532_v1  ;;  %v14672_v14 = vcombine.low %v2524_v63, %v2532_v1 }
 0xb36   : > { %v2495_v3 = vsub.f32 %v2487_v62, %v2494_v2  ;;  %v14687_v62 = vcombine.high %v2539_v57, %v2547_v58  ;;  %v2525_v2 = vld [vmem:[#allocation19 + $0x38] sm:$0xff] }
 0xb38   : > { %v2496_v4 = vmul.f32 %v2495_v3, %v2495_v3 }
 0xb3a   : > { %v2497_v6 = vsel %vm1913_vm1, %v2496_v4, 0.0  ;;  %v14684_v4 = vcombine.low %v2538_v55, %v2546_v56 }
 0xb3b   : > { %2498 = vadd.xlane.f32.xlu1 %v2497_v6  ;;  %v14686_v6 = vcombine.low %v2539_v57, %v2547_v58  ;;  %v20234_v58 = vld [vmem:[#allocation20] sm:$0xff] }
 0xbc8   : > { %v2499_v31 = vpop.xlane.xlu1 %2498 }
 0xbc9   : > { %v2500_v32 = vmul.f32 0.03125, %v2499_v31  ;;  %v17119_v31 = vld [vmem:[#allocation22 + $0x58] sm:$0xff]  }
 0xbcb   : > { %v2501_v33 = vadd.f32 1e-05, %v2500_v32  ;;  %v17120_v32 = vld [vmem:[#allocation22 + $0xd8] sm:$0xff]  }
 0xbcd   : > { %17661 = vrsqrt.f32 %v2501_v33  ;;  %v17121_v33 = vld [vmem:[#allocation22 + $0x18] sm:$0xff]  }
 0xbd7   : > { %v17662_v34 = vpop.eup %17661 }
 0xbd8   : > { %v2503_v36 = vmul.f32 %v17662_v34, %v2495_v3  ;;  %v2533_v3 = vld [vmem:[#allocation19 + $0x78] sm:$0xff] }
 0xbd9   : > { %v14675_v8 = vcombine.high %v2525_v2, %v2533_v3  ;;  %v14674_v15 = vcombine.low %v2525_v2, %v2533_v3  ;;  %v17122_v34 = vld [vmem:[#allocation22 + $0x98] sm:$0xff]  }
 0xbda   : > { %v2510_v38 = vmul.f32 %v14658_v35, %v2503_v36  ;;  %v17123_v35 = vld [vmem:[#allocation22 + $0x60] sm:$0xff]  }
 0xbdb   : > { %v17124_v36 = vld [vmem:[#allocation22 + $0xe0] sm:$0xff]  }
 0xbdc   : > { %v20197_v43 = vadd.f32 %v14659_v37, %v2510_v38  ;;  %v17125_v37 = vld [vmem:[#allocation22 + $0x20] sm:$0xff]  }
 0xbdd   : > { %v17126_v38 = vld [vmem:[#allocation22 + $0xa0] sm:$0xff]  }
 0xbde   : > { %v20201_v44 = vpack.c.bf16 %v20197_v43, %v20197_v43 }
 0xbe0   : > { %14692 = vmatmul.mubr.msk.bf16.vlgmr.msra.gmra.mrb[20].mxu0 %vm1913_vm1, %v20201_v44  ;;  %14693 = vmatmul.mubr.msk.bf16.vlgmr.msra.gmra.mrb[20].mxu1 %vm1913_vm1, %v20201_v44 }
 0xbe1   : > { %2881 = vmatpush1.bf16.msra.mxu0 %v14664_v28  ;;  %2922 = vmatpush1.bf16.msra.mxu1 %v14666_v29  ;;  %v17116_v28 = vld [vmem:[#allocation22 + $0xd0] sm:$0xff]  }
 0xbe2   : > { %2882 = vmatprep.subr.bf16.mxu0 %v14681_v45  ;;  %2923 = vmatprep.subr.bf16.mxu1 %v14683_v46  ;;  %v17117_v29 = vld [vmem:[#allocation22 + $0x10] sm:$0xff]  }
 0xbe3   : > { %2912 = vmatprep.mubr.bf16.mxu0 %v19127_v27  ;;  %2953 = vmatprep.mubr.bf16.mxu1 %v19127_v27  ;;  %v17132_v45 = vld [vmem:[#allocation22 + $0xf0] sm:$0xff]  }
 0xbe4   : > { %v17133_v46 = vld [vmem:[#allocation22 + $0x30] sm:$0xff]  }
 0xbe5   : > { %2883 = vmatpush1.bf16.msra.mxu0 %v14680_v51  ;;  %2924 = vmatpush1.bf16.msra.mxu1 %v14682_v52  ;;  %v17138_v51 = vld [vmem:[#allocation22 + $0xb8] sm:$0xff]   ;;  %v17139_v52 = vld [vmem:[#allocation22 + $0x140] sm:$0xff]  }
 0xbe6   : > { %2962 = vmatprep.subr.bf16.mxu0 %v14669_v53  ;;  %3003 = vmatprep.subr.bf16.mxu1 %v14671_v54  ;;  %v17140_v53 = vld [vmem:[#allocation22 + $0x1c0] sm:$0xff]   ;;  %v2555_v54 = vlaneseq }
 0xbe8   : > { %14694 = vmatmul.mubr.msk.bf16.vlgmr.msra.gmra.mrb[24].mxu0 %vm1913_vm1, %v20201_v44  ;;  %14695 = vmatmul.mubr.msk.bf16.vlgmr.msra.gmra.mrb[24].mxu1 %vm1913_vm1, %v20201_v44  ;;  %v20226_v55 = vshrl.u32 %v2555_v54, 7 }
 0xbe9   : > { %2963 = vmatpush1.bf16.msra.mxu0 %v14668_v59  ;;  %3004 = vmatpush1.bf16.msra.mxu1 %v14670_v60 }
 0xbea   : > { %2964 = vmatprep.subr.bf16.mxu0 %v14685_v61  ;;  %3005 = vmatprep.subr.bf16.mxu1 %v14687_v62  ;;  %v20229_v56 = vsub.s32 0, %v20226_v55  ;;  %v20232_v57 = vsub.s32 2, %v20226_v55  ;;  %v20237_v59 = vsub.s32 1, %v20226_v55  ;;  %v20240_v60 = vsub.s32 3, %v20226_v55 }
 0xbeb   : > { %2994 = vmatprep.mubr.bf16.mxu0 %v19127_v27  ;;  %3035 = vmatprep.mubr.bf16.mxu1 %v19127_v27 }
 0xbec   : > { %v2558_v61 = vrot.slane %v20234_v58, %v20229_v56  ;;  %v2566_v62 = vrot.slane %v20234_v58, %v20232_v57  ;;  %v2562_v63 = vrot.slane %v20234_v58, %v20237_v59  ;;  %v2570_v1 = vrot.slane %v20234_v58, %v20240_v60 }
 0xbed   : > { %2965 = vmatpush1.bf16.msra.mxu0 %v14684_v4  ;;  %3006 = vmatpush1.bf16.msra.mxu1 %v14686_v6 }
 0xbee   : > { %3044 = vmatprep.subr.bf16.mxu0 %v14673_v7  ;;  %3085 = vmatprep.subr.bf16.mxu1 %v14675_v8 }
 0xbf0   : > { %14696 = vmatmul.mubr.msk.bf16.vlgmr.msra.gmra.mrb[28].mxu0 %vm1913_vm1, %v20201_v44  ;;  %14697 = vmatmul.mubr.msk.bf16.vlgmr.msra.gmra.mrb[28].mxu1 %vm1913_vm1, %v20201_v44 }
 0xbf1   : > { %3045 = vmatpush1.bf16.msra.mxu0 %v14672_v14  ;;  %3086 = vmatpush1.bf16.msra.mxu1 %v14674_v15  ;;  %v20251_v14 = vsub.s32 5, %v20226_v55  ;;  %v20254_v15 = vsub.s32 7, %v20226_v55 }
 0xbf2   : > { %3046 = vmatprep.subr.bf16.mxu0 %v14689_v5  ;;  %3087 = vmatprep.subr.bf16.mxu1 %v14691_v16 }
 0xbf3   : > { %3076 = vmatprep.mubr.bf16.mxu0 %v19127_v27  ;;  %3117 = vmatprep.mubr.bf16.mxu1 %v19127_v27 }
 0xbf5   : > { %3047 = vmatpush1.bf16.msra.mxu0 %v14688_v17  ;;  %3088 = vmatpush1.bf16.msra.mxu1 %v14690_v18 }
 0xbf6   : > { %15476 = vmatprep.subr.bf16.mxu0 %v17107_v12  ;;  %15498 = vmatprep.subr.bf16.mxu1 %v17108_v19 }
 0xbf8   : > { %14698 = vmatmul.mubr.msk.bf16.vlgmr.msra.gmra.mrb[32].mxu0 %vm1913_vm1, %v20201_v44  ;;  %14699 = vmatmul.mubr.msk.bf16.vlgmr.msra.gmra.mrb[32].mxu1 %vm1913_vm1, %v20201_v44  ;;  %v17131_v44 = vld [vmem:[#allocation22 + $0x70] sm:$0xff]  }
 0xbf9   : > { %15477 = vmatpush3.bf16.msra.mxu0 %v17109_v20  ;;  %15499 = vmatpush3.bf16.msra.mxu1 %v17110_v21 }
 0xbfa   : > { %15478 = vmatprep.subr.bf16.mxu0 %v17111_v22  ;;  %15500 = vmatprep.subr.bf16.mxu1 %v17112_v23  ;;  %v2578_v22 = vrot.slane %v20234_v58, %v20251_v14  ;;  %v2586_v23 = vrot.slane %v20234_v58, %v20254_v15 }
 0xbfd   : > { %15479 = vmatpush3.bf16.msra.mxu0 %v17113_v24  ;;  %15501 = vmatpush3.bf16.msra.mxu1 %v17114_v25  ;;  %v17141_v24 = vld [vmem:[#allocation22 + $0x100] sm:$0xff]  }
 0xbfe   : > { %15480 = vmatprep.subr.bf16.mxu0 %v17115_v26  ;;  %15502 = vmatprep.subr.bf16.mxu1 %v17116_v28  ;;  %v17142_v25 = vld [vmem:[#allocation22 + $0x180] sm:$0xff]  }
 0xc01   : > { %15481 = vmatpush3.bf16.msra.mxu0 %v17117_v29  ;;  %15503 = vmatpush3.bf16.msra.mxu1 %v17118_v30  ;;  %v17143_v29 = vld [vmem:[#allocation22 + $0x148] sm:$0xff]  }
 0xc02   : > { %15482 = vmatprep.subr.bf16.mxu0 %v17119_v31  ;;  %15504 = vmatprep.subr.bf16.mxu1 %v17120_v32  ;;  %v17144_v30 = vld [vmem:[#allocation22 + $0x1c8] sm:$0xff]  }
 0xc05   : > { %15483 = vmatpush3.bf16.msra.mxu0 %v17121_v33  ;;  %15505 = vmatpush3.bf16.msra.mxu1 %v17122_v34 }
 0xc06   : > { %15484 = vmatprep.subr.bf16.mxu0 %v17123_v35  ;;  %15506 = vmatprep.subr.bf16.mxu1 %v17124_v36 }
 0xc09   : > { %15485 = vmatpush3.bf16.msra.mxu0 %v17125_v37  ;;  %15507 = vmatpush3.bf16.msra.mxu1 %v17126_v38 }
 0xc0a   : > { %15486 = vmatprep.subr.bf16.mxu0 %v17127_v39  ;;  %15508 = vmatprep.subr.bf16.mxu1 %v17128_v40  ;;  %v17145_v39 = vld [vmem:[#allocation22 + $0x108] sm:$0xff]  }
 0xc0b   : > { %v17146_v40 = vld [vmem:[#allocation22 + $0x188] sm:$0xff]  }
 0xc0d   : > { %15487 = vmatpush3.bf16.msra.mxu0 %v17129_v41  ;;  %15509 = vmatpush3.bf16.msra.mxu1 %v17130_v42 }
 0xc0e   : > { %15488 = vmatprep.subr.bf16.mxu0 %v17131_v44  ;;  %15510 = vmatprep.subr.bf16.mxu1 %v17132_v45  ;;  %v17147_v44 = vld [vmem:[#allocation22 + $0x150] sm:$0xff]  }
 0xc0f   : > { %v17148_v45 = vld [vmem:[#allocation22 + $0x1d0] sm:$0xff]  }
 0xc11   : > { %15489 = vmatpush3.bf16.msra.mxu0 %v17133_v46  ;;  %15511 = vmatpush3.bf16.msra.mxu1 %v17134_v47 }
 0xc12   : > { %15490 = vmatprep.subr.bf16.mxu0 %v17135_v48  ;;  %15512 = vmatprep.subr.bf16.mxu1 %v17136_v49 }
 0xc15   : > { %15491 = vmatpush3.bf16.msra.mxu0 %v17137_v50  ;;  %15513 = vmatpush3.bf16.msra.mxu1 %v17138_v51  ;;  %v17149_v50 = vld [vmem:[#allocation22 + $0x110] sm:$0xff]  }
 0xc16   : > { %15520 = vmatprep.subr.bf16.mxu0 %v17139_v52  ;;  %15542 = vmatprep.subr.bf16.mxu1 %v17140_v53  ;;  %v17150_v51 = vld [vmem:[#allocation22 + $0x190] sm:$0xff]   ;;  %v17151_v52 = vld [vmem:[#allocation22 + $0x158] sm:$0xff]  }
 0xc17   : > { %v17152_v53 = vld [vmem:[#allocation22 + $0x1d8] sm:$0xff]  }
 0xcb3   : > { %v2832_v2 = vpop.f32.mrb[20].mxu0  ;;  %v2873_v3 = vpop.f32.mrb[20].mxu1 }
 0xcb4   : > { %v2833_v4 = vadd.f32 %v2832_v2, %v2558_v61  ;;  %v2874_v6 = vadd.f32 %v2873_v3, %v2566_v62  ;;  %v2834_v7 = vpop.f32.mrb[21].mxu0  ;;  %v2875_v8 = vpop.f32.mrb[21].mxu1 }
 0xcb5   : > { %v2835_v9 = vadd.f32 %v2834_v7, %v2562_v63  ;;  %v2876_v10 = vadd.f32 %v2875_v8, %v2570_v1  ;;  %v2836_v11 = vpop.f32.mrb[22].mxu0  ;;  %v2877_v13 = vpop.f32.mrb[22].mxu1  ;;  %v20269_v7 = vsub.s32 6, %v20226_v55 }
 0xcb6   : > { %v3126_v5 = vmax.f32 %v2833_v4, 0.0  ;;  %v3128_v16 = vmax.f32 %v2874_v6, 0.0  ;;  %v2837_v17 = vpop.f32.mrb[23].mxu0  ;;  %v2878_v18 = vpop.f32.mrb[23].mxu1  ;;  %v17153_v4 = vld [vmem:[#allocation22 + $0x118] sm:$0xff]   ;;  %v17156_v11 = vld [vmem:[#allocation22 + $0x1e0] sm:$0xff]  }
 0xcb7   : > { %v3127_v12 = vmax.f32 %v2835_v9, 0.0  ;;  %v3129_v19 = vmax.f32 %v2876_v10, 0.0  ;;  %v17154_v6 = vld [vmem:[#allocation22 + $0x198] sm:$0xff]   ;;  %v17155_v10 = vld [vmem:[#allocation22 + $0x160] sm:$0xff]   ;;  %v20271_v13 = vld [vmem:[#allocation20 + $0x8] sm:$0xff]  ;;  %v20276_v18 = vsub.s32 4, %v20226_v55 }
 0xcb8   : > { %v3399_v26 = vpack.c.bf16 %v3126_v5, %v3126_v5  ;;  %v3401_v28 = vpack.c.bf16 %v3128_v16, %v3128_v16  ;;  %v2614_v5 = vrot.slane %v20271_v13, %v20269_v7  ;;  %v17157_v16 = vld [vmem:[#allocation22 + $0x120] sm:$0xff]  }
 0xcb9   : > { %v3400_v20 = vpack.c.bf16 %v3127_v12, %v3127_v12  ;;  %v3402_v21 = vpack.c.bf16 %v3129_v19, %v3129_v19  ;;  %v17158_v17 = vld [vmem:[#allocation22 + $0x1a0] sm:$0xff]   ;;  %v17159_v12 = vld [vmem:[#allocation22 + $0x168] sm:$0xff]  }
 0xcba   : > { %v17160_v19 = vld [vmem:[#allocation22 + $0x1e8] sm:$0xff]  }
 0xcbb   : > { %v20260_v31 = vpop.f32.mrb[24].mxu0  ;;  %v20262_v32 = vpop.f32.mrb[24].mxu1  ;;  %4221 = vmatprep.mubr.bf16.mxu0 %v3400_v20  ;;  %4261 = vmatprep.mubr.bf16.mxu1 %v3402_v21 }
 0xcbc   : > { %v2916_v33 = vpop.f32.mrb[25].mxu0  ;;  %v2957_v34 = vpop.f32.mrb[25].mxu1  ;;  %4222 = vmatmul.mubr.bf16.vlgmr.msra.gmra.mrb[36].mxu0 %v3399_v26  ;;  %4262 = vmatmul.mubr.bf16.vlgmr.msra.gmra.mrb[36].mxu1 %v3401_v28  ;;  %v17161_v28 = vld [vmem:[#allocation22 + $0x128] sm:$0xff]  }
 0xcbd   : > { %v2917_v35 = vadd.f32 %v2916_v33, %v2578_v22  ;;  %v2958_v36 = vadd.f32 %v2957_v34, %v2586_v23  ;;  %15521 = vmatpush3.bf16.msra.mxu0 %v17141_v24  ;;  %15543 = vmatpush3.bf16.msra.mxu1 %v17142_v25  ;;  %v2918_v37 = vpop.f32.mrb[26].mxu0  ;;  %v2959_v38 = vpop.f32.mrb[26].mxu1  ;;  %v2582_v33 = vrot.slane %v20234_v58, %v20269_v7 }
 0xcbe   : > { %v2919_v41 = vpop.f32.mrb[27].mxu0  ;;  %v2960_v42 = vpop.f32.mrb[27].mxu1  ;;  %15522 = vmatprep.subr.bf16.mxu0 %v17143_v29  ;;  %15544 = vmatprep.subr.bf16.mxu1 %v17144_v30  ;;  %v17162_v29 = vld [vmem:[#allocation22 + $0x1a8] sm:$0xff]   ;;  %v2574_v30 = vrot.slane %v20234_v58, %v20276_v18  ;;  %v17164_v37 = vld [vmem:[#allocation22 + $0x1f0] sm:$0xff]   ;;  %v2594_v38 = vrot.slane %v20271_v13, %v20237_v59 }
 0xcbf   : > { %v3131_v46 = vmax.f32 %v2917_v35, 0.0  ;;  %v3133_v47 = vmax.f32 %v2958_v36, 0.0  ;;  %v17163_v36 = vld [vmem:[#allocation22 + $0x170] sm:$0xff]   ;;  %v2956_v58 = vadd.f32 %v20262_v32, %v2582_v33  ;;  %v17173_v32 = vld [vmem:[#allocation22 + $0x200] sm:$0xff]  }
 0xcc0   : > { %v17166_v41 = vld [vmem:[#allocation22 + $0x1b0] sm:$0xff]   ;;  %v2915_v42 = vadd.f32 %v20260_v31, %v2574_v30  ;;  %v17189_v30 = vld [vmem:[#allocation22 + $0x220] sm:$0xff]  }
 0xcc1   : > { %v3404_v48 = vpack.c.bf16 %v3131_v46, %v3131_v46  ;;  %v3406_v49 = vpack.c.bf16 %v3133_v47, %v3133_v47  ;;  %15523 = vmatpush3.bf16.msra.mxu0 %v17145_v39  ;;  %15545 = vmatpush3.bf16.msra.mxu1 %v17146_v40  ;;  %v2602_v39 = vrot.slane %v20271_v13, %v20240_v60  ;;  %v17165_v40 = vld [vmem:[#allocation22 + $0x130] sm:$0xff]   ;;  %v17190_v33 = vld [vmem:[#allocation22 + $0x2a0] sm:$0xff]  }
 0xcc2   : > { %15524 = vmatprep.subr.bf16.mxu0 %v17147_v44  ;;  %15546 = vmatprep.subr.bf16.mxu1 %v17148_v45  ;;  %v17167_v44 = vld [vmem:[#allocation22 + $0x178] sm:$0xff]  }
 0xcc3   : > { %v20264_v61 = vpop.f32.mrb[28].mxu0  ;;  %v20266_v62 = vpop.f32.mrb[28].mxu1  ;;  %4301 = vmatprep.mubr.bf16.mxu0 %v3404_v48  ;;  %4341 = vmatprep.mubr.bf16.mxu1 %v3406_v49  ;;  %v17168_v45 = vld [vmem:[#allocation22 + $0x1f8] sm:$0xff]  }
 0xcc4   : > { %v2998_v63 = vpop.f32.mrb[29].mxu0  ;;  %v3039_v1 = vpop.f32.mrb[29].mxu1  ;;  %v17169_v48 = vld [vmem:[#allocation22 + $0x138] sm:$0xff]  }
 0xcc5   : > { %15525 = vmatpush3.bf16.msra.mxu0 %v17149_v50  ;;  %15547 = vmatpush3.bf16.msra.mxu1 %v17150_v51  ;;  %v3000_v2 = vpop.f32.mrb[30].mxu0  ;;  %v3041_v3 = vpop.f32.mrb[30].mxu1  ;;  %v2999_v46 = vadd.f32 %v2998_v63, %v2594_v38  ;;  %v3040_v47 = vadd.f32 %v3039_v1, %v2602_v39  ;;  %v17170_v49 = vld [vmem:[#allocation22 + $0x1b8] sm:$0xff]   ;;  %v3130_v50 = vmax.f32 %v2915_v42, 0.0  ;;  %v3132_v51 = vmax.f32 %v2956_v58, 0.0  ;;  %v17174_v63 = vld [vmem:[#allocation22 + $0x280] sm:$0xff]  }
 0xcc6   : > { %v3001_v8 = vpop.f32.mrb[31].mxu0  ;;  %v3042_v9 = vpop.f32.mrb[31].mxu1  ;;  %15526 = vmatprep.subr.bf16.mxu0 %v17151_v52  ;;  %15548 = vmatprep.subr.bf16.mxu1 %v17152_v53  ;;  %v17171_v52 = vld [vmem:[#allocation22 + $0x240] sm:$0xff]   ;;  %v17194_v38 = vld [vmem:[#allocation22 + $0x2a8] sm:$0xff]   ;;  %v17195_v39 = vld [vmem:[#allocation22 + $0x270] sm:$0xff]   ;;  %v2610_v42 = vrot.slane %v20271_v13, %v20251_v14  ;;  %v2618_v58 = vrot.slane %v20271_v13, %v20254_v15 }
 0xcc7   : > { %v17172_v53 = vld [vmem:[#allocation22 + $0x2c0] sm:$0xff]   ;;  %v3135_v2 = vmax.f32 %v2999_v46, 0.0  ;;  %v3137_v31 = vmax.f32 %v3040_v47, 0.0  ;;  %v3403_v3 = vpack.c.bf16 %v3130_v50, %v3130_v50  ;;  %v17176_v8 = vld [vmem:[#allocation22 + $0x2c8] sm:$0xff]   ;;  %v17198_v46 = vld [vmem:[#allocation22 + $0x2b0] sm:$0xff]  }
 0xcc8   : > { %v17199_v47 = vld [vmem:[#allocation22 + $0x278] sm:$0xff]  }
 0xcc9   : > { %15527 = vmatpush3.bf16.msra.mxu0 %v17153_v4  ;;  %15549 = vmatpush3.bf16.msra.mxu1 %v17154_v6  ;;  %v3405_v4 = vpack.c.bf16 %v3132_v51, %v3132_v51  ;;  %v3408_v1 = vpack.c.bf16 %v3135_v2, %v3135_v2  ;;  %v17175_v6 = vld [vmem:[#allocation22 + $0x248] sm:$0xff]   ;;  %v3410_v9 = vpack.c.bf16 %v3137_v31, %v3137_v31  ;;  %v17202_v2 = vld [vmem:[#allocation22 + $0x2b8] sm:$0xff]   ;;  %v17203_v31 = vld [vmem:[#allocation22 + $0x340] sm:$0xff]  }
 0xcca   : > { %15528 = vmatprep.subr.bf16.mxu0 %v17155_v10  ;;  %15550 = vmatprep.subr.bf16.mxu1 %v17156_v11  ;;  %v17177_v10 = vld [vmem:[#allocation22 + $0x208] sm:$0xff]  }
 0xccb   : > { %v20278_v20 = vpop.f32.mrb[32].mxu0  ;;  %v3119_v21 = vpop.f32.mrb[32].mxu1  ;;  %v17178_v11 = vld [vmem:[#allocation22 + $0x288] sm:$0xff]  }
 0xccc   : > { %v20280_v22 = vadd.f32 %v3119_v21, %v2614_v5  ;;  %v20282_v23 = vpop.f32.mrb[33].mxu0  ;;  %v20284_v24 = vpop.f32.mrb[33].mxu1  ;;  %v17179_v5 = vld [vmem:[#allocation22 + $0x250] sm:$0xff]   ;;  %v17184_v21 = vld [vmem:[#allocation22 + $0x2d8] sm:$0xff]  }
 0xccd   : > { %15529 = vmatpush3.bf16.msra.mxu0 %v17157_v16  ;;  %15551 = vmatpush3.bf16.msra.mxu1 %v17158_v17  ;;  %v3082_v25 = vpop.f32.mrb[34].mxu0  ;;  %v3123_v26 = vpop.f32.mrb[34].mxu1  ;;  %v17180_v16 = vld [vmem:[#allocation22 + $0x2d0] sm:$0xff]   ;;  %v3081_v50 = vadd.f32 %v20282_v23, %v2610_v42  ;;  %v3122_v51 = vadd.f32 %v20284_v24, %v2618_v58  ;;  %v17206_v23 = vld [vmem:[#allocation22 + $0x380] sm:$0xff]   ;;  %v17207_v24 = vld [vmem:[#allocation22 + $0x348] sm:$0xff]  }
 0xcce   : > { %v3083_v34 = vpop.f32.mrb[35].mxu0  ;;  %v3124_v35 = vpop.f32.mrb[35].mxu1  ;;  %15530 = vmatprep.subr.bf16.mxu0 %v17159_v12  ;;  %15552 = vmatprep.subr.bf16.mxu1 %v17160_v19  ;;  %v17181_v17 = vld [vmem:[#allocation22 + $0x210] sm:$0xff]   ;;  %v17183_v19 = vld [vmem:[#allocation22 + $0x258] sm:$0xff]  }
 0xccf   : > { %v17182_v12 = vld [vmem:[#allocation22 + $0x290] sm:$0xff]   ;;  %v17185_v25 = vld [vmem:[#allocation22 + $0x218] sm:$0xff]   ;;  %v17191_v34 = vld [vmem:[#allocation22 + $0x268] sm:$0xff]  }
 0xcd0   : > { %v17186_v26 = vld [vmem:[#allocation22 + $0x298] sm:$0xff]   ;;  %v17192_v35 = vld [vmem:[#allocation22 + $0x2e8] sm:$0xff]   ;;  %v17230_v58 = vld [vmem:[#allocation22 + $0x3b0] sm:$0xff]  }
 0xcd1   : > { %15531 = vmatpush3.bf16.msra.mxu0 %v17161_v28  ;;  %15553 = vmatpush3.bf16.msra.mxu1 %v17162_v29  ;;  %v17187_v28 = vld [vmem:[#allocation22 + $0x260] sm:$0xff]  }
 0xcd2   : > { %15532 = vmatprep.subr.bf16.mxu0 %v17163_v36  ;;  %15554 = vmatprep.subr.bf16.mxu1 %v17164_v37  ;;  %v17188_v29 = vld [vmem:[#allocation22 + $0x2e0] sm:$0xff]   ;;  %v17193_v36 = vld [vmem:[#allocation22 + $0x228] sm:$0xff]   ;;  %v2590_v37 = vrot.slane %v20271_v13, %v20229_v56 }
 0xcd5   : > { %15533 = vmatpush3.bf16.msra.mxu0 %v17165_v40  ;;  %15555 = vmatpush3.bf16.msra.mxu1 %v17166_v41  ;;  %v2598_v40 = vrot.slane %v20271_v13, %v20232_v57  ;;  %v17196_v41 = vld [vmem:[#allocation22 + $0x2f0] sm:$0xff]  }
 0xcd6   : > { %15534 = vmatprep.subr.bf16.mxu0 %v17167_v44  ;;  %15556 = vmatprep.subr.bf16.mxu1 %v17168_v45  ;;  %v17197_v44 = vld [vmem:[#allocation22 + $0x230] sm:$0xff]   ;;  %v2997_v45 = vadd.f32 %v20264_v61, %v2590_v37  ;;  %v2606_v37 = vrot.slane %v20271_v13, %v20276_v18  ;;  %v17234_v13 = vld [vmem:[#allocation22 + $0x3b8] sm:$0xff]  }
 0xcd8   : > { %v3079_v42 = vadd.f32 %v20278_v20, %v2606_v37 }
 0xcd9   : > { %15535 = vmatpush3.bf16.msra.mxu0 %v17169_v48  ;;  %15557 = vmatpush3.bf16.msra.mxu1 %v17170_v49  ;;  %v3038_v48 = vadd.f32 %v20266_v62, %v2598_v40  ;;  %v17200_v49 = vld [vmem:[#allocation22 + $0x2f8] sm:$0xff]   ;;  %v17205_v62 = vld [vmem:[#allocation22 + $0x300] sm:$0xff]   ;;  %v17228_v40 = vld [vmem:[#allocation22 + $0x3f0] sm:$0xff]  }
 0xcda   : > { %15564 = vmatprep.subr.bf16.mxu0 %v17171_v52  ;;  %15586 = vmatprep.subr.bf16.mxu1 %v17172_v53  ;;  %v17201_v52 = vld [vmem:[#allocation22 + $0x238] sm:$0xff]   ;;  %v3134_v53 = vmax.f32 %v2997_v45, 0.0 }
 0xcdb   : > { %v3136_v61 = vmax.f32 %v3038_v48, 0.0  ;;  %v17232_v45 = vld [vmem:[#allocation22 + $0x3f8] sm:$0xff]   ;;  %v3140_v48 = vmax.f32 %v20280_v22, 0.0  ;;  %v14700_v22 = vld [vmem:[#allocation23] ss:$0 sm:$0xff] }
 0xcdc   : > { %4302 = vmatmul.mubr.bf16.vlgmr.msra.gmra.mrb[40].mxu0 %v3403_v3  ;;  %4342 = vmatmul.mubr.bf16.vlgmr.msra.gmra.mrb[40].mxu1 %v3405_v4  ;;  %v3139_v3 = vmax.f32 %v3081_v50, 0.0  ;;  %v3141_v4 = vmax.f32 %v3122_v51, 0.0 }
 0xcdd   : > { %15565 = vmatpush3.bf16.msra.mxu0 %v17173_v32  ;;  %4381 = vmatprep.mubr.bf16.mxu0 %v3408_v1  ;;  %v17204_v32 = vld [vmem:[#allocation22 + $0x3c0] sm:$0xff]   ;;  %v3409_v1 = vpack.c.bf16 %v3136_v61, %v3136_v61  ;;  %v3413_v20 = vpack.c.bf16 %v3140_v48, %v3140_v48 }
 0xcde   : > { %15587 = vmatpush3.bf16.msra.mxu1 %v17174_v63  ;;  %4421 = vmatprep.mubr.bf16.mxu1 %v3410_v9  ;;  %v3407_v63 = vpack.c.bf16 %v3134_v53, %v3134_v53  ;;  %v3414_v9 = vpack.c.bf16 %v3141_v4, %v3141_v4 }
 0xcdf   : > { %15566 = vmatprep.subr.bf16.mxu0 %v17175_v6  ;;  %15588 = vmatprep.subr.bf16.mxu1 %v17176_v8  ;;  %v3412_v6 = vpack.c.bf16 %v3139_v3, %v3139_v3  ;;  %v17208_v8 = vld [vmem:[#allocation22 + $0x3c8] sm:$0xff]  }
 0xce1   : > { %15567 = vmatpush3.bf16.msra.mxu0 %v17177_v10  ;;  %v17209_v10 = vld [vmem:[#allocation22 + $0x308] sm:$0xff]  }
 0xce2   : > { %15589 = vmatpush3.bf16.msra.mxu1 %v17178_v11  ;;  %15568 = vmatprep.subr.bf16.mxu0 %v17179_v5  ;;  %v17210_v11 = vld [vmem:[#allocation22 + $0x388] sm:$0xff]   ;;  %v17211_v5 = vld [vmem:[#allocation22 + $0x350] sm:$0xff]  }
 0xce3   : > { %15590 = vmatprep.subr.bf16.mxu1 %v17180_v16  ;;  %v17212_v16 = vld [vmem:[#allocation22 + $0x3d0] sm:$0xff]  }
 0xce5   : > { %15569 = vmatpush3.bf16.msra.mxu0 %v17181_v17  ;;  %v17213_v17 = vld [vmem:[#allocation22 + $0x310] sm:$0xff]  }
 0xce6   : > { %15591 = vmatpush3.bf16.msra.mxu1 %v17182_v12  ;;  %15570 = vmatprep.subr.bf16.mxu0 %v17183_v19  ;;  %v17214_v12 = vld [vmem:[#allocation22 + $0x390] sm:$0xff]   ;;  %v17215_v19 = vld [vmem:[#allocation22 + $0x358] sm:$0xff]  }
 0xce7   : > { %15592 = vmatprep.subr.bf16.mxu1 %v17184_v21  ;;  %v17216_v21 = vld [vmem:[#allocation22 + $0x3d8] sm:$0xff]  }
 0xce9   : > { %15571 = vmatpush3.bf16.msra.mxu0 %v17185_v25  ;;  %v17217_v25 = vld [vmem:[#allocation22 + $0x318] sm:$0xff]  }
 0xcea   : > { %15593 = vmatpush3.bf16.msra.mxu1 %v17186_v26  ;;  %15572 = vmatprep.subr.bf16.mxu0 %v17187_v28  ;;  %v17218_v26 = vld [vmem:[#allocation22 + $0x398] sm:$0xff]   ;;  %v17219_v28 = vld [vmem:[#allocation22 + $0x360] sm:$0xff]  }
 0xceb   : > { %15594 = vmatprep.subr.bf16.mxu1 %v17188_v29  ;;  %v17220_v29 = vld [vmem:[#allocation22 + $0x3e0] sm:$0xff]  }
 0xced   : > { %15573 = vmatpush3.bf16.msra.mxu0 %v17189_v30  ;;  %v17221_v30 = vld [vmem:[#allocation22 + $0x320] sm:$0xff]  }
 0xcee   : > { %15595 = vmatpush3.bf16.msra.mxu1 %v17190_v33  ;;  %15574 = vmatprep.subr.bf16.mxu0 %v17191_v34  ;;  %v17222_v33 = vld [vmem:[#allocation22 + $0x3a0] sm:$0xff]   ;;  %v17223_v34 = vld [vmem:[#allocation22 + $0x368] sm:$0xff]  }
 0xcef   : > { %15596 = vmatprep.subr.bf16.mxu1 %v17192_v35  ;;  %v17224_v35 = vld [vmem:[#allocation22 + $0x3e8] sm:$0xff]  }
 0xcf1   : > { %15575 = vmatpush3.bf16.msra.mxu0 %v17193_v36  ;;  %v17225_v36 = vld [vmem:[#allocation22 + $0x328] sm:$0xff]  }
 0xcf2   : > { %15597 = vmatpush3.bf16.msra.mxu1 %v17194_v38  ;;  %15576 = vmatprep.subr.bf16.mxu0 %v17195_v39  ;;  %v17226_v38 = vld [vmem:[#allocation22 + $0x3a8] sm:$0xff]   ;;  %v17227_v39 = vld [vmem:[#allocation22 + $0x370] sm:$0xff]  }
 0xcf3   : > { %15598 = vmatprep.subr.bf16.mxu1 %v17196_v41  ;;  %v17229_v41 = vld [vmem:[#allocation22 + $0x330] sm:$0xff]  }
 0xcf5   : > { %15577 = vmatpush3.bf16.msra.mxu0 %v17197_v44  ;;  %v17231_v44 = vld [vmem:[#allocation22 + $0x378] sm:$0xff]  }
 0xcf6   : > { %15599 = vmatpush3.bf16.msra.mxu1 %v17198_v46  ;;  %15578 = vmatprep.subr.bf16.mxu0 %v17199_v47  ;;  %v17233_v46 = vld [vmem:[#allocation22 + $0x338] sm:$0xff]   ;;  %v3138_v47 = vmax.f32 %v3079_v42, 0.0 }
 0xcf7   : > { %15600 = vmatprep.subr.bf16.mxu1 %v17200_v49 }
 0xcf8   : > { %v3411_v49 = vpack.c.bf16 %v3138_v47, %v3138_v47 }
 0xcf9   : > { %15579 = vmatpush3.bf16.msra.mxu0 %v17201_v52 }
 0xcfa   : > { %15601 = vmatpush3.bf16.msra.mxu1 %v17202_v2  ;;  %15608 = vmatprep.subr.bf16.mxu0 %v17203_v31 }
 0xcfb   : > { %15630 = vmatprep.subr.bf16.mxu1 %v17204_v32 }
 0xcfc   : > { %4382 = vmatmul.mubr.bf16.vlgmr.msra.gmra.mrb[44].mxu0 %v3407_v63 }
 0xcfd   : > { %4422 = vmatmul.mubr.bf16.vlgmr.msra.gmra.mrb[44].mxu1 %v3409_v1  ;;  %15609 = vmatpush3.bf16.msra.mxu0 %v17205_v62 }
 0xcfe   : > { %4461 = vmatprep.mubr.bf16.mxu0 %v3412_v6  ;;  %15631 = vmatpush3.bf16.msra.mxu1 %v17206_v23 }
 0xcff   : > { %4501 = vmatprep.mubr.bf16.mxu1 %v3414_v9  ;;  %15610 = vmatprep.subr.bf16.mxu0 %v17207_v24 }
 0xd00   : > { %15632 = vmatprep.subr.bf16.mxu1 %v17208_v8 }
 0xd01   : > { %15611 = vmatpush3.bf16.msra.mxu0 %v17209_v10 }
 0xd02   : > { %15633 = vmatpush3.bf16.msra.mxu1 %v17210_v11  ;;  %15612 = vmatprep.subr.bf16.mxu0 %v17211_v5 }
 0xd03   : > { %15634 = vmatprep.subr.bf16.mxu1 %v17212_v16 }
 0xd05   : > { %15613 = vmatpush3.bf16.msra.mxu0 %v17213_v17 }
 0xd06   : > { %15635 = vmatpush3.bf16.msra.mxu1 %v17214_v12  ;;  %15614 = vmatprep.subr.bf16.mxu0 %v17215_v19 }
 0xd07   : > { %15636 = vmatprep.subr.bf16.mxu1 %v17216_v21 }
 0xd09   : > { %15615 = vmatpush3.bf16.msra.mxu0 %v17217_v25 }
 0xd0a   : > { %15637 = vmatpush3.bf16.msra.mxu1 %v17218_v26  ;;  %15616 = vmatprep.subr.bf16.mxu0 %v17219_v28 }
 0xd0b   : > { %15638 = vmatprep.subr.bf16.mxu1 %v17220_v29 }
 0xd0d   : > { %15617 = vmatpush3.bf16.msra.mxu0 %v17221_v30 }
 0xd0e   : > { %15639 = vmatpush3.bf16.msra.mxu1 %v17222_v33  ;;  %15618 = vmatprep.subr.bf16.mxu0 %v17223_v34 }
 0xd0f   : > { %15640 = vmatprep.subr.bf16.mxu1 %v17224_v35 }
 0xd11   : > { %15619 = vmatpush3.bf16.msra.mxu0 %v17225_v36 }
 0xd12   : > { %15641 = vmatpush3.bf16.msra.mxu1 %v17226_v38  ;;  %15620 = vmatprep.subr.bf16.mxu0 %v17227_v39 }
 0xd13   : > { %15642 = vmatprep.subr.bf16.mxu1 %v17228_v40 }
 0xd15   : > { %15621 = vmatpush3.bf16.msra.mxu0 %v17229_v41 }
 0xd16   : > { %15643 = vmatpush3.bf16.msra.mxu1 %v17230_v58  ;;  %15622 = vmatprep.subr.bf16.mxu0 %v17231_v44 }
 0xd17   : > { %15644 = vmatprep.subr.bf16.mxu1 %v17232_v45 }
 0xd19   : > { %15623 = vmatpush3.bf16.msra.mxu0 %v17233_v46 }
 0xd1a   : > { %15645 = vmatpush3.bf16.msra.mxu1 %v17234_v13  ;;  %16363 = vmatprep.subr.bf16.mxu0 %v19111_v0 }
 0xd1b   : > { %16371 = vmatprep.subr.bf16.mxu1 %v19111_v0 }
 0xd1c   : > { %4462 = vmatmul.mubr.bf16.vlgmr.msra.gmra.mrb[48].mxu0 %v3411_v49 }
 0xd1d   : > { %4502 = vmatmul.mubr.bf16.vlgmr.msra.gmra.mrb[48].mxu1 %v3413_v20  ;;  %16367 = vmatprep.mubr.msk.bf16.mxu0 %vm19112_vm0, %v19111_v0 }
 0xd1e   : > { %16373 = vmatprep.mubr.msk.bf16.mxu1 %vm19112_vm0, %v19111_v0 }
 0xd8f   : > { %v15492_v50 = vpop.f32.mrb[36].mxu0  ;;  %v15514_v51 = vpop.f32.mrb[36].mxu1 }
 0xd90   : > { %v15493_v52 = vpop.f32.mrb[37].mxu0  ;;  %v15515_v53 = vpop.f32.mrb[37].mxu1 }
 0xd91   : > { %v15494_v2 = vadd.f32 %v15493_v52, %v15492_v50  ;;  %v15516_v31 = vadd.f32 %v15515_v53, %v15514_v51  ;;  %v15495_v61 = vpop.f32.mrb[38].mxu0  ;;  %v15517_v32 = vpop.f32.mrb[38].mxu1 }
 0xd92   : > { %v15496_v3 = vpop.f32.mrb[39].mxu0  ;;  %v15518_v4 = vpop.f32.mrb[39].mxu1 }
 0xd93   : > { %v4224_v62 = vadd.f32 %v15494_v2, %v14700_v22  ;;  %v17235_v2 = vld [vmem:[#allocation10 + $0x10] sm:$0xff]   ;;  %v14829_v4 = vld [vmem:[#allocation25] ss:$0 sm:$0xff] }
 0xd94   : > { %16364 = vmatpush3.bf16.msra.mxu0 %v17235_v2 }
 0xd95   : > { %v4264_v63 = vadd.f32 %v15516_v31, %v4224_v62  ;;  %v17236_v31 = vld [vmem:[#allocation10 + $0x18] sm:$0xff]   ;;  %16365 = vmatprep.subr.bf16.mxu0 %v19111_v0 }
 0xd98   : > { %16366 = vmatpush3.bf16.msra.mxu0 %v17236_v31 }
 0xd99   : > { %16377 = vmatprep.subr.bf16.mxu0 %v19111_v0 }
 0xdaf   : > { %v15536_v23 = vpop.f32.mrb[40].mxu0  ;;  %v15558_v1 = vpop.f32.mrb[40].mxu1 }
 0xdb0   : > { %v15537_v24 = vpop.f32.mrb[41].mxu0  ;;  %v15559_v6 = vpop.f32.mrb[41].mxu1 }
 0xdb1   : > { %v15538_v8 = vadd.f32 %v15537_v24, %v15536_v23  ;;  %v15560_v9 = vadd.f32 %v15559_v6, %v15558_v1  ;;  %v15539_v10 = vpop.f32.mrb[42].mxu0  ;;  %v15561_v11 = vpop.f32.mrb[42].mxu1  ;;  %v14831_v6 = vld [vmem:[#allocation11 + $0x1] ss:$0 sm:$0xff] }
 0xdb2   : > { %v15540_v5 = vpop.f32.mrb[43].mxu0  ;;  %v15562_v16 = vpop.f32.mrb[43].mxu1 }
 0xdb3   : > { %v4304_v17 = vadd.f32 %v15538_v8, %v4264_v63  ;;  %v14830_v63 = vld [vmem:[#allocation26] ss:$0 sm:$0xff] }
 0xdb5   : > { %v4344_v12 = vadd.f32 %v15560_v9, %v4304_v17 }
 0xdcf   : > { %v15580_v19 = vpop.f32.mrb[44].mxu0 }
 0xdd0   : > { %v15602_v21 = vpop.f32.mrb[44].mxu1  ;;  %v15581_v25 = vpop.f32.mrb[45].mxu0 }
 0xdd1   : > { %v15582_v26 = vadd.f32 %v15581_v25, %v15580_v19  ;;  %v15603_v28 = vpop.f32.mrb[45].mxu1  ;;  %v15583_v29 = vpop.f32.mrb[46].mxu0 }
 0xdd2   : > { %v15604_v30 = vadd.f32 %v15603_v28, %v15602_v21  ;;  %v15605_v33 = vpop.f32.mrb[46].mxu1  ;;  %v15584_v34 = vpop.f32.mrb[47].mxu0 }
 0xdd3   : > { %v4384_v35 = vadd.f32 %v15582_v26, %v4344_v12  ;;  %v15606_v36 = vpop.f32.mrb[47].mxu1 }
 0xdd5   : > { %v4424_v37 = vadd.f32 %v15604_v30, %v4384_v35 }
 0xdef   : > { %v15624_v38 = vpop.f32.mrb[48].mxu0 }
 0xdf0   : > { %v15646_v39 = vpop.f32.mrb[48].mxu1  ;;  %v15625_v40 = vpop.f32.mrb[49].mxu0 }
 0xdf1   : > { %v15626_v41 = vadd.f32 %v15625_v40, %v15624_v38  ;;  %v15647_v42 = vpop.f32.mrb[49].mxu1  ;;  %v15627_v58 = vpop.f32.mrb[50].mxu0 }
 0xdf2   : > { %v15648_v44 = vadd.f32 %v15647_v42, %v15646_v39  ;;  %v15649_v45 = vpop.f32.mrb[50].mxu1  ;;  %v15628_v46 = vpop.f32.mrb[51].mxu0 }
 0xdf3   : > { %v4464_v47 = vadd.f32 %v15626_v41, %v4424_v37  ;;  %v15650_v13 = vpop.f32.mrb[51].mxu1 }
 0xdf5   : > { %v4504_v48 = vadd.f32 %v15648_v44, %v4464_v47 }
 0xdf7   : > { %v4509_v49 = vadd.f32 %v4504_v48, %v20197_v43 }
 0xdf9   : > { %v4512_v20 = vsel %vm1913_vm1, %v4509_v49, 0.0 }
 0xdfa   : > { %4513 = vadd.xlane.f32.xlu0 %v4512_v20 }
 0xe87   : > { %v4514_v50 = vpop.xlane.xlu0 %4513 }
 0xe88   : > { %v4515_v51 = vmul.f32 0.03125, %v4514_v50 }
 0xe8a   : > { %v4516_v22 = vsub.f32 %v4509_v49, %v4515_v51 }
 0xe8c   : > { %v4517_v52 = vmul.f32 %v4516_v22, %v4516_v22 }
 0xe8e   : > { %v4518_v53 = vsel %vm1913_vm1, %v4517_v52, 0.0 }
 0xe8f   : > { %4519 = vadd.xlane.f32.xlu0 %v4518_v53 }
 0xf1c   : > { %v4520_v61 = vpop.xlane.xlu0 %4519 }
 0xf1d   : > { %v4521_v43 = vmul.f32 0.03125, %v4520_v61 }
 0xf1f   : > { %v4522_v32 = vadd.f32 1e-05, %v4521_v43 }
 0xf21   : > { %17663 = vrsqrt.f32 %v4522_v32 }
 0xf2b   : > { %v17664_v3 = vpop.eup %17663 }
 0xf2c   : > { %v4524_v62 = vmul.f32 %v17664_v3, %v4516_v22 }
 0xf2e   : > { %v4531_v23 = vmul.f32 %v14829_v4, %v4524_v62 }
 0xf30   : > { %v20323_v1 = vadd.f32 %v14830_v63, %v4531_v23 }
 0xf32   : > { %v4546_v24 = vpack.c.bf16 %v20323_v1, %v20323_v1 }
 0xf34   : > { %16368 = vmatmul.mubr.msk.bf16.vlgmr.msra.gmra.mrb[52].mxu0 %vm1913_vm1, %v4546_v24 }
 0xf35   : > { %16379 = vmatprep.mubr.msk.bf16.mxu0 %vm19112_vm0, %v19111_v0 }
0x1007   : > { %v4602_v8 = vpop.f32.mrb[52].mxu0 }
0x1008   : > { %v4603_v9 = vadd.f32 %v14831_v6, %v4602_v8  ;;  %v16369_v10 = vpop.f32.mrb[53].mxu0 }
0x1009   : > { %v4605_v11 = vpop.f32.mrb[54].mxu0 }
0x100a   : > { %v20330_v5 = vpack.c.bf16 %v4603_v9, %v4603_v9  ;;  %v16370_v16 = vpop.f32.mrb[55].mxu0 }
0x100c   : > { %4721 = vrot.lane.b32.xlu0 %v20330_v5, %s19116_s0  ;;  %4610 = vrot.lane.b32.xlu1 %v20330_v5, %s19114_s14 }
0x1010   : > { %4830 = vrot.lane.b32.xlu0 %v20330_v5, %s21233_s10  ;;  %4719 = vrot.lane.b32.xlu1 %v20330_v5, %s19113_s12  ;;  %s21377_s10 = smov 48  }
0x1014   : > { %4941 = vrot.lane.b32.xlu0 %v20330_v5, %s21231_s6  ;;  %4832 = vrot.lane.b32.xlu1 %v20330_v5, %s21241_s8  ;;  %s21376_s6 = smov 40  }
0x1018   : > { %4943 = vrot.lane.b32.xlu1 %v20330_v5, %s21242_s11 }
0x107e   : > { %v4611_v17 = vpop.permute.xlu1 %4610  ;;  %v4722_v19 = vpop.permute.xlu0 %4721 }
0x107f   : > { %v4616_v12 = vsel %vm1961_vm2, %v4611_v17, 0  ;;  %v4727_v25 = vsel %vm1961_vm2, %v4722_v19, 0 }
0x1080   : > { %16372 = vmatpush3.bf16.xpose.msra.mxu1 %v4616_v12 }
0x1081   : > { %16383 = vmatprep.subr.bf16.mxu1 %v19111_v0 }
0x1082   : > { %v4720_v21 = vpop.permute.xlu1 %4719  ;;  %v4831_v30 = vpop.permute.xlu0 %4830 }
0x1086   : > { %v4833_v26 = vpop.permute.xlu1 %4832  ;;  %v4942_v34 = vpop.permute.xlu0 %4941 }
0x1087   : > { %16374 = vmatmul.mubr.msk.bf16.vlgmr.msra.gmra.mrb[52].mxu1 %vm1961_vm2, %v20330_v5  ;;  %v4838_v28 = vsel %vm1961_vm2, %v4833_v26, 0 }
0x1088   : > { %16384 = vmatpush3.bf16.xpose.msra.mxu1 %v4727_v25  ;;  %16385 = vmatprep.mubr.msk.bf16.mxu1 %vm19112_vm0, %v19111_v0 }
0x1089   : > { %16395 = vmatprep.subr.bf16.mxu1 %v19111_v0 }
0x108a   : > { %v4944_v29 = vpop.permute.xlu1 %4943 }
0x108b   : > { %v4949_v33 = vsel %vm1961_vm2, %v4944_v29, 0 }
0x108f   : > { %16386 = vmatmul.mubr.msk.bf16.vlgmr.msra.gmra.mrb[56].mxu1 %vm1961_vm2, %v4720_v21 }
0x1090   : > { %16396 = vmatpush3.bf16.xpose.msra.mxu1 %v4838_v28  ;;  %16397 = vmatprep.mubr.msk.bf16.mxu1 %vm19112_vm0, %v19111_v0 }
0x1091   : > { %16407 = vmatprep.subr.bf16.mxu1 %v19111_v0 }
0x1097   : > { %16398 = vmatmul.mubr.msk.bf16.vlgmr.msra.gmra.mrb[60].mxu1 %vm1961_vm2, %v4831_v30 }
0x1098   : > { %16408 = vmatpush3.bf16.xpose.msra.mxu1 %v4949_v33  ;;  %16409 = vmatprep.mubr.msk.bf16.mxu1 %vm19112_vm0, %v19111_v0 }
0x1099   : > { %16419 = vmatprep.subr.bf16.mxu1 %v19111_v0 }
0x109f   : > { %16410 = vmatmul.mubr.msk.bf16.vlgmr.msra.gmra.mrb[64].mxu1 %vm1961_vm2, %v4942_v34 }
0x10a0   : > { %16423 = vmatprep.mubr.msk.bf16.mxu1 %vm19112_vm0, %v19111_v0 }
0x115a   : > { %v4652_v35 = vpop.f32.mrb[52].mxu1 }
0x115b   : > { %v4658_v36 = vmul.f32 0.35355338, %v4652_v35  ;;  %v16375_v37 = vpop.f32.mrb[53].mxu1 }
0x115c   : > { %v4655_v38 = vpop.f32.mrb[54].mxu1 }
0x115d   : > { %v16376_v39 = vpop.f32.mrb[55].mxu1  ;;  %v4659_v40 = vsel %vm1961_vm2, %v4658_v36, -inf }
0x115e   : > { %4660 = vmax.xlane.f32.xlu1 %v4659_v40 }
0x1162   : > { %v4763_v41 = vpop.f32.mrb[56].mxu1 }
0x1163   : > { %v4769_v42 = vmul.f32 0.35355338, %v4763_v41  ;;  %v16387_v58 = vpop.f32.mrb[57].mxu1 }
0x1164   : > { %v4766_v44 = vpop.f32.mrb[58].mxu1 }
0x1165   : > { %v16388_v45 = vpop.f32.mrb[59].mxu1  ;;  %v4770_v46 = vsel %vm1961_vm2, %v4769_v42, -inf }
0x1166   : > { %4771 = vmax.xlane.f32.xlu0 %v4770_v46 }
0x116a   : > { %v4874_v47 = vpop.f32.mrb[60].mxu1 }
0x116b   : > { %v4880_v13 = vmul.f32 0.35355338, %v4874_v47  ;;  %v16399_v48 = vpop.f32.mrb[61].mxu1 }
0x116c   : > { %v4877_v49 = vpop.f32.mrb[62].mxu1 }
0x116d   : > { %v16400_v20 = vpop.f32.mrb[63].mxu1  ;;  %v4881_v50 = vsel %vm1961_vm2, %v4880_v13, -inf }
0x116e   : > { %4882 = vmax.xlane.f32.xlu0 %v4881_v50 }
0x1172   : > { %v4985_v51 = vpop.f32.mrb[64].mxu1 }
0x1173   : > { %v4991_v22 = vmul.f32 0.35355338, %v4985_v51  ;;  %v16411_v52 = vpop.f32.mrb[65].mxu1 }
0x1174   : > { %v4988_v53 = vpop.f32.mrb[66].mxu1 }
0x1175   : > { %v16412_v2 = vpop.f32.mrb[67].mxu1  ;;  %v4992_v31 = vsel %vm1961_vm2, %v4991_v22, -inf }
0x1176   : > { %4993 = vmax.xlane.f32.xlu1 %v4992_v31 }
0x11eb   : > { %v4661_v61 = vpop.xlane.xlu1 %4660 }
0x11ec   : > { %v4662_v43 = vsub.f32 %v4658_v36, %v4661_v61 }
0x11ee   : > { %v4663_v32 = vmul.f32 1.442695, %v4662_v43  ;;  %v17237_v43 = vld [vmem:[#allocation13 + $0x10] sm:$0xff]  }
0x11ef   : > { %16420 = vmatpush3.bf16.msra.mxu1 %v17237_v43 }
0x11f0   : > { %17665 = vpow2.f32 %v4663_v32  ;;  %16421 = vmatprep.subr.bf16.mxu1 %v19111_v0  ;;  %v17238_v32 = vld [vmem:[#allocation13 + $0x18] sm:$0xff]  }
0x11f3   : > { %v4772_v3 = vpop.xlane.xlu0 %4771  ;;  %16422 = vmatpush3.bf16.msra.mxu1 %v17238_v32 }
0x11f4   : > { %v4773_v4 = vsub.f32 %v4769_v42, %v4772_v3 }
0x11f6   : > { %v4774_v62 = vmul.f32 1.442695, %v4773_v4 }
0x11f8   : > { %17667 = vpow2.f32 %v4774_v62 }
0x11fa   : > { %v17666_v63 = vpop.eup %17665 }
0x11fb   : > { %v4883_v23 = vpop.xlane.xlu0 %4882  ;;  %v4665_v24 = vsel %vm1961_vm2, %v17666_v63, 0.0 }
0x11fc   : > { %v4884_v6 = vsub.f32 %v4880_v13, %v4883_v23  ;;  %4666 = vadd.xlane.f32.xlu0 %v4665_v24 }
0x11fe   : > { %v4885_v8 = vmul.f32 1.442695, %v4884_v6 }
0x1200   : > { %17669 = vpow2.f32 %v4885_v8 }
0x1202   : > { %v17668_v9 = vpop.eup %17667 }
0x1203   : > { %v4776_v10 = vsel %vm1961_vm2, %v17668_v9, 0.0  ;;  %v4994_v17 = vpop.xlane.xlu1 %4993 }
0x1204   : > { %4777 = vadd.xlane.f32.xlu1 %v4776_v10  ;;  %v4995_v12 = vsub.f32 %v4991_v22, %v4994_v17 }
0x1206   : > { %v4996_v19 = vmul.f32 1.442695, %v4995_v12 }
0x1208   : > { %17671 = vpow2.f32 %v4996_v19 }
0x120a   : > { %v17670_v11 = vpop.eup %17669 }
0x120b   : > { %v4887_v16 = vsel %vm1961_vm2, %v17670_v11, 0.0 }
0x120c   : > { %4888 = vadd.xlane.f32.xlu0 %v4887_v16 }
0x1212   : > { %v17672_v21 = vpop.eup %17671 }
0x1213   : > { %v4998_v25 = vsel %vm1961_vm2, %v17672_v21, 0.0 }
0x1215   : > { %4782 = vrot.lane.b32.xlu1 %v20330_v5, %s21239_s28 }
0x1222   : > { %4671 = vrot.lane.b32.xlu0 %v20330_v5, %s21240_s7 }
0x1226   : > { %5004 = vrot.lane.b32.xlu0 %v20330_v5, %s21376_s6 }
0x1239   : > { %4999 = vadd.xlane.f32.xlu1 %v4998_v25 }
0x124a   : > { %4893 = vrot.lane.b32.xlu1 %v20330_v5, %s21377_s10 }
0x1289   : > { %v4667_v26 = vpop.xlane.xlu0 %4666 }
0x128a   : > { %17673 = vrcp.f32 %v4667_v26 }
0x1291   : > { %v4778_v28 = vpop.xlane.xlu1 %4777 }
0x1292   : > { %17675 = vrcp.f32 %v4778_v28 }
0x1294   : > { %v17674_v29 = vpop.eup %17673 }
0x1295   : > { %v4669_v33 = vmul.f32 %v17674_v29, %v17666_v63  ;;  %v4783_v36 = vpop.permute.xlu1 %4782 }
0x1296   : > { %v4788_v39 = vsel %vm2026_vm3, %v4783_v36, 0 }
0x1297   : > { %v4670_v37 = vpack.c.bf16 %v4669_v33, %v4669_v33 }
0x1299   : > { %v4889_v30 = vpop.xlane.xlu0 %4888 }
0x129a   : > { %17677 = vrcp.f32 %v4889_v30 }
0x129c   : > { %v17676_v38 = vpop.eup %17675 }
0x129d   : > { %v4672_v34 = vpop.permute.xlu0 %4671  ;;  %v4780_v5 = vmul.f32 %v17676_v38, %v17668_v9 }
0x129e   : > { %v4677_v35 = vsel %vm2026_vm3, %v4672_v34, 0 }
0x129f   : > { %16378 = vmatpush3.bf16.msra.mxu0 %v4677_v35  ;;  %v4781_v40 = vpack.c.bf16 %v4780_v5, %v4780_v5  ;;  %v5169_v5 = vld [vmem:[#allocation19 + $0x100] sm:$0xff] }
0x12a0   : > { %16389 = vmatprep.subr.bf16.mxu0 %v19111_v0 }
0x12a1   : > { %v5005_v46 = vpop.permute.xlu0 %5004 }
0x12a2   : > { %16380 = vmatmul.mubr.msk.bf16.vlgmr.msra.gmra.mrb[56].mxu0 %vm1961_vm2, %v4670_v37  ;;  %v5010_v13 = vsel %vm2026_vm3, %v5005_v46, 0 }
0x12a3   : > { %16390 = vmatpush3.bf16.msra.mxu0 %v4788_v39  ;;  %16391 = vmatprep.mubr.msk.bf16.mxu0 %vm19112_vm0, %v19111_v0 }
0x12a4   : > { %16401 = vmatprep.subr.bf16.mxu0 %v19111_v0  ;;  %v17678_v41 = vpop.eup %17677 }
0x12a5   : > { %v4891_v58 = vmul.f32 %v17678_v41, %v17670_v11  ;;  %v5170_v41 = vld [vmem:[#allocation19 + $0x108] sm:$0xff] }
0x12a7   : > { %v4892_v47 = vpack.c.bf16 %v4891_v58, %v4891_v58  ;;  %v5178_v58 = vld [vmem:[#allocation19 + $0x148] sm:$0xff] }
0x12a8   : > { %v14852_v46 = vcombine.high %v5170_v41, %v5178_v58 }
0x12aa   : > { %16392 = vmatmul.mubr.msk.bf16.vlgmr.msra.gmra.mrb[60].mxu0 %vm1961_vm2, %v4781_v40  ;;  %v5177_v40 = vld [vmem:[#allocation19 + $0x140] sm:$0xff]  ;;  %5491 = vmatprep.subr.bf16.mxu1 %v14852_v46  ;;  %v5184_v46 = vld [vmem:[#allocation19 + $0x178] sm:$0xff] }
0x12ab   : > { %16403 = vmatprep.mubr.msk.bf16.mxu0 %vm19112_vm0, %v19111_v0 }
0x12c6   : > { %v5000_v42 = vpop.xlane.xlu1 %4999 }
0x12c7   : > { %17679 = vrcp.f32 %v5000_v42  ;;  %v14850_v42 = vcombine.high %v5169_v5, %v5177_v40 }
0x12ca   : > { %v4894_v44 = vpop.permute.xlu1 %4893 }
0x12cb   : > { %v4899_v45 = vsel %vm2026_vm3, %v4894_v44, 0  ;;  %v14849_v44 = vcombine.low %v5169_v5, %v5177_v40 }
0x12cc   : > { %16402 = vmatpush3.bf16.msra.mxu0 %v4899_v45  ;;  %v14851_v45 = vcombine.low %v5170_v41, %v5178_v58  ;;  %v5175_v58 = vld [vmem:[#allocation19 + $0x130] sm:$0xff] }
0x12cd   : > { %16413 = vmatprep.subr.bf16.mxu0 %v19111_v0 }
0x12cf   : > { %16404 = vmatmul.mubr.msk.bf16.vlgmr.msra.gmra.mrb[64].mxu0 %vm1961_vm2, %v4892_v47  ;;  %v5193_v47 = vld [vmem:[#allocation19 + $0x1c0] sm:$0xff] }
0x12d0   : > { %16414 = vmatpush3.bf16.msra.mxu0 %v5010_v13  ;;  %16415 = vmatprep.mubr.msk.bf16.mxu0 %vm19112_vm0, %v19111_v0  ;;  %v5186_v13 = vld [vmem:[#allocation19 + $0x188] sm:$0xff] }
0x12d1   : > { %v17680_v48 = vpop.eup %17679  ;;  %5450 = vmatprep.subr.bf16.mxu0 %v14850_v42 }
0x12d2   : > { %v5002_v49 = vmul.f32 %v17680_v48, %v17672_v21  ;;  %v14843_v21 = vld [vmem:[#allocation14 + $0x1] ss:$0 sm:$0xff] }
0x12d4   : > { %v5003_v20 = vpack.c.bf16 %v5002_v49, %v5002_v49  ;;  %v5194_v49 = vld [vmem:[#allocation19 + $0x1c8] sm:$0xff] }
0x12d7   : > { %16416 = vmatmul.mubr.msk.bf16.vlgmr.msra.gmra.mrb[68].mxu0 %vm1961_vm2, %v5003_v20 }
0x12d8   : > { %5482 = vmatprep.mubr.bf16.mxu0 %v19127_v27  ;;  %5451 = vmatpush1.bf16.msra.mxu0 %v14849_v44  ;;  %v5183_v44 = vld [vmem:[#allocation19 + $0x170] sm:$0xff] }
0x1375   : > { %v4713_v50 = vpop.f32.mrb[56].mxu0 }
0x1376   : > { %v16381_v51 = vpop.f32.mrb[57].mxu0 }
0x1377   : > { %v4716_v22 = vpop.f32.mrb[58].mxu0  ;;  %v14868_v51 = vcombine.high %v5186_v13, %v5194_v49 }
0x1378   : > { %v16382_v52 = vpop.f32.mrb[59].mxu0  ;;  %v5171_v22 = vld [vmem:[#allocation19 + $0x110] sm:$0xff] }
0x1379   : > { %v5179_v52 = vld [vmem:[#allocation19 + $0x150] sm:$0xff] }
0x137d   : > { %v4824_v53 = vpop.f32.mrb[60].mxu0 }
0x137e   : > { %5053 = vrot.lane.b32.xlu1 %v4824_v53, %s19124_s5  ;;  %v16393_v2 = vpop.f32.mrb[61].mxu0  ;;  %v5172_v53 = vld [vmem:[#allocation19 + $0x118] sm:$0xff] }
0x137f   : > { %v4827_v31 = vpop.f32.mrb[62].mxu0  ;;  %v14853_v2 = vcombine.low %v5171_v22, %v5179_v52 }
0x1380   : > { %v16394_v61 = vpop.f32.mrb[63].mxu0  ;;  %v14854_v31 = vcombine.high %v5171_v22, %v5179_v52  ;;  %v14861_v22 = vcombine.low %v5175_v58, %v5183_v44 }
0x1381   : > { %v5180_v61 = vld [vmem:[#allocation19 + $0x158] sm:$0xff] }
0x1382   : > { %v14855_v43 = vcombine.low %v5172_v53, %v5180_v61  ;;  %v14856_v32 = vcombine.high %v5172_v53, %v5180_v61 }
0x13a2   : > { %v4935_v3 = vpop.f32.mrb[64].mxu0 }
0x13a3   : > { %5057 = vrot.lane.b32.xlu0 %v4935_v3, %s21237_s2  ;;  %v16405_v4 = vpop.f32.mrb[65].mxu0  ;;  %s21380_s2 = smov 104  }
0x13a4   : > { %v4938_v62 = vpop.f32.mrb[66].mxu0 }
0x13a5   : > { %v16406_v63 = vpop.f32.mrb[67].mxu0 }
0x13aa   : > { %v5046_v23 = vpop.f32.mrb[68].mxu0 }
0x13ab   : > { %5061 = vrot.lane.b32.xlu1 %v5046_v23, %s21235_s1  ;;  %v16417_v24 = vpop.f32.mrb[69].mxu0  ;;  %v14847_v23 = vld [vmem:[#allocation16 + $0x1] ss:$0 sm:$0xff]  ;;  %s21378_s1 = scalar_lea.vmem [#allocation5], %s19999_s4 }
0x13ac   : > { %v5049_v6 = vpop.f32.mrb[70].mxu0 }
0x13ad   : > { %v16418_v8 = vpop.f32.mrb[71].mxu0  ;;  %v14848_v6 = vld [vmem:[#allocation17 + $0x1] ss:$0 sm:$0xff] }
0x13f0   : > { %v5054_v9 = vpop.permute.xlu1 %5053 }
0x13f1   : > { %v5064_v11 = vsel %vm1961_vm2, %v4713_v50, %v5054_v9  ;;  %v14867_v50 = vcombine.low %v5186_v13, %v5194_v49  ;;  %v5187_v9 = vld [vmem:[#allocation19 + $0x190] sm:$0xff]  ;;  %v14862_v13 = vcombine.high %v5175_v58, %v5183_v44  ;;  %v17272_v58 = vld [vmem:[#allocation22 + $0x5c0] sm:$0xff]  }
0x13f2   : > { %v5191_v49 = vld [vmem:[#allocation19 + $0x1b0] sm:$0xff] }
0x13f3   : > { %v20441_v44 = vld [vmem:[#allocation20 + $0x10] sm:$0xff] }
0x1415   : > { %v5058_v10 = vpop.permute.xlu0 %5057 }
0x1416   : > { %v5065_v16 = vsel %vm2416_vm4, %v5064_v11, %v5058_v10  ;;  %v5195_v10 = vld [vmem:[#allocation19 + $0x1d0] sm:$0xff]  ;;  %v5188_v11 = vld [vmem:[#allocation19 + $0x198] sm:$0xff] }
0x141d   : > { %v5062_v17 = vpop.permute.xlu1 %5061 }
0x141e   : > { %v5066_v12 = vsel %vm2418_vm5, %v5065_v16, %v5062_v17  ;;  %v5196_v16 = vld [vmem:[#allocation19 + $0x1d8] sm:$0xff] }
0x141f   : > { %v5074_v19 = vpack.c.bf16 %v5066_v12, %v5066_v12 }
0x1421   : > { %16424 = vmatmul.mubr.msk.bf16.vlgmr.msra.gmra.mrb[68].mxu1 %vm1913_vm1, %v5074_v19  ;;  %v14870_v19 = vcombine.high %v5187_v9, %v5195_v10 }
0x1422   : > { %5523 = vmatprep.mubr.bf16.mxu1 %v19127_v27  ;;  %5492 = vmatpush1.bf16.msra.mxu1 %v14851_v45  ;;  %v5176_v45 = vld [vmem:[#allocation19 + $0x138] sm:$0xff] }
0x1423   : > { %5493 = vmatprep.subr.bf16.mxu1 %v14868_v51  ;;  %v5200_v51 = vld [vmem:[#allocation19 + $0x1f8] sm:$0xff]  ;;  %v14863_v52 = vcombine.low %v5176_v45, %v5184_v46 }
0x1426   : > { %5494 = vmatpush1.bf16.msra.mxu1 %v14867_v50  ;;  %v5192_v50 = vld [vmem:[#allocation19 + $0x1b8] sm:$0xff] }
0x1427   : > { %5573 = vmatprep.subr.bf16.mxu1 %v14856_v32  ;;  %v14879_v61 = vcombine.low %v5192_v50, %v5200_v51  ;;  %v17240_v32 = vld [vmem:[#allocation22 + $0x4c0] sm:$0xff]  }
0x14f4   : > { %v5130_v25 = vpop.f32.mrb[68].mxu1 }
0x14f5   : > { %v5131_v26 = vadd.f32 %v14843_v21, %v5130_v25  ;;  %v16425_v28 = vpop.f32.mrb[69].mxu1  ;;  %v14872_v21 = vcombine.high %v5188_v11, %v5196_v16  ;;  %v5173_v25 = vld [vmem:[#allocation19 + $0x120] sm:$0xff] }
0x14f6   : > { %v5133_v29 = vpop.f32.mrb[70].mxu1  ;;  %v5174_v28 = vld [vmem:[#allocation19 + $0x128] sm:$0xff] }
0x14f7   : > { %v16426_v30 = vpop.f32.mrb[71].mxu1  ;;  %v5136_v33 = vadd.f32 %v5131_v26, %v20323_v1  ;;  %v5185_v1 = vld [vmem:[#allocation19 + $0x180] sm:$0xff]  ;;  %v5182_v29 = vld [vmem:[#allocation19 + $0x168] sm:$0xff] }
0x14f8   : > { %v14866_v48 = vcombine.high %v5185_v1, %v5193_v47  ;;  %v14865_v20 = vcombine.low %v5185_v1, %v5193_v47  ;;  %v5181_v26 = vld [vmem:[#allocation19 + $0x160] sm:$0xff]  ;;  %v14869_v30 = vcombine.low %v5187_v9, %v5195_v10  ;;  %v14859_v40 = vcombine.low %v5174_v28, %v5182_v29  ;;  %v17249_v9 = vld [vmem:[#allocation22 + $0x410] sm:$0xff]  }
0x14f9   : > { %v5141_v34 = vsel %vm1913_vm1, %v5136_v33, 0.0  ;;  %v14857_v5 = vcombine.low %v5173_v25, %v5181_v26  ;;  %v17250_v10 = vld [vmem:[#allocation22 + $0x490] sm:$0xff]  }
0x14fa   : > { %5142 = vadd.xlane.f32.xlu0 %v5141_v34  ;;  %5452 = vmatprep.subr.bf16.mxu0 %v14866_v48  ;;  %v14858_v34 = vcombine.high %v5173_v25, %v5181_v26  ;;  %v14864_v48 = vcombine.high %v5176_v45, %v5184_v46  ;;  %v17256_v25 = vld [vmem:[#allocation22 + $0x4e0] sm:$0xff]   ;;  %v5210_v45 = vrot.slane %v20441_v44, %v20229_v56 }
0x14fb   : > { %5453 = vmatpush1.bf16.msra.mxu0 %v14865_v20  ;;  %v5199_v20 = vld [vmem:[#allocation19 + $0x1f0] sm:$0xff]  ;;  %v17257_v26 = vld [vmem:[#allocation22 + $0x420] sm:$0xff]   ;;  %v5218_v46 = vrot.slane %v20441_v44, %v20232_v57 }
0x14fc   : > { %5532 = vmatprep.subr.bf16.mxu0 %v14854_v31  ;;  %v14878_v53 = vcombine.high %v5191_v49, %v5199_v20  ;;  %v14877_v31 = vcombine.low %v5191_v49, %v5199_v20 }
0x1587   : > { %v5143_v35 = vpop.xlane.xlu0 %5142 }
0x1588   : > { %v5144_v36 = vmul.f32 0.03125, %v5143_v35  ;;  %v14860_v35 = vcombine.high %v5174_v28, %v5182_v29  ;;  %v17258_v28 = vld [vmem:[#allocation22 + $0x4a0] sm:$0xff]   ;;  %v17259_v29 = vld [vmem:[#allocation22 + $0x468] sm:$0xff]  }
0x158a   : > { %v5145_v37 = vsub.f32 %v5136_v33, %v5144_v36  ;;  %v14871_v33 = vcombine.low %v5188_v11, %v5196_v16  ;;  %v5189_v36 = vld [vmem:[#allocation19 + $0x1a0] sm:$0xff]  ;;  %v17251_v11 = vld [vmem:[#allocation22 + $0x458] sm:$0xff]  }
0x158b   : > { %v17252_v16 = vld [vmem:[#allocation22 + $0x4d8] sm:$0xff]  }
0x158c   : > { %v5146_v38 = vmul.f32 %v5145_v37, %v5145_v37 }
0x158e   : > { %v5147_v39 = vsel %vm1913_vm1, %v5146_v38, 0.0  ;;  %v5190_v38 = vld [vmem:[#allocation19 + $0x1a8] sm:$0xff] }
0x158f   : > { %5148 = vadd.xlane.f32.xlu1 %v5147_v39  ;;  %v5198_v39 = vld [vmem:[#allocation19 + $0x1e8] sm:$0xff] }
0x1590   : > { %v14876_v42 = vcombine.high %v5190_v38, %v5198_v39  ;;  %v14875_v47 = vcombine.low %v5190_v38, %v5198_v39  ;;  %v17266_v38 = vld [vmem:[#allocation22 + $0x4b0] sm:$0xff]   ;;  %v17267_v39 = vld [vmem:[#allocation22 + $0x478] sm:$0xff]  }
0x161c   : > { %v5149_v3 = vpop.xlane.xlu1 %5148 }
0x161d   : > { %v5150_v4 = vmul.f32 0.03125, %v5149_v3  ;;  %v17241_v3 = vld [vmem:[#allocation22 + $0x400] sm:$0xff]  }
0x161f   : > { %v5151_v62 = vadd.f32 1e-05, %v5150_v4  ;;  %v17242_v4 = vld [vmem:[#allocation22 + $0x480] sm:$0xff]  }
0x1621   : > { %17681 = vrsqrt.f32 %v5151_v62  ;;  %v17243_v62 = vld [vmem:[#allocation22 + $0x448] sm:$0xff]  }
0x162b   : > { %v17682_v63 = vpop.eup %17681 }
0x162c   : > { %v5153_v24 = vmul.f32 %v17682_v63, %v5145_v37  ;;  %v5197_v37 = vld [vmem:[#allocation19 + $0x1e0] sm:$0xff]  ;;  %v17244_v63 = vld [vmem:[#allocation22 + $0x4c8] sm:$0xff]  }
0x162d   : > { %v14874_v41 = vcombine.high %v5189_v36, %v5197_v37  ;;  %v14873_v1 = vcombine.low %v5189_v36, %v5197_v37  ;;  %v17264_v36 = vld [vmem:[#allocation22 + $0x4f0] sm:$0xff]  }
0x162e   : > { %v5160_v8 = vmul.f32 %v14847_v23, %v5153_v24  ;;  %v17245_v23 = vld [vmem:[#allocation22 + $0x408] sm:$0xff]   ;;  %v17265_v37 = vld [vmem:[#allocation22 + $0x430] sm:$0xff]  }
0x162f   : > { %v17246_v24 = vld [vmem:[#allocation22 + $0x488] sm:$0xff]  }
0x1630   : > { %v20413_v17 = vadd.f32 %v14848_v6, %v5160_v8  ;;  %v17247_v6 = vld [vmem:[#allocation22 + $0x450] sm:$0xff]  }
0x1631   : > { %v17248_v8 = vld [vmem:[#allocation22 + $0x4d0] sm:$0xff]  }
0x1632   : > { %v20417_v12 = vpack.c.bf16 %v20413_v17, %v20413_v17 }
0x1634   : > { %14881 = vmatmul.mubr.msk.bf16.vlgmr.msra.gmra.mrb[72].mxu0 %vm1913_vm1, %v20417_v12  ;;  %14882 = vmatmul.mubr.msk.bf16.vlgmr.msra.gmra.mrb[72].mxu1 %vm1913_vm1, %v20417_v12 }
0x1635   : > { %5533 = vmatpush1.bf16.msra.mxu0 %v14853_v2  ;;  %5574 = vmatpush1.bf16.msra.mxu1 %v14855_v43  ;;  %v14880_v2 = vcombine.high %v5192_v50, %v5200_v51  ;;  %v17239_v43 = vld [vmem:[#allocation22 + $0x440] sm:$0xff]  }
0x1636   : > { %5534 = vmatprep.subr.bf16.mxu0 %v14870_v19  ;;  %5575 = vmatprep.subr.bf16.mxu1 %v14872_v21  ;;  %v17253_v19 = vld [vmem:[#allocation22 + $0x418] sm:$0xff]   ;;  %v17255_v21 = vld [vmem:[#allocation22 + $0x460] sm:$0xff]  }
0x1637   : > { %5564 = vmatprep.mubr.bf16.mxu0 %v19127_v27  ;;  %5605 = vmatprep.mubr.bf16.mxu1 %v19127_v27 }
0x1639   : > { %5535 = vmatpush1.bf16.msra.mxu0 %v14869_v30  ;;  %5576 = vmatpush1.bf16.msra.mxu1 %v14871_v33  ;;  %v17260_v30 = vld [vmem:[#allocation22 + $0x4e8] sm:$0xff]  }
0x163a   : > { %5614 = vmatprep.subr.bf16.mxu0 %v14858_v34  ;;  %5655 = vmatprep.subr.bf16.mxu1 %v14860_v35  ;;  %v17261_v33 = vld [vmem:[#allocation22 + $0x428] sm:$0xff]   ;;  %v17263_v35 = vld [vmem:[#allocation22 + $0x470] sm:$0xff]  }
0x163b   : > { %v17262_v34 = vld [vmem:[#allocation22 + $0x4a8] sm:$0xff]  }
0x163c   : > { %14883 = vmatmul.mubr.msk.bf16.vlgmr.msra.gmra.mrb[76].mxu0 %vm1913_vm1, %v20417_v12  ;;  %14884 = vmatmul.mubr.msk.bf16.vlgmr.msra.gmra.mrb[76].mxu1 %vm1913_vm1, %v20417_v12 }
0x163d   : > { %5615 = vmatpush1.bf16.msra.mxu0 %v14857_v5  ;;  %5656 = vmatpush1.bf16.msra.mxu1 %v14859_v40  ;;  %v17268_v5 = vld [vmem:[#allocation22 + $0x4f8] sm:$0xff]  }
0x163e   : > { %5616 = vmatprep.subr.bf16.mxu0 %v14874_v41  ;;  %5657 = vmatprep.subr.bf16.mxu1 %v14876_v42  ;;  %v17269_v40 = vld [vmem:[#allocation22 + $0x438] sm:$0xff]   ;;  %v17271_v42 = vld [vmem:[#allocation22 + $0x540] sm:$0xff]  }
0x163f   : > { %5646 = vmatprep.mubr.bf16.mxu0 %v19127_v27  ;;  %5687 = vmatprep.mubr.bf16.mxu1 %v19127_v27  ;;  %v17270_v41 = vld [vmem:[#allocation22 + $0x4b8] sm:$0xff]  }
0x1641   : > { %5617 = vmatpush1.bf16.msra.mxu0 %v14873_v1  ;;  %5658 = vmatpush1.bf16.msra.mxu1 %v14875_v47  ;;  %v5214_v1 = vrot.slane %v20441_v44, %v20237_v59  ;;  %v5222_v47 = vrot.slane %v20441_v44, %v20240_v60 }
0x1642   : > { %5696 = vmatprep.subr.bf16.mxu0 %v14862_v13  ;;  %5737 = vmatprep.subr.bf16.mxu1 %v14864_v48 }
0x1644   : > { %14885 = vmatmul.mubr.msk.bf16.vlgmr.msra.gmra.mrb[80].mxu0 %vm1913_vm1, %v20417_v12  ;;  %14886 = vmatmul.mubr.msk.bf16.vlgmr.msra.gmra.mrb[80].mxu1 %vm1913_vm1, %v20417_v12 }
0x1645   : > { %5697 = vmatpush1.bf16.msra.mxu0 %v14861_v22  ;;  %5738 = vmatpush1.bf16.msra.mxu1 %v14863_v52 }
0x1646   : > { %5698 = vmatprep.subr.bf16.mxu0 %v14878_v53  ;;  %5739 = vmatprep.subr.bf16.mxu1 %v14880_v2 }
0x1647   : > { %5728 = vmatprep.mubr.bf16.mxu0 %v19127_v27  ;;  %5769 = vmatprep.mubr.bf16.mxu1 %v19127_v27 }
0x1649   : > { %5699 = vmatpush1.bf16.msra.mxu0 %v14877_v31  ;;  %5740 = vmatpush1.bf16.msra.mxu1 %v14879_v61 }
0x164a   : > { %15674 = vmatprep.subr.bf16.mxu0 %v17239_v43  ;;  %15696 = vmatprep.subr.bf16.mxu1 %v17240_v32 }
0x164c   : > { %14887 = vmatmul.mubr.msk.bf16.vlgmr.msra.gmra.mrb[84].mxu0 %vm1913_vm1, %v20417_v12  ;;  %14888 = vmatmul.mubr.msk.bf16.vlgmr.msra.gmra.mrb[84].mxu1 %vm1913_vm1, %v20417_v12  ;;  %v17254_v12 = vld [vmem:[#allocation22 + $0x498] sm:$0xff]  }
0x164d   : > { %15675 = vmatpush3.bf16.msra.mxu0 %v17241_v3  ;;  %15697 = vmatpush3.bf16.msra.mxu1 %v17242_v4 }
0x164e   : > { %15676 = vmatprep.subr.bf16.mxu0 %v17243_v62  ;;  %15698 = vmatprep.subr.bf16.mxu1 %v17244_v63 }
0x1651   : > { %15677 = vmatpush3.bf16.msra.mxu0 %v17245_v23  ;;  %15699 = vmatpush3.bf16.msra.mxu1 %v17246_v24  ;;  %v5230_v23 = vrot.slane %v20441_v44, %v20251_v14  ;;  %v5238_v24 = vrot.slane %v20441_v44, %v20254_v15 }
0x1652   : > { %15678 = vmatprep.subr.bf16.mxu0 %v17247_v6  ;;  %15700 = vmatprep.subr.bf16.mxu1 %v17248_v8  ;;  %v17273_v6 = vld [vmem:[#allocation22 + $0x500] sm:$0xff]  }
0x1653   : > { %v17274_v8 = vld [vmem:[#allocation22 + $0x580] sm:$0xff]  }
0x1655   : > { %15679 = vmatpush3.bf16.msra.mxu0 %v17249_v9  ;;  %15701 = vmatpush3.bf16.msra.mxu1 %v17250_v10 }
0x1656   : > { %15680 = vmatprep.subr.bf16.mxu0 %v17251_v11  ;;  %15702 = vmatprep.subr.bf16.mxu1 %v17252_v16  ;;  %v17275_v11 = vld [vmem:[#allocation22 + $0x548] sm:$0xff]  }
0x1657   : > { %v17276_v16 = vld [vmem:[#allocation22 + $0x5c8] sm:$0xff]  }
0x1659   : > { %15681 = vmatpush3.bf16.msra.mxu0 %v17253_v19  ;;  %15703 = vmatpush3.bf16.msra.mxu1 %v17254_v12 }
0x165a   : > { %15682 = vmatprep.subr.bf16.mxu0 %v17255_v21  ;;  %15704 = vmatprep.subr.bf16.mxu1 %v17256_v25 }
0x165d   : > { %15683 = vmatpush3.bf16.msra.mxu0 %v17257_v26  ;;  %15705 = vmatpush3.bf16.msra.mxu1 %v17258_v28 }
0x165e   : > { %15684 = vmatprep.subr.bf16.mxu0 %v17259_v29  ;;  %15706 = vmatprep.subr.bf16.mxu1 %v17260_v30 }
0x1661   : > { %15685 = vmatpush3.bf16.msra.mxu0 %v17261_v33  ;;  %15707 = vmatpush3.bf16.msra.mxu1 %v17262_v34  ;;  %v17277_v33 = vld [vmem:[#allocation22 + $0x508] sm:$0xff]  }
0x1662   : > { %15686 = vmatprep.subr.bf16.mxu0 %v17263_v35  ;;  %15708 = vmatprep.subr.bf16.mxu1 %v17264_v36  ;;  %v17278_v34 = vld [vmem:[#allocation22 + $0x588] sm:$0xff]  }
0x1665   : > { %15687 = vmatpush3.bf16.msra.mxu0 %v17265_v37  ;;  %15709 = vmatpush3.bf16.msra.mxu1 %v17266_v38  ;;  %v17279_v37 = vld [vmem:[#allocation22 + $0x550] sm:$0xff]  }
0x1666   : > { %15688 = vmatprep.subr.bf16.mxu0 %v17267_v39  ;;  %15710 = vmatprep.subr.bf16.mxu1 %v17268_v5  ;;  %v17280_v38 = vld [vmem:[#allocation22 + $0x5d0] sm:$0xff]  }
0x1669   : > { %15689 = vmatpush3.bf16.msra.mxu0 %v17269_v40  ;;  %15711 = vmatpush3.bf16.msra.mxu1 %v17270_v41 }
0x166a   : > { %15718 = vmatprep.subr.bf16.mxu0 %v17271_v42  ;;  %15740 = vmatprep.subr.bf16.mxu1 %v17272_v58  ;;  %v17281_v42 = vld [vmem:[#allocation22 + $0x510] sm:$0xff]  }
0x166b   : > { %v17282_v58 = vld [vmem:[#allocation22 + $0x590] sm:$0xff]  }
0x1707   : > { %v5484_v13 = vpop.f32.mrb[72].mxu0  ;;  %v5525_v48 = vpop.f32.mrb[72].mxu1 }
0x1708   : > { %v5485_v49 = vadd.f32 %v5484_v13, %v5210_v45  ;;  %v5526_v20 = vadd.f32 %v5525_v48, %v5218_v46  ;;  %v5486_v50 = vpop.f32.mrb[73].mxu0  ;;  %v5527_v51 = vpop.f32.mrb[73].mxu1  ;;  %v17283_v45 = vld [vmem:[#allocation22 + $0x558] sm:$0xff]  }
0x1709   : > { %v5487_v22 = vadd.f32 %v5486_v50, %v5214_v1  ;;  %v5528_v52 = vadd.f32 %v5527_v51, %v5222_v47  ;;  %v5488_v53 = vpop.f32.mrb[74].mxu0  ;;  %v5529_v2 = vpop.f32.mrb[74].mxu1  ;;  %v17284_v46 = vld [vmem:[#allocation22 + $0x5d8] sm:$0xff]  }
0x170a   : > { %v5778_v31 = vmax.f32 %v5485_v49, 0.0  ;;  %v5780_v61 = vmax.f32 %v5526_v20, 0.0  ;;  %v5489_v43 = vpop.f32.mrb[75].mxu0  ;;  %v5530_v32 = vpop.f32.mrb[75].mxu1  ;;  %v17285_v50 = vld [vmem:[#allocation22 + $0x518] sm:$0xff]   ;;  %v17287_v53 = vld [vmem:[#allocation22 + $0x560] sm:$0xff]  }
0x170b   : > { %v5779_v3 = vmax.f32 %v5487_v22, 0.0  ;;  %v5781_v4 = vmax.f32 %v5528_v52, 0.0  ;;  %v17286_v51 = vld [vmem:[#allocation22 + $0x598] sm:$0xff]   ;;  %v17288_v2 = vld [vmem:[#allocation22 + $0x5e0] sm:$0xff]  }
0x170c   : > { %v6053_v9 = vpack.c.bf16 %v5778_v31, %v5778_v31  ;;  %v6055_v10 = vpack.c.bf16 %v5780_v61, %v5780_v61  ;;  %v20463_v31 = vld [vmem:[#allocation20 + $0x18] sm:$0xff]  ;;  %v17289_v43 = vld [vmem:[#allocation22 + $0x520] sm:$0xff]  }
0x170d   : > { %v6054_v62 = vpack.c.bf16 %v5779_v3, %v5779_v3  ;;  %v6056_v63 = vpack.c.bf16 %v5781_v4, %v5781_v4  ;;  %v5266_v61 = vrot.slane %v20463_v31, %v20269_v7  ;;  %v17290_v32 = vld [vmem:[#allocation22 + $0x5a0] sm:$0xff]   ;;  %v17291_v3 = vld [vmem:[#allocation22 + $0x568] sm:$0xff]  }
0x170e   : > { %v17292_v4 = vld [vmem:[#allocation22 + $0x5e8] sm:$0xff]  }
0x170f   : > { %v20455_v19 = vpop.f32.mrb[76].mxu0  ;;  %v20457_v12 = vpop.f32.mrb[76].mxu1  ;;  %6875 = vmatprep.mubr.bf16.mxu0 %v6054_v62  ;;  %6915 = vmatprep.mubr.bf16.mxu1 %v6056_v63 }
0x1710   : > { %v5568_v21 = vpop.f32.mrb[77].mxu0  ;;  %v5609_v25 = vpop.f32.mrb[77].mxu1  ;;  %6876 = vmatmul.mubr.bf16.vlgmr.msra.gmra.mrb[88].mxu0 %v6053_v9  ;;  %6916 = vmatmul.mubr.bf16.vlgmr.msra.gmra.mrb[88].mxu1 %v6055_v10  ;;  %v17293_v10 = vld [vmem:[#allocation22 + $0x528] sm:$0xff]  }
0x1711   : > { %v5569_v26 = vadd.f32 %v5568_v21, %v5230_v23  ;;  %v5610_v28 = vadd.f32 %v5609_v25, %v5238_v24  ;;  %15719 = vmatpush3.bf16.msra.mxu0 %v17273_v6  ;;  %15741 = vmatpush3.bf16.msra.mxu1 %v17274_v8  ;;  %v5570_v29 = vpop.f32.mrb[78].mxu0  ;;  %v5611_v30 = vpop.f32.mrb[78].mxu1  ;;  %v5234_v21 = vrot.slane %v20441_v44, %v20269_v7 }
0x1712   : > { %v5571_v35 = vpop.f32.mrb[79].mxu0  ;;  %v5612_v36 = vpop.f32.mrb[79].mxu1  ;;  %15720 = vmatprep.subr.bf16.mxu0 %v17275_v11  ;;  %15742 = vmatprep.subr.bf16.mxu1 %v17276_v16  ;;  %v17294_v11 = vld [vmem:[#allocation22 + $0x5a8] sm:$0xff]   ;;  %v5226_v16 = vrot.slane %v20441_v44, %v20276_v18  ;;  %v17296_v29 = vld [vmem:[#allocation22 + $0x5f0] sm:$0xff]   ;;  %v5246_v30 = vrot.slane %v20463_v31, %v20237_v59 }
0x1713   : > { %v5783_v39 = vmax.f32 %v5569_v26, 0.0  ;;  %v5785_v5 = vmax.f32 %v5610_v28, 0.0  ;;  %v17295_v28 = vld [vmem:[#allocation22 + $0x570] sm:$0xff]   ;;  %v5608_v44 = vadd.f32 %v20457_v12, %v5234_v21  ;;  %v17305_v12 = vld [vmem:[#allocation22 + $0x600] sm:$0xff]  }
0x1714   : > { %v17298_v35 = vld [vmem:[#allocation22 + $0x5b0] sm:$0xff]   ;;  %v5567_v36 = vadd.f32 %v20455_v19, %v5226_v16  ;;  %v17321_v16 = vld [vmem:[#allocation22 + $0x620] sm:$0xff]  }
0x1715   : > { %v6058_v40 = vpack.c.bf16 %v5783_v39, %v5783_v39  ;;  %v6060_v41 = vpack.c.bf16 %v5785_v5, %v5785_v5  ;;  %15721 = vmatpush3.bf16.msra.mxu0 %v17277_v33  ;;  %15743 = vmatpush3.bf16.msra.mxu1 %v17278_v34  ;;  %v5254_v33 = vrot.slane %v20463_v31, %v20240_v60  ;;  %v17297_v34 = vld [vmem:[#allocation22 + $0x530] sm:$0xff]   ;;  %v17322_v21 = vld [vmem:[#allocation22 + $0x6a0] sm:$0xff]  }
0x1716   : > { %15722 = vmatprep.subr.bf16.mxu0 %v17279_v37  ;;  %15744 = vmatprep.subr.bf16.mxu1 %v17280_v38  ;;  %v17299_v37 = vld [vmem:[#allocation22 + $0x578] sm:$0xff]  }
0x1717   : > { %v20459_v1 = vpop.f32.mrb[80].mxu0  ;;  %v20461_v47 = vpop.f32.mrb[80].mxu1  ;;  %6955 = vmatprep.mubr.bf16.mxu0 %v6058_v40  ;;  %6995 = vmatprep.mubr.bf16.mxu1 %v6060_v41  ;;  %v17300_v38 = vld [vmem:[#allocation22 + $0x5f8] sm:$0xff]  }
0x1718   : > { %v5650_v13 = vpop.f32.mrb[81].mxu0  ;;  %v5691_v48 = vpop.f32.mrb[81].mxu1  ;;  %v17301_v40 = vld [vmem:[#allocation22 + $0x538] sm:$0xff]  }
0x1719   : > { %15723 = vmatpush3.bf16.msra.mxu0 %v17281_v42  ;;  %15745 = vmatpush3.bf16.msra.mxu1 %v17282_v58  ;;  %v5652_v49 = vpop.f32.mrb[82].mxu0  ;;  %v5693_v20 = vpop.f32.mrb[82].mxu1  ;;  %v5651_v39 = vadd.f32 %v5650_v13, %v5246_v30  ;;  %v5692_v5 = vadd.f32 %v5691_v48, %v5254_v33  ;;  %v17302_v41 = vld [vmem:[#allocation22 + $0x5b8] sm:$0xff]   ;;  %v5782_v42 = vmax.f32 %v5567_v36, 0.0  ;;  %v5784_v58 = vmax.f32 %v5608_v44, 0.0  ;;  %v17306_v13 = vld [vmem:[#allocation22 + $0x680] sm:$0xff]  }
0x171a   : > { %v5653_v22 = vpop.f32.mrb[83].mxu0  ;;  %v5694_v52 = vpop.f32.mrb[83].mxu1  ;;  %15724 = vmatprep.subr.bf16.mxu0 %v17283_v45  ;;  %15746 = vmatprep.subr.bf16.mxu1 %v17284_v46  ;;  %v17303_v45 = vld [vmem:[#allocation22 + $0x640] sm:$0xff]   ;;  %v17326_v30 = vld [vmem:[#allocation22 + $0x6a8] sm:$0xff]   ;;  %v17327_v33 = vld [vmem:[#allocation22 + $0x670] sm:$0xff]   ;;  %v5262_v36 = vrot.slane %v20463_v31, %v20251_v14  ;;  %v5270_v44 = vrot.slane %v20463_v31, %v20254_v15 }
0x171b   : > { %v17304_v46 = vld [vmem:[#allocation22 + $0x6c0] sm:$0xff]   ;;  %v5787_v49 = vmax.f32 %v5651_v39, 0.0  ;;  %v5789_v19 = vmax.f32 %v5692_v5, 0.0  ;;  %v6057_v20 = vpack.c.bf16 %v5782_v42, %v5782_v42  ;;  %v17308_v22 = vld [vmem:[#allocation22 + $0x6c8] sm:$0xff]   ;;  %v17330_v39 = vld [vmem:[#allocation22 + $0x6b0] sm:$0xff]  }
0x171c   : > { %v17331_v5 = vld [vmem:[#allocation22 + $0x678] sm:$0xff]  }
0x171d   : > { %15725 = vmatpush3.bf16.msra.mxu0 %v17285_v50  ;;  %15747 = vmatpush3.bf16.msra.mxu1 %v17286_v51  ;;  %v6059_v50 = vpack.c.bf16 %v5784_v58, %v5784_v58  ;;  %v6062_v48 = vpack.c.bf16 %v5787_v49, %v5787_v49  ;;  %v17307_v51 = vld [vmem:[#allocation22 + $0x648] sm:$0xff]   ;;  %v6064_v52 = vpack.c.bf16 %v5789_v19, %v5789_v19  ;;  %v17334_v49 = vld [vmem:[#allocation22 + $0x6b8] sm:$0xff]   ;;  %v17335_v19 = vld [vmem:[#allocation22 + $0x740] sm:$0xff]  }
0x171e   : > { %15726 = vmatprep.subr.bf16.mxu0 %v17287_v53  ;;  %15748 = vmatprep.subr.bf16.mxu1 %v17288_v2  ;;  %v17309_v53 = vld [vmem:[#allocation22 + $0x608] sm:$0xff]  }
0x171f   : > { %v20467_v62 = vpop.f32.mrb[84].mxu0  ;;  %v5771_v63 = vpop.f32.mrb[84].mxu1  ;;  %v17310_v2 = vld [vmem:[#allocation22 + $0x688] sm:$0xff]  }
0x1720   : > { %v20469_v23 = vadd.f32 %v5771_v63, %v5266_v61  ;;  %v20471_v24 = vpop.f32.mrb[85].mxu0  ;;  %v20473_v6 = vpop.f32.mrb[85].mxu1  ;;  %v17311_v61 = vld [vmem:[#allocation22 + $0x650] sm:$0xff]   ;;  %v17316_v63 = vld [vmem:[#allocation22 + $0x6d8] sm:$0xff]  }
0x1721   : > { %15727 = vmatpush3.bf16.msra.mxu0 %v17289_v43  ;;  %15749 = vmatpush3.bf16.msra.mxu1 %v17290_v32  ;;  %v5734_v8 = vpop.f32.mrb[86].mxu0  ;;  %v5775_v9 = vpop.f32.mrb[86].mxu1  ;;  %v17312_v43 = vld [vmem:[#allocation22 + $0x6d0] sm:$0xff]   ;;  %v5733_v42 = vadd.f32 %v20471_v24, %v5262_v36  ;;  %v5774_v58 = vadd.f32 %v20473_v6, %v5270_v44  ;;  %v17338_v24 = vld [vmem:[#allocation22 + $0x780] sm:$0xff]   ;;  %v17339_v6 = vld [vmem:[#allocation22 + $0x748] sm:$0xff]  }
0x1722   : > { %v5735_v25 = vpop.f32.mrb[87].mxu0  ;;  %v5776_v26 = vpop.f32.mrb[87].mxu1  ;;  %15728 = vmatprep.subr.bf16.mxu0 %v17291_v3  ;;  %15750 = vmatprep.subr.bf16.mxu1 %v17292_v4  ;;  %v17313_v32 = vld [vmem:[#allocation22 + $0x610] sm:$0xff]   ;;  %v17315_v4 = vld [vmem:[#allocation22 + $0x658] sm:$0xff]  }
0x1723   : > { %v17314_v3 = vld [vmem:[#allocation22 + $0x690] sm:$0xff]   ;;  %v17317_v8 = vld [vmem:[#allocation22 + $0x618] sm:$0xff]   ;;  %v17323_v25 = vld [vmem:[#allocation22 + $0x668] sm:$0xff]  }
0x1724   : > { %v17318_v9 = vld [vmem:[#allocation22 + $0x698] sm:$0xff]   ;;  %v17324_v26 = vld [vmem:[#allocation22 + $0x6e8] sm:$0xff]   ;;  %v17362_v44 = vld [vmem:[#allocation22 + $0x7b0] sm:$0xff]  }
0x1725   : > { %15729 = vmatpush3.bf16.msra.mxu0 %v17293_v10  ;;  %15751 = vmatpush3.bf16.msra.mxu1 %v17294_v11  ;;  %v17319_v10 = vld [vmem:[#allocation22 + $0x660] sm:$0xff]  }
0x1726   : > { %15730 = vmatprep.subr.bf16.mxu0 %v17295_v28  ;;  %15752 = vmatprep.subr.bf16.mxu1 %v17296_v29  ;;  %v17320_v11 = vld [vmem:[#allocation22 + $0x6e0] sm:$0xff]   ;;  %v17325_v28 = vld [vmem:[#allocation22 + $0x628] sm:$0xff]   ;;  %v5242_v29 = vrot.slane %v20463_v31, %v20229_v56 }
0x1729   : > { %15731 = vmatpush3.bf16.msra.mxu0 %v17297_v34  ;;  %15753 = vmatpush3.bf16.msra.mxu1 %v17298_v35  ;;  %v5250_v34 = vrot.slane %v20463_v31, %v20232_v57  ;;  %v17328_v35 = vld [vmem:[#allocation22 + $0x6f0] sm:$0xff]  }
0x172a   : > { %15732 = vmatprep.subr.bf16.mxu0 %v17299_v37  ;;  %15754 = vmatprep.subr.bf16.mxu1 %v17300_v38  ;;  %v17329_v37 = vld [vmem:[#allocation22 + $0x630] sm:$0xff]   ;;  %v5649_v38 = vadd.f32 %v20459_v1, %v5242_v29  ;;  %v5258_v29 = vrot.slane %v20463_v31, %v20276_v18 }
0x172c   : > { %v5731_v36 = vadd.f32 %v20467_v62, %v5258_v29  ;;  %v7224_v62 = vld [vmem:[%s21378_s1] sm:$0xff]  ;;  %s21379_s1 = smov 112  }
0x172d   : > { %15733 = vmatpush3.bf16.msra.mxu0 %v17301_v40  ;;  %15755 = vmatpush3.bf16.msra.mxu1 %v17302_v41  ;;  %v5690_v40 = vadd.f32 %v20461_v47, %v5250_v34  ;;  %v17332_v41 = vld [vmem:[#allocation22 + $0x6f8] sm:$0xff]   ;;  %v17337_v47 = vld [vmem:[#allocation22 + $0x700] sm:$0xff]   ;;  %v17360_v34 = vld [vmem:[#allocation22 + $0x7f0] sm:$0xff]  }
0x172e   : > { %15762 = vmatprep.subr.bf16.mxu0 %v17303_v45  ;;  %15784 = vmatprep.subr.bf16.mxu1 %v17304_v46  ;;  %v17333_v45 = vld [vmem:[#allocation22 + $0x638] sm:$0xff]   ;;  %v5786_v46 = vmax.f32 %v5649_v38, 0.0  ;;  %v5790_v31 = vmax.f32 %v5731_v36, 0.0 }
0x172f   : > { %v5788_v1 = vmax.f32 %v5690_v40, 0.0  ;;  %v17364_v38 = vld [vmem:[#allocation22 + $0x7f8] sm:$0xff]   ;;  %v5792_v40 = vmax.f32 %v20469_v23, 0.0 }
0x1730   : > { %6956 = vmatmul.mubr.bf16.vlgmr.msra.gmra.mrb[92].mxu0 %v6057_v20  ;;  %6996 = vmatmul.mubr.bf16.vlgmr.msra.gmra.mrb[92].mxu1 %v6059_v50  ;;  %v5791_v20 = vmax.f32 %v5733_v42, 0.0  ;;  %v5793_v50 = vmax.f32 %v5774_v58, 0.0  ;;  %v7225_v42 = vld [vmem:[#allocation8] sm:$0xff]  ;;  %v6065_v58 = vpack.c.bf16 %v5790_v31, %v5790_v31 }
0x1731   : > { %15763 = vmatpush3.bf16.msra.mxu0 %v17305_v12  ;;  %7035 = vmatprep.mubr.bf16.mxu0 %v6062_v48  ;;  %v17336_v12 = vld [vmem:[#allocation22 + $0x7c0] sm:$0xff]   ;;  %v6063_v48 = vpack.c.bf16 %v5788_v1, %v5788_v1 }
0x1732   : > { %15785 = vmatpush3.bf16.msra.mxu1 %v17306_v13  ;;  %7075 = vmatprep.mubr.bf16.mxu1 %v6064_v52  ;;  %v6061_v13 = vpack.c.bf16 %v5786_v46, %v5786_v46  ;;  %v6068_v52 = vpack.c.bf16 %v5793_v50, %v5793_v50  ;;  %v20505_v46 = vadd.f32 %v7225_v42, %v7224_v62 }
0x1733   : > { %15764 = vmatprep.subr.bf16.mxu0 %v17307_v51  ;;  %15786 = vmatprep.subr.bf16.mxu1 %v17308_v22  ;;  %v6066_v51 = vpack.c.bf16 %v5791_v20, %v5791_v20  ;;  %v17340_v22 = vld [vmem:[#allocation22 + $0x7c8] sm:$0xff]  }
0x1734   : > { %v7238_v23 = vpack.c.bf16 %v20505_v46, %v20505_v46 }
0x1735   : > { %15765 = vmatpush3.bf16.msra.mxu0 %v17309_v53  ;;  %v17341_v53 = vld [vmem:[#allocation22 + $0x708] sm:$0xff]  }
0x1736   : > { %15787 = vmatpush3.bf16.msra.mxu1 %v17310_v2  ;;  %15766 = vmatprep.subr.bf16.mxu0 %v17311_v61  ;;  %v17342_v2 = vld [vmem:[#allocation22 + $0x788] sm:$0xff]   ;;  %v17343_v61 = vld [vmem:[#allocation22 + $0x750] sm:$0xff]  }
0x1737   : > { %15788 = vmatprep.subr.bf16.mxu1 %v17312_v43  ;;  %v17344_v43 = vld [vmem:[#allocation22 + $0x7d0] sm:$0xff]  }
0x1739   : > { %15767 = vmatpush3.bf16.msra.mxu0 %v17313_v32  ;;  %v17345_v32 = vld [vmem:[#allocation22 + $0x710] sm:$0xff]  }
0x173a   : > { %15789 = vmatpush3.bf16.msra.mxu1 %v17314_v3  ;;  %15768 = vmatprep.subr.bf16.mxu0 %v17315_v4  ;;  %v17346_v3 = vld [vmem:[#allocation22 + $0x790] sm:$0xff]   ;;  %v17347_v4 = vld [vmem:[#allocation22 + $0x758] sm:$0xff]  }
0x173b   : > { %15790 = vmatprep.subr.bf16.mxu1 %v17316_v63  ;;  %v17348_v63 = vld [vmem:[#allocation22 + $0x7d8] sm:$0xff]  }
0x173d   : > { %15769 = vmatpush3.bf16.msra.mxu0 %v17317_v8  ;;  %v17349_v8 = vld [vmem:[#allocation22 + $0x718] sm:$0xff]  }
0x173e   : > { %15791 = vmatpush3.bf16.msra.mxu1 %v17318_v9  ;;  %15770 = vmatprep.subr.bf16.mxu0 %v17319_v10  ;;  %v17350_v9 = vld [vmem:[#allocation22 + $0x798] sm:$0xff]   ;;  %v17351_v10 = vld [vmem:[#allocation22 + $0x760] sm:$0xff]  }
0x173f   : > { %15792 = vmatprep.subr.bf16.mxu1 %v17320_v11  ;;  %v17352_v11 = vld [vmem:[#allocation22 + $0x7e0] sm:$0xff]  }
0x1741   : > { %15771 = vmatpush3.bf16.msra.mxu0 %v17321_v16  ;;  %v17353_v16 = vld [vmem:[#allocation22 + $0x720] sm:$0xff]  }
0x1742   : > { %15793 = vmatpush3.bf16.msra.mxu1 %v17322_v21  ;;  %15772 = vmatprep.subr.bf16.mxu0 %v17323_v25  ;;  %v17354_v21 = vld [vmem:[#allocation22 + $0x7a0] sm:$0xff]   ;;  %v17355_v25 = vld [vmem:[#allocation22 + $0x768] sm:$0xff]  }
0x1743   : > { %15794 = vmatprep.subr.bf16.mxu1 %v17324_v26  ;;  %v17356_v26 = vld [vmem:[#allocation22 + $0x7e8] sm:$0xff]  }
0x1745   : > { %15773 = vmatpush3.bf16.msra.mxu0 %v17325_v28  ;;  %v17357_v28 = vld [vmem:[#allocation22 + $0x728] sm:$0xff]  }
0x1746   : > { %15795 = vmatpush3.bf16.msra.mxu1 %v17326_v30  ;;  %15774 = vmatprep.subr.bf16.mxu0 %v17327_v33  ;;  %v17358_v30 = vld [vmem:[#allocation22 + $0x7a8] sm:$0xff]   ;;  %v17359_v33 = vld [vmem:[#allocation22 + $0x770] sm:$0xff]  }
0x1747   : > { %15796 = vmatprep.subr.bf16.mxu1 %v17328_v35  ;;  %v17361_v35 = vld [vmem:[#allocation22 + $0x730] sm:$0xff]  }
0x1749   : > { %15775 = vmatpush3.bf16.msra.mxu0 %v17329_v37  ;;  %v17363_v37 = vld [vmem:[#allocation22 + $0x778] sm:$0xff]  }
0x174a   : > { %15797 = vmatpush3.bf16.msra.mxu1 %v17330_v39  ;;  %15776 = vmatprep.subr.bf16.mxu0 %v17331_v5  ;;  %v17365_v39 = vld [vmem:[#allocation22 + $0x738] sm:$0xff]  }
0x174b   : > { %15798 = vmatprep.subr.bf16.mxu1 %v17332_v41  ;;  %v17366_v5 = vld [vmem:[#allocation22 + $0x7b8] sm:$0xff]   ;;  %v17367_v41 = vld [vmem:[#allocation31] sm:$0xff]  }
0x174d   : > { %15777 = vmatpush3.bf16.msra.mxu0 %v17333_v45  ;;  %v6067_v45 = vpack.c.bf16 %v5792_v40, %v5792_v40 }
0x174e   : > { %15799 = vmatpush3.bf16.msra.mxu1 %v17334_v49  ;;  %15806 = vmatprep.subr.bf16.mxu0 %v17335_v19  ;;  %v17368_v49 = vld [vmem:[#allocation31 + $0x8] sm:$0xff]  }
0x174f   : > { %15828 = vmatprep.subr.bf16.mxu1 %v17336_v12  ;;  %v14889_v12 = vld [vmem:[#allocation23 + $0x1] ss:$0 sm:$0xff] }
0x1750   : > { %7036 = vmatmul.mubr.bf16.vlgmr.msra.gmra.mrb[96].mxu0 %v6061_v13 }
0x1751   : > { %7076 = vmatmul.mubr.bf16.vlgmr.msra.gmra.mrb[96].mxu1 %v6063_v48  ;;  %15807 = vmatpush3.bf16.msra.mxu0 %v17337_v47 }
0x1752   : > { %7115 = vmatprep.mubr.bf16.mxu0 %v6066_v51  ;;  %15829 = vmatpush3.bf16.msra.mxu1 %v17338_v24 }
0x1753   : > { %7155 = vmatprep.mubr.bf16.mxu1 %v6068_v52  ;;  %15808 = vmatprep.subr.bf16.mxu0 %v17339_v6 }
0x1754   : > { %15830 = vmatprep.subr.bf16.mxu1 %v17340_v22 }
0x1755   : > { %15809 = vmatpush3.bf16.msra.mxu0 %v17341_v53 }
0x1756   : > { %15831 = vmatpush3.bf16.msra.mxu1 %v17342_v2  ;;  %15810 = vmatprep.subr.bf16.mxu0 %v17343_v61 }
0x1757   : > { %15832 = vmatprep.subr.bf16.mxu1 %v17344_v43 }
0x1759   : > { %15811 = vmatpush3.bf16.msra.mxu0 %v17345_v32 }
0x175a   : > { %15833 = vmatpush3.bf16.msra.mxu1 %v17346_v3  ;;  %15812 = vmatprep.subr.bf16.mxu0 %v17347_v4 }
0x175b   : > { %15834 = vmatprep.subr.bf16.mxu1 %v17348_v63 }
0x175d   : > { %15813 = vmatpush3.bf16.msra.mxu0 %v17349_v8 }
0x175e   : > { %15835 = vmatpush3.bf16.msra.mxu1 %v17350_v9  ;;  %15814 = vmatprep.subr.bf16.mxu0 %v17351_v10 }
0x175f   : > { %15836 = vmatprep.subr.bf16.mxu1 %v17352_v11 }
0x1761   : > { %15815 = vmatpush3.bf16.msra.mxu0 %v17353_v16 }
0x1762   : > { %15837 = vmatpush3.bf16.msra.mxu1 %v17354_v21  ;;  %15816 = vmatprep.subr.bf16.mxu0 %v17355_v25 }
0x1763   : > { %15838 = vmatprep.subr.bf16.mxu1 %v17356_v26 }
0x1765   : > { %15817 = vmatpush3.bf16.msra.mxu0 %v17357_v28 }
0x1766   : > { %15839 = vmatpush3.bf16.msra.mxu1 %v17358_v30  ;;  %15818 = vmatprep.subr.bf16.mxu0 %v17359_v33 }
0x1767   : > { %15840 = vmatprep.subr.bf16.mxu1 %v17360_v34 }
0x1769   : > { %15819 = vmatpush3.bf16.msra.mxu0 %v17361_v35 }
0x176a   : > { %15841 = vmatpush3.bf16.msra.mxu1 %v17362_v44  ;;  %15820 = vmatprep.subr.bf16.mxu0 %v17363_v37 }
0x176b   : > { %15842 = vmatprep.subr.bf16.mxu1 %v17364_v38 }
0x176d   : > { %15821 = vmatpush3.bf16.msra.mxu0 %v17365_v39 }
0x176e   : > { %15843 = vmatpush3.bf16.msra.mxu1 %v17366_v5  ;;  %16427 = vmatprep.subr.bf16.mxu0 %v19111_v0 }
0x176f   : > { %16435 = vmatprep.subr.bf16.mxu1 %v19111_v0 }
0x1770   : > { %7116 = vmatmul.mubr.bf16.vlgmr.msra.gmra.mrb[100].mxu0 %v6065_v58 }
0x1771   : > { %7156 = vmatmul.mubr.bf16.vlgmr.msra.gmra.mrb[100].mxu1 %v6067_v45  ;;  %16428 = vmatpush3.bf16.msra.mxu0 %v17367_v41 }
0x1772   : > { %16429 = vmatprep.subr.bf16.mxu0 %v19111_v0  ;;  %16431 = vmatprep.mubr.msk.bf16.mxu0 %vm19112_vm0, %v19111_v0 }
0x1773   : > { %16437 = vmatprep.mubr.msk.bf16.mxu1 %vm19112_vm0, %v19111_v0 }
0x1775   : > { %16430 = vmatpush3.bf16.msra.mxu0 %v17368_v49 }
0x1776   : > { %16441 = vmatprep.subr.bf16.mxu0 %v19111_v0 }
0x1778   : > { %16432 = vmatmul.mubr.msk.bf16.vlgmr.msra.gmra.mrb[104].mxu0 %vm1913_vm1, %v7238_v23  ;;  %v15022_v23 = vld [vmem:[#allocation32] ss:$0 sm:$0xff] }
0x1779   : > { %16443 = vmatprep.mubr.msk.bf16.mxu0 %vm19112_vm0, %v19111_v0 }
0x17e3   : > { %v15690_v19 = vpop.f32.mrb[88].mxu0  ;;  %v15712_v1 = vpop.f32.mrb[88].mxu1 }
0x17e4   : > { %v15691_v20 = vpop.f32.mrb[89].mxu0  ;;  %v15713_v50 = vpop.f32.mrb[89].mxu1 }
0x17e5   : > { %v15692_v47 = vadd.f32 %v15691_v20, %v15690_v19  ;;  %v15714_v13 = vadd.f32 %v15713_v50, %v15712_v1  ;;  %v15693_v24 = vpop.f32.mrb[90].mxu0  ;;  %v15715_v48 = vpop.f32.mrb[90].mxu1 }
0x17e6   : > { %v15694_v6 = vpop.f32.mrb[91].mxu0  ;;  %v15716_v51 = vpop.f32.mrb[91].mxu1 }
0x17e7   : > { %v6878_v22 = vadd.f32 %v15692_v47, %v14889_v12 }
0x17e9   : > { %v6918_v52 = vadd.f32 %v15714_v13, %v6878_v22 }
0x1803   : > { %v15734_v53 = vpop.f32.mrb[92].mxu0  ;;  %v15756_v2 = vpop.f32.mrb[92].mxu1 }
0x1804   : > { %v15735_v61 = vpop.f32.mrb[93].mxu0  ;;  %v15757_v43 = vpop.f32.mrb[93].mxu1 }
0x1805   : > { %v15736_v32 = vadd.f32 %v15735_v61, %v15734_v53  ;;  %v15758_v3 = vadd.f32 %v15757_v43, %v15756_v2  ;;  %v15737_v4 = vpop.f32.mrb[94].mxu0  ;;  %v15759_v63 = vpop.f32.mrb[94].mxu1 }
0x1806   : > { %v15738_v8 = vpop.f32.mrb[95].mxu0  ;;  %v15760_v9 = vpop.f32.mrb[95].mxu1 }
0x1807   : > { %v6958_v10 = vadd.f32 %v15736_v32, %v6918_v52  ;;  %v7230_v32 = vand.u32 127, %v2555_v54 }
0x1809   : > { %v6998_v11 = vadd.f32 %v15758_v3, %v6958_v10  ;;  %vm7231_vm6 = vcmp.gt.s32.totalorder %v7230_v32, %v20226_v55 }
0x180a   : > { %v20560_v4 = vsel %vm7231_vm6, -1e+30, %v19111_v0 }
0x1823   : > { %v15778_v16 = vpop.f32.mrb[96].mxu0 }
0x1824   : > { %v15800_v21 = vpop.f32.mrb[96].mxu1  ;;  %v15779_v25 = vpop.f32.mrb[97].mxu0 }
0x1825   : > { %v15780_v26 = vadd.f32 %v15779_v25, %v15778_v16  ;;  %v15801_v28 = vpop.f32.mrb[97].mxu1  ;;  %v15781_v29 = vpop.f32.mrb[98].mxu0 }
0x1826   : > { %v15802_v30 = vadd.f32 %v15801_v28, %v15800_v21  ;;  %v15803_v33 = vpop.f32.mrb[98].mxu1  ;;  %v15782_v34 = vpop.f32.mrb[99].mxu0 }
0x1827   : > { %v7038_v35 = vadd.f32 %v15780_v26, %v6998_v11  ;;  %v15804_v36 = vpop.f32.mrb[99].mxu1 }
0x1829   : > { %v7078_v44 = vadd.f32 %v15802_v30, %v7038_v35 }
0x1843   : > { %v15822_v37 = vpop.f32.mrb[100].mxu0 }
0x1844   : > { %v15844_v38 = vpop.f32.mrb[100].mxu1  ;;  %v15823_v39 = vpop.f32.mrb[101].mxu0 }
0x1845   : > { %v15824_v31 = vadd.f32 %v15823_v39, %v15822_v37  ;;  %v15845_v5 = vpop.f32.mrb[101].mxu1  ;;  %v15825_v40 = vpop.f32.mrb[102].mxu0 }
0x1846   : > { %v15846_v41 = vadd.f32 %v15845_v5, %v15844_v38  ;;  %v15847_v62 = vpop.f32.mrb[102].mxu1  ;;  %v15826_v42 = vpop.f32.mrb[103].mxu0 }
0x1847   : > { %v7118_v58 = vadd.f32 %v15824_v31, %v7078_v44  ;;  %v15848_v45 = vpop.f32.mrb[103].mxu1 }
0x1849   : > { %v20518_v49 = vadd.f32 %v15846_v41, %v7118_v58 }
0x184b   : > { %v7294_v19 = vpop.f32.mrb[104].mxu0 }
0x184c   : > { %v7295_v1 = vadd.f32 %v15022_v23, %v7294_v19  ;;  %v16433_v12 = vpop.f32.mrb[105].mxu0 }
0x184d   : > { %v7297_v20 = vpop.f32.mrb[106].mxu0 }
0x184e   : > { %v20520_v50 = vpack.c.bf16 %v7295_v1, %v7295_v1  ;;  %v16434_v47 = vpop.f32.mrb[107].mxu0 }
0x1850   : > { %7414 = vrot.lane.b32.xlu1 %v20520_v50, %s19116_s0  ;;  %7302 = vrot.lane.b32.xlu0 %v20520_v50, %s19114_s14 }
0x1854   : > { %7526 = vrot.lane.b32.xlu1 %v20520_v50, %s21241_s8  ;;  %7412 = vrot.lane.b32.xlu0 %v20520_v50, %s19113_s12 }
0x1858   : > { %7638 = vrot.lane.b32.xlu1 %v20520_v50, %s21242_s11  ;;  %7524 = vrot.lane.b32.xlu0 %v20520_v50, %s21379_s1 }
0x185c   : > { %7636 = vrot.lane.b32.xlu0 %v20520_v50, %s21380_s2 }
0x18c2   : > { %v7303_v13 = vpop.permute.xlu0 %7302  ;;  %v7415_v48 = vpop.permute.xlu1 %7414 }
0x18c3   : > { %v7308_v24 = vsel %vm1961_vm2, %v7303_v13, 0  ;;  %v7420_v6 = vsel %vm1961_vm2, %v7415_v48, 0 }
0x18c4   : > { %16436 = vmatpush3.bf16.xpose.msra.mxu1 %v7308_v24 }
0x18c5   : > { %16447 = vmatprep.subr.bf16.mxu1 %v19111_v0 }
0x18c6   : > { %v7527_v51 = vpop.permute.xlu1 %7526  ;;  %v7413_v22 = vpop.permute.xlu0 %7412 }
0x18c7   : > { %v7532_v52 = vsel %vm1961_vm2, %v7527_v51, 0 }
0x18ca   : > { %v7639_v53 = vpop.permute.xlu1 %7638  ;;  %v7525_v2 = vpop.permute.xlu0 %7524 }
0x18cb   : > { %16438 = vmatmul.mubr.msk.bf16.vlgmr.msra.gmra.mrb[104].mxu1 %vm1961_vm2, %v20520_v50  ;;  %v7644_v61 = vsel %vm1961_vm2, %v7639_v53, 0 }
0x18cc   : > { %16448 = vmatpush3.bf16.xpose.msra.mxu1 %v7420_v6  ;;  %16449 = vmatprep.mubr.msk.bf16.mxu1 %vm19112_vm0, %v19111_v0 }
0x18cd   : > { %16459 = vmatprep.subr.bf16.mxu1 %v19111_v0 }
0x18ce   : > { %v7637_v43 = vpop.permute.xlu0 %7636 }
0x18d3   : > { %16450 = vmatmul.mubr.msk.bf16.vlgmr.msra.gmra.mrb[108].mxu1 %vm1961_vm2, %v7413_v22 }
0x18d4   : > { %16460 = vmatpush3.bf16.xpose.msra.mxu1 %v7532_v52  ;;  %16461 = vmatprep.mubr.msk.bf16.mxu1 %vm19112_vm0, %v19111_v0 }
0x18d5   : > { %16471 = vmatprep.subr.bf16.mxu1 %v19111_v0 }
0x18db   : > { %16462 = vmatmul.mubr.msk.bf16.vlgmr.msra.gmra.mrb[112].mxu1 %vm1961_vm2, %v7525_v2 }
0x18dc   : > { %16472 = vmatpush3.bf16.xpose.msra.mxu1 %v7644_v61  ;;  %16473 = vmatprep.mubr.msk.bf16.mxu1 %vm19112_vm0, %v19111_v0 }
0x18dd   : > { %16483 = vmatprep.subr.bf16.mxu1 %v19111_v0 }
0x18e3   : > { %16474 = vmatmul.mubr.msk.bf16.vlgmr.msra.gmra.mrb[116].mxu1 %vm1961_vm2, %v7637_v43 }
0x18e4   : > { %16487 = vmatprep.mubr.msk.bf16.mxu1 %vm19112_vm0, %v19111_v0 }
0x199e   : > { %v7344_v3 = vpop.f32.mrb[104].mxu1 }
0x199f   : > { %v7350_v63 = vmul.f32 0.35355338, %v7344_v3  ;;  %v16439_v8 = vpop.f32.mrb[105].mxu1 }
0x19a0   : > { %v7347_v9 = vpop.f32.mrb[106].mxu1 }
0x19a1   : > { %v16440_v10 = vpop.f32.mrb[107].mxu1  ;;  %v7351_v11 = vadd.f32 %v7350_v63, %v20560_v4 }
0x19a3   : > { %v7352_v16 = vsel %vm1961_vm2, %v7351_v11, -inf }
0x19a4   : > { %7353 = vmax.xlane.f32.xlu1 %v7352_v16 }
0x19a6   : > { %v7456_v21 = vpop.f32.mrb[108].mxu1 }
0x19a7   : > { %v7462_v25 = vmul.f32 0.35355338, %v7456_v21  ;;  %v16451_v26 = vpop.f32.mrb[109].mxu1 }
0x19a8   : > { %v7459_v28 = vpop.f32.mrb[110].mxu1 }
0x19a9   : > { %v16452_v54 = vpop.f32.mrb[111].mxu1  ;;  %v7463_v55 = vadd.f32 %v7462_v25, %v20560_v4 }
0x19ab   : > { %v7464_v29 = vsel %vm1961_vm2, %v7463_v55, -inf }
0x19ac   : > { %7465 = vmax.xlane.f32.xlu0 %v7464_v29 }
0x19ae   : > { %v7568_v30 = vpop.f32.mrb[112].mxu1 }
0x19af   : > { %v7574_v33 = vmul.f32 0.35355338, %v7568_v30  ;;  %v16463_v34 = vpop.f32.mrb[113].mxu1 }
0x19b0   : > { %v7571_v35 = vpop.f32.mrb[114].mxu1 }
0x19b1   : > { %v16464_v36 = vpop.f32.mrb[115].mxu1  ;;  %v7575_v44 = vadd.f32 %v7574_v33, %v20560_v4 }
0x19b3   : > { %v7576_v37 = vsel %vm1961_vm2, %v7575_v44, -inf }
0x19b4   : > { %7577 = vmax.xlane.f32.xlu0 %v7576_v37 }
0x19b6   : > { %v7680_v38 = vpop.f32.mrb[116].mxu1 }
0x19b7   : > { %v7686_v39 = vmul.f32 0.35355338, %v7680_v38  ;;  %v16475_v31 = vpop.f32.mrb[117].mxu1 }
0x19b8   : > { %v7683_v5 = vpop.f32.mrb[118].mxu1 }
0x19b9   : > { %v16476_v40 = vpop.f32.mrb[119].mxu1  ;;  %v7687_v41 = vadd.f32 %v7686_v39, %v20560_v4 }
0x19bb   : > { %v7688_v62 = vsel %vm1961_vm2, %v7687_v41, -inf }
0x19bc   : > { %7689 = vmax.xlane.f32.xlu1 %v7688_v62 }
0x1a31   : > { %v7354_v42 = vpop.xlane.xlu1 %7353 }
0x1a32   : > { %v7355_v58 = vsub.f32 %v7351_v11, %v7354_v42 }
0x1a34   : > { %v7356_v45 = vmul.f32 1.442695, %v7355_v58 }
0x1a36   : > { %17683 = vpow2.f32 %v7356_v45  ;;  %v17369_v45 = vld [vmem:[#allocation34] sm:$0xff]  }
0x1a37   : > { %16484 = vmatpush3.bf16.msra.mxu1 %v17369_v45  ;;  %v17371_v45 = vld [vmem:[#allocation43] sm:$0xff]  }
0x1a38   : > { %16485 = vmatprep.subr.bf16.mxu1 %v19111_v0 }
0x1a39   : > { %v7466_v23 = vpop.xlane.xlu0 %7465 }
0x1a3a   : > { %v7467_v19 = vsub.f32 %v7463_v55, %v7466_v23  ;;  %v17370_v23 = vld [vmem:[#allocation34 + $0x8] sm:$0xff]  }
0x1a3b   : > { %16486 = vmatpush3.bf16.msra.mxu1 %v17370_v23  ;;  %v17373_v23 = vld [vmem:[#allocation43 + $0x8] sm:$0xff]  }
0x1a3c   : > { %v7468_v1 = vmul.f32 1.442695, %v7467_v19  ;;  %16499 = vmatprep.subr.bf16.mxu1 %v19111_v0 }
0x1a3e   : > { %17685 = vpow2.f32 %v7468_v1 }
0x1a40   : > { %v17684_v12 = vpop.eup %17683 }
0x1a41   : > { %v7578_v20 = vpop.xlane.xlu0 %7577  ;;  %v7358_v47 = vsel %vm1961_vm2, %v17684_v12, 0.0 }
0x1a42   : > { %v7579_v13 = vsub.f32 %v7575_v44, %v7578_v20  ;;  %7359 = vadd.xlane.f32.xlu0 %v7358_v47 }
0x1a44   : > { %v7580_v24 = vmul.f32 1.442695, %v7579_v13 }
0x1a46   : > { %17687 = vpow2.f32 %v7580_v24 }
0x1a48   : > { %v17686_v48 = vpop.eup %17685 }
0x1a49   : > { %v7470_v6 = vsel %vm1961_vm2, %v17686_v48, 0.0  ;;  %v7690_v52 = vpop.xlane.xlu1 %7689 }
0x1a4a   : > { %7471 = vadd.xlane.f32.xlu1 %v7470_v6  ;;  %v7691_v53 = vsub.f32 %v7687_v41, %v7690_v52  ;;  %v7163_v6 = vadd.f32 %v20518_v49, %v20413_v17 }
0x1a4c   : > { %v7692_v2 = vmul.f32 1.442695, %v7691_v53 }
0x1a4e   : > { %17689 = vpow2.f32 %v7692_v2 }
0x1a50   : > { %v17688_v51 = vpop.eup %17687 }
0x1a51   : > { %v7582_v22 = vsel %vm1961_vm2, %v17688_v51, 0.0 }
0x1a52   : > { %7583 = vadd.xlane.f32.xlu0 %v7582_v22 }
0x1a58   : > { %v17690_v61 = vpop.eup %17689 }
0x1a59   : > { %v7694_v43 = vsel %vm1961_vm2, %v17690_v61, 0.0 }
0x1a5b   : > { %7476 = vrot.lane.b32.xlu1 %v20520_v50, %s21239_s28  ;;  %s21381_s28 = smov 16  }
0x1a68   : > { %7364 = vrot.lane.b32.xlu0 %v20520_v50, %s21240_s7  ;;  %s21382_s7 = smov 24  }
0x1a6c   : > { %7700 = vrot.lane.b32.xlu0 %v20520_v50, %s21376_s6 }
0x1a7f   : > { %7695 = vadd.xlane.f32.xlu1 %v7694_v43 }
0x1a90   : > { %7588 = vrot.lane.b32.xlu1 %v20520_v50, %s21377_s10 }
0x1acf   : > { %v7360_v32 = vpop.xlane.xlu0 %7359 }
0x1ad0   : > { %17691 = vrcp.f32 %v7360_v32 }
0x1ad7   : > { %v7472_v3 = vpop.xlane.xlu1 %7471 }
0x1ad8   : > { %17693 = vrcp.f32 %v7472_v3 }
0x1ada   : > { %v17692_v63 = vpop.eup %17691 }
0x1adb   : > { %v7362_v9 = vmul.f32 %v17692_v63, %v17684_v12  ;;  %v7477_v16 = vpop.permute.xlu1 %7476 }
0x1adc   : > { %v7482_v26 = vsel %vm2026_vm3, %v7477_v16, 0 }
0x1add   : > { %v7363_v21 = vpack.c.bf16 %v7362_v9, %v7362_v9 }
0x1adf   : > { %v7584_v8 = vpop.xlane.xlu0 %7583 }
0x1ae0   : > { %17695 = vrcp.f32 %v7584_v8 }
0x1ae2   : > { %v17694_v25 = vpop.eup %17693 }
0x1ae3   : > { %v7365_v10 = vpop.permute.xlu0 %7364  ;;  %v7474_v50 = vmul.f32 %v17694_v25, %v17686_v48  ;;  %v15018_v25 = vld [vmem:[#allocation25 + $0x1] ss:$0 sm:$0xff] }
0x1ae4   : > { %v7370_v11 = vsel %vm2026_vm3, %v7365_v10, 0 }
0x1ae5   : > { %16442 = vmatpush3.bf16.msra.mxu0 %v7370_v11  ;;  %v7475_v28 = vpack.c.bf16 %v7474_v50, %v7474_v50 }
0x1ae6   : > { %16453 = vmatprep.subr.bf16.mxu0 %v19111_v0 }
0x1ae7   : > { %v7701_v34 = vpop.permute.xlu0 %7700 }
0x1ae8   : > { %16444 = vmatmul.mubr.msk.bf16.vlgmr.msra.gmra.mrb[108].mxu0 %vm1961_vm2, %v7363_v21  ;;  %v7706_v36 = vsel %vm2026_vm3, %v7701_v34, 0  ;;  %v15034_v21 = vld [vmem:[#allocation35] ss:$0 sm:$0xff] }
0x1ae9   : > { %16454 = vmatpush3.bf16.msra.mxu0 %v7482_v26  ;;  %16455 = vmatprep.mubr.msk.bf16.mxu0 %vm19112_vm0, %v19111_v0 }
0x1aea   : > { %16465 = vmatprep.subr.bf16.mxu0 %v19111_v0  ;;  %v17696_v54 = vpop.eup %17695 }
0x1aeb   : > { %v7586_v29 = vmul.f32 %v17696_v54, %v17688_v51  ;;  %v7168_v51 = vsel %vm1913_vm1, %v7163_v6, 0.0  ;;  %v15019_v54 = vld [vmem:[#allocation26 + $0x1] ss:$0 sm:$0xff] }
0x1aed   : > { %v7587_v35 = vpack.c.bf16 %v7586_v29, %v7586_v29 }
0x1af0   : > { %16456 = vmatmul.mubr.msk.bf16.vlgmr.msra.gmra.mrb[112].mxu0 %vm1961_vm2, %v7475_v28 }
0x1af1   : > { %16467 = vmatprep.mubr.msk.bf16.mxu0 %vm19112_vm0, %v19111_v0 }
0x1b0c   : > { %v7696_v55 = vpop.xlane.xlu1 %7695 }
0x1b0d   : > { %17697 = vrcp.f32 %v7696_v55 }
0x1b10   : > { %v7589_v30 = vpop.permute.xlu1 %7588 }
0x1b11   : > { %v7594_v33 = vsel %vm2026_vm3, %v7589_v30, 0 }
0x1b12   : > { %16466 = vmatpush3.bf16.msra.mxu0 %v7594_v33 }
0x1b13   : > { %16477 = vmatprep.subr.bf16.mxu0 %v19111_v0 }
0x1b15   : > { %16468 = vmatmul.mubr.msk.bf16.vlgmr.msra.gmra.mrb[116].mxu0 %vm1961_vm2, %v7587_v35 }
0x1b16   : > { %16478 = vmatpush3.bf16.msra.mxu0 %v7706_v36  ;;  %16479 = vmatprep.mubr.msk.bf16.mxu0 %vm19112_vm0, %v19111_v0 }
0x1b17   : > { %v17698_v44 = vpop.eup %17697  ;;  %16491 = vmatprep.subr.bf16.mxu0 %v19111_v0 }
0x1b18   : > { %v7698_v37 = vmul.f32 %v17698_v44, %v17690_v61 }
0x1b1a   : > { %v7699_v38 = vpack.c.bf16 %v7698_v37, %v7698_v37 }
0x1b1d   : > { %16480 = vmatmul.mubr.msk.bf16.vlgmr.msra.gmra.mrb[120].mxu0 %vm1961_vm2, %v7699_v38 }
0x1b1e   : > { %16495 = vmatprep.mubr.msk.bf16.mxu0 %vm19112_vm0, %v19111_v0 }
0x1bbb   : > { %v7406_v39 = vpop.f32.mrb[108].mxu0 }
0x1bbc   : > { %v16445_v31 = vpop.f32.mrb[109].mxu0 }
0x1bbd   : > { %v7409_v5 = vpop.f32.mrb[110].mxu0 }
0x1bbe   : > { %v16446_v40 = vpop.f32.mrb[111].mxu0 }
0x1bc3   : > { %v7518_v41 = vpop.f32.mrb[112].mxu0 }
0x1bc4   : > { %7749 = vrot.lane.b32.xlu1 %v7518_v41, %s19124_s5  ;;  %v16457_v62 = vpop.f32.mrb[113].mxu0 }
0x1bc5   : > { %v7521_v42 = vpop.f32.mrb[114].mxu0 }
0x1bc6   : > { %v16458_v58 = vpop.f32.mrb[115].mxu0 }
0x1be8   : > { %v7630_v19 = vpop.f32.mrb[116].mxu0 }
0x1be9   : > { %7753 = vrot.lane.b32.xlu0 %v7630_v19, %s21381_s28  ;;  %v16469_v1 = vpop.f32.mrb[117].mxu0  ;;  %v17374_v19 = vld [vmem:[#allocation40 + $0x8] sm:$0xff]  }
0x1bea   : > { %v7633_v12 = vpop.f32.mrb[118].mxu0 }
0x1beb   : > { %v16470_v20 = vpop.f32.mrb[119].mxu0 }
0x1bf0   : > { %v7742_v47 = vpop.f32.mrb[120].mxu0 }
0x1bf1   : > { %7757 = vrot.lane.b32.xlu1 %v7742_v47, %s21382_s7  ;;  %v16481_v13 = vpop.f32.mrb[121].mxu0 }
0x1bf2   : > { %v7745_v24 = vpop.f32.mrb[122].mxu0 }
0x1bf3   : > { %v16482_v48 = vpop.f32.mrb[123].mxu0 }
0x1c08   : > { %7169 = vadd.xlane.f32.xlu0 %v7168_v51 }
0x1c36   : > { %v7750_v22 = vpop.permute.xlu1 %7749 }
0x1c37   : > { %v7760_v53 = vsel %vm1961_vm2, %v7406_v39, %v7750_v22  ;;  %v15021_v22 = vld [vmem:[#allocation29] ss:$0 sm:$0xff] }
0x1c5b   : > { %v7754_v52 = vpop.permute.xlu0 %7753 }
0x1c5c   : > { %v7761_v2 = vsel %vm2416_vm4, %v7760_v53, %v7754_v52 }
0x1c63   : > { %v7758_v61 = vpop.permute.xlu1 %7757 }
0x1c64   : > { %v7762_v43 = vsel %vm2418_vm5, %v7761_v2, %v7758_v61  ;;  %v15038_v2 = vld [vmem:[#allocation37] ss:$0 sm:$0xff] }
0x1c65   : > { %v7768_v32 = vpack.c.bf16 %v7762_v43, %v7762_v43 }
0x1c67   : > { %16488 = vmatmul.mubr.msk.bf16.vlgmr.msra.gmra.mrb[120].mxu1 %vm1913_vm1, %v7768_v32  ;;  %v15039_v32 = vld [vmem:[#allocation38] ss:$0 sm:$0xff] }
0x1c68   : > { %16503 = vmatprep.mubr.msk.bf16.mxu1 %vm19112_vm0, %v19111_v0  ;;  %16500 = vmatpush3.bf16.msra.mxu1 %v17371_v45 }
0x1c69   : > { %16501 = vmatprep.subr.bf16.mxu1 %v19111_v0 }
0x1c6c   : > { %16502 = vmatpush3.bf16.msra.mxu1 %v17373_v23 }
0x1c6d   : > { %16513 = vmatprep.subr.bf16.mxu1 %v19111_v0 }
0x1c95   : > { %v7170_v3 = vpop.xlane.xlu0 %7169 }
0x1c96   : > { %v7171_v17 = vmul.f32 0.03125, %v7170_v3 }
0x1c98   : > { %v7172_v49 = vsub.f32 %v7163_v6, %v7171_v17  ;;  %v15020_v6 = vld [vmem:[#allocation28] ss:$0 sm:$0xff] }
0x1c9a   : > { %v7173_v63 = vmul.f32 %v7172_v49, %v7172_v49 }
0x1c9c   : > { %v7174_v8 = vsel %vm1913_vm1, %v7173_v63, 0.0 }
0x1c9d   : > { %7175 = vadd.xlane.f32.xlu1 %v7174_v8  ;;  %v15044_v8 = vld [vmem:[#allocation44] ss:$0 sm:$0xff] }
0x1d2a   : > { %v7176_v9 = vpop.xlane.xlu1 %7175 }
0x1d2b   : > { %v7177_v10 = vmul.f32 0.03125, %v7176_v9 }
0x1d2d   : > { %v7178_v11 = vadd.f32 1e-05, %v7177_v10 }
0x1d2f   : > { %17699 = vrsqrt.f32 %v7178_v11 }
0x1d39   : > { %v17700_v16 = vpop.eup %17699 }
0x1d3a   : > { %v7824_v26 = vpop.f32.mrb[120].mxu1  ;;  %v7180_v50 = vmul.f32 %v17700_v16, %v7172_v49 }
0x1d3b   : > { %v16489_v28 = vpop.f32.mrb[121].mxu1  ;;  %v7825_v55 = vadd.f32 %v15034_v21, %v7824_v26  ;;  %v15040_v21 = vld [vmem:[#allocation41] ss:$0 sm:$0xff] }
0x1d3c   : > { %v7827_v29 = vpop.f32.mrb[122].mxu1  ;;  %v7187_v30 = vmul.f32 %v15018_v25, %v7180_v50 }
0x1d3d   : > { %v16490_v33 = vpop.f32.mrb[123].mxu1  ;;  %v7830_v36 = vadd.f32 %v7825_v55, %v20505_v46  ;;  %v17372_v46 = vld [vmem:[#allocation40] sm:$0xff]  }
0x1d3e   : > { %v7194_v34 = vadd.f32 %v15019_v54, %v7187_v30  ;;  %16492 = vmatpush3.bf16.msra.mxu0 %v17372_v46 }
0x1d3f   : > { %v7833_v44 = vsel %vm1913_vm1, %v7830_v36, 0.0  ;;  %16493 = vmatprep.subr.bf16.mxu0 %v19111_v0 }
0x1d40   : > { %v7197_v35 = vsel %vm1913_vm1, %v7194_v34, 0.0 }
0x1d41   : > { %7198 = vadd.xlane.f32.xlu0 %v7197_v35 }
0x1d42   : > { %16494 = vmatpush3.bf16.msra.mxu0 %v17374_v19 }
0x1d43   : > { %16507 = vmatprep.subr.bf16.mxu0 %v19111_v0 }
0x1d45   : > { %7834 = vadd.xlane.f32.xlu0 %v7833_v44 }
0x1dce   : > { %v7199_v37 = vpop.xlane.xlu0 %7198 }
0x1dcf   : > { %v7200_v38 = vmul.f32 0.03125, %v7199_v37 }
0x1dd1   : > { %v7201_v39 = vsub.f32 %v7194_v34, %v7200_v38 }
0x1dd2   : > { %v7835_v31 = vpop.xlane.xlu0 %7834 }
0x1dd3   : > { %v7836_v5 = vmul.f32 0.03125, %v7835_v31  ;;  %v7202_v40 = vmul.f32 %v7201_v39, %v7201_v39 }
0x1dd5   : > { %v7837_v41 = vsub.f32 %v7830_v36, %v7836_v5  ;;  %v7203_v62 = vsel %vm1913_vm1, %v7202_v40, 0.0 }
0x1dd6   : > { %7204 = vadd.xlane.f32.xlu1 %v7203_v62 }
0x1dd7   : > { %v7838_v42 = vmul.f32 %v7837_v41, %v7837_v41 }
0x1dd9   : > { %v7839_v58 = vsel %vm1913_vm1, %v7838_v42, 0.0 }
0x1dda   : > { %7840 = vadd.xlane.f32.xlu0 %v7839_v58 }
0x1e63   : > { %v7205_v1 = vpop.xlane.xlu1 %7204 }
0x1e64   : > { %v7206_v12 = vmul.f32 0.03125, %v7205_v1 }
0x1e66   : > { %v7207_v20 = vadd.f32 1e-05, %v7206_v12 }
0x1e67   : > { %v7841_v47 = vpop.xlane.xlu0 %7840 }
0x1e68   : > { %17701 = vrsqrt.f32 %v7207_v20  ;;  %v7842_v13 = vmul.f32 0.03125, %v7841_v47 }
0x1e6a   : > { %v7843_v24 = vadd.f32 1e-05, %v7842_v13 }
0x1e6c   : > { %17703 = vrsqrt.f32 %v7843_v24 }
0x1e72   : > { %v17702_v48 = vpop.eup %17701 }
0x1e73   : > { %v7209_v51 = vmul.f32 %v17702_v48, %v7201_v39 }
0x1e75   : > { %v7216_v52 = vmul.f32 %v15020_v6, %v7209_v51 }
0x1e76   : > { %v17704_v53 = vpop.eup %17703 }
0x1e77   : > { %v7845_v61 = vmul.f32 %v17704_v53, %v7837_v41  ;;  %v7223_v43 = vadd.f32 %v15021_v22, %v7216_v52 }
0x1e79   : > { %v7852_v3 = vmul.f32 %v15038_v2, %v7845_v61  ;;  %v20626_v17 = vpack.c.bf16 %v7223_v43, %v7223_v43 }
0x1e7b   : > { %16504 = vmatmul.mubr.msk.bf16.vlgmr.msra.gmra.mrb[124].mxu1 %vm1913_vm1, %v20626_v17  ;;  %v20630_v49 = vadd.f32 %v15039_v32, %v7852_v3 }
0x1e7c   : > { %16515 = vmatprep.mubr.msk.bf16.mxu1 %vm19112_vm0, %v19111_v0 }
0x1e7d   : > { %v7865_v63 = vpack.c.bf16 %v20630_v49, %v20630_v49 }
0x1e7f   : > { %16496 = vmatmul.mubr.msk.bf16.vlgmr.msra.gmra.mrb[124].mxu0 %vm1913_vm1, %v7865_v63 }
0x1e80   : > { %16509 = vmatprep.mubr.msk.bf16.mxu0 %vm19112_vm0, %v19111_v0 }
0x1f4e   : > { %v7988_v9 = vpop.f32.mrb[124].mxu1 }
0x1f4f   : > { %v7989_v10 = vadd.f32 %v15044_v8, %v7988_v9  ;;  %v16505_v11 = vpop.f32.mrb[125].mxu1 }
0x1f50   : > { %v7991_v16 = vpop.f32.mrb[126].mxu1 }
0x1f51   : > { %v20639_v25 = vpack.c.bf16 %v7989_v10, %v7989_v10  ;;  %v16506_v26 = vpop.f32.mrb[127].mxu1 }
0x1f52   : > { %v7921_v50 = vpop.f32.mrb[124].mxu0 }
0x1f53   : > { %v7922_v28 = vadd.f32 %v15040_v21, %v7921_v50  ;;  %8107 = vrot.lane.b32.xlu1 %v20639_v25, %s19113_s12  ;;  %v16497_v54 = vpop.f32.mrb[125].mxu0  ;;  %v8000_v55 = vsel %vm1961_vm2, %v20639_v25, 0 }
0x1f54   : > { %v7924_v29 = vpop.f32.mrb[126].mxu0  ;;  %16508 = vmatpush3.bf16.xpose.msra.mxu0 %v8000_v55 }
0x1f55   : > { %v7994_v30 = vpack.c.bf16 %v7922_v28, %v7922_v28  ;;  %v16498_v33 = vpop.f32.mrb[127].mxu0  ;;  %16519 = vmatprep.subr.bf16.mxu0 %v19111_v0 }
0x1f57   : > { %8218 = vrot.lane.b32.xlu1 %v20639_v25, %s21379_s1  ;;  %8105 = vrot.lane.b32.xlu0 %v7994_v30, %s19113_s12 }
0x1f5b   : > { %8216 = vrot.lane.b32.xlu1 %v7994_v30, %s21379_s1  ;;  %8329 = vrot.lane.b32.xlu0 %v20639_v25, %s21380_s2 }
0x1f5c   : > { %16510 = vmatmul.mubr.msk.bf16.vlgmr.msra.gmra.mrb[128].mxu0 %vm1961_vm2, %v7994_v30 }
0x1f5d   : > { %16521 = vmatprep.mubr.msk.bf16.mxu0 %vm19112_vm0, %v19111_v0 }
0x1f5f   : > { %8327 = vrot.lane.b32.xlu1 %v7994_v30, %s21380_s2 }
0x1fc5   : > { %v8108_v34 = vpop.permute.xlu1 %8107 }
0x1fc6   : > { %v8113_v35 = vsel %vm1961_vm2, %v8108_v34, 0 }
0x1fc7   : > { %16520 = vmatpush3.bf16.xpose.msra.mxu0 %v8113_v35 }
0x1fc8   : > { %16531 = vmatprep.subr.bf16.mxu0 %v19111_v0 }
0x1fc9   : > { %v8219_v36 = vpop.permute.xlu1 %8218  ;;  %v8106_v44 = vpop.permute.xlu0 %8105 }
0x1fca   : > { %v8224_v37 = vsel %vm1961_vm2, %v8219_v36, 0 }
0x1fcd   : > { %v8330_v38 = vpop.permute.xlu0 %8329  ;;  %v8217_v39 = vpop.permute.xlu1 %8216 }
0x1fce   : > { %16522 = vmatmul.mubr.msk.bf16.vlgmr.msra.gmra.mrb[132].mxu0 %vm1961_vm2, %v8106_v44  ;;  %v8335_v31 = vsel %vm1961_vm2, %v8330_v38, 0 }
0x1fcf   : > { %16532 = vmatpush3.bf16.xpose.msra.mxu0 %v8224_v37  ;;  %16533 = vmatprep.mubr.msk.bf16.mxu0 %vm19112_vm0, %v19111_v0 }
0x1fd0   : > { %16543 = vmatprep.subr.bf16.mxu0 %v19111_v0 }
0x1fd1   : > { %v8328_v5 = vpop.permute.xlu1 %8327 }
0x1fd6   : > { %16534 = vmatmul.mubr.msk.bf16.vlgmr.msra.gmra.mrb[136].mxu0 %vm1961_vm2, %v8217_v39 }
0x1fd7   : > { %16544 = vmatpush3.bf16.xpose.msra.mxu0 %v8335_v31  ;;  %16545 = vmatprep.mubr.msk.bf16.mxu0 %vm19112_vm0, %v19111_v0 }
0x1fd8   : > { %16555 = vmatprep.subr.bf16.mxu0 %v19111_v0 }
0x1fde   : > { %16546 = vmatmul.mubr.msk.bf16.vlgmr.msra.gmra.mrb[140].mxu0 %vm1961_vm2, %v8328_v5 }
0x1fdf   : > { %16559 = vmatprep.mubr.msk.bf16.mxu0 %vm19112_vm0, %v19111_v0 }
0x202f   : > { %v8036_v40 = vpop.f32.mrb[128].mxu0 }
0x2030   : > { %v8042_v41 = vmul.f32 0.35355338, %v8036_v40  ;;  %v16511_v62 = vpop.f32.mrb[129].mxu0 }
0x2031   : > { %v8039_v42 = vpop.f32.mrb[130].mxu0 }
0x2032   : > { %v16512_v58 = vpop.f32.mrb[131].mxu0  ;;  %v8043_v45 = vsel %vm1961_vm2, %v8042_v41, -inf }
0x2033   : > { %8044 = vmax.xlane.f32.xlu0 %v8043_v45 }
0x20a1   : > { %v8149_v46 = vpop.f32.mrb[132].mxu0 }
0x20a2   : > { %v8155_v23 = vmul.f32 0.35355338, %v8149_v46  ;;  %v16523_v19 = vpop.f32.mrb[133].mxu0 }
0x20a3   : > { %v8152_v1 = vpop.f32.mrb[134].mxu0 }
0x20a4   : > { %v16524_v12 = vpop.f32.mrb[135].mxu0  ;;  %v8156_v20 = vsel %vm1961_vm2, %v8155_v23, -inf }
0x20a5   : > { %8157 = vmax.xlane.f32.xlu1 %v8156_v20 }
0x20a9   : > { %v8260_v47 = vpop.f32.mrb[136].mxu0 }
0x20aa   : > { %v8266_v13 = vmul.f32 0.35355338, %v8260_v47  ;;  %v16535_v24 = vpop.f32.mrb[137].mxu0 }
0x20ab   : > { %v8263_v48 = vpop.f32.mrb[138].mxu0 }
0x20ac   : > { %v16536_v6 = vpop.f32.mrb[139].mxu0  ;;  %v8267_v51 = vsel %vm1961_vm2, %v8266_v13, -inf }
0x20ad   : > { %8268 = vmax.xlane.f32.xlu0 %v8267_v51 }
0x20b1   : > { %v8371_v22 = vpop.f32.mrb[140].mxu0 }
0x20b2   : > { %v8377_v52 = vmul.f32 0.35355338, %v8371_v22  ;;  %v16547_v53 = vpop.f32.mrb[141].mxu0 }
0x20b3   : > { %v8374_v2 = vpop.f32.mrb[142].mxu0 }
0x20b4   : > { %v16548_v61 = vpop.f32.mrb[143].mxu0  ;;  %v8378_v43 = vsel %vm1961_vm2, %v8377_v52, -inf  ;;  %v17375_v2 = vld [vmem:[#allocation46] sm:$0xff]  }
0x20b5   : > { %8379 = vmax.xlane.f32.xlu0 %v8378_v43  ;;  %16556 = vmatpush3.bf16.msra.mxu0 %v17375_v2  ;;  %v8553_v2 = vld [vmem:[#allocation52 + $0x18] sm:$0xff] }
0x20b6   : > { %16557 = vmatprep.subr.bf16.mxu0 %v19111_v0 }
0x20c0   : > { %v8045_v32 = vpop.xlane.xlu0 %8044 }
0x20c1   : > { %v8046_v3 = vsub.f32 %v8042_v41, %v8045_v32 }
0x20c3   : > { %v8047_v63 = vmul.f32 1.442695, %v8046_v3 }
0x20c5   : > { %17705 = vpow2.f32 %v8047_v63  ;;  %v17376_v63 = vld [vmem:[#allocation46 + $0x8] sm:$0xff]  }
0x20c6   : > { %16558 = vmatpush3.bf16.msra.mxu0 %v17376_v63 }
0x20cf   : > { %v17706_v8 = vpop.eup %17705 }
0x20d0   : > { %v8049_v9 = vsel %vm1961_vm2, %v17706_v8, 0.0 }
0x20d1   : > { %8050 = vadd.xlane.f32.xlu1 %v8049_v9 }
0x20e2   : > { %8056 = vrot.lane.b32.xlu1 %v20639_v25, %s19114_s14 }
0x2132   : > { %v8158_v10 = vpop.xlane.xlu1 %8157 }
0x2133   : > { %v8159_v11 = vsub.f32 %v8155_v23, %v8158_v10 }
0x2135   : > { %v8160_v16 = vmul.f32 1.442695, %v8159_v11 }
0x2137   : > { %17707 = vpow2.f32 %v8160_v16 }
0x213a   : > { %v8269_v21 = vpop.xlane.xlu0 %8268 }
0x213b   : > { %v8270_v26 = vsub.f32 %v8266_v13, %v8269_v21 }
0x213d   : > { %v8271_v50 = vmul.f32 1.442695, %v8270_v26 }
0x213f   : > { %17709 = vpow2.f32 %v8271_v50 }
0x2141   : > { %v17708_v28 = vpop.eup %17707 }
0x2142   : > { %v8380_v54 = vpop.xlane.xlu0 %8379  ;;  %v8162_v55 = vsel %vm1961_vm2, %v17708_v28, 0.0 }
0x2143   : > { %v8381_v29 = vsub.f32 %v8377_v52, %v8380_v54  ;;  %8163 = vadd.xlane.f32.xlu0 %v8162_v55 }
0x2145   : > { %v8382_v30 = vmul.f32 1.442695, %v8381_v29 }
0x2147   : > { %17711 = vpow2.f32 %v8382_v30 }
0x2149   : > { %v17710_v33 = vpop.eup %17709 }
0x214a   : > { %v8273_v34 = vsel %vm1961_vm2, %v17710_v33, 0.0 }
0x214b   : > { %8274 = vadd.xlane.f32.xlu1 %v8273_v34 }
0x2151   : > { %v17712_v35 = vpop.eup %17711 }
0x2152   : > { %v8384_v36 = vsel %vm1961_vm2, %v17712_v35, 0.0 }
0x2153   : > { %8385 = vadd.xlane.f32.xlu0 %v8384_v36 }
0x215c   : > { %8279 = vrot.lane.b32.xlu1 %v20639_v25, %s21241_s8 }
0x215e   : > { %v8051_v44 = vpop.xlane.xlu1 %8050 }
0x215f   : > { %17713 = vrcp.f32 %v8051_v44 }
0x2160   : > { %8390 = vrot.lane.b32.xlu1 %v20639_v25, %s21242_s11 }
0x2162   : > { %v8057_v37 = vpop.permute.xlu1 %8056 }
0x2163   : > { %v8062_v38 = vsel %vm2026_vm3, %v8057_v37, 0 }
0x2164   : > { %16514 = vmatpush3.bf16.msra.mxu1 %v8062_v38 }
0x2165   : > { %16525 = vmatprep.subr.bf16.mxu1 %v19111_v0 }
0x2169   : > { %v17714_v39 = vpop.eup %17713  ;;  %8168 = vrot.lane.b32.xlu0 %v20639_v25, %s19116_s0 }
0x216a   : > { %v8053_v31 = vmul.f32 %v17714_v39, %v17706_v8 }
0x216c   : > { %v8054_v5 = vpack.c.bf16 %v8053_v31, %v8053_v31 }
0x216e   : > { %16516 = vmatmul.mubr.msk.bf16.vlgmr.msra.gmra.mrb[128].mxu1 %vm1961_vm2, %v8054_v5 }
0x216f   : > { %16527 = vmatprep.mubr.msk.bf16.mxu1 %vm19112_vm0, %v19111_v0 }
0x21d0   : > { %v8164_v40 = vpop.xlane.xlu0 %8163 }
0x21d1   : > { %17715 = vrcp.f32 %v8164_v40 }
0x21d8   : > { %v8275_v41 = vpop.xlane.xlu1 %8274 }
0x21d9   : > { %17717 = vrcp.f32 %v8275_v41 }
0x21db   : > { %v17716_v62 = vpop.eup %17715 }
0x21dc   : > { %v8166_v58 = vmul.f32 %v17716_v62, %v17708_v28  ;;  %v8280_v23 = vpop.permute.xlu1 %8279 }
0x21dd   : > { %v8285_v1 = vsel %vm2026_vm3, %v8280_v23, 0  ;;  %v8551_v23 = vld [vmem:[#allocation52 + $0x8] sm:$0xff] }
0x21de   : > { %v8167_v25 = vpack.c.bf16 %v8166_v58, %v8166_v58 }
0x21e0   : > { %v8386_v42 = vpop.xlane.xlu0 %8385  ;;  %v8391_v20 = vpop.permute.xlu1 %8390 }
0x21e1   : > { %17719 = vrcp.f32 %v8386_v42  ;;  %v8396_v24 = vsel %vm2026_vm3, %v8391_v20, 0 }
0x21e3   : > { %v17718_v19 = vpop.eup %17717 }
0x21e4   : > { %v8169_v45 = vpop.permute.xlu0 %8168  ;;  %v8277_v12 = vmul.f32 %v17718_v19, %v17710_v33  ;;  %v8559_v19 = vld [vmem:[#allocation52 + $0x48] sm:$0xff] }
0x21e5   : > { %v8174_v46 = vsel %vm2026_vm3, %v8169_v45, 0  ;;  %v8550_v45 = vld [vmem:[#allocation52] sm:$0xff]  ;;  %v15065_v20 = vcombine.high %v8551_v23, %v8559_v19 }
0x21e6   : > { %16526 = vmatpush3.bf16.msra.mxu1 %v8174_v46  ;;  %v8278_v47 = vpack.c.bf16 %v8277_v12, %v8277_v12  ;;  %v8558_v46 = vld [vmem:[#allocation52 + $0x40] sm:$0xff]  ;;  %v15064_v12 = vcombine.low %v8551_v23, %v8559_v19  ;;  %v8556_v19 = vld [vmem:[#allocation52 + $0x30] sm:$0xff] }
0x21e7   : > { %16537 = vmatprep.subr.bf16.mxu1 %v19111_v0  ;;  %8871 = vmatprep.subr.bf16.mxu0 %v15065_v20  ;;  %v8565_v20 = vld [vmem:[#allocation52 + $0x78] sm:$0xff] }
0x21e9   : > { %16528 = vmatmul.mubr.msk.bf16.vlgmr.msra.gmra.mrb[132].mxu1 %vm1961_vm2, %v8167_v25  ;;  %v15063_v25 = vcombine.high %v8550_v45, %v8558_v46 }
0x21ea   : > { %16538 = vmatpush3.bf16.msra.mxu1 %v8285_v1  ;;  %16539 = vmatprep.mubr.msk.bf16.mxu1 %vm19112_vm0, %v19111_v0  ;;  %v15062_v1 = vcombine.low %v8550_v45, %v8558_v46 }
0x21eb   : > { %16549 = vmatprep.subr.bf16.mxu1 %v19111_v0  ;;  %v17720_v13 = vpop.eup %17719 }
0x21ec   : > { %v8388_v48 = vmul.f32 %v17720_v13, %v17712_v35  ;;  %v15056_v35 = vld [vmem:[#allocation47] ss:$0 sm:$0xff]  ;;  %v8567_v13 = vld [vmem:[#allocation52 + $0x88] sm:$0xff] }
0x21ee   : > { %v8389_v6 = vpack.c.bf16 %v8388_v48, %v8388_v48  ;;  %v8575_v48 = vld [vmem:[#allocation52 + $0xc8] sm:$0xff] }
0x21f1   : > { %16540 = vmatmul.mubr.msk.bf16.vlgmr.msra.gmra.mrb[136].mxu1 %vm1961_vm2, %v8278_v47  ;;  %v8574_v47 = vld [vmem:[#allocation52 + $0xc0] sm:$0xff] }
0x21f2   : > { %16550 = vmatpush3.bf16.msra.mxu1 %v8396_v24  ;;  %16551 = vmatprep.mubr.msk.bf16.mxu1 %vm19112_vm0, %v19111_v0 }
0x21f3   : > { %8830 = vmatprep.subr.bf16.mxu1 %v15063_v25 }
0x21f9   : > { %16552 = vmatmul.mubr.msk.bf16.vlgmr.msra.gmra.mrb[140].mxu1 %vm1961_vm2, %v8389_v6 }
0x21fa   : > { %8862 = vmatprep.mubr.bf16.mxu1 %v19127_v27  ;;  %8831 = vmatpush1.bf16.msra.mxu1 %v15062_v1  ;;  %v8564_v1 = vld [vmem:[#allocation52 + $0x70] sm:$0xff] }
0x2241   : > { %v8098_v51 = vpop.f32.mrb[128].mxu1 }
0x2242   : > { %v16517_v22 = vpop.f32.mrb[129].mxu1 }
0x2243   : > { %v8101_v52 = vpop.f32.mrb[130].mxu1  ;;  %v15081_v22 = vcombine.high %v8567_v13, %v8575_v48 }
0x2244   : > { %v16518_v53 = vpop.f32.mrb[131].mxu1  ;;  %v8552_v52 = vld [vmem:[#allocation52 + $0x10] sm:$0xff] }
0x2245   : > { %v8560_v53 = vld [vmem:[#allocation52 + $0x50] sm:$0xff] }
0x22bc   : > { %v8210_v61 = vpop.f32.mrb[132].mxu1 }
0x22bd   : > { %8439 = vrot.lane.b32.xlu0 %v8210_v61, %s19124_s5  ;;  %v16529_v43 = vpop.f32.mrb[133].mxu1  ;;  %v15066_v61 = vcombine.low %v8552_v52, %v8560_v53 }
0x22be   : > { %v8213_v32 = vpop.f32.mrb[134].mxu1  ;;  %v15067_v43 = vcombine.high %v8552_v52, %v8560_v53  ;;  %v15074_v52 = vcombine.low %v8556_v19, %v8564_v1 }
0x22bf   : > { %v16530_v3 = vpop.f32.mrb[135].mxu1  ;;  %v8561_v32 = vld [vmem:[#allocation52 + $0x58] sm:$0xff] }
0x22c0   : > { %v15068_v3 = vcombine.low %v8553_v2, %v8561_v32  ;;  %v15069_v63 = vcombine.high %v8553_v2, %v8561_v32 }
0x22c4   : > { %v8321_v8 = vpop.f32.mrb[136].mxu1 }
0x22c5   : > { %8443 = vrot.lane.b32.xlu1 %v8321_v8, %s21381_s28  ;;  %v16541_v9 = vpop.f32.mrb[137].mxu1 }
0x22c6   : > { %v8324_v10 = vpop.f32.mrb[138].mxu1 }
0x22c7   : > { %v16542_v11 = vpop.f32.mrb[139].mxu1 }
0x22cc   : > { %v8432_v16 = vpop.f32.mrb[140].mxu1 }
0x22cd   : > { %8447 = vrot.lane.b32.xlu0 %v8432_v16, %s21382_s7  ;;  %v16553_v21 = vpop.f32.mrb[141].mxu1  ;;  %v15060_v16 = vld [vmem:[#allocation49] ss:$0 sm:$0xff] }
0x22ce   : > { %v8435_v26 = vpop.f32.mrb[142].mxu1 }
0x22cf   : > { %v16554_v50 = vpop.f32.mrb[143].mxu1  ;;  %v15061_v26 = vld [vmem:[#allocation50] ss:$0 sm:$0xff] }
0x232f   : > { %v8440_v28 = vpop.permute.xlu0 %8439 }
0x2330   : > { %v8450_v55 = vsel %vm1961_vm2, %v8098_v51, %v8440_v28  ;;  %v15080_v51 = vcombine.low %v8567_v13, %v8575_v48  ;;  %v8568_v28 = vld [vmem:[#allocation52 + $0x90] sm:$0xff]  ;;  %v15075_v13 = vcombine.high %v8556_v19, %v8564_v1  ;;  %v17410_v19 = vld [vmem:[#allocation55 + $0x1c0] sm:$0xff]  }
0x2331   : > { %v8572_v48 = vld [vmem:[#allocation52 + $0xb0] sm:$0xff]  ;;  %v20745_v1 = vld [vmem:[#allocation53] sm:$0xff] }
0x2337   : > { %v8444_v54 = vpop.permute.xlu1 %8443 }
0x2338   : > { %v8451_v29 = vsel %vm2416_vm4, %v8450_v55, %v8444_v54  ;;  %v8576_v54 = vld [vmem:[#allocation52 + $0xd0] sm:$0xff]  ;;  %v8569_v55 = vld [vmem:[#allocation52 + $0x98] sm:$0xff] }
0x233f   : > { %v8448_v30 = vpop.permute.xlu0 %8447 }
0x2340   : > { %v8452_v33 = vsel %vm2418_vm5, %v8451_v29, %v8448_v30  ;;  %v8577_v29 = vld [vmem:[#allocation52 + $0xd8] sm:$0xff] }
0x2341   : > { %v8458_v34 = vpack.c.bf16 %v8452_v33, %v8452_v33 }
0x2343   : > { %16560 = vmatmul.mubr.msk.bf16.vlgmr.msra.gmra.mrb[144].mxu0 %vm1913_vm1, %v8458_v34  ;;  %v15083_v34 = vcombine.high %v8568_v28, %v8576_v54 }
0x2344   : > { %8903 = vmatprep.mubr.bf16.mxu0 %v19127_v27  ;;  %8872 = vmatpush1.bf16.msra.mxu0 %v15064_v12  ;;  %v8557_v12 = vld [vmem:[#allocation52 + $0x38] sm:$0xff] }
0x2345   : > { %8873 = vmatprep.subr.bf16.mxu0 %v15081_v22  ;;  %v8581_v22 = vld [vmem:[#allocation52 + $0xf8] sm:$0xff]  ;;  %v15076_v53 = vcombine.low %v8557_v12, %v8565_v20 }
0x2348   : > { %8874 = vmatpush1.bf16.msra.mxu0 %v15080_v51  ;;  %v8573_v51 = vld [vmem:[#allocation52 + $0xb8] sm:$0xff] }
0x2349   : > { %8953 = vmatprep.subr.bf16.mxu0 %v15069_v63  ;;  %v15092_v32 = vcombine.low %v8573_v51, %v8581_v22  ;;  %v17378_v63 = vld [vmem:[#allocation55 + $0xc0] sm:$0xff]  }
0x2416   : > { %v8514_v36 = vpop.f32.mrb[144].mxu0 }
0x2417   : > { %v8515_v44 = vadd.f32 %v15056_v35, %v8514_v36  ;;  %v16561_v37 = vpop.f32.mrb[145].mxu0  ;;  %v15085_v35 = vcombine.high %v8569_v55, %v8577_v29  ;;  %v8554_v36 = vld [vmem:[#allocation52 + $0x20] sm:$0xff] }
0x2418   : > { %v8517_v38 = vpop.f32.mrb[146].mxu0  ;;  %v8555_v37 = vld [vmem:[#allocation52 + $0x28] sm:$0xff] }
0x2419   : > { %v8520_v39 = vadd.f32 %v8515_v44, %v20630_v49  ;;  %v16562_v31 = vpop.f32.mrb[147].mxu0  ;;  %v8566_v49 = vld [vmem:[#allocation52 + $0x80] sm:$0xff]  ;;  %v8563_v38 = vld [vmem:[#allocation52 + $0x68] sm:$0xff] }
0x241a   : > { %v15079_v24 = vcombine.high %v8566_v49, %v8574_v47  ;;  %v15078_v6 = vcombine.low %v8566_v49, %v8574_v47  ;;  %v8562_v44 = vld [vmem:[#allocation52 + $0x60] sm:$0xff]  ;;  %v15084_v31 = vcombine.low %v8569_v55, %v8577_v29  ;;  %v15072_v46 = vcombine.low %v8555_v37, %v8563_v38  ;;  %v17389_v55 = vld [vmem:[#allocation55 + $0x58] sm:$0xff]  }
0x241b   : > { %v8523_v5 = vsel %vm1913_vm1, %v8520_v39, 0.0  ;;  %v15070_v45 = vcombine.low %v8554_v36, %v8562_v44  ;;  %v17390_v29 = vld [vmem:[#allocation55 + $0xd8] sm:$0xff]  }
0x241c   : > { %8524 = vadd.xlane.f32.xlu1 %v8523_v5  ;;  %8832 = vmatprep.subr.bf16.mxu1 %v15079_v24  ;;  %v15071_v5 = vcombine.high %v8554_v36, %v8562_v44  ;;  %v15077_v24 = vcombine.high %v8557_v12, %v8565_v20  ;;  %v17394_v36 = vld [vmem:[#allocation55 + $0xe0] sm:$0xff]   ;;  %v8590_v12 = vrot.slane %v20745_v1, %v20229_v56 }
0x241d   : > { %8833 = vmatpush1.bf16.msra.mxu1 %v15078_v6  ;;  %v8580_v6 = vld [vmem:[#allocation52 + $0xf0] sm:$0xff]  ;;  %v17395_v44 = vld [vmem:[#allocation55 + $0x20] sm:$0xff]   ;;  %v8598_v20 = vrot.slane %v20745_v1, %v20232_v57 }
0x241e   : > { %8912 = vmatprep.subr.bf16.mxu1 %v15067_v43  ;;  %v15091_v2 = vcombine.high %v8572_v48, %v8580_v6  ;;  %v15090_v43 = vcombine.low %v8572_v48, %v8580_v6 }
0x24a9   : > { %v8525_v40 = vpop.xlane.xlu1 %8524 }
0x24aa   : > { %v8526_v41 = vmul.f32 0.03125, %v8525_v40  ;;  %v15073_v40 = vcombine.high %v8555_v37, %v8563_v38  ;;  %v17396_v37 = vld [vmem:[#allocation55 + $0xa0] sm:$0xff]   ;;  %v17397_v38 = vld [vmem:[#allocation55 + $0x68] sm:$0xff]  }
0x24ac   : > { %v8527_v62 = vsub.f32 %v8520_v39, %v8526_v41  ;;  %v15082_v39 = vcombine.low %v8568_v28, %v8576_v54  ;;  %v8570_v41 = vld [vmem:[#allocation52 + $0xa0] sm:$0xff]  ;;  %v17387_v28 = vld [vmem:[#allocation55 + $0x10] sm:$0xff]  }
0x24ad   : > { %v17388_v54 = vld [vmem:[#allocation55 + $0x90] sm:$0xff]  }
0x24ae   : > { %v8528_v42 = vmul.f32 %v8527_v62, %v8527_v62 }
0x24b0   : > { %v8529_v58 = vsel %vm1913_vm1, %v8528_v42, 0.0  ;;  %v8571_v42 = vld [vmem:[#allocation52 + $0xa8] sm:$0xff] }
0x24b1   : > { %8530 = vadd.xlane.f32.xlu0 %v8529_v58  ;;  %v8579_v58 = vld [vmem:[#allocation52 + $0xe8] sm:$0xff] }
0x24b2   : > { %v15089_v25 = vcombine.high %v8571_v42, %v8579_v58  ;;  %v15088_v47 = vcombine.low %v8571_v42, %v8579_v58  ;;  %v17404_v42 = vld [vmem:[#allocation55 + $0xb0] sm:$0xff]   ;;  %v17405_v58 = vld [vmem:[#allocation55 + $0x78] sm:$0xff]  }
0x253e   : > { %v8531_v8 = vpop.xlane.xlu0 %8530 }
0x253f   : > { %v8532_v9 = vmul.f32 0.03125, %v8531_v8  ;;  %v17379_v8 = vld [vmem:[#allocation55] sm:$0xff]  }
0x2541   : > { %v8533_v10 = vadd.f32 1e-05, %v8532_v9  ;;  %v17380_v9 = vld [vmem:[#allocation55 + $0x80] sm:$0xff]  }
0x2543   : > { %17721 = vrsqrt.f32 %v8533_v10  ;;  %v17381_v10 = vld [vmem:[#allocation55 + $0x48] sm:$0xff]  }
0x254d   : > { %v17722_v11 = vpop.eup %17721 }
0x254e   : > { %v8535_v21 = vmul.f32 %v17722_v11, %v8527_v62  ;;  %v8578_v62 = vld [vmem:[#allocation52 + $0xe0] sm:$0xff]  ;;  %v17382_v11 = vld [vmem:[#allocation55 + $0xc8] sm:$0xff]  }
0x254f   : > { %v15087_v23 = vcombine.high %v8570_v41, %v8578_v62  ;;  %v15086_v49 = vcombine.low %v8570_v41, %v8578_v62  ;;  %v17402_v41 = vld [vmem:[#allocation55 + $0xf0] sm:$0xff]  }
0x2550   : > { %v8542_v50 = vmul.f32 %v15060_v16, %v8535_v21  ;;  %v17383_v16 = vld [vmem:[#allocation55 + $0x8] sm:$0xff]   ;;  %v17403_v62 = vld [vmem:[#allocation55 + $0x30] sm:$0xff]  }
0x2551   : > { %v17384_v21 = vld [vmem:[#allocation55 + $0x88] sm:$0xff]  }
0x2552   : > { %v20717_v30 = vadd.f32 %v15061_v26, %v8542_v50  ;;  %v17385_v26 = vld [vmem:[#allocation55 + $0x50] sm:$0xff]  }
0x2553   : > { %v17386_v50 = vld [vmem:[#allocation55 + $0xd0] sm:$0xff]  }
0x2554   : > { %v20721_v33 = vpack.c.bf16 %v20717_v30, %v20717_v30 }
0x2556   : > { %15094 = vmatmul.mubr.msk.bf16.vlgmr.msra.gmra.mrb[144].mxu1 %vm1913_vm1, %v20721_v33  ;;  %15095 = vmatmul.mubr.msk.bf16.vlgmr.msra.gmra.mrb[148].mxu0 %vm1913_vm1, %v20721_v33 }
0x2557   : > { %8913 = vmatpush1.bf16.msra.mxu1 %v15066_v61  ;;  %8954 = vmatpush1.bf16.msra.mxu0 %v15068_v3  ;;  %v15093_v61 = vcombine.high %v8573_v51, %v8581_v22  ;;  %v17377_v3 = vld [vmem:[#allocation55 + $0x40] sm:$0xff]  }
0x2558   : > { %8914 = vmatprep.subr.bf16.mxu1 %v15083_v34  ;;  %8955 = vmatprep.subr.bf16.mxu0 %v15085_v35  ;;  %v17391_v34 = vld [vmem:[#allocation55 + $0x18] sm:$0xff]   ;;  %v17393_v35 = vld [vmem:[#allocation55 + $0x60] sm:$0xff]  }
0x2559   : > { %8944 = vmatprep.mubr.bf16.mxu1 %v19127_v27  ;;  %8985 = vmatprep.mubr.bf16.mxu0 %v19127_v27 }
0x255b   : > { %8915 = vmatpush1.bf16.msra.mxu1 %v15082_v39  ;;  %8956 = vmatpush1.bf16.msra.mxu0 %v15084_v31  ;;  %v17398_v39 = vld [vmem:[#allocation55 + $0xe8] sm:$0xff]  }
0x255c   : > { %8994 = vmatprep.subr.bf16.mxu1 %v15071_v5  ;;  %9035 = vmatprep.subr.bf16.mxu0 %v15073_v40  ;;  %v17399_v31 = vld [vmem:[#allocation55 + $0x28] sm:$0xff]   ;;  %v17401_v40 = vld [vmem:[#allocation55 + $0x70] sm:$0xff]  }
0x255d   : > { %v17400_v5 = vld [vmem:[#allocation55 + $0xa8] sm:$0xff]  }
0x255e   : > { %15096 = vmatmul.mubr.msk.bf16.vlgmr.msra.gmra.mrb[148].mxu1 %vm1913_vm1, %v20721_v33  ;;  %15097 = vmatmul.mubr.msk.bf16.vlgmr.msra.gmra.mrb[152].mxu0 %vm1913_vm1, %v20721_v33 }
0x255f   : > { %8995 = vmatpush1.bf16.msra.mxu1 %v15070_v45  ;;  %9036 = vmatpush1.bf16.msra.mxu0 %v15072_v46  ;;  %v17406_v45 = vld [vmem:[#allocation55 + $0xf8] sm:$0xff]  }
0x2560   : > { %8996 = vmatprep.subr.bf16.mxu1 %v15087_v23  ;;  %9037 = vmatprep.subr.bf16.mxu0 %v15089_v25  ;;  %v17407_v46 = vld [vmem:[#allocation55 + $0x38] sm:$0xff]   ;;  %v17409_v25 = vld [vmem:[#allocation55 + $0x140] sm:$0xff]  }
0x2561   : > { %9026 = vmatprep.mubr.bf16.mxu1 %v19127_v27  ;;  %9067 = vmatprep.mubr.bf16.mxu0 %v19127_v27  ;;  %v17408_v23 = vld [vmem:[#allocation55 + $0xb8] sm:$0xff]  }
0x2563   : > { %8997 = vmatpush1.bf16.msra.mxu1 %v15086_v49  ;;  %9038 = vmatpush1.bf16.msra.mxu0 %v15088_v47  ;;  %v8594_v49 = vrot.slane %v20745_v1, %v20237_v59  ;;  %v8602_v47 = vrot.slane %v20745_v1, %v20240_v60 }
0x2564   : > { %9076 = vmatprep.subr.bf16.mxu1 %v15075_v13  ;;  %9117 = vmatprep.subr.bf16.mxu0 %v15077_v24 }
0x2566   : > { %15098 = vmatmul.mubr.msk.bf16.vlgmr.msra.gmra.mrb[152].mxu1 %vm1913_vm1, %v20721_v33  ;;  %15099 = vmatmul.mubr.msk.bf16.vlgmr.msra.gmra.mrb[156].mxu0 %vm1913_vm1, %v20721_v33 }
0x2567   : > { %9077 = vmatpush1.bf16.msra.mxu1 %v15074_v52  ;;  %9118 = vmatpush1.bf16.msra.mxu0 %v15076_v53 }
0x2568   : > { %9078 = vmatprep.subr.bf16.mxu1 %v15091_v2  ;;  %9119 = vmatprep.subr.bf16.mxu0 %v15093_v61 }
0x2569   : > { %9108 = vmatprep.mubr.bf16.mxu1 %v19127_v27  ;;  %9149 = vmatprep.mubr.bf16.mxu0 %v19127_v27 }
0x256b   : > { %9079 = vmatpush1.bf16.msra.mxu1 %v15090_v43  ;;  %9120 = vmatpush1.bf16.msra.mxu0 %v15092_v32 }
0x256c   : > { %15897 = vmatprep.subr.bf16.mxu1 %v17377_v3  ;;  %15919 = vmatprep.subr.bf16.mxu0 %v17378_v63 }
0x256e   : > { %15100 = vmatmul.mubr.msk.bf16.vlgmr.msra.gmra.mrb[156].mxu1 %vm1913_vm1, %v20721_v33  ;;  %15101 = vmatmul.mubr.msk.bf16.vlgmr.msra.gmra.mrb[160].mxu0 %vm1913_vm1, %v20721_v33  ;;  %v17392_v33 = vld [vmem:[#allocation55 + $0x98] sm:$0xff]  }
0x256f   : > { %15898 = vmatpush3.bf16.msra.mxu1 %v17379_v8  ;;  %15920 = vmatpush3.bf16.msra.mxu0 %v17380_v9 }
0x2570   : > { %15899 = vmatprep.subr.bf16.mxu1 %v17381_v10  ;;  %15921 = vmatprep.subr.bf16.mxu0 %v17382_v11 }
0x2573   : > { %15900 = vmatpush3.bf16.msra.mxu1 %v17383_v16  ;;  %15922 = vmatpush3.bf16.msra.mxu0 %v17384_v21  ;;  %v8610_v16 = vrot.slane %v20745_v1, %v20251_v14  ;;  %v8618_v21 = vrot.slane %v20745_v1, %v20254_v15 }
0x2574   : > { %15901 = vmatprep.subr.bf16.mxu1 %v17385_v26  ;;  %15923 = vmatprep.subr.bf16.mxu0 %v17386_v50  ;;  %v17411_v26 = vld [vmem:[#allocation55 + $0x100] sm:$0xff]  }
0x2575   : > { %v17412_v50 = vld [vmem:[#allocation55 + $0x180] sm:$0xff]  }
0x2577   : > { %15902 = vmatpush3.bf16.msra.mxu1 %v17387_v28  ;;  %15924 = vmatpush3.bf16.msra.mxu0 %v17388_v54 }
0x2578   : > { %15903 = vmatprep.subr.bf16.mxu1 %v17389_v55  ;;  %15925 = vmatprep.subr.bf16.mxu0 %v17390_v29  ;;  %v17413_v55 = vld [vmem:[#allocation55 + $0x148] sm:$0xff]  }
0x2579   : > { %v17414_v29 = vld [vmem:[#allocation55 + $0x1c8] sm:$0xff]  }
0x257b   : > { %15904 = vmatpush3.bf16.msra.mxu1 %v17391_v34  ;;  %15926 = vmatpush3.bf16.msra.mxu0 %v17392_v33 }
0x257c   : > { %15905 = vmatprep.subr.bf16.mxu1 %v17393_v35  ;;  %15927 = vmatprep.subr.bf16.mxu0 %v17394_v36 }
0x257f   : > { %15906 = vmatpush3.bf16.msra.mxu1 %v17395_v44  ;;  %15928 = vmatpush3.bf16.msra.mxu0 %v17396_v37 }
0x2580   : > { %15907 = vmatprep.subr.bf16.mxu1 %v17397_v38  ;;  %15929 = vmatprep.subr.bf16.mxu0 %v17398_v39 }
0x2583   : > { %15908 = vmatpush3.bf16.msra.mxu1 %v17399_v31  ;;  %15930 = vmatpush3.bf16.msra.mxu0 %v17400_v5  ;;  %v17415_v31 = vld [vmem:[#allocation55 + $0x108] sm:$0xff]  }
0x2584   : > { %15909 = vmatprep.subr.bf16.mxu1 %v17401_v40  ;;  %15931 = vmatprep.subr.bf16.mxu0 %v17402_v41  ;;  %v17416_v5 = vld [vmem:[#allocation55 + $0x188] sm:$0xff]  }
0x2587   : > { %15910 = vmatpush3.bf16.msra.mxu1 %v17403_v62  ;;  %15932 = vmatpush3.bf16.msra.mxu0 %v17404_v42  ;;  %v17417_v62 = vld [vmem:[#allocation55 + $0x150] sm:$0xff]  }
0x2588   : > { %15911 = vmatprep.subr.bf16.mxu1 %v17405_v58  ;;  %15933 = vmatprep.subr.bf16.mxu0 %v17406_v45  ;;  %v17418_v42 = vld [vmem:[#allocation55 + $0x1d0] sm:$0xff]  }
0x258b   : > { %15912 = vmatpush3.bf16.msra.mxu1 %v17407_v46  ;;  %15934 = vmatpush3.bf16.msra.mxu0 %v17408_v23 }
0x258c   : > { %15941 = vmatprep.subr.bf16.mxu1 %v17409_v25  ;;  %15963 = vmatprep.subr.bf16.mxu0 %v17410_v19  ;;  %v17419_v25 = vld [vmem:[#allocation55 + $0x110] sm:$0xff]  }
0x258d   : > { %v17420_v19 = vld [vmem:[#allocation55 + $0x190] sm:$0xff]  }
0x2629   : > { %v8864_v13 = vpop.f32.mrb[144].mxu1  ;;  %v8905_v24 = vpop.f32.mrb[148].mxu0 }
0x262a   : > { %v8865_v48 = vadd.f32 %v8864_v13, %v8590_v12  ;;  %v8906_v6 = vadd.f32 %v8905_v24, %v8598_v20  ;;  %v8866_v51 = vpop.f32.mrb[145].mxu1  ;;  %v8907_v22 = vpop.f32.mrb[149].mxu0  ;;  %v17421_v12 = vld [vmem:[#allocation55 + $0x158] sm:$0xff]  }
0x262b   : > { %v8867_v52 = vadd.f32 %v8866_v51, %v8594_v49  ;;  %v8908_v53 = vadd.f32 %v8907_v22, %v8602_v47  ;;  %v8868_v2 = vpop.f32.mrb[146].mxu1  ;;  %v8909_v61 = vpop.f32.mrb[150].mxu0  ;;  %v17422_v20 = vld [vmem:[#allocation55 + $0x1d8] sm:$0xff]  }
0x262c   : > { %v9158_v43 = vmax.f32 %v8865_v48, 0.0  ;;  %v9160_v32 = vmax.f32 %v8906_v6, 0.0  ;;  %v8869_v3 = vpop.f32.mrb[147].mxu1  ;;  %v8910_v63 = vpop.f32.mrb[151].mxu0  ;;  %v17423_v51 = vld [vmem:[#allocation55 + $0x118] sm:$0xff]   ;;  %v17425_v2 = vld [vmem:[#allocation55 + $0x160] sm:$0xff]  }
0x262d   : > { %v9159_v8 = vmax.f32 %v8867_v52, 0.0  ;;  %v9161_v9 = vmax.f32 %v8908_v53, 0.0  ;;  %v17424_v22 = vld [vmem:[#allocation55 + $0x198] sm:$0xff]   ;;  %v17426_v61 = vld [vmem:[#allocation55 + $0x1e0] sm:$0xff]  }
0x262e   : > { %v9431_v28 = vpack.c.bf16 %v9158_v43, %v9158_v43  ;;  %v9433_v54 = vpack.c.bf16 %v9160_v32, %v9160_v32  ;;  %v20767_v43 = vld [vmem:[#allocation53 + $0x8] sm:$0xff]  ;;  %v17427_v3 = vld [vmem:[#allocation55 + $0x120] sm:$0xff]  }
0x262f   : > { %v9432_v10 = vpack.c.bf16 %v9159_v8, %v9159_v8  ;;  %v9434_v11 = vpack.c.bf16 %v9161_v9, %v9161_v9  ;;  %v8646_v32 = vrot.slane %v20767_v43, %v20269_v7  ;;  %v17428_v63 = vld [vmem:[#allocation55 + $0x1a0] sm:$0xff]   ;;  %v17429_v8 = vld [vmem:[#allocation55 + $0x168] sm:$0xff]  }
0x2630   : > { %v17430_v9 = vld [vmem:[#allocation55 + $0x1e8] sm:$0xff]  }
0x2631   : > { %v20759_v34 = vpop.f32.mrb[148].mxu1  ;;  %v20761_v33 = vpop.f32.mrb[152].mxu0  ;;  %10253 = vmatprep.mubr.bf16.mxu1 %v9432_v10  ;;  %10293 = vmatprep.mubr.bf16.mxu0 %v9434_v11 }
0x2632   : > { %v8948_v35 = vpop.f32.mrb[149].mxu1  ;;  %v8989_v36 = vpop.f32.mrb[153].mxu0  ;;  %10254 = vmatmul.mubr.bf16.vlgmr.msra.gmra.mrb[160].mxu1 %v9431_v28  ;;  %10294 = vmatmul.mubr.bf16.vlgmr.msra.gmra.mrb[164].mxu0 %v9433_v54  ;;  %v17431_v54 = vld [vmem:[#allocation55 + $0x128] sm:$0xff]  }
0x2633   : > { %v8949_v44 = vadd.f32 %v8948_v35, %v8610_v16  ;;  %v8990_v37 = vadd.f32 %v8989_v36, %v8618_v21  ;;  %15942 = vmatpush3.bf16.msra.mxu1 %v17411_v26  ;;  %15964 = vmatpush3.bf16.msra.mxu0 %v17412_v50  ;;  %v8950_v38 = vpop.f32.mrb[150].mxu1  ;;  %v8991_v39 = vpop.f32.mrb[154].mxu0  ;;  %v8614_v35 = vrot.slane %v20745_v1, %v20269_v7 }
0x2634   : > { %v8951_v40 = vpop.f32.mrb[151].mxu1  ;;  %v8992_v41 = vpop.f32.mrb[155].mxu0  ;;  %15943 = vmatprep.subr.bf16.mxu1 %v17413_v55  ;;  %15965 = vmatprep.subr.bf16.mxu0 %v17414_v29  ;;  %v17432_v55 = vld [vmem:[#allocation55 + $0x1a8] sm:$0xff]   ;;  %v8606_v29 = vrot.slane %v20745_v1, %v20276_v18  ;;  %v17434_v38 = vld [vmem:[#allocation55 + $0x1f0] sm:$0xff]   ;;  %v8626_v39 = vrot.slane %v20767_v43, %v20237_v59 }
0x2635   : > { %v9163_v58 = vmax.f32 %v8949_v44, 0.0  ;;  %v9165_v45 = vmax.f32 %v8990_v37, 0.0  ;;  %v17433_v37 = vld [vmem:[#allocation55 + $0x170] sm:$0xff]   ;;  %v8988_v1 = vadd.f32 %v20761_v33, %v8614_v35  ;;  %v17443_v33 = vld [vmem:[#allocation55 + $0x200] sm:$0xff]  }
0x2636   : > { %v17436_v40 = vld [vmem:[#allocation55 + $0x1b0] sm:$0xff]   ;;  %v8947_v41 = vadd.f32 %v20759_v34, %v8606_v29  ;;  %v17459_v29 = vld [vmem:[#allocation55 + $0x220] sm:$0xff]  }
0x2637   : > { %v9436_v46 = vpack.c.bf16 %v9163_v58, %v9163_v58  ;;  %v9438_v23 = vpack.c.bf16 %v9165_v45, %v9165_v45  ;;  %15944 = vmatpush3.bf16.msra.mxu1 %v17415_v31  ;;  %15966 = vmatpush3.bf16.msra.mxu0 %v17416_v5  ;;  %v8634_v31 = vrot.slane %v20767_v43, %v20240_v60  ;;  %v17435_v5 = vld [vmem:[#allocation55 + $0x130] sm:$0xff]   ;;  %v17460_v35 = vld [vmem:[#allocation55 + $0x2a0] sm:$0xff]  }
0x2638   : > { %15945 = vmatprep.subr.bf16.mxu1 %v17417_v62  ;;  %15967 = vmatprep.subr.bf16.mxu0 %v17418_v42  ;;  %v17437_v62 = vld [vmem:[#allocation55 + $0x178] sm:$0xff]  }
0x2639   : > { %v20763_v49 = vpop.f32.mrb[152].mxu1  ;;  %v20765_v47 = vpop.f32.mrb[156].mxu0  ;;  %10333 = vmatprep.mubr.bf16.mxu1 %v9436_v46  ;;  %10373 = vmatprep.mubr.bf16.mxu0 %v9438_v23  ;;  %v17438_v42 = vld [vmem:[#allocation55 + $0x1f8] sm:$0xff]  }
0x263a   : > { %v9030_v13 = vpop.f32.mrb[153].mxu1  ;;  %v9071_v24 = vpop.f32.mrb[157].mxu0  ;;  %v17439_v46 = vld [vmem:[#allocation55 + $0x138] sm:$0xff]  }
0x263b   : > { %15946 = vmatpush3.bf16.msra.mxu1 %v17419_v25  ;;  %15968 = vmatpush3.bf16.msra.mxu0 %v17420_v19  ;;  %v9032_v48 = vpop.f32.mrb[154].mxu1  ;;  %v9073_v6 = vpop.f32.mrb[158].mxu0  ;;  %v9031_v58 = vadd.f32 %v9030_v13, %v8626_v39  ;;  %v9072_v45 = vadd.f32 %v9071_v24, %v8634_v31  ;;  %v17440_v23 = vld [vmem:[#allocation55 + $0x1b8] sm:$0xff]   ;;  %v9162_v25 = vmax.f32 %v8947_v41, 0.0  ;;  %v9164_v19 = vmax.f32 %v8988_v1, 0.0  ;;  %v17444_v13 = vld [vmem:[#allocation55 + $0x280] sm:$0xff]  }
0x263c   : > { %v9033_v52 = vpop.f32.mrb[155].mxu1  ;;  %v9074_v53 = vpop.f32.mrb[159].mxu0  ;;  %15947 = vmatprep.subr.bf16.mxu1 %v17421_v12  ;;  %15969 = vmatprep.subr.bf16.mxu0 %v17422_v20  ;;  %v17441_v12 = vld [vmem:[#allocation55 + $0x240] sm:$0xff]   ;;  %v17464_v39 = vld [vmem:[#allocation55 + $0x2a8] sm:$0xff]   ;;  %v17465_v31 = vld [vmem:[#allocation55 + $0x270] sm:$0xff]   ;;  %v8642_v41 = vrot.slane %v20767_v43, %v20251_v14  ;;  %v8650_v1 = vrot.slane %v20767_v43, %v20254_v15 }
0x263d   : > { %v17442_v20 = vld [vmem:[#allocation55 + $0x2c0] sm:$0xff]   ;;  %v9167_v48 = vmax.f32 %v9031_v58, 0.0  ;;  %v9169_v34 = vmax.f32 %v9072_v45, 0.0  ;;  %v9435_v6 = vpack.c.bf16 %v9162_v25, %v9162_v25  ;;  %v17446_v52 = vld [vmem:[#allocation55 + $0x2c8] sm:$0xff]   ;;  %v17468_v58 = vld [vmem:[#allocation55 + $0x2b0] sm:$0xff]  }
0x263e   : > { %v17469_v45 = vld [vmem:[#allocation55 + $0x278] sm:$0xff]  }
0x263f   : > { %15948 = vmatpush3.bf16.msra.mxu1 %v17423_v51  ;;  %15970 = vmatpush3.bf16.msra.mxu0 %v17424_v22  ;;  %v9437_v51 = vpack.c.bf16 %v9164_v19, %v9164_v19  ;;  %v9440_v24 = vpack.c.bf16 %v9167_v48, %v9167_v48  ;;  %v17445_v22 = vld [vmem:[#allocation55 + $0x248] sm:$0xff]   ;;  %v9442_v53 = vpack.c.bf16 %v9169_v34, %v9169_v34  ;;  %v17472_v48 = vld [vmem:[#allocation55 + $0x2b8] sm:$0xff]   ;;  %v17473_v34 = vld [vmem:[#allocation55 + $0x340] sm:$0xff]  }
0x2640   : > { %15949 = vmatprep.subr.bf16.mxu1 %v17425_v2  ;;  %15971 = vmatprep.subr.bf16.mxu0 %v17426_v61  ;;  %v17447_v2 = vld [vmem:[#allocation55 + $0x208] sm:$0xff]  }
0x2641   : > { %v20771_v10 = vpop.f32.mrb[156].mxu1  ;;  %v9151_v11 = vpop.f32.mrb[160].mxu0  ;;  %v17448_v61 = vld [vmem:[#allocation55 + $0x288] sm:$0xff]  }
0x2642   : > { %v20773_v16 = vadd.f32 %v9151_v11, %v8646_v32  ;;  %v20775_v21 = vpop.f32.mrb[157].mxu1  ;;  %v20777_v26 = vpop.f32.mrb[161].mxu0  ;;  %v17449_v32 = vld [vmem:[#allocation55 + $0x250] sm:$0xff]   ;;  %v17454_v11 = vld [vmem:[#allocation55 + $0x2d8] sm:$0xff]  }
0x2643   : > { %15950 = vmatpush3.bf16.msra.mxu1 %v17427_v3  ;;  %15972 = vmatpush3.bf16.msra.mxu0 %v17428_v63  ;;  %v9114_v50 = vpop.f32.mrb[158].mxu1  ;;  %v9155_v28 = vpop.f32.mrb[162].mxu0  ;;  %v17450_v3 = vld [vmem:[#allocation55 + $0x2d0] sm:$0xff]   ;;  %v9113_v25 = vadd.f32 %v20775_v21, %v8642_v41  ;;  %v9154_v19 = vadd.f32 %v20777_v26, %v8650_v1  ;;  %v17476_v21 = vld [vmem:[#allocation55 + $0x380] sm:$0xff]   ;;  %v17477_v26 = vld [vmem:[#allocation55 + $0x348] sm:$0xff]  }
0x2644   : > { %v9115_v36 = vpop.f32.mrb[159].mxu1  ;;  %v9156_v44 = vpop.f32.mrb[163].mxu0  ;;  %15951 = vmatprep.subr.bf16.mxu1 %v17429_v8  ;;  %15973 = vmatprep.subr.bf16.mxu0 %v17430_v9  ;;  %v17451_v63 = vld [vmem:[#allocation55 + $0x210] sm:$0xff]   ;;  %v17453_v9 = vld [vmem:[#allocation55 + $0x258] sm:$0xff]  }
0x2645   : > { %v17452_v8 = vld [vmem:[#allocation55 + $0x290] sm:$0xff]   ;;  %v17455_v50 = vld [vmem:[#allocation55 + $0x218] sm:$0xff]   ;;  %v17461_v36 = vld [vmem:[#allocation55 + $0x268] sm:$0xff]  }
0x2646   : > { %v17456_v28 = vld [vmem:[#allocation55 + $0x298] sm:$0xff]   ;;  %v17462_v44 = vld [vmem:[#allocation55 + $0x2e8] sm:$0xff]   ;;  %v17500_v1 = vld [vmem:[#allocation55 + $0x3b0] sm:$0xff]  }
0x2647   : > { %15952 = vmatpush3.bf16.msra.mxu1 %v17431_v54  ;;  %15974 = vmatpush3.bf16.msra.mxu0 %v17432_v55  ;;  %v17457_v54 = vld [vmem:[#allocation55 + $0x260] sm:$0xff]  }
0x2648   : > { %15953 = vmatprep.subr.bf16.mxu1 %v17433_v37  ;;  %15975 = vmatprep.subr.bf16.mxu0 %v17434_v38  ;;  %v17458_v55 = vld [vmem:[#allocation55 + $0x2e0] sm:$0xff]   ;;  %v17463_v37 = vld [vmem:[#allocation55 + $0x228] sm:$0xff]   ;;  %v8622_v38 = vrot.slane %v20767_v43, %v20229_v56 }
0x264b   : > { %15954 = vmatpush3.bf16.msra.mxu1 %v17435_v5  ;;  %15976 = vmatpush3.bf16.msra.mxu0 %v17436_v40  ;;  %v8630_v5 = vrot.slane %v20767_v43, %v20232_v57  ;;  %v17466_v40 = vld [vmem:[#allocation55 + $0x2f0] sm:$0xff]  }
0x264c   : > { %15955 = vmatprep.subr.bf16.mxu1 %v17437_v62  ;;  %15977 = vmatprep.subr.bf16.mxu0 %v17438_v42  ;;  %v17467_v62 = vld [vmem:[#allocation55 + $0x230] sm:$0xff]   ;;  %v9029_v42 = vadd.f32 %v20763_v49, %v8622_v38  ;;  %v8638_v38 = vrot.slane %v20767_v43, %v20276_v18  ;;  %v17504_v43 = vld [vmem:[#allocation55 + $0x3b8] sm:$0xff]  }
0x264e   : > { %v9111_v41 = vadd.f32 %v20771_v10, %v8638_v38 }
0x264f   : > { %15956 = vmatpush3.bf16.msra.mxu1 %v17439_v46  ;;  %15978 = vmatpush3.bf16.msra.mxu0 %v17440_v23  ;;  %v9070_v46 = vadd.f32 %v20765_v47, %v8630_v5  ;;  %v17470_v23 = vld [vmem:[#allocation55 + $0x2f8] sm:$0xff]   ;;  %v17475_v47 = vld [vmem:[#allocation55 + $0x300] sm:$0xff]   ;;  %v17498_v5 = vld [vmem:[#allocation55 + $0x3f0] sm:$0xff]  }
0x2650   : > { %15985 = vmatprep.subr.bf16.mxu1 %v17441_v12  ;;  %16007 = vmatprep.subr.bf16.mxu0 %v17442_v20  ;;  %v17471_v12 = vld [vmem:[#allocation55 + $0x238] sm:$0xff]   ;;  %v9166_v20 = vmax.f32 %v9029_v42, 0.0 }
0x2651   : > { %v9168_v49 = vmax.f32 %v9070_v46, 0.0  ;;  %v17502_v42 = vld [vmem:[#allocation55 + $0x3f8] sm:$0xff]   ;;  %v9172_v46 = vmax.f32 %v20773_v16, 0.0  ;;  %v15102_v16 = vld [vmem:[#allocation56] ss:$0 sm:$0xff] }
0x2652   : > { %10334 = vmatmul.mubr.bf16.vlgmr.msra.gmra.mrb[164].mxu1 %v9435_v6  ;;  %10374 = vmatmul.mubr.bf16.vlgmr.msra.gmra.mrb[168].mxu0 %v9437_v51  ;;  %v9171_v6 = vmax.f32 %v9113_v25, 0.0  ;;  %v9173_v51 = vmax.f32 %v9154_v19, 0.0 }
0x2653   : > { %15986 = vmatpush3.bf16.msra.mxu1 %v17443_v33  ;;  %10413 = vmatprep.mubr.bf16.mxu1 %v9440_v24  ;;  %v17474_v33 = vld [vmem:[#allocation55 + $0x3c0] sm:$0xff]   ;;  %v9441_v24 = vpack.c.bf16 %v9168_v49, %v9168_v49  ;;  %v9445_v10 = vpack.c.bf16 %v9172_v46, %v9172_v46 }
0x2654   : > { %16008 = vmatpush3.bf16.msra.mxu0 %v17444_v13  ;;  %10453 = vmatprep.mubr.bf16.mxu0 %v9442_v53  ;;  %v9439_v13 = vpack.c.bf16 %v9166_v20, %v9166_v20  ;;  %v9446_v53 = vpack.c.bf16 %v9173_v51, %v9173_v51 }
0x2655   : > { %15987 = vmatprep.subr.bf16.mxu1 %v17445_v22  ;;  %16009 = vmatprep.subr.bf16.mxu0 %v17446_v52  ;;  %v9444_v22 = vpack.c.bf16 %v9171_v6, %v9171_v6  ;;  %v17478_v52 = vld [vmem:[#allocation55 + $0x3c8] sm:$0xff]  }
0x2657   : > { %15988 = vmatpush3.bf16.msra.mxu1 %v17447_v2  ;;  %v17479_v2 = vld [vmem:[#allocation55 + $0x308] sm:$0xff]  }
0x2658   : > { %16010 = vmatpush3.bf16.msra.mxu0 %v17448_v61  ;;  %15989 = vmatprep.subr.bf16.mxu1 %v17449_v32  ;;  %v17480_v61 = vld [vmem:[#allocation55 + $0x388] sm:$0xff]   ;;  %v17481_v32 = vld [vmem:[#allocation55 + $0x350] sm:$0xff]  }
0x2659   : > { %16011 = vmatprep.subr.bf16.mxu0 %v17450_v3  ;;  %v17482_v3 = vld [vmem:[#allocation55 + $0x3d0] sm:$0xff]  }
0x265b   : > { %15990 = vmatpush3.bf16.msra.mxu1 %v17451_v63  ;;  %v17483_v63 = vld [vmem:[#allocation55 + $0x310] sm:$0xff]  }
0x265c   : > { %16012 = vmatpush3.bf16.msra.mxu0 %v17452_v8  ;;  %15991 = vmatprep.subr.bf16.mxu1 %v17453_v9  ;;  %v17484_v8 = vld [vmem:[#allocation55 + $0x390] sm:$0xff]   ;;  %v17485_v9 = vld [vmem:[#allocation55 + $0x358] sm:$0xff]  }
0x265d   : > { %16013 = vmatprep.subr.bf16.mxu0 %v17454_v11  ;;  %v17486_v11 = vld [vmem:[#allocation55 + $0x3d8] sm:$0xff]  }
0x265f   : > { %15992 = vmatpush3.bf16.msra.mxu1 %v17455_v50  ;;  %v17487_v50 = vld [vmem:[#allocation55 + $0x318] sm:$0xff]  }
0x2660   : > { %16014 = vmatpush3.bf16.msra.mxu0 %v17456_v28  ;;  %15993 = vmatprep.subr.bf16.mxu1 %v17457_v54  ;;  %v17488_v28 = vld [vmem:[#allocation55 + $0x398] sm:$0xff]   ;;  %v17489_v54 = vld [vmem:[#allocation55 + $0x360] sm:$0xff]  }
0x2661   : > { %16015 = vmatprep.subr.bf16.mxu0 %v17458_v55  ;;  %v17490_v55 = vld [vmem:[#allocation55 + $0x3e0] sm:$0xff]  }
0x2663   : > { %15994 = vmatpush3.bf16.msra.mxu1 %v17459_v29  ;;  %v17491_v29 = vld [vmem:[#allocation55 + $0x320] sm:$0xff]  }
0x2664   : > { %16016 = vmatpush3.bf16.msra.mxu0 %v17460_v35  ;;  %15995 = vmatprep.subr.bf16.mxu1 %v17461_v36  ;;  %v17492_v35 = vld [vmem:[#allocation55 + $0x3a0] sm:$0xff]   ;;  %v17493_v36 = vld [vmem:[#allocation55 + $0x368] sm:$0xff]  }
0x2665   : > { %16017 = vmatprep.subr.bf16.mxu0 %v17462_v44  ;;  %v17494_v44 = vld [vmem:[#allocation55 + $0x3e8] sm:$0xff]  }
0x2667   : > { %15996 = vmatpush3.bf16.msra.mxu1 %v17463_v37  ;;  %v17495_v37 = vld [vmem:[#allocation55 + $0x328] sm:$0xff]  }
0x2668   : > { %16018 = vmatpush3.bf16.msra.mxu0 %v17464_v39  ;;  %15997 = vmatprep.subr.bf16.mxu1 %v17465_v31  ;;  %v17496_v39 = vld [vmem:[#allocation55 + $0x3a8] sm:$0xff]   ;;  %v17497_v31 = vld [vmem:[#allocation55 + $0x370] sm:$0xff]  }
0x2669   : > { %16019 = vmatprep.subr.bf16.mxu0 %v17466_v40  ;;  %v17499_v40 = vld [vmem:[#allocation55 + $0x330] sm:$0xff]  }
0x266b   : > { %15998 = vmatpush3.bf16.msra.mxu1 %v17467_v62  ;;  %v17501_v62 = vld [vmem:[#allocation55 + $0x378] sm:$0xff]  }
0x266c   : > { %16020 = vmatpush3.bf16.msra.mxu0 %v17468_v58  ;;  %15999 = vmatprep.subr.bf16.mxu1 %v17469_v45  ;;  %v17503_v58 = vld [vmem:[#allocation55 + $0x338] sm:$0xff]   ;;  %v9170_v45 = vmax.f32 %v9111_v41, 0.0 }
0x266d   : > { %16021 = vmatprep.subr.bf16.mxu0 %v17470_v23 }
0x266e   : > { %v9443_v23 = vpack.c.bf16 %v9170_v45, %v9170_v45 }
0x266f   : > { %16000 = vmatpush3.bf16.msra.mxu1 %v17471_v12 }
0x2670   : > { %16022 = vmatpush3.bf16.msra.mxu0 %v17472_v48  ;;  %16029 = vmatprep.subr.bf16.mxu1 %v17473_v34 }
0x2671   : > { %16051 = vmatprep.subr.bf16.mxu0 %v17474_v33 }
0x2672   : > { %10414 = vmatmul.mubr.bf16.vlgmr.msra.gmra.mrb[168].mxu1 %v9439_v13 }
0x2673   : > { %10454 = vmatmul.mubr.bf16.vlgmr.msra.gmra.mrb[172].mxu0 %v9441_v24  ;;  %16030 = vmatpush3.bf16.msra.mxu1 %v17475_v47 }
0x2674   : > { %10493 = vmatprep.mubr.bf16.mxu1 %v9444_v22  ;;  %16052 = vmatpush3.bf16.msra.mxu0 %v17476_v21 }
0x2675   : > { %10533 = vmatprep.mubr.bf16.mxu0 %v9446_v53  ;;  %16031 = vmatprep.subr.bf16.mxu1 %v17477_v26 }
0x2676   : > { %16053 = vmatprep.subr.bf16.mxu0 %v17478_v52 }
0x2677   : > { %16032 = vmatpush3.bf16.msra.mxu1 %v17479_v2 }
0x2678   : > { %16054 = vmatpush3.bf16.msra.mxu0 %v17480_v61  ;;  %16033 = vmatprep.subr.bf16.mxu1 %v17481_v32 }
0x2679   : > { %16055 = vmatprep.subr.bf16.mxu0 %v17482_v3 }
0x267b   : > { %16034 = vmatpush3.bf16.msra.mxu1 %v17483_v63 }
0x267c   : > { %16056 = vmatpush3.bf16.msra.mxu0 %v17484_v8  ;;  %16035 = vmatprep.subr.bf16.mxu1 %v17485_v9 }
0x267d   : > { %16057 = vmatprep.subr.bf16.mxu0 %v17486_v11 }
0x267f   : > { %16036 = vmatpush3.bf16.msra.mxu1 %v17487_v50 }
0x2680   : > { %16058 = vmatpush3.bf16.msra.mxu0 %v17488_v28  ;;  %16037 = vmatprep.subr.bf16.mxu1 %v17489_v54 }
0x2681   : > { %16059 = vmatprep.subr.bf16.mxu0 %v17490_v55 }
0x2683   : > { %16038 = vmatpush3.bf16.msra.mxu1 %v17491_v29 }
0x2684   : > { %16060 = vmatpush3.bf16.msra.mxu0 %v17492_v35  ;;  %16039 = vmatprep.subr.bf16.mxu1 %v17493_v36 }
0x2685   : > { %16061 = vmatprep.subr.bf16.mxu0 %v17494_v44 }
0x2687   : > { %16040 = vmatpush3.bf16.msra.mxu1 %v17495_v37 }
0x2688   : > { %16062 = vmatpush3.bf16.msra.mxu0 %v17496_v39  ;;  %16041 = vmatprep.subr.bf16.mxu1 %v17497_v31 }
0x2689   : > { %16063 = vmatprep.subr.bf16.mxu0 %v17498_v5 }
0x268b   : > { %16042 = vmatpush3.bf16.msra.mxu1 %v17499_v40 }
0x268c   : > { %16064 = vmatpush3.bf16.msra.mxu0 %v17500_v1  ;;  %16043 = vmatprep.subr.bf16.mxu1 %v17501_v62 }
0x268d   : > { %16065 = vmatprep.subr.bf16.mxu0 %v17502_v42 }
0x268f   : > { %16044 = vmatpush3.bf16.msra.mxu1 %v17503_v58 }
0x2690   : > { %16066 = vmatpush3.bf16.msra.mxu0 %v17504_v43  ;;  %16563 = vmatprep.subr.bf16.mxu1 %v19111_v0 }
0x2691   : > { %16571 = vmatprep.subr.bf16.mxu0 %v19111_v0 }
0x2692   : > { %10494 = vmatmul.mubr.bf16.vlgmr.msra.gmra.mrb[172].mxu1 %v9443_v23 }
0x2693   : > { %10534 = vmatmul.mubr.bf16.vlgmr.msra.gmra.mrb[176].mxu0 %v9445_v10  ;;  %16567 = vmatprep.mubr.msk.bf16.mxu1 %vm19112_vm0, %v19111_v0 }
0x2694   : > { %16573 = vmatprep.mubr.msk.bf16.mxu0 %vm19112_vm0, %v19111_v0 }
0x2705   : > { %v15913_v25 = vpop.f32.mrb[160].mxu1  ;;  %v15935_v19 = vpop.f32.mrb[164].mxu0 }
0x2706   : > { %v15914_v12 = vpop.f32.mrb[161].mxu1  ;;  %v15936_v20 = vpop.f32.mrb[165].mxu0 }
0x2707   : > { %v15915_v48 = vadd.f32 %v15914_v12, %v15913_v25  ;;  %v15937_v34 = vadd.f32 %v15936_v20, %v15935_v19  ;;  %v15916_v49 = vpop.f32.mrb[162].mxu1  ;;  %v15938_v33 = vpop.f32.mrb[166].mxu0 }
0x2708   : > { %v15917_v6 = vpop.f32.mrb[163].mxu1  ;;  %v15939_v51 = vpop.f32.mrb[167].mxu0 }
0x2709   : > { %v10256_v47 = vadd.f32 %v15915_v48, %v15102_v16  ;;  %v17505_v48 = vld [vmem:[#allocation31 + $0x10] sm:$0xff]  }
0x270a   : > { %16564 = vmatpush3.bf16.msra.mxu1 %v17505_v48  ;;  %v15231_v51 = vld [vmem:[#allocation58] ss:$0 sm:$0xff] }
0x270b   : > { %v10296_v13 = vadd.f32 %v15937_v34, %v10256_v47  ;;  %v17506_v34 = vld [vmem:[#allocation31 + $0x18] sm:$0xff]   ;;  %16565 = vmatprep.subr.bf16.mxu1 %v19111_v0 }
0x270e   : > { %16566 = vmatpush3.bf16.msra.mxu1 %v17506_v34 }
0x270f   : > { %16577 = vmatprep.subr.bf16.mxu1 %v19111_v0 }
0x2725   : > { %v15957_v21 = vpop.f32.mrb[164].mxu1  ;;  %v15979_v24 = vpop.f32.mrb[168].mxu0 }
0x2726   : > { %v15958_v26 = vpop.f32.mrb[165].mxu1  ;;  %v15980_v22 = vpop.f32.mrb[169].mxu0 }
0x2727   : > { %v15959_v52 = vadd.f32 %v15958_v26, %v15957_v21  ;;  %v15981_v53 = vadd.f32 %v15980_v22, %v15979_v24  ;;  %v15960_v2 = vpop.f32.mrb[166].mxu1  ;;  %v15982_v61 = vpop.f32.mrb[170].mxu0  ;;  %v15233_v22 = vld [vmem:[#allocation32 + $0x1] ss:$0 sm:$0xff] }
0x2728   : > { %v15961_v32 = vpop.f32.mrb[167].mxu1  ;;  %v15983_v3 = vpop.f32.mrb[171].mxu0 }
0x2729   : > { %v10336_v63 = vadd.f32 %v15959_v52, %v10296_v13  ;;  %v15232_v13 = vld [vmem:[#allocation59] ss:$0 sm:$0xff] }
0x272b   : > { %v10376_v8 = vadd.f32 %v15981_v53, %v10336_v63 }
0x2745   : > { %v16001_v9 = vpop.f32.mrb[168].mxu1 }
0x2746   : > { %v16023_v11 = vpop.f32.mrb[172].mxu0  ;;  %v16002_v50 = vpop.f32.mrb[169].mxu1 }
0x2747   : > { %v16003_v28 = vadd.f32 %v16002_v50, %v16001_v9  ;;  %v16024_v54 = vpop.f32.mrb[173].mxu0  ;;  %v16004_v55 = vpop.f32.mrb[170].mxu1 }
0x2748   : > { %v16025_v29 = vadd.f32 %v16024_v54, %v16023_v11  ;;  %v16026_v35 = vpop.f32.mrb[174].mxu0  ;;  %v16005_v36 = vpop.f32.mrb[171].mxu1 }
0x2749   : > { %v10416_v44 = vadd.f32 %v16003_v28, %v10376_v8  ;;  %v16027_v37 = vpop.f32.mrb[175].mxu0 }
0x274b   : > { %v10456_v38 = vadd.f32 %v16025_v29, %v10416_v44 }
0x2765   : > { %v16045_v39 = vpop.f32.mrb[172].mxu1 }
0x2766   : > { %v16067_v31 = vpop.f32.mrb[176].mxu0  ;;  %v16046_v5 = vpop.f32.mrb[173].mxu1 }
0x2767   : > { %v16047_v40 = vadd.f32 %v16046_v5, %v16045_v39  ;;  %v16068_v41 = vpop.f32.mrb[177].mxu0  ;;  %v16048_v1 = vpop.f32.mrb[174].mxu1 }
0x2768   : > { %v16069_v62 = vadd.f32 %v16068_v41, %v16067_v31  ;;  %v16070_v42 = vpop.f32.mrb[178].mxu0  ;;  %v16049_v58 = vpop.f32.mrb[175].mxu1 }
0x2769   : > { %v10496_v45 = vadd.f32 %v16047_v40, %v10456_v38  ;;  %v16071_v43 = vpop.f32.mrb[179].mxu0 }
0x276b   : > { %v10536_v46 = vadd.f32 %v16069_v62, %v10496_v45 }
0x276d   : > { %v10541_v23 = vadd.f32 %v10536_v46, %v20717_v30 }
0x276f   : > { %v10544_v10 = vsel %vm1913_vm1, %v10541_v23, 0.0 }
0x2770   : > { %10545 = vadd.xlane.f32.xlu0 %v10544_v10 }
0x27fd   : > { %v10546_v25 = vpop.xlane.xlu0 %10545 }
0x27fe   : > { %v10547_v19 = vmul.f32 0.03125, %v10546_v25 }
0x2800   : > { %v10548_v16 = vsub.f32 %v10541_v23, %v10547_v19 }
0x2802   : > { %v10549_v12 = vmul.f32 %v10548_v16, %v10548_v16 }
0x2804   : > { %v10550_v20 = vsel %vm1913_vm1, %v10549_v12, 0.0 }
0x2805   : > { %10551 = vadd.xlane.f32.xlu1 %v10550_v20 }
0x2892   : > { %v10552_v49 = vpop.xlane.xlu1 %10551 }
0x2893   : > { %v10553_v30 = vmul.f32 0.03125, %v10552_v49 }
0x2895   : > { %v10554_v33 = vadd.f32 1e-05, %v10553_v30 }
0x2897   : > { %17723 = vrsqrt.f32 %v10554_v33 }
0x28a1   : > { %v17724_v6 = vpop.eup %17723 }
0x28a2   : > { %v10556_v47 = vmul.f32 %v17724_v6, %v10548_v16 }
0x28a4   : > { %v10563_v21 = vmul.f32 %v15231_v51, %v10556_v47 }
0x28a6   : > { %v20816_v24 = vadd.f32 %v15232_v13, %v10563_v21 }
0x28a8   : > { %v10578_v26 = vpack.c.bf16 %v20816_v24, %v20816_v24 }
0x28aa   : > { %16568 = vmatmul.mubr.msk.bf16.vlgmr.msra.gmra.mrb[176].mxu1 %vm1913_vm1, %v10578_v26 }
0x28ab   : > { %16579 = vmatprep.mubr.msk.bf16.mxu1 %vm19112_vm0, %v19111_v0 }
0x297d   : > { %v10634_v52 = vpop.f32.mrb[176].mxu1 }
0x297e   : > { %v10635_v53 = vadd.f32 %v15233_v22, %v10634_v52  ;;  %v16569_v2 = vpop.f32.mrb[177].mxu1 }
0x297f   : > { %v10637_v61 = vpop.f32.mrb[178].mxu1 }
0x2980   : > { %v20823_v32 = vpack.c.bf16 %v10635_v53, %v10635_v53  ;;  %v16570_v3 = vpop.f32.mrb[179].mxu1 }
0x2982   : > { %10754 = vrot.lane.b32.xlu1 %v20823_v32, %s19116_s0  ;;  %10642 = vrot.lane.b32.xlu0 %v20823_v32, %s19114_s14 }
0x2986   : > { %10752 = vrot.lane.b32.xlu1 %v20823_v32, %s19113_s12  ;;  %10866 = vrot.lane.b32.xlu0 %v20823_v32, %s21241_s8  ;;  %s21383_s8 = smov 64  }
0x298a   : > { %10864 = vrot.lane.b32.xlu1 %v20823_v32, %s21379_s1  ;;  %10978 = vrot.lane.b32.xlu0 %v20823_v32, %s21242_s11  ;;  %s21384_s11 = smov 56  }
0x298e   : > { %10976 = vrot.lane.b32.xlu1 %v20823_v32, %s21380_s2 }
0x29f4   : > { %v10643_v63 = vpop.permute.xlu0 %10642  ;;  %v10755_v9 = vpop.permute.xlu1 %10754 }
0x29f5   : > { %v10648_v8 = vsel %vm1961_vm2, %v10643_v63, 0  ;;  %v10760_v11 = vsel %vm1961_vm2, %v10755_v9, 0 }
0x29f6   : > { %16572 = vmatpush3.bf16.xpose.msra.mxu0 %v10648_v8 }
0x29f7   : > { %16583 = vmatprep.subr.bf16.mxu0 %v19111_v0 }
0x29f8   : > { %v10867_v50 = vpop.permute.xlu0 %10866  ;;  %v10753_v28 = vpop.permute.xlu1 %10752 }
0x29f9   : > { %v10872_v54 = vsel %vm1961_vm2, %v10867_v50, 0 }
0x29fc   : > { %v10979_v55 = vpop.permute.xlu0 %10978  ;;  %v10865_v29 = vpop.permute.xlu1 %10864 }
0x29fd   : > { %16574 = vmatmul.mubr.msk.bf16.vlgmr.msra.gmra.mrb[180].mxu0 %vm1961_vm2, %v20823_v32  ;;  %v10984_v35 = vsel %vm1961_vm2, %v10979_v55, 0 }
0x29fe   : > { %16584 = vmatpush3.bf16.xpose.msra.mxu0 %v10760_v11  ;;  %16585 = vmatprep.mubr.msk.bf16.mxu0 %vm19112_vm0, %v19111_v0 }
0x29ff   : > { %16595 = vmatprep.subr.bf16.mxu0 %v19111_v0 }
0x2a00   : > { %v10977_v36 = vpop.permute.xlu1 %10976 }
0x2a05   : > { %16586 = vmatmul.mubr.msk.bf16.vlgmr.msra.gmra.mrb[184].mxu0 %vm1961_vm2, %v10753_v28 }
0x2a06   : > { %16596 = vmatpush3.bf16.xpose.msra.mxu0 %v10872_v54  ;;  %16597 = vmatprep.mubr.msk.bf16.mxu0 %vm19112_vm0, %v19111_v0 }
0x2a07   : > { %16607 = vmatprep.subr.bf16.mxu0 %v19111_v0 }
0x2a0d   : > { %16598 = vmatmul.mubr.msk.bf16.vlgmr.msra.gmra.mrb[188].mxu0 %vm1961_vm2, %v10865_v29 }
0x2a0e   : > { %16608 = vmatpush3.bf16.xpose.msra.mxu0 %v10984_v35  ;;  %16609 = vmatprep.mubr.msk.bf16.mxu0 %vm19112_vm0, %v19111_v0 }
0x2a0f   : > { %16619 = vmatprep.subr.bf16.mxu0 %v19111_v0 }
0x2a15   : > { %16610 = vmatmul.mubr.msk.bf16.vlgmr.msra.gmra.mrb[192].mxu0 %vm1961_vm2, %v10977_v36 }
0x2a16   : > { %16623 = vmatprep.mubr.msk.bf16.mxu0 %vm19112_vm0, %v19111_v0 }
0x2ad0   : > { %v10684_v44 = vpop.f32.mrb[180].mxu0 }
0x2ad1   : > { %v10690_v37 = vmul.f32 0.35355338, %v10684_v44  ;;  %v16575_v38 = vpop.f32.mrb[181].mxu0 }
0x2ad2   : > { %v10687_v39 = vpop.f32.mrb[182].mxu0 }
0x2ad3   : > { %v10691_v31 = vadd.f32 %v10690_v37, %v20560_v4  ;;  %v16576_v5 = vpop.f32.mrb[183].mxu0 }
0x2ad5   : > { %v10692_v40 = vsel %vm1961_vm2, %v10691_v31, -inf }
0x2ad6   : > { %10693 = vmax.xlane.f32.xlu0 %v10692_v40 }
0x2ad8   : > { %v10796_v41 = vpop.f32.mrb[184].mxu0 }
0x2ad9   : > { %v10802_v1 = vmul.f32 0.35355338, %v10796_v41  ;;  %v16587_v62 = vpop.f32.mrb[185].mxu0 }
0x2ada   : > { %v10799_v42 = vpop.f32.mrb[186].mxu0 }
0x2adb   : > { %v10803_v58 = vadd.f32 %v10802_v1, %v20560_v4  ;;  %v16588_v45 = vpop.f32.mrb[187].mxu0 }
0x2add   : > { %v10804_v43 = vsel %vm1961_vm2, %v10803_v58, -inf }
0x2ade   : > { %10805 = vmax.xlane.f32.xlu1 %v10804_v43 }
0x2ae0   : > { %v10908_v46 = vpop.f32.mrb[188].mxu0 }
0x2ae1   : > { %v10914_v23 = vmul.f32 0.35355338, %v10908_v46  ;;  %v16599_v10 = vpop.f32.mrb[189].mxu0 }
0x2ae2   : > { %v10911_v25 = vpop.f32.mrb[190].mxu0 }
0x2ae3   : > { %v10915_v19 = vadd.f32 %v10914_v23, %v20560_v4  ;;  %v16600_v16 = vpop.f32.mrb[191].mxu0 }
0x2ae5   : > { %v10916_v12 = vsel %vm1961_vm2, %v10915_v19, -inf }
0x2ae6   : > { %10917 = vmax.xlane.f32.xlu0 %v10916_v12 }
0x2ae8   : > { %v11020_v20 = vpop.f32.mrb[192].mxu0 }
0x2ae9   : > { %v11026_v48 = vmul.f32 0.35355338, %v11020_v20  ;;  %v16611_v34 = vpop.f32.mrb[193].mxu0 }
0x2aea   : > { %v11023_v49 = vpop.f32.mrb[194].mxu0 }
0x2aeb   : > { %v11027_v30 = vadd.f32 %v11026_v48, %v20560_v4  ;;  %v16612_v33 = vpop.f32.mrb[195].mxu0 }
0x2aed   : > { %v11028_v6 = vsel %vm1961_vm2, %v11027_v30, -inf }
0x2aee   : > { %11029 = vmax.xlane.f32.xlu0 %v11028_v6 }
0x2b63   : > { %v10694_v51 = vpop.xlane.xlu0 %10693 }
0x2b64   : > { %v10695_v47 = vsub.f32 %v10691_v31, %v10694_v51  ;;  %v17507_v51 = vld [vmem:[#allocation34 + $0x10] sm:$0xff]  }
0x2b65   : > { %16620 = vmatpush3.bf16.msra.mxu0 %v17507_v51 }
0x2b66   : > { %v10696_v13 = vmul.f32 1.442695, %v10695_v47  ;;  %16621 = vmatprep.subr.bf16.mxu0 %v19111_v0  ;;  %v17508_v47 = vld [vmem:[#allocation34 + $0x18] sm:$0xff]  }
0x2b68   : > { %17725 = vpow2.f32 %v10696_v13 }
0x2b69   : > { %16622 = vmatpush3.bf16.msra.mxu0 %v17508_v47 }
0x2b6a   : > { %16635 = vmatprep.subr.bf16.mxu0 %v19111_v0 }
0x2b6b   : > { %v10806_v21 = vpop.xlane.xlu1 %10805 }
0x2b6c   : > { %v10807_v26 = vsub.f32 %v10803_v58, %v10806_v21 }
0x2b6e   : > { %v10808_v22 = vmul.f32 1.442695, %v10807_v26 }
0x2b70   : > { %17727 = vpow2.f32 %v10808_v22 }
0x2b72   : > { %v17726_v52 = vpop.eup %17725 }
0x2b73   : > { %v10698_v53 = vsel %vm1961_vm2, %v17726_v52, 0.0  ;;  %v10918_v2 = vpop.xlane.xlu0 %10917 }
0x2b74   : > { %10699 = vadd.xlane.f32.xlu1 %v10698_v53  ;;  %v10919_v50 = vsub.f32 %v10915_v19, %v10918_v2 }
0x2b76   : > { %v10920_v28 = vmul.f32 1.442695, %v10919_v50  ;;  %v17509_v50 = vld [vmem:[#allocation43 + $0x10] sm:$0xff]  }
0x2b7a   : > { %v17728_v61 = vpop.eup %17727 }
0x2b7b   : > { %v11030_v3 = vpop.xlane.xlu0 %11029  ;;  %v10810_v4 = vsel %vm1961_vm2, %v17728_v61, 0.0 }
0x2b7c   : > { %v11031_v63 = vsub.f32 %v11027_v30, %v11030_v3  ;;  %10811 = vadd.xlane.f32.xlu0 %v10810_v4 }
0x2b7e   : > { %v11032_v8 = vmul.f32 1.442695, %v11031_v63 }
0x2b80   : > { %17729 = vpow2.f32 %v11032_v8 }
0x2b81   : > { %17731 = vpow2.f32 %v10920_v28 }
0x2b85   : > { %10704 = vrot.lane.b32.xlu1 %v20823_v32, %s21383_s8  ;;  %s21386_s8 = smov 80  }
0x2b8a   : > { %v17730_v9 = vpop.eup %17729 }
0x2b8b   : > { %v11034_v11 = vsel %vm1961_vm2, %v17730_v9, 0.0  ;;  %v17732_v54 = vpop.eup %17731 }
0x2b8c   : > { %11035 = vadd.xlane.f32.xlu0 %v11034_v11  ;;  %v10922_v55 = vsel %vm1961_vm2, %v17732_v54, 0.0 }
0x2ba2   : > { %10816 = vrot.lane.b32.xlu0 %v20823_v32, %s21384_s11  ;;  %s1884_s11 = scalar_lea.vmem [#allocation67], %s19999_s4 }
0x2ba9   : > { %10923 = vadd.xlane.f32.xlu1 %v10922_v55  ;;  %v15245_v55 = vld [vmem:[#allocation35 + $0x1] ss:$0 sm:$0xff] }
0x2bba   : > { %10928 = vrot.lane.b32.xlu1 %v20823_v32, %s21377_s10  ;;  %s14036_s10 = sshll.u32 %s1884_s11, 4  ;;  %s21110_s10 = int_to_ptr.vmem [resolvable:$true] %s14036_s10 }
0x2bbe   : > { %11040 = vrot.lane.b32.xlu1 %v20823_v32, %s21376_s6 }
0x2c01   : > { %v10700_v29 = vpop.xlane.xlu1 %10699 }
0x2c02   : > { %17733 = vrcp.f32 %v10700_v29 }
0x2c05   : > { %v10705_v35 = vpop.permute.xlu1 %10704 }
0x2c06   : > { %v10710_v36 = vsel %vm2026_vm3, %v10705_v35, 0 }
0x2c07   : > { %16578 = vmatpush3.bf16.msra.mxu1 %v10710_v36 }
0x2c08   : > { %16589 = vmatprep.subr.bf16.mxu1 %v19111_v0 }
0x2c09   : > { %v10812_v37 = vpop.xlane.xlu0 %10811 }
0x2c0a   : > { %17735 = vrcp.f32 %v10812_v37 }
0x2c0c   : > { %v17734_v44 = vpop.eup %17733 }
0x2c0d   : > { %v10702_v38 = vmul.f32 %v17734_v44, %v17726_v52 }
0x2c0f   : > { %v10703_v39 = vpack.c.bf16 %v10702_v38, %v10702_v38 }
0x2c11   : > { %16580 = vmatmul.mubr.msk.bf16.vlgmr.msra.gmra.mrb[180].mxu1 %vm1961_vm2, %v10703_v39 }
0x2c12   : > { %16591 = vmatprep.mubr.msk.bf16.mxu1 %vm19112_vm0, %v19111_v0 }
0x2c14   : > { %v17736_v31 = vpop.eup %17735 }
0x2c15   : > { %v10814_v5 = vmul.f32 %v17736_v31, %v17728_v61 }
0x2c17   : > { %v10815_v1 = vpack.c.bf16 %v10814_v5, %v10814_v5 }
0x2c19   : > { %v11036_v32 = vpop.xlane.xlu0 %11035 }
0x2c1d   : > { %v10817_v40 = vpop.permute.xlu0 %10816 }
0x2c1e   : > { %v10822_v41 = vsel %vm2026_vm3, %v10817_v40, 0 }
0x2c1f   : > { %16590 = vmatpush3.bf16.msra.mxu1 %v10822_v41 }
0x2c20   : > { %16601 = vmatprep.subr.bf16.mxu1 %v19111_v0 }
0x2c22   : > { %16592 = vmatmul.mubr.msk.bf16.vlgmr.msra.gmra.mrb[184].mxu1 %vm1961_vm2, %v10815_v1 }
0x2c23   : > { %16603 = vmatprep.mubr.msk.bf16.mxu1 %vm19112_vm0, %v19111_v0 }
0x2c36   : > { %v10924_v62 = vpop.xlane.xlu1 %10923 }
0x2c37   : > { %17737 = vrcp.f32 %v10924_v62 }
0x2c38   : > { %17739 = vrcp.f32 %v11036_v32 }
0x2c3a   : > { %v10929_v42 = vpop.permute.xlu1 %10928 }
0x2c3b   : > { %v10934_v58 = vsel %vm2026_vm3, %v10929_v42, 0 }
0x2c3c   : > { %16602 = vmatpush3.bf16.msra.mxu1 %v10934_v58  ;;  %v15255_v58 = vld [vmem:[#allocation44 + $0x1] ss:$0 sm:$0xff] }
0x2c3d   : > { %16613 = vmatprep.subr.bf16.mxu1 %v19111_v0 }
0x2c3e   : > { %v11041_v46 = vpop.permute.xlu1 %11040 }
0x2c3f   : > { %v11046_v25 = vsel %vm2026_vm3, %v11041_v46, 0  ;;  %v17512_v46 = vld [vmem:[#allocation40 + $0x18] sm:$0xff]  }
0x2c41   : > { %v17738_v45 = vpop.eup %17737 }
0x2c42   : > { %v10926_v43 = vmul.f32 %v17738_v45, %v17732_v54  ;;  %v17740_v10 = vpop.eup %17739  ;;  %v17510_v54 = vld [vmem:[#allocation43 + $0x18] sm:$0xff]  }
0x2c43   : > { %v11038_v19 = vmul.f32 %v17740_v10, %v17730_v9 }
0x2c44   : > { %v10927_v23 = vpack.c.bf16 %v10926_v43, %v10926_v43 }
0x2c45   : > { %v11039_v16 = vpack.c.bf16 %v11038_v19, %v11038_v19 }
0x2c46   : > { %16604 = vmatmul.mubr.msk.bf16.vlgmr.msra.gmra.mrb[188].mxu1 %vm1961_vm2, %v10927_v23 }
0x2c47   : > { %16614 = vmatpush3.bf16.msra.mxu1 %v11046_v25  ;;  %16615 = vmatprep.mubr.msk.bf16.mxu1 %vm19112_vm0, %v19111_v0 }
0x2c48   : > { %16627 = vmatprep.subr.bf16.mxu1 %v19111_v0 }
0x2c4e   : > { %16616 = vmatmul.mubr.msk.bf16.vlgmr.msra.gmra.mrb[192].mxu1 %vm1961_vm2, %v11039_v16  ;;  %v15249_v16 = vld [vmem:[#allocation37 + $0x1] ss:$0 sm:$0xff] }
0x2c4f   : > { %16631 = vmatprep.mubr.msk.bf16.mxu1 %vm19112_vm0, %v19111_v0 }
0x2ce4   : > { %v10746_v12 = vpop.f32.mrb[180].mxu1 }
0x2ce5   : > { %v16581_v20 = vpop.f32.mrb[181].mxu1 }
0x2ce6   : > { %v10749_v48 = vpop.f32.mrb[182].mxu1  ;;  %v15250_v20 = vld [vmem:[#allocation38 + $0x1] ss:$0 sm:$0xff] }
0x2ce7   : > { %v16582_v34 = vpop.f32.mrb[183].mxu1 }
0x2cf5   : > { %v10858_v49 = vpop.f32.mrb[184].mxu1 }
0x2cf6   : > { %11089 = vrot.lane.b32.xlu0 %v10858_v49, %s19124_s5  ;;  %v16593_v30 = vpop.f32.mrb[185].mxu1 }
0x2cf7   : > { %v10861_v33 = vpop.f32.mrb[186].mxu1 }
0x2cf8   : > { %v16594_v6 = vpop.f32.mrb[187].mxu1  ;;  %v15251_v33 = vld [vmem:[#allocation41 + $0x1] ss:$0 sm:$0xff] }
0x2d19   : > { %v10970_v13 = vpop.f32.mrb[188].mxu1 }
0x2d1a   : > { %11093 = vrot.lane.b32.xlu1 %v10970_v13, %s21381_s28  ;;  %v16605_v21 = vpop.f32.mrb[189].mxu1 }
0x2d1b   : > { %v10973_v26 = vpop.f32.mrb[190].mxu1 }
0x2d1c   : > { %v16606_v22 = vpop.f32.mrb[191].mxu1 }
0x2d21   : > { %v11082_v52 = vpop.f32.mrb[192].mxu1 }
0x2d22   : > { %11097 = vrot.lane.b32.xlu0 %v11082_v52, %s21382_s7  ;;  %v16617_v53 = vpop.f32.mrb[193].mxu1 }
0x2d23   : > { %v11085_v2 = vpop.f32.mrb[194].mxu1 }
0x2d24   : > { %v16618_v61 = vpop.f32.mrb[195].mxu1 }
0x2d68   : > { %v11090_v3 = vpop.permute.xlu0 %11089 }
0x2d69   : > { %v11100_v63 = vsel %vm1961_vm2, %v10746_v12, %v11090_v3 }
0x2d8c   : > { %v11094_v4 = vpop.permute.xlu1 %11093 }
0x2d8d   : > { %v11101_v8 = vsel %vm2416_vm4, %v11100_v63, %v11094_v4 }
0x2d94   : > { %v11098_v9 = vpop.permute.xlu0 %11097 }
0x2d95   : > { %v11102_v11 = vsel %vm2418_vm5, %v11101_v8, %v11098_v9 }
0x2d96   : > { %v11110_v28 = vpack.c.bf16 %v11102_v11, %v11102_v11 }
0x2d98   : > { %16624 = vmatmul.mubr.msk.bf16.vlgmr.msra.gmra.mrb[196].mxu0 %vm1913_vm1, %v11110_v28 }
0x2d99   : > { %16636 = vmatpush3.bf16.msra.mxu0 %v17509_v50  ;;  %16639 = vmatprep.mubr.msk.bf16.mxu0 %vm19112_vm0, %v19111_v0 }
0x2d9a   : > { %16637 = vmatprep.subr.bf16.mxu0 %v19111_v0 }
0x2d9d   : > { %16638 = vmatpush3.bf16.msra.mxu0 %v17510_v54 }
0x2d9e   : > { %16649 = vmatprep.subr.bf16.mxu0 %v19111_v0 }
0x2da0   : > { %16640 = vmatmul.mubr.msk.bf16.vlgmr.msra.gmra.mrb[200].mxu0 %vm1913_vm1, %v20626_v17 }
0x2da1   : > { %16651 = vmatprep.mubr.msk.bf16.mxu0 %vm19112_vm0, %v19111_v0 }
0x2e6b   : > { %v11166_v29 = vpop.f32.mrb[196].mxu0 }
0x2e6c   : > { %v11167_v35 = vadd.f32 %v15245_v55, %v11166_v29  ;;  %v16625_v36 = vpop.f32.mrb[197].mxu0 }
0x2e6d   : > { %v11169_v44 = vpop.f32.mrb[198].mxu0 }
0x2e6e   : > { %v11172_v37 = vadd.f32 %v11167_v35, %v20816_v24  ;;  %v16626_v38 = vpop.f32.mrb[199].mxu0  ;;  %v17511_v24 = vld [vmem:[#allocation40 + $0x10] sm:$0xff]  }
0x2e6f   : > { %16628 = vmatpush3.bf16.msra.mxu1 %v17511_v24 }
0x2e70   : > { %v11177_v39 = vsel %vm1913_vm1, %v11172_v37, 0.0  ;;  %16629 = vmatprep.subr.bf16.mxu1 %v19111_v0 }
0x2e71   : > { %11178 = vadd.xlane.f32.xlu1 %v11177_v39 }
0x2e73   : > { %v11332_v31 = vpop.f32.mrb[200].mxu0  ;;  %16630 = vmatpush3.bf16.msra.mxu1 %v17512_v46 }
0x2e74   : > { %v16641_v32 = vpop.f32.mrb[201].mxu0  ;;  %v11333_v45 = vadd.f32 %v15255_v58, %v11332_v31  ;;  %16643 = vmatprep.subr.bf16.mxu1 %v19111_v0 }
0x2e75   : > { %v11335_v5 = vpop.f32.mrb[202].mxu0 }
0x2e76   : > { %v16642_v40 = vpop.f32.mrb[203].mxu0  ;;  %v20920_v43 = vpack.c.bf16 %v11333_v45, %v11333_v45 }
0x2e78   : > { %v11344_v30 = vsel %vm1961_vm2, %v20920_v43, 0 }
0x2efe   : > { %v11179_v41 = vpop.xlane.xlu1 %11178 }
0x2eff   : > { %v11180_v17 = vmul.f32 0.03125, %v11179_v41 }
0x2f01   : > { %v11181_v1 = vsub.f32 %v11172_v37, %v11180_v17 }
0x2f03   : > { %v11182_v62 = vmul.f32 %v11181_v1, %v11181_v1 }
0x2f05   : > { %v11183_v42 = vsel %vm1913_vm1, %v11182_v62, 0.0 }
0x2f06   : > { %11184 = vadd.xlane.f32.xlu0 %v11183_v42 }
0x2f1c   : > { %11451 = vrot.lane.b32.xlu0 %v20920_v43, %s19113_s12 }
0x2f93   : > { %v11185_v23 = vpop.xlane.xlu0 %11184 }
0x2f94   : > { %v11186_v10 = vmul.f32 0.03125, %v11185_v23 }
0x2f96   : > { %v11187_v25 = vadd.f32 1e-05, %v11186_v10 }
0x2f97   : > { %v11452_v21 = vpop.permute.xlu0 %11451 }
0x2f98   : > { %17741 = vrsqrt.f32 %v11187_v25  ;;  %v11457_v52 = vsel %vm1961_vm2, %v11452_v21, 0 }
0x2fa2   : > { %v17742_v19 = vpop.eup %17741 }
0x2fa3   : > { %v11189_v12 = vmul.f32 %v17742_v19, %v11181_v1 }
0x2fa5   : > { %v11196_v48 = vmul.f32 %v15249_v16, %v11189_v12 }
0x2fa7   : > { %v20926_v34 = vadd.f32 %v15250_v20, %v11196_v48 }
0x2fa9   : > { %v11211_v49 = vpack.c.bf16 %v20926_v34, %v20926_v34 }
0x2fab   : > { %16632 = vmatmul.mubr.msk.bf16.vlgmr.msra.gmra.mrb[196].mxu1 %vm1913_vm1, %v11211_v49 }
0x2fac   : > { %16644 = vmatpush3.bf16.xpose.msra.mxu1 %v11344_v30  ;;  %16645 = vmatprep.mubr.msk.bf16.mxu1 %vm19112_vm0, %v19111_v0 }
0x2fad   : > { %16655 = vmatprep.subr.bf16.mxu1 %v19111_v0 }
0x307e   : > { %v11267_v6 = vpop.f32.mrb[196].mxu1 }
0x307f   : > { %v11268_v51 = vadd.f32 %v15251_v33, %v11267_v6  ;;  %v16633_v47 = vpop.f32.mrb[197].mxu1 }
0x3080   : > { %v11270_v13 = vpop.f32.mrb[198].mxu1 }
0x3081   : > { %v11338_v26 = vpack.c.bf16 %v11268_v51, %v11268_v51  ;;  %v16634_v22 = vpop.f32.mrb[199].mxu1 }
0x3083   : > { %11560 = vrot.lane.b32.xlu0 %v11338_v26, %s21379_s1  ;;  %11449 = vrot.lane.b32.xlu1 %v11338_v26, %s19113_s12  ;;  %s21385_s12 = smov 72  }
0x3084   : > { %16646 = vmatmul.mubr.msk.bf16.vlgmr.msra.gmra.mrb[200].mxu1 %vm1961_vm2, %v11338_v26 }
0x3085   : > { %16656 = vmatpush3.bf16.xpose.msra.mxu1 %v11457_v52  ;;  %16657 = vmatprep.mubr.msk.bf16.mxu1 %vm19112_vm0, %v19111_v0 }
0x3086   : > { %16667 = vmatprep.subr.bf16.mxu1 %v19111_v0 }
0x3087   : > { %11671 = vrot.lane.b32.xlu0 %v11338_v26, %s21380_s2  ;;  %11562 = vrot.lane.b32.xlu1 %v20920_v43, %s21379_s1 }
0x308b   : > { %11673 = vrot.lane.b32.xlu1 %v20920_v43, %s21380_s2 }
0x30f5   : > { %v11450_v53 = vpop.permute.xlu1 %11449  ;;  %v11561_v4 = vpop.permute.xlu0 %11560 }
0x30f6   : > { %16658 = vmatmul.mubr.msk.bf16.vlgmr.msra.gmra.mrb[204].mxu1 %vm1961_vm2, %v11450_v53 }
0x30f7   : > { %16669 = vmatprep.mubr.msk.bf16.mxu1 %vm19112_vm0, %v19111_v0 }
0x30f9   : > { %v11563_v2 = vpop.permute.xlu1 %11562  ;;  %v11672_v8 = vpop.permute.xlu0 %11671 }
0x30fa   : > { %v11568_v61 = vsel %vm1961_vm2, %v11563_v2, 0 }
0x30fb   : > { %16668 = vmatpush3.bf16.xpose.msra.mxu1 %v11568_v61 }
0x30fc   : > { %16679 = vmatprep.subr.bf16.mxu1 %v19111_v0 }
0x30fd   : > { %v11674_v3 = vpop.permute.xlu1 %11673 }
0x30fe   : > { %v11679_v63 = vsel %vm1961_vm2, %v11674_v3, 0 }
0x3102   : > { %16670 = vmatmul.mubr.msk.bf16.vlgmr.msra.gmra.mrb[208].mxu1 %vm1961_vm2, %v11561_v4 }
0x3103   : > { %16680 = vmatpush3.bf16.xpose.msra.mxu1 %v11679_v63  ;;  %16681 = vmatprep.mubr.msk.bf16.mxu1 %vm19112_vm0, %v19111_v0 }
0x3104   : > { %16691 = vmatprep.subr.bf16.mxu1 %v19111_v0 }
0x310a   : > { %16682 = vmatmul.mubr.msk.bf16.vlgmr.msra.gmra.mrb[212].mxu1 %vm1961_vm2, %v11672_v8 }
0x310b   : > { %16695 = vmatprep.mubr.msk.bf16.mxu1 %vm19112_vm0, %v19111_v0 }
0x3157   : > { %v11380_v9 = vpop.f32.mrb[200].mxu1 }
0x3158   : > { %v11386_v11 = vmul.f32 0.35355338, %v11380_v9  ;;  %v16647_v50 = vpop.f32.mrb[201].mxu1 }
0x3159   : > { %v11383_v28 = vpop.f32.mrb[202].mxu1 }
0x315a   : > { %v16648_v54 = vpop.f32.mrb[203].mxu1  ;;  %v11387_v55 = vsel %vm1961_vm2, %v11386_v11, -inf }
0x315b   : > { %11388 = vmax.xlane.f32.xlu1 %v11387_v55 }
0x31c9   : > { %v11493_v29 = vpop.f32.mrb[204].mxu1 }
0x31ca   : > { %v11499_v35 = vmul.f32 0.35355338, %v11493_v29  ;;  %v16659_v36 = vpop.f32.mrb[205].mxu1 }
0x31cb   : > { %v11496_v44 = vpop.f32.mrb[206].mxu1 }
0x31cc   : > { %v16660_v37 = vpop.f32.mrb[207].mxu1  ;;  %v11500_v38 = vsel %vm1961_vm2, %v11499_v35, -inf }
0x31cd   : > { %11501 = vmax.xlane.f32.xlu0 %v11500_v38 }
0x31d5   : > { %v11604_v39 = vpop.f32.mrb[208].mxu1 }
0x31d6   : > { %v11610_v31 = vmul.f32 0.35355338, %v11604_v39  ;;  %v16671_v32 = vpop.f32.mrb[209].mxu1 }
0x31d7   : > { %v11607_v5 = vpop.f32.mrb[210].mxu1 }
0x31d8   : > { %v16672_v40 = vpop.f32.mrb[211].mxu1  ;;  %v11611_v41 = vsel %vm1961_vm2, %v11610_v31, -inf }
0x31d9   : > { %11612 = vmax.xlane.f32.xlu0 %v11611_v41 }
0x31dd   : > { %v11715_v17 = vpop.f32.mrb[212].mxu1 }
0x31de   : > { %v11721_v1 = vmul.f32 0.35355338, %v11715_v17  ;;  %v16683_v62 = vpop.f32.mrb[213].mxu1 }
0x31df   : > { %v11718_v42 = vpop.f32.mrb[214].mxu1 }
0x31e0   : > { %v16684_v58 = vpop.f32.mrb[215].mxu1  ;;  %v11722_v45 = vsel %vm1961_vm2, %v11721_v1, -inf }
0x31e1   : > { %11723 = vmax.xlane.f32.xlu1 %v11722_v45  ;;  %v17513_v45 = vld [vmem:[#allocation46 + $0x10] sm:$0xff]  }
0x31e2   : > { %16692 = vmatpush3.bf16.msra.mxu1 %v17513_v45 }
0x31e3   : > { %16693 = vmatprep.subr.bf16.mxu1 %v19111_v0 }
0x31e8   : > { %v11389_v24 = vpop.xlane.xlu1 %11388 }
0x31e9   : > { %v11390_v46 = vsub.f32 %v11386_v11, %v11389_v24  ;;  %v17514_v24 = vld [vmem:[#allocation46 + $0x18] sm:$0xff]  }
0x31ea   : > { %16694 = vmatpush3.bf16.msra.mxu1 %v17514_v24 }
0x31eb   : > { %v11391_v23 = vmul.f32 1.442695, %v11390_v46 }
0x31ed   : > { %17743 = vpow2.f32 %v11391_v23 }
0x31f7   : > { %v17744_v10 = vpop.eup %17743 }
0x31f8   : > { %v11393_v25 = vsel %vm1961_vm2, %v17744_v10, 0.0 }
0x31f9   : > { %11394 = vadd.xlane.f32.xlu0 %v11393_v25 }
0x325a   : > { %v11502_v19 = vpop.xlane.xlu0 %11501 }
0x325b   : > { %v11503_v16 = vsub.f32 %v11499_v35, %v11502_v19 }
0x325d   : > { %v11504_v12 = vmul.f32 1.442695, %v11503_v16 }
0x325f   : > { %17745 = vpow2.f32 %v11504_v12 }
0x3266   : > { %v11613_v20 = vpop.xlane.xlu0 %11612 }
0x3267   : > { %v11614_v48 = vsub.f32 %v11610_v31, %v11613_v20 }
0x3269   : > { %v17746_v49 = vpop.eup %17745  ;;  %v11615_v30 = vmul.f32 1.442695, %v11614_v48 }
0x326a   : > { %v11506_v33 = vsel %vm1961_vm2, %v17746_v49, 0.0 }
0x326b   : > { %17747 = vpow2.f32 %v11615_v30  ;;  %11507 = vadd.xlane.f32.xlu1 %v11506_v33 }
0x326e   : > { %v11724_v47 = vpop.xlane.xlu1 %11723 }
0x326f   : > { %v11725_v13 = vsub.f32 %v11721_v1, %v11724_v47 }
0x3271   : > { %v11726_v21 = vmul.f32 1.442695, %v11725_v13  ;;  %v15267_v13 = vld [vmem:[#allocation47 + $0x1] ss:$0 sm:$0xff] }
0x3273   : > { %17749 = vpow2.f32 %v11726_v21 }
0x3275   : > { %v17748_v6 = vpop.eup %17747 }
0x3276   : > { %v11617_v51 = vsel %vm1961_vm2, %v17748_v6, 0.0 }
0x3277   : > { %11618 = vadd.xlane.f32.xlu0 %v11617_v51 }
0x327c   : > { %11512 = vrot.lane.b32.xlu1 %v20920_v43, %s19116_s0  ;;  %s15451_s0 = sshll.u32 %s19370_s22, 7  ;;  %s19128_s22 = smov [#allocation67]  }
0x327d   : > { %v17750_v26 = vpop.eup %17749  ;;  %s18869_s4 = sshll.u32 %s19128_s22, 4  ;;  %s18870_s4 = int_to_ptr.vmem [resolvable:$false] %s18869_s4 }
0x327e   : > { %v11728_v22 = vsel %vm1961_vm2, %v17750_v26, 0.0  ;;  %s18871_s2 = scalar_lea.vmem %s18870_s4, 256  ;;  %p18872_p3 = scmp.lt.s32.totalorder %s21110_s10, %s18870_s4 }
0x3286   : > { %v11395_v52 = vpop.xlane.xlu0 %11394 }
0x3287   : > { %17751 = vrcp.f32 %v11395_v52 }
0x328d   : > { %11400 = vrot.lane.b32.xlu0 %v20920_v43, %s19114_s14  ;;  %s21388_s14 = sld [smem:[#allocation130_spill]] }
0x3291   : > { %11734 = vrot.lane.b32.xlu0 %v20920_v43, %s21385_s12  ;;  %v17752_v2 = vpop.eup %17751 }
0x3292   : > { %v11397_v3 = vmul.f32 %v17752_v2, %v17744_v10 }
0x3293   : > { %p21389_p9 = scmp.ne.s32.totalorder %s21388_s14, 0 }
0x3294   : > { %v11398_v9 = vpack.c.bf16 %v11397_v3, %v11397_v3 }
0x32a0   : > { %11729 = vadd.xlane.f32.xlu1 %v11728_v22 }
0x32b1   : > { %11623 = vrot.lane.b32.xlu1 %v20920_v43, %s21386_s8 }
0x32f8   : > { %v11508_v53 = vpop.xlane.xlu1 %11507 }
0x32f9   : > { %17753 = vrcp.f32 %v11508_v53 }
0x32fc   : > { %v11513_v8 = vpop.permute.xlu1 %11512 }
0x32fd   : > { %v11518_v50 = vsel %vm2026_vm3, %v11513_v8, 0 }
0x3303   : > { %v17754_v11 = vpop.eup %17753 }
0x3304   : > { %v11619_v61 = vpop.xlane.xlu0 %11618  ;;  %v11510_v43 = vmul.f32 %v17754_v11, %v17746_v49  ;;  %v11899_v11 = vld [vmem:[#allocation52 + $0x100] sm:$0xff] }
0x3305   : > { %17755 = vrcp.f32 %v11619_v61 }
0x3306   : > { %v11511_v28 = vpack.c.bf16 %v11510_v43, %v11510_v43  ;;  %v11900_v43 = vld [vmem:[#allocation52 + $0x108] sm:$0xff] }
0x3308   : > { %v11401_v4 = vpop.permute.xlu0 %11400 }
0x3309   : > { %v11406_v63 = vsel %vm2026_vm3, %v11401_v4, 0 }
0x330a   : > { %16650 = vmatpush3.bf16.msra.mxu0 %v11406_v63 }
0x330b   : > { %16661 = vmatprep.subr.bf16.mxu0 %v19111_v0 }
0x330c   : > { %v11735_v44 = vpop.permute.xlu0 %11734 }
0x330d   : > { %16652 = vmatmul.mubr.msk.bf16.vlgmr.msra.gmra.mrb[204].mxu0 %vm1961_vm2, %v11398_v9  ;;  %v11740_v38 = vsel %vm2026_vm3, %v11735_v44, 0  ;;  %v11916_v44 = vld [vmem:[#allocation52 + $0x188] sm:$0xff] }
0x330e   : > { %16662 = vmatpush3.bf16.msra.mxu0 %v11518_v50  ;;  %16663 = vmatprep.mubr.msk.bf16.mxu0 %vm19112_vm0, %v19111_v0  ;;  %v11907_v50 = vld [vmem:[#allocation52 + $0x140] sm:$0xff] }
0x330f   : > { %16673 = vmatprep.subr.bf16.mxu0 %v19111_v0  ;;  %v17756_v54 = vpop.eup %17755 }
0x3310   : > { %v11621_v29 = vmul.f32 %v17756_v54, %v17748_v6  ;;  %v11908_v54 = vld [vmem:[#allocation52 + $0x148] sm:$0xff] }
0x3312   : > { %v11622_v37 = vpack.c.bf16 %v11621_v29, %v11621_v29  ;;  %v15275_v29 = vcombine.low %v11900_v43, %v11908_v54 }
0x3315   : > { %16664 = vmatmul.mubr.msk.bf16.vlgmr.msra.gmra.mrb[208].mxu0 %vm1961_vm2, %v11511_v28  ;;  %v15274_v28 = vcombine.high %v11899_v11, %v11907_v50 }
0x3316   : > { %16675 = vmatprep.mubr.msk.bf16.mxu0 %vm19112_vm0, %v19111_v0 }
0x332d   : > { %v11730_v55 = vpop.xlane.xlu1 %11729 }
0x332e   : > { %17757 = vrcp.f32 %v11730_v55  ;;  %v15273_v55 = vcombine.low %v11899_v11, %v11907_v50 }
0x3331   : > { %v11624_v35 = vpop.permute.xlu1 %11623 }
0x3332   : > { %v11629_v36 = vsel %vm2026_vm3, %v11624_v35, 0  ;;  %v15276_v35 = vcombine.high %v11900_v43, %v11908_v54  ;;  %v11905_v43 = vld [vmem:[#allocation52 + $0x130] sm:$0xff]  ;;  %v11906_v54 = vld [vmem:[#allocation52 + $0x138] sm:$0xff] }
0x3333   : > { %16674 = vmatpush3.bf16.msra.mxu0 %v11629_v36  ;;  %v11923_v36 = vld [vmem:[#allocation52 + $0x1c0] sm:$0xff] }
0x3334   : > { %16685 = vmatprep.subr.bf16.mxu0 %v19111_v0  ;;  %12221 = vmatprep.subr.bf16.mxu1 %v15276_v35 }
0x3336   : > { %16676 = vmatmul.mubr.msk.bf16.vlgmr.msra.gmra.mrb[212].mxu0 %vm1961_vm2, %v11622_v37 }
0x3337   : > { %16686 = vmatpush3.bf16.msra.mxu0 %v11740_v38  ;;  %16687 = vmatprep.mubr.msk.bf16.mxu0 %vm19112_vm0, %v19111_v0  ;;  %v11924_v38 = vld [vmem:[#allocation52 + $0x1c8] sm:$0xff] }
0x3338   : > { %v17758_v39 = vpop.eup %17757  ;;  %12180 = vmatprep.subr.bf16.mxu0 %v15274_v28  ;;  %v11913_v28 = vld [vmem:[#allocation52 + $0x170] sm:$0xff] }
0x3339   : > { %v11732_v31 = vmul.f32 %v17758_v39, %v17750_v26 }
0x333b   : > { %v11733_v32 = vpack.c.bf16 %v11732_v31, %v11732_v31  ;;  %v15291_v31 = vcombine.low %v11916_v44, %v11924_v38 }
0x333e   : > { %16688 = vmatmul.mubr.msk.bf16.vlgmr.msra.gmra.mrb[216].mxu0 %vm1961_vm2, %v11733_v32  ;;  %v15292_v32 = vcombine.high %v11916_v44, %v11924_v38  ;;  %v11921_v44 = vld [vmem:[#allocation52 + $0x1b0] sm:$0xff]  ;;  %v11922_v38 = vld [vmem:[#allocation52 + $0x1b8] sm:$0xff] }
0x333f   : > { %12212 = vmatprep.mubr.bf16.mxu0 %v19127_v27  ;;  %12181 = vmatpush1.bf16.msra.mxu0 %v15273_v55  ;;  %v11914_v55 = vld [vmem:[#allocation52 + $0x178] sm:$0xff] }
0x33e0   : > { %v11442_v5 = vpop.f32.mrb[204].mxu0 }
0x33e1   : > { %v16653_v40 = vpop.f32.mrb[205].mxu0 }
0x33e2   : > { %v11445_v41 = vpop.f32.mrb[206].mxu0  ;;  %v11909_v40 = vld [vmem:[#allocation52 + $0x150] sm:$0xff] }
0x33e3   : > { %v16654_v17 = vpop.f32.mrb[207].mxu0  ;;  %v11902_v41 = vld [vmem:[#allocation52 + $0x118] sm:$0xff] }
0x33e8   : > { %v11554_v1 = vpop.f32.mrb[208].mxu0 }
0x33e9   : > { %11783 = vrot.lane.b32.xlu1 %v11554_v1, %s19124_s5  ;;  %v16665_v62 = vpop.f32.mrb[209].mxu0  ;;  %s21387_s5 = sld [smem:[#allocation125_spill]] }
0x33ea   : > { %v11557_v42 = vpop.f32.mrb[210].mxu0  ;;  %v11910_v62 = vld [vmem:[#allocation52 + $0x158] sm:$0xff] }
0x33eb   : > { %v16666_v58 = vpop.f32.mrb[211].mxu0  ;;  %v15279_v42 = vcombine.low %v11902_v41, %v11910_v62 }
0x33ec   : > { %v15280_v58 = vcombine.high %v11902_v41, %v11910_v62  ;;  %v17516_v62 = vld [vmem:[#allocation55 + $0x4c0] sm:$0xff]  }
0x33ef   : > { %s21108_s6 = scalar_lea.hbm %s21387_s5, %s15451_s0 }
0x3409   : > { %v11665_v46 = vpop.f32.mrb[212].mxu0 }
0x340a   : > { %11787 = vrot.lane.b32.xlu0 %v11665_v46, %s21381_s28  ;;  %v16677_v23 = vpop.f32.mrb[213].mxu0  ;;  %s14023_s28 = scalar_lea.sflag [#allocation4], %s19996_s9 }
0x340b   : > { %v11668_v10 = vpop.f32.mrb[214].mxu0 }
0x340c   : > { %v16678_v25 = vpop.f32.mrb[215].mxu0  ;;  %v15271_v10 = vld [vmem:[#allocation49 + $0x1] ss:$0 sm:$0xff] }
0x3411   : > { %v11776_v19 = vpop.f32.mrb[216].mxu0 }
0x3412   : > { %11791 = vrot.lane.b32.xlu1 %v11776_v19, %s21382_s7  ;;  %v16689_v16 = vpop.f32.mrb[217].mxu0  ;;  %v15272_v19 = vld [vmem:[#allocation50 + $0x1] ss:$0 sm:$0xff]  ;;  %s18865_s7 = scalar_lea.vmem %s21110_s10, 128 }
0x3413   : > { %v11779_v12 = vpop.f32.mrb[218].mxu0  ;;  %p18866_p2 = scmp.ne.s32.totalorder %s21110_s10, %s18865_s7  ;;  %p18873_p6 = scmp.lt.s32.totalorder %s18871_s2, %s18865_s7 }
0x3414   : > { %v16690_v20 = vpop.f32.mrb[219].mxu0  ;;  %v11917_v12 = vld [vmem:[#allocation52 + $0x190] sm:$0xff] }
0x3415   : > { %v11925_v20 = vld [vmem:[#allocation52 + $0x1d0] sm:$0xff]  ;;  %p18867_p10 = pnand %p18866_p2, %p21389_p9  ;;  %p18874_p12 = por %p18873_p6, %p18872_p3 }
0x3417   : > { %p18868_p1 = pneg %p18867_p10 }
0x3419   : > { %p18875_p5 = pnand %p18874_p12, %p18868_p1 }
0x345b   : > { %v11784_v48 = vpop.permute.xlu1 %11783 }
0x345c   : > { %v11794_v30 = vsel %vm1961_vm2, %v11442_v5, %v11784_v48  ;;  %v11901_v5 = vld [vmem:[#allocation52 + $0x110] sm:$0xff]  ;;  %v11918_v48 = vld [vmem:[#allocation52 + $0x198] sm:$0xff] }
0x345d   : > { %v15277_v17 = vcombine.low %v11901_v5, %v11909_v40  ;;  %v15278_v1 = vcombine.high %v11901_v5, %v11909_v40 }
0x347c   : > { %v11788_v49 = vpop.permute.xlu0 %11787 }
0x347d   : > { %v11795_v33 = vsel %vm2416_vm4, %v11794_v30, %v11788_v49  ;;  %v11926_v49 = vld [vmem:[#allocation52 + $0x1d8] sm:$0xff] }
0x3484   : > { %v11792_v6 = vpop.permute.xlu1 %11791 }
0x3485   : > { %v11796_v51 = vsel %vm2418_vm5, %v11795_v33, %v11792_v6  ;;  %v15294_v6 = vcombine.high %v11917_v12, %v11925_v20 }
0x3486   : > { %v11804_v47 = vpack.c.bf16 %v11796_v51, %v11796_v51  ;;  %v15296_v51 = vcombine.high %v11918_v48, %v11926_v49 }
0x3488   : > { %16696 = vmatmul.mubr.msk.bf16.vlgmr.msra.gmra.mrb[216].mxu1 %vm1913_vm1, %v11804_v47  ;;  %v11903_v47 = vld [vmem:[#allocation52 + $0x120] sm:$0xff] }
0x3489   : > { %12253 = vmatprep.mubr.bf16.mxu1 %v19127_v27  ;;  %12222 = vmatpush1.bf16.msra.mxu1 %v15275_v29 }
0x348a   : > { %12223 = vmatprep.subr.bf16.mxu1 %v15292_v32  ;;  %v15287_v32 = vcombine.low %v11906_v54, %v11914_v55 }
0x348d   : > { %12224 = vmatpush1.bf16.msra.mxu1 %v15291_v31  ;;  %v15285_v31 = vcombine.low %v11905_v43, %v11913_v28 }
0x348e   : > { %12303 = vmatprep.subr.bf16.mxu1 %v15280_v58  ;;  %v17518_v58 = vld [vmem:[#allocation55 + $0x480] sm:$0xff]  }
0x355b   : > { %v11860_v21 = vpop.f32.mrb[216].mxu1 }
0x355c   : > { %v11861_v26 = vadd.f32 %v15267_v13, %v11860_v21  ;;  %v16697_v22 = vpop.f32.mrb[217].mxu1  ;;  %v11911_v13 = vld [vmem:[#allocation52 + $0x160] sm:$0xff]  ;;  %v11904_v21 = vld [vmem:[#allocation52 + $0x128] sm:$0xff] }
0x355d   : > { %v11863_v52 = vpop.f32.mrb[218].mxu1  ;;  %v15293_v22 = vcombine.low %v11917_v12, %v11925_v20  ;;  %v17528_v12 = vld [vmem:[#allocation55 + $0x4d8] sm:$0xff]  }
0x355e   : > { %v11866_v53 = vadd.f32 %v11861_v26, %v20926_v34  ;;  %v16698_v2 = vpop.f32.mrb[219].mxu1  ;;  %v11915_v34 = vld [vmem:[#allocation52 + $0x180] sm:$0xff]  ;;  %v11912_v26 = vld [vmem:[#allocation52 + $0x168] sm:$0xff]  ;;  %v15295_v52 = vcombine.low %v11918_v48, %v11926_v49  ;;  %v17529_v20 = vld [vmem:[#allocation55 + $0x418] sm:$0xff]  }
0x355f   : > { %v15290_v37 = vcombine.high %v11915_v34, %v11923_v36  ;;  %v15289_v39 = vcombine.low %v11915_v34, %v11923_v36  ;;  %v15284_v2 = vcombine.high %v11904_v21, %v11912_v26  ;;  %v15286_v34 = vcombine.high %v11905_v43, %v11913_v28  ;;  %v17530_v48 = vld [vmem:[#allocation55 + $0x498] sm:$0xff]   ;;  %v17531_v49 = vld [vmem:[#allocation55 + $0x460] sm:$0xff]  }
0x3560   : > { %v11871_v61 = vsel %vm1913_vm1, %v11866_v53, 0.0  ;;  %v15288_v36 = vcombine.high %v11906_v54, %v11914_v55 }
0x3561   : > { %11872 = vadd.xlane.f32.xlu0 %v11871_v61  ;;  %12182 = vmatprep.subr.bf16.mxu0 %v15290_v37  ;;  %v11919_v61 = vld [vmem:[#allocation52 + $0x1a0] sm:$0xff]  ;;  %v11929_v37 = vld [vmem:[#allocation52 + $0x1f0] sm:$0xff] }
0x3562   : > { %12183 = vmatpush1.bf16.msra.mxu0 %v15289_v39  ;;  %v11930_v39 = vld [vmem:[#allocation52 + $0x1f8] sm:$0xff]  ;;  %v15302_v5 = vcombine.high %v11921_v44, %v11929_v37  ;;  %v15301_v41 = vcombine.low %v11921_v44, %v11929_v37 }
0x3563   : > { %12262 = vmatprep.subr.bf16.mxu0 %v15278_v1  ;;  %v15304_v40 = vcombine.high %v11922_v38, %v11930_v39  ;;  %v17515_v1 = vld [vmem:[#allocation55 + $0x440] sm:$0xff]  }
0x35ee   : > { %v11873_v3 = vpop.xlane.xlu0 %11872 }
0x35ef   : > { %v11874_v4 = vmul.f32 0.03125, %v11873_v3  ;;  %v11927_v3 = vld [vmem:[#allocation52 + $0x1e0] sm:$0xff] }
0x35f0   : > { %v15298_v11 = vcombine.high %v11919_v61, %v11927_v3  ;;  %v15297_v29 = vcombine.low %v11919_v61, %v11927_v3  ;;  %v17543_v61 = vld [vmem:[#allocation55 + $0x478] sm:$0xff]  }
0x35f1   : > { %v11875_v63 = vsub.f32 %v11866_v53, %v11874_v4  ;;  %v15282_v53 = vcombine.high %v11903_v47, %v11911_v13  ;;  %v11920_v4 = vld [vmem:[#allocation52 + $0x1a8] sm:$0xff]  ;;  %v17544_v3 = vld [vmem:[#allocation55 + $0x4f8] sm:$0xff]  }
0x35f3   : > { %v11876_v8 = vmul.f32 %v11875_v63, %v11875_v63 }
0x35f5   : > { %v11877_v9 = vsel %vm1913_vm1, %v11876_v8, 0.0  ;;  %v15281_v8 = vcombine.low %v11903_v47, %v11911_v13  ;;  %v17535_v47 = vld [vmem:[#allocation55 + $0x468] sm:$0xff]  }
0x35f6   : > { %11878 = vadd.xlane.f32.xlu1 %v11877_v9  ;;  %v15283_v9 = vcombine.low %v11904_v21, %v11912_v26  ;;  %v17536_v13 = vld [vmem:[#allocation55 + $0x4e8] sm:$0xff]  }
0x35f7   : > { %v17537_v21 = vld [vmem:[#allocation55 + $0x428] sm:$0xff]  }
0x35f8   : > { %v17538_v26 = vld [vmem:[#allocation55 + $0x4a8] sm:$0xff]  }
0x3683   : > { %v11879_v45 = vpop.xlane.xlu1 %11878 }
0x3684   : > { %v11880_v24 = vmul.f32 0.03125, %v11879_v45  ;;  %v17519_v45 = vld [vmem:[#allocation55 + $0x448] sm:$0xff]  }
0x3686   : > { %v11881_v46 = vadd.f32 1e-05, %v11880_v24  ;;  %v17520_v24 = vld [vmem:[#allocation55 + $0x4c8] sm:$0xff]  }
0x3688   : > { %17759 = vrsqrt.f32 %v11881_v46  ;;  %v17521_v46 = vld [vmem:[#allocation55 + $0x408] sm:$0xff]  }
0x3692   : > { %v17760_v23 = vpop.eup %17759 }
0x3693   : > { %v11883_v25 = vmul.f32 %v17760_v23, %v11875_v63  ;;  %v11928_v63 = vld [vmem:[#allocation52 + $0x1e8] sm:$0xff] }
0x3694   : > { %v15300_v50 = vcombine.high %v11920_v4, %v11928_v63  ;;  %v15299_v35 = vcombine.low %v11920_v4, %v11928_v63  ;;  %v17522_v23 = vld [vmem:[#allocation55 + $0x488] sm:$0xff]   ;;  %v17545_v4 = vld [vmem:[#allocation55 + $0x438] sm:$0xff]  }
0x3695   : > { %v11890_v16 = vmul.f32 %v15271_v10, %v11883_v25  ;;  %v17524_v10 = vld [vmem:[#allocation55 + $0x4d0] sm:$0xff]   ;;  %v17546_v63 = vld [vmem:[#allocation55 + $0x4b8] sm:$0xff]  }
0x3696   : > { %v17525_v25 = vld [vmem:[#allocation55 + $0x410] sm:$0xff]  }
0x3697   : > { %v21007_v30 = vadd.f32 %v15272_v19, %v11890_v16  ;;  %v17526_v19 = vld [vmem:[#allocation55 + $0x490] sm:$0xff]   ;;  %v17527_v16 = vld [vmem:[#allocation55 + $0x458] sm:$0xff]  }
0x3699   : > { %v21011_v33 = vpack.c.bf16 %v21007_v30, %v21007_v30 }
0x369b   : > { %15305 = vmatmul.mubr.msk.bf16.vlgmr.msra.gmra.mrb[220].mxu0 %vm1913_vm1, %v21011_v33  ;;  %15306 = vmatmul.mubr.msk.bf16.vlgmr.msra.gmra.mrb[220].mxu1 %vm1913_vm1, %v21011_v33 }
0x369c   : > { %12263 = vmatpush1.bf16.msra.mxu0 %v15277_v17  ;;  %12304 = vmatpush1.bf16.msra.mxu1 %v15279_v42  ;;  %v15303_v17 = vcombine.low %v11922_v38, %v11930_v39  ;;  %v17517_v42 = vld [vmem:[#allocation55 + $0x400] sm:$0xff]  }
0x369d   : > { %12264 = vmatprep.subr.bf16.mxu0 %v15294_v6  ;;  %12305 = vmatprep.subr.bf16.mxu1 %v15296_v51  ;;  %v17533_v6 = vld [vmem:[#allocation55 + $0x420] sm:$0xff]  }
0x369e   : > { %12294 = vmatprep.mubr.bf16.mxu0 %v19127_v27  ;;  %12335 = vmatprep.mubr.bf16.mxu1 %v19127_v27  ;;  %v17534_v51 = vld [vmem:[#allocation55 + $0x4a0] sm:$0xff]  }
0x36a0   : > { %12265 = vmatpush1.bf16.msra.mxu0 %v15293_v22  ;;  %12306 = vmatpush1.bf16.msra.mxu1 %v15295_v52  ;;  %v17539_v22 = vld [vmem:[#allocation55 + $0x470] sm:$0xff]  }
0x36a1   : > { %12344 = vmatprep.subr.bf16.mxu0 %v15282_v53  ;;  %12385 = vmatprep.subr.bf16.mxu1 %v15284_v2  ;;  %v17540_v52 = vld [vmem:[#allocation55 + $0x4f0] sm:$0xff]  }
0x36a2   : > { %v17541_v53 = vld [vmem:[#allocation55 + $0x430] sm:$0xff]  }
0x36a3   : > { %15307 = vmatmul.mubr.msk.bf16.vlgmr.msra.gmra.mrb[224].mxu0 %vm1913_vm1, %v21011_v33  ;;  %15308 = vmatmul.mubr.msk.bf16.vlgmr.msra.gmra.mrb[224].mxu1 %vm1913_vm1, %v21011_v33  ;;  %v17542_v2 = vld [vmem:[#allocation55 + $0x4b0] sm:$0xff]  }
0x36a4   : > { %12345 = vmatpush1.bf16.msra.mxu0 %v15281_v8  ;;  %12386 = vmatpush1.bf16.msra.mxu1 %v15283_v9  ;;  %v17547_v8 = vld [vmem:[#allocation55 + $0x540] sm:$0xff]  }
0x36a5   : > { %12346 = vmatprep.subr.bf16.mxu0 %v15298_v11  ;;  %12387 = vmatprep.subr.bf16.mxu1 %v15300_v50  ;;  %v17548_v9 = vld [vmem:[#allocation55 + $0x5c0] sm:$0xff]   ;;  %v21035_v11 = vld [vmem:[#allocation53 + $0x10] sm:$0xff] }
0x36a6   : > { %12376 = vmatprep.mubr.bf16.mxu0 %v19127_v27  ;;  %12417 = vmatprep.mubr.bf16.mxu1 %v19127_v27  ;;  %v11940_v50 = vrot.slane %v21035_v11, %v20229_v56  ;;  %v11948_v43 = vrot.slane %v21035_v11, %v20232_v57  ;;  %v11944_v28 = vrot.slane %v21035_v11, %v20237_v59 }
0x36a7   : > { %v11952_v54 = vrot.slane %v21035_v11, %v20240_v60 }
0x36a8   : > { %12347 = vmatpush1.bf16.msra.mxu0 %v15297_v29  ;;  %12388 = vmatpush1.bf16.msra.mxu1 %v15299_v35 }
0x36a9   : > { %12426 = vmatprep.subr.bf16.mxu0 %v15286_v34  ;;  %12467 = vmatprep.subr.bf16.mxu1 %v15288_v36 }
0x36ab   : > { %15309 = vmatmul.mubr.msk.bf16.vlgmr.msra.gmra.mrb[228].mxu0 %vm1913_vm1, %v21011_v33  ;;  %15310 = vmatmul.mubr.msk.bf16.vlgmr.msra.gmra.mrb[228].mxu1 %vm1913_vm1, %v21011_v33 }
0x36ac   : > { %12427 = vmatpush1.bf16.msra.mxu0 %v15285_v31  ;;  %12468 = vmatpush1.bf16.msra.mxu1 %v15287_v32 }
0x36ad   : > { %12428 = vmatprep.subr.bf16.mxu0 %v15302_v5  ;;  %12469 = vmatprep.subr.bf16.mxu1 %v15304_v40 }
0x36ae   : > { %12458 = vmatprep.mubr.bf16.mxu0 %v19127_v27  ;;  %12499 = vmatprep.mubr.bf16.mxu1 %v19127_v27  ;;  %v17523_v27 = vld [vmem:[#allocation55 + $0x450] sm:$0xff]  }
0x36b0   : > { %12429 = vmatpush1.bf16.msra.mxu0 %v15301_v41  ;;  %12470 = vmatpush1.bf16.msra.mxu1 %v15303_v17 }
0x36b1   : > { %16120 = vmatprep.subr.bf16.mxu0 %v17515_v1  ;;  %16142 = vmatprep.subr.bf16.mxu1 %v17516_v62 }
0x36b3   : > { %15311 = vmatmul.mubr.msk.bf16.vlgmr.msra.gmra.mrb[232].mxu0 %vm1913_vm1, %v21011_v33  ;;  %15312 = vmatmul.mubr.msk.bf16.vlgmr.msra.gmra.mrb[232].mxu1 %vm1913_vm1, %v21011_v33  ;;  %v17532_v33 = vld [vmem:[#allocation55 + $0x4e0] sm:$0xff]  }
0x36b4   : > { %16121 = vmatpush3.bf16.msra.mxu0 %v17517_v42  ;;  %16143 = vmatpush3.bf16.msra.mxu1 %v17518_v58  ;;  %v11960_v58 = vrot.slane %v21035_v11, %v20251_v14 }
0x36b5   : > { %16122 = vmatprep.subr.bf16.mxu0 %v17519_v45  ;;  %16144 = vmatprep.subr.bf16.mxu1 %v17520_v24  ;;  %v11968_v45 = vrot.slane %v21035_v11, %v20254_v15  ;;  %v17549_v24 = vld [vmem:[#allocation55 + $0x500] sm:$0xff]  }
0x36b8   : > { %16123 = vmatpush3.bf16.msra.mxu0 %v17521_v46  ;;  %16145 = vmatpush3.bf16.msra.mxu1 %v17522_v23  ;;  %v17550_v46 = vld [vmem:[#allocation55 + $0x580] sm:$0xff]  }
0x36b9   : > { %16124 = vmatprep.subr.bf16.mxu0 %v17523_v27  ;;  %16146 = vmatprep.subr.bf16.mxu1 %v17524_v10  ;;  %v17551_v10 = vld [vmem:[#allocation55 + $0x548] sm:$0xff]  }
0x36bc   : > { %16125 = vmatpush3.bf16.msra.mxu0 %v17525_v25  ;;  %16147 = vmatpush3.bf16.msra.mxu1 %v17526_v19  ;;  %v17552_v25 = vld [vmem:[#allocation55 + $0x5c8] sm:$0xff]  }
0x36bd   : > { %16126 = vmatprep.subr.bf16.mxu0 %v17527_v16  ;;  %16148 = vmatprep.subr.bf16.mxu1 %v17528_v12 }
0x36c0   : > { %16127 = vmatpush3.bf16.msra.mxu0 %v17529_v20  ;;  %16149 = vmatpush3.bf16.msra.mxu1 %v17530_v48 }
0x36c1   : > { %16128 = vmatprep.subr.bf16.mxu0 %v17531_v49  ;;  %16150 = vmatprep.subr.bf16.mxu1 %v17532_v33 }
0x36c4   : > { %16129 = vmatpush3.bf16.msra.mxu0 %v17533_v6  ;;  %16151 = vmatpush3.bf16.msra.mxu1 %v17534_v51  ;;  %v17553_v51 = vld [vmem:[#allocation55 + $0x508] sm:$0xff]  }
0x36c5   : > { %16130 = vmatprep.subr.bf16.mxu0 %v17535_v47  ;;  %16152 = vmatprep.subr.bf16.mxu1 %v17536_v13  ;;  %v17554_v47 = vld [vmem:[#allocation55 + $0x588] sm:$0xff]  }
0x36c8   : > { %16131 = vmatpush3.bf16.msra.mxu0 %v17537_v21  ;;  %16153 = vmatpush3.bf16.msra.mxu1 %v17538_v26  ;;  %v17555_v26 = vld [vmem:[#allocation55 + $0x550] sm:$0xff]  }
0x36c9   : > { %16132 = vmatprep.subr.bf16.mxu0 %v17539_v22  ;;  %16154 = vmatprep.subr.bf16.mxu1 %v17540_v52  ;;  %v17556_v22 = vld [vmem:[#allocation55 + $0x5d0] sm:$0xff]  }
0x36cc   : > { %16133 = vmatpush3.bf16.msra.mxu0 %v17541_v53  ;;  %16155 = vmatpush3.bf16.msra.mxu1 %v17542_v2 }
0x36cd   : > { %16134 = vmatprep.subr.bf16.mxu0 %v17543_v61  ;;  %16156 = vmatprep.subr.bf16.mxu1 %v17544_v3  ;;  %v17557_v3 = vld [vmem:[#allocation55 + $0x510] sm:$0xff]  }
0x36d0   : > { %16135 = vmatpush3.bf16.msra.mxu0 %v17545_v4  ;;  %16157 = vmatpush3.bf16.msra.mxu1 %v17546_v63  ;;  %v17558_v4 = vld [vmem:[#allocation55 + $0x590] sm:$0xff]   ;;  %v17559_v63 = vld [vmem:[#allocation55 + $0x558] sm:$0xff]  }
0x36d1   : > { %16164 = vmatprep.subr.bf16.mxu0 %v17547_v8  ;;  %16186 = vmatprep.subr.bf16.mxu1 %v17548_v9  ;;  %v17560_v8 = vld [vmem:[#allocation55 + $0x5d8] sm:$0xff]  }
0x376e   : > { %v12214_v55 = vpop.f32.mrb[220].mxu0  ;;  %v12255_v29 = vpop.f32.mrb[220].mxu1 }
0x376f   : > { %v12215_v35 = vadd.f32 %v12214_v55, %v11940_v50  ;;  %v12256_v34 = vadd.f32 %v12255_v29, %v11948_v43  ;;  %v12216_v36 = vpop.f32.mrb[221].mxu0  ;;  %v12257_v44 = vpop.f32.mrb[221].mxu1  ;;  %v17561_v29 = vld [vmem:[#allocation55 + $0x518] sm:$0xff]  }
0x3770   : > { %v12217_v37 = vadd.f32 %v12216_v36, %v11944_v28  ;;  %v12258_v38 = vadd.f32 %v12257_v44, %v11952_v54  ;;  %v12218_v39 = vpop.f32.mrb[222].mxu0  ;;  %v12259_v31 = vpop.f32.mrb[222].mxu1  ;;  %v17563_v44 = vld [vmem:[#allocation55 + $0x560] sm:$0xff]  }
0x3771   : > { %v12508_v32 = vmax.f32 %v12215_v35, 0.0  ;;  %v12510_v5 = vmax.f32 %v12256_v34, 0.0  ;;  %v12219_v40 = vpop.f32.mrb[223].mxu0  ;;  %v12260_v41 = vpop.f32.mrb[223].mxu1  ;;  %v17562_v35 = vld [vmem:[#allocation55 + $0x598] sm:$0xff]   ;;  %v17565_v31 = vld [vmem:[#allocation55 + $0x520] sm:$0xff]  }
0x3772   : > { %v12509_v17 = vmax.f32 %v12217_v37, 0.0  ;;  %v12511_v1 = vmax.f32 %v12258_v38, 0.0  ;;  %v17564_v37 = vld [vmem:[#allocation55 + $0x5e0] sm:$0xff]   ;;  %v21057_v38 = vld [vmem:[#allocation53 + $0x18] sm:$0xff]  ;;  %v17568_v40 = vld [vmem:[#allocation55 + $0x5e8] sm:$0xff]  }
0x3773   : > { %v12783_v23 = vpack.c.bf16 %v12508_v32, %v12508_v32  ;;  %v12785_v27 = vpack.c.bf16 %v12510_v5, %v12510_v5  ;;  %v11996_v39 = vrot.slane %v21057_v38, %v20269_v7  ;;  %v17566_v32 = vld [vmem:[#allocation55 + $0x5a0] sm:$0xff]   ;;  %v17567_v5 = vld [vmem:[#allocation55 + $0x568] sm:$0xff]  }
0x3774   : > { %v12784_v62 = vpack.c.bf16 %v12509_v17, %v12509_v17  ;;  %v12786_v42 = vpack.c.bf16 %v12511_v1, %v12511_v1 }
0x3776   : > { %v21049_v19 = vpop.f32.mrb[224].mxu0  ;;  %v21051_v16 = vpop.f32.mrb[224].mxu1  ;;  %13605 = vmatprep.mubr.bf16.mxu0 %v12784_v62  ;;  %13645 = vmatprep.mubr.bf16.mxu1 %v12786_v42 }
0x3777   : > { %v12298_v12 = vpop.f32.mrb[225].mxu0  ;;  %v12339_v20 = vpop.f32.mrb[225].mxu1  ;;  %13606 = vmatmul.mubr.bf16.vlgmr.msra.gmra.mrb[236].mxu0 %v12783_v23  ;;  %13646 = vmatmul.mubr.bf16.vlgmr.msra.gmra.mrb[236].mxu1 %v12785_v27  ;;  %v11956_v23 = vrot.slane %v21035_v11, %v20276_v18  ;;  %v11964_v27 = vrot.slane %v21035_v11, %v20269_v7  ;;  %v17575_v11 = vld [vmem:[#allocation55 + $0x578] sm:$0xff]  }
0x3778   : > { %v12299_v48 = vadd.f32 %v12298_v12, %v11960_v58  ;;  %v12340_v49 = vadd.f32 %v12339_v20, %v11968_v45  ;;  %16165 = vmatpush3.bf16.msra.mxu0 %v17549_v24  ;;  %16187 = vmatpush3.bf16.msra.mxu1 %v17550_v46  ;;  %v12300_v33 = vpop.f32.mrb[226].mxu0  ;;  %v12341_v6 = vpop.f32.mrb[226].mxu1  ;;  %v17569_v24 = vld [vmem:[#allocation55 + $0x528] sm:$0xff]   ;;  %v17571_v12 = vld [vmem:[#allocation55 + $0x570] sm:$0xff]  }
0x3779   : > { %v12301_v13 = vpop.f32.mrb[227].mxu0  ;;  %v12342_v21 = vpop.f32.mrb[227].mxu1  ;;  %16166 = vmatprep.subr.bf16.mxu0 %v17551_v10  ;;  %16188 = vmatprep.subr.bf16.mxu1 %v17552_v25  ;;  %v17570_v46 = vld [vmem:[#allocation55 + $0x5a8] sm:$0xff]   ;;  %v17572_v20 = vld [vmem:[#allocation55 + $0x5f0] sm:$0xff]   ;;  %v12338_v7 = vadd.f32 %v21051_v16, %v11964_v27  ;;  %v17581_v16 = vld [vmem:[#allocation55 + $0x600] sm:$0xff]  }
0x377a   : > { %v12513_v52 = vmax.f32 %v12299_v48, 0.0  ;;  %v12515_v53 = vmax.f32 %v12340_v49, 0.0  ;;  %v11976_v48 = vrot.slane %v21057_v38, %v20237_v59  ;;  %v11984_v49 = vrot.slane %v21057_v38, %v20240_v60  ;;  %v17573_v33 = vld [vmem:[#allocation55 + $0x530] sm:$0xff]   ;;  %v17577_v59 = vld [vmem:[#allocation55 + $0x538] sm:$0xff]  }
0x377b   : > { %v17574_v6 = vld [vmem:[#allocation55 + $0x5b0] sm:$0xff]   ;;  %v12514_v60 = vmax.f32 %v12338_v7, 0.0 }
0x377c   : > { %v12788_v2 = vpack.c.bf16 %v12513_v52, %v12513_v52  ;;  %v12790_v61 = vpack.c.bf16 %v12515_v53, %v12515_v53  ;;  %16167 = vmatpush3.bf16.msra.mxu0 %v17553_v51  ;;  %16189 = vmatpush3.bf16.msra.mxu1 %v17554_v47  ;;  %v12297_v51 = vadd.f32 %v21049_v19, %v11956_v23  ;;  %v17576_v47 = vld [vmem:[#allocation55 + $0x5f8] sm:$0xff]   ;;  %v17579_v52 = vld [vmem:[#allocation55 + $0x640] sm:$0xff]   ;;  %v17602_v23 = vld [vmem:[#allocation55 + $0x6a8] sm:$0xff]  }
0x377d   : > { %16168 = vmatprep.subr.bf16.mxu0 %v17555_v26  ;;  %16190 = vmatprep.subr.bf16.mxu1 %v17556_v22  ;;  %v17578_v26 = vld [vmem:[#allocation55 + $0x5b8] sm:$0xff]   ;;  %v17580_v53 = vld [vmem:[#allocation55 + $0x6c0] sm:$0xff]   ;;  %v17603_v27 = vld [vmem:[#allocation55 + $0x670] sm:$0xff]  }
0x377e   : > { %v21053_v9 = vpop.f32.mrb[228].mxu0  ;;  %v21055_v50 = vpop.f32.mrb[228].mxu1  ;;  %13685 = vmatprep.mubr.bf16.mxu0 %v12788_v2  ;;  %13725 = vmatprep.mubr.bf16.mxu1 %v12790_v61  ;;  %v12512_v22 = vmax.f32 %v12297_v51, 0.0 }
0x377f   : > { %v12380_v43 = vpop.f32.mrb[229].mxu0  ;;  %v12421_v28 = vpop.f32.mrb[229].mxu1 }
0x3780   : > { %16169 = vmatpush3.bf16.msra.mxu0 %v17557_v3  ;;  %16191 = vmatpush3.bf16.msra.mxu1 %v17558_v4  ;;  %v12382_v54 = vpop.f32.mrb[230].mxu0  ;;  %v12423_v55 = vpop.f32.mrb[230].mxu1  ;;  %v12381_v13 = vadd.f32 %v12380_v43, %v11976_v48  ;;  %v12422_v21 = vadd.f32 %v12421_v28, %v11984_v49  ;;  %v12787_v61 = vpack.c.bf16 %v12512_v22, %v12512_v22  ;;  %v17582_v4 = vld [vmem:[#allocation55 + $0x680] sm:$0xff]   ;;  %v17584_v43 = vld [vmem:[#allocation55 + $0x6c8] sm:$0xff]   ;;  %v17605_v48 = vld [vmem:[#allocation55 + $0x630] sm:$0xff]  }
0x3781   : > { %v12383_v34 = vpop.f32.mrb[231].mxu0  ;;  %v12424_v36 = vpop.f32.mrb[231].mxu1  ;;  %16170 = vmatprep.subr.bf16.mxu0 %v17559_v63  ;;  %16192 = vmatprep.subr.bf16.mxu1 %v17560_v8  ;;  %v12789_v3 = vpack.c.bf16 %v12514_v60, %v12514_v60  ;;  %v17583_v8 = vld [vmem:[#allocation55 + $0x648] sm:$0xff]  }
0x3782   : > { %v12517_v2 = vmax.f32 %v12381_v13, 0.0  ;;  %v12519_v19 = vmax.f32 %v12422_v21, 0.0  ;;  %v17585_v54 = vld [vmem:[#allocation55 + $0x608] sm:$0xff]   ;;  %v17589_v34 = vld [vmem:[#allocation55 + $0x610] sm:$0xff]   ;;  %v17612_v13 = vld [vmem:[#allocation55 + $0x7c0] sm:$0xff]  }
0x3783   : > { %v17586_v55 = vld [vmem:[#allocation55 + $0x688] sm:$0xff]   ;;  %v17590_v36 = vld [vmem:[#allocation55 + $0x690] sm:$0xff]  }
0x3784   : > { %16171 = vmatpush3.bf16.msra.mxu0 %v17561_v29  ;;  %16193 = vmatpush3.bf16.msra.mxu1 %v17562_v35  ;;  %v12792_v63 = vpack.c.bf16 %v12517_v2, %v12517_v2  ;;  %v12794_v28 = vpack.c.bf16 %v12519_v19, %v12519_v19  ;;  %v17587_v29 = vld [vmem:[#allocation55 + $0x650] sm:$0xff]   ;;  %v17617_v2 = vld [vmem:[#allocation55 + $0x708] sm:$0xff]  }
0x3785   : > { %16172 = vmatprep.subr.bf16.mxu0 %v17563_v44  ;;  %16194 = vmatprep.subr.bf16.mxu1 %v17564_v37  ;;  %v17588_v35 = vld [vmem:[#allocation55 + $0x6d0] sm:$0xff]   ;;  %v17591_v44 = vld [vmem:[#allocation55 + $0x658] sm:$0xff]   ;;  %v17618_v19 = vld [vmem:[#allocation55 + $0x788] sm:$0xff]  }
0x3786   : > { %v21061_v41 = vpop.f32.mrb[232].mxu0  ;;  %v12501_v17 = vpop.f32.mrb[232].mxu1  ;;  %v17592_v37 = vld [vmem:[#allocation55 + $0x6d8] sm:$0xff]  }
0x3787   : > { %v21063_v1 = vadd.f32 %v12501_v17, %v11996_v39  ;;  %v21065_v62 = vpop.f32.mrb[233].mxu0  ;;  %v21067_v42 = vpop.f32.mrb[233].mxu1  ;;  %v17593_v39 = vld [vmem:[#allocation55 + $0x618] sm:$0xff]   ;;  %v17598_v17 = vld [vmem:[#allocation55 + $0x6a0] sm:$0xff]  }
0x3788   : > { %16173 = vmatpush3.bf16.msra.mxu0 %v17565_v31  ;;  %16195 = vmatpush3.bf16.msra.mxu1 %v17566_v32  ;;  %v12464_v58 = vpop.f32.mrb[234].mxu0  ;;  %v12505_v45 = vpop.f32.mrb[234].mxu1  ;;  %v17594_v31 = vld [vmem:[#allocation55 + $0x698] sm:$0xff]   ;;  %v17595_v32 = vld [vmem:[#allocation55 + $0x660] sm:$0xff]  }
0x3789   : > { %v12465_v10 = vpop.f32.mrb[235].mxu0  ;;  %v12506_v25 = vpop.f32.mrb[235].mxu1  ;;  %16174 = vmatprep.subr.bf16.mxu0 %v17567_v5  ;;  %16196 = vmatprep.subr.bf16.mxu1 %v17568_v40  ;;  %v17596_v5 = vld [vmem:[#allocation55 + $0x6e0] sm:$0xff]   ;;  %v17599_v58 = vld [vmem:[#allocation55 + $0x668] sm:$0xff]  }
0x378a   : > { %v17597_v40 = vld [vmem:[#allocation55 + $0x620] sm:$0xff]   ;;  %v17600_v45 = vld [vmem:[#allocation55 + $0x6e8] sm:$0xff]   ;;  %v11980_v10 = vrot.slane %v21057_v38, %v20232_v57  ;;  %v17604_v25 = vld [vmem:[#allocation55 + $0x6f0] sm:$0xff]  }
0x378b   : > { %v17608_v57 = vld [vmem:[#allocation55 + $0x6f8] sm:$0xff]  }
0x378c   : > { %16175 = vmatpush3.bf16.msra.mxu0 %v17569_v24  ;;  %16197 = vmatpush3.bf16.msra.mxu1 %v17570_v46  ;;  %v17601_v24 = vld [vmem:[#allocation55 + $0x628] sm:$0xff]   ;;  %v11972_v46 = vrot.slane %v21057_v38, %v20229_v56  ;;  %v17606_v56 = vld [vmem:[#allocation55 + $0x6b0] sm:$0xff]  }
0x378d   : > { %16176 = vmatprep.subr.bf16.mxu0 %v17571_v12  ;;  %16198 = vmatprep.subr.bf16.mxu1 %v17572_v20  ;;  %v11992_v12 = vrot.slane %v21057_v38, %v20251_v14  ;;  %v12000_v20 = vrot.slane %v21057_v38, %v20254_v15  ;;  %v17609_v14 = vld [vmem:[#allocation55 + $0x638] sm:$0xff]  }
0x378e   : > { %v12379_v49 = vadd.f32 %v21053_v9, %v11972_v46  ;;  %v17610_v15 = vld [vmem:[#allocation55 + $0x6b8] sm:$0xff]  }
0x378f   : > { %v12463_v51 = vadd.f32 %v21065_v62, %v11992_v12  ;;  %v12504_v7 = vadd.f32 %v21067_v42, %v12000_v20  ;;  %v17614_v62 = vld [vmem:[#allocation55 + $0x780] sm:$0xff]   ;;  %v17615_v42 = vld [vmem:[#allocation55 + $0x748] sm:$0xff]  }
0x3790   : > { %16177 = vmatpush3.bf16.msra.mxu0 %v17573_v33  ;;  %16199 = vmatpush3.bf16.msra.mxu1 %v17574_v6  ;;  %v17607_v33 = vld [vmem:[#allocation55 + $0x678] sm:$0xff]   ;;  %v12420_v6 = vadd.f32 %v21055_v50, %v11980_v10  ;;  %v17613_v50 = vld [vmem:[#allocation55 + $0x700] sm:$0xff]  }
0x3791   : > { %16178 = vmatprep.subr.bf16.mxu0 %v17575_v11  ;;  %16200 = vmatprep.subr.bf16.mxu1 %v17576_v47  ;;  %v12516_v11 = vmax.f32 %v12379_v49, 0.0  ;;  %v17611_v47 = vld [vmem:[#allocation55 + $0x740] sm:$0xff]   ;;  %v12521_v21 = vmax.f32 %v12463_v51, 0.0 }
0x3792   : > { %v12518_v9 = vmax.f32 %v12420_v6, 0.0 }
0x3793   : > { %v12796_v60 = vpack.c.bf16 %v12521_v21, %v12521_v21 }
0x3794   : > { %16179 = vmatpush3.bf16.msra.mxu0 %v17577_v59  ;;  %16201 = vmatpush3.bf16.msra.mxu1 %v17578_v26  ;;  %v12523_v59 = vmax.f32 %v12504_v7, 0.0  ;;  %v12791_v26 = vpack.c.bf16 %v12516_v11, %v12516_v11  ;;  %v12793_v22 = vpack.c.bf16 %v12518_v9, %v12518_v9 }
0x3795   : > { %16208 = vmatprep.subr.bf16.mxu0 %v17579_v52  ;;  %16230 = vmatprep.subr.bf16.mxu1 %v17580_v53  ;;  %v17616_v52 = vld [vmem:[#allocation55 + $0x7c8] sm:$0xff]  }
0x3796   : > { %v12798_v53 = vpack.c.bf16 %v12523_v59, %v12523_v59 }
0x3797   : > { %13686 = vmatmul.mubr.bf16.vlgmr.msra.gmra.mrb[240].mxu0 %v12787_v61  ;;  %13726 = vmatmul.mubr.bf16.vlgmr.msra.gmra.mrb[240].mxu1 %v12789_v3  ;;  %v17620_v61 = vld [vmem:[#allocation55 + $0x7d0] sm:$0xff]  }
0x3798   : > { %16209 = vmatpush3.bf16.msra.mxu0 %v17581_v16  ;;  %13765 = vmatprep.mubr.bf16.mxu0 %v12792_v63  ;;  %v17619_v16 = vld [vmem:[#allocation55 + $0x750] sm:$0xff]   ;;  %v17623_v63 = vld [vmem:[#allocation55 + $0x758] sm:$0xff]  }
0x3799   : > { %16231 = vmatpush3.bf16.msra.mxu1 %v17582_v4  ;;  %13805 = vmatprep.mubr.bf16.mxu1 %v12794_v28  ;;  %v17621_v3 = vld [vmem:[#allocation55 + $0x710] sm:$0xff]   ;;  %v17626_v28 = vld [vmem:[#allocation55 + $0x798] sm:$0xff]  }
0x379a   : > { %16210 = vmatprep.subr.bf16.mxu0 %v17583_v8  ;;  %16232 = vmatprep.subr.bf16.mxu1 %v17584_v43  ;;  %v17622_v4 = vld [vmem:[#allocation55 + $0x790] sm:$0xff]   ;;  %v17624_v8 = vld [vmem:[#allocation55 + $0x7d8] sm:$0xff]  }
0x379b   : > { %v17625_v43 = vld [vmem:[#allocation55 + $0x718] sm:$0xff]  }
0x379c   : > { %16211 = vmatpush3.bf16.msra.mxu0 %v17585_v54  ;;  %v17627_v54 = vld [vmem:[#allocation55 + $0x760] sm:$0xff]  }
0x379d   : > { %16233 = vmatpush3.bf16.msra.mxu1 %v17586_v55  ;;  %16212 = vmatprep.subr.bf16.mxu0 %v17587_v29  ;;  %v17628_v55 = vld [vmem:[#allocation55 + $0x7e0] sm:$0xff]  }
0x379e   : > { %16234 = vmatprep.subr.bf16.mxu1 %v17588_v35  ;;  %v17629_v29 = vld [vmem:[#allocation55 + $0x720] sm:$0xff]  }
0x379f   : > { %v17630_v35 = vld [vmem:[#allocation55 + $0x7a0] sm:$0xff]  }
0x37a0   : > { %16213 = vmatpush3.bf16.msra.mxu0 %v17589_v34  ;;  %v17631_v34 = vld [vmem:[#allocation55 + $0x768] sm:$0xff]  }
0x37a1   : > { %16235 = vmatpush3.bf16.msra.mxu1 %v17590_v36  ;;  %16214 = vmatprep.subr.bf16.mxu0 %v17591_v44  ;;  %v17632_v36 = vld [vmem:[#allocation55 + $0x7e8] sm:$0xff]  }
0x37a2   : > { %16236 = vmatprep.subr.bf16.mxu1 %v17592_v37  ;;  %v17633_v44 = vld [vmem:[#allocation55 + $0x728] sm:$0xff]   ;;  %v11988_v37 = vrot.slane %v21057_v38, %v20276_v18  ;;  %v17642_v18 = vld [vmem:[#allocation55 + $0x7b8] sm:$0xff]   ;;  %v12522_v38 = vmax.f32 %v21063_v1, 0.0 }
0x37a4   : > { %16215 = vmatpush3.bf16.msra.mxu0 %v17593_v39  ;;  %v17634_v39 = vld [vmem:[#allocation55 + $0x7a8] sm:$0xff]  }
0x37a5   : > { %16237 = vmatpush3.bf16.msra.mxu1 %v17594_v31  ;;  %16216 = vmatprep.subr.bf16.mxu0 %v17595_v32  ;;  %v17635_v31 = vld [vmem:[#allocation55 + $0x770] sm:$0xff]  }
0x37a6   : > { %16238 = vmatprep.subr.bf16.mxu1 %v17596_v5  ;;  %v17636_v32 = vld [vmem:[#allocation55 + $0x7f0] sm:$0xff]  }
0x37a7   : > { %v17637_v5 = vld [vmem:[#allocation55 + $0x730] sm:$0xff]  }
0x37a8   : > { %16217 = vmatpush3.bf16.msra.mxu0 %v17597_v40  ;;  %v12461_v40 = vadd.f32 %v21061_v41, %v11988_v37  ;;  %v12797_v41 = vpack.c.bf16 %v12522_v38, %v12522_v38 }
0x37a9   : > { %16239 = vmatpush3.bf16.msra.mxu1 %v17598_v17  ;;  %16218 = vmatprep.subr.bf16.mxu0 %v17599_v58  ;;  %v17638_v17 = vld [vmem:[#allocation55 + $0x7b0] sm:$0xff]   ;;  %v17639_v58 = vld [vmem:[#allocation55 + $0x778] sm:$0xff]  }
0x37aa   : > { %16240 = vmatprep.subr.bf16.mxu1 %v17600_v45  ;;  %v17640_v45 = vld [vmem:[#allocation55 + $0x7f8] sm:$0xff]   ;;  %v12520_v46 = vmax.f32 %v12461_v40, 0.0 }
0x37ac   : > { %16219 = vmatpush3.bf16.msra.mxu0 %v17601_v24  ;;  %v17641_v24 = vld [vmem:[#allocation55 + $0x738] sm:$0xff]  }
0x37ad   : > { %16241 = vmatpush3.bf16.msra.mxu1 %v17602_v23  ;;  %16220 = vmatprep.subr.bf16.mxu0 %v17603_v27  ;;  %v12795_v23 = vpack.c.bf16 %v12520_v46, %v12520_v46 }
0x37ae   : > { %16242 = vmatprep.subr.bf16.mxu1 %v17604_v25  ;;  %v15313_v25 = vld [vmem:[#allocation56 + $0x1] ss:$0 sm:$0xff] }
0x37b0   : > { %16221 = vmatpush3.bf16.msra.mxu0 %v17605_v48 }
0x37b1   : > { %16243 = vmatpush3.bf16.msra.mxu1 %v17606_v56  ;;  %16222 = vmatprep.subr.bf16.mxu0 %v17607_v33 }
0x37b2   : > { %16244 = vmatprep.subr.bf16.mxu1 %v17608_v57 }
0x37b4   : > { %16223 = vmatpush3.bf16.msra.mxu0 %v17609_v14 }
0x37b5   : > { %16245 = vmatpush3.bf16.msra.mxu1 %v17610_v15  ;;  %16252 = vmatprep.subr.bf16.mxu0 %v17611_v47 }
0x37b6   : > { %16274 = vmatprep.subr.bf16.mxu1 %v17612_v13 }
0x37b7   : > { %13766 = vmatmul.mubr.bf16.vlgmr.msra.gmra.mrb[244].mxu0 %v12791_v26 }
0x37b8   : > { %13806 = vmatmul.mubr.bf16.vlgmr.msra.gmra.mrb[244].mxu1 %v12793_v22  ;;  %16253 = vmatpush3.bf16.msra.mxu0 %v17613_v50 }
0x37b9   : > { %13845 = vmatprep.mubr.bf16.mxu0 %v12796_v60  ;;  %16275 = vmatpush3.bf16.msra.mxu1 %v17614_v62 }
0x37ba   : > { %13885 = vmatprep.mubr.bf16.mxu1 %v12798_v53  ;;  %16254 = vmatprep.subr.bf16.mxu0 %v17615_v42 }
0x37bb   : > { %16276 = vmatprep.subr.bf16.mxu1 %v17616_v52 }
0x37bc   : > { %16255 = vmatpush3.bf16.msra.mxu0 %v17617_v2 }
0x37bd   : > { %16277 = vmatpush3.bf16.msra.mxu1 %v17618_v19  ;;  %16256 = vmatprep.subr.bf16.mxu0 %v17619_v16 }
0x37be   : > { %16278 = vmatprep.subr.bf16.mxu1 %v17620_v61 }
0x37c0   : > { %16257 = vmatpush3.bf16.msra.mxu0 %v17621_v3 }
0x37c1   : > { %16279 = vmatpush3.bf16.msra.mxu1 %v17622_v4  ;;  %16258 = vmatprep.subr.bf16.mxu0 %v17623_v63 }
0x37c2   : > { %16280 = vmatprep.subr.bf16.mxu1 %v17624_v8 }
0x37c4   : > { %16259 = vmatpush3.bf16.msra.mxu0 %v17625_v43 }
0x37c5   : > { %16281 = vmatpush3.bf16.msra.mxu1 %v17626_v28  ;;  %16260 = vmatprep.subr.bf16.mxu0 %v17627_v54 }
0x37c6   : > { %16282 = vmatprep.subr.bf16.mxu1 %v17628_v55 }
0x37c8   : > { %16261 = vmatpush3.bf16.msra.mxu0 %v17629_v29 }
0x37c9   : > { %16283 = vmatpush3.bf16.msra.mxu1 %v17630_v35  ;;  %16262 = vmatprep.subr.bf16.mxu0 %v17631_v34 }
0x37ca   : > { %16284 = vmatprep.subr.bf16.mxu1 %v17632_v36 }
0x37cc   : > { %16263 = vmatpush3.bf16.msra.mxu0 %v17633_v44 }
0x37cd   : > { %16285 = vmatpush3.bf16.msra.mxu1 %v17634_v39  ;;  %16264 = vmatprep.subr.bf16.mxu0 %v17635_v31 }
0x37ce   : > { %16286 = vmatprep.subr.bf16.mxu1 %v17636_v32 }
0x37d0   : > { %16265 = vmatpush3.bf16.msra.mxu0 %v17637_v5 }
0x37d1   : > { %16287 = vmatpush3.bf16.msra.mxu1 %v17638_v17  ;;  %16266 = vmatprep.subr.bf16.mxu0 %v17639_v58 }
0x37d2   : > { %16288 = vmatprep.subr.bf16.mxu1 %v17640_v45 }
0x37d4   : > { %16267 = vmatpush3.bf16.msra.mxu0 %v17641_v24 }
0x37d5   : > { %16289 = vmatpush3.bf16.msra.mxu1 %v17642_v18  ;;  %16699 = vmatprep.subr.bf16.mxu0 %v19111_v0 }
0x37d7   : > { %13846 = vmatmul.mubr.bf16.vlgmr.msra.gmra.mrb[248].mxu0 %v12795_v23  ;;  %v15442_v23 = vld [vmem:[#allocation58 + $0x1] ss:$0 sm:$0xff] }
0x37d8   : > { %13886 = vmatmul.mubr.bf16.vlgmr.msra.gmra.mrb[248].mxu1 %v12797_v41  ;;  %16703 = vmatprep.mubr.msk.bf16.mxu0 %vm19112_vm0, %v19111_v0 }
0x384a   : > { %v16136_v27 = vpop.f32.mrb[236].mxu0  ;;  %v16158_v10 = vpop.f32.mrb[236].mxu1 }
0x384b   : > { %v16137_v12 = vpop.f32.mrb[237].mxu0  ;;  %v16159_v20 = vpop.f32.mrb[237].mxu1 }
0x384c   : > { %v16138_v48 = vadd.f32 %v16137_v12, %v16136_v27  ;;  %v16160_v49 = vadd.f32 %v16159_v20, %v16158_v10  ;;  %v16139_v1 = vpop.f32.mrb[238].mxu0  ;;  %v16161_v56 = vpop.f32.mrb[238].mxu1  ;;  %v15443_v27 = vld [vmem:[#allocation59 + $0x1] ss:$0 sm:$0xff] }
0x384d   : > { %v16140_v33 = vpop.f32.mrb[239].mxu0  ;;  %v16162_v6 = vpop.f32.mrb[239].mxu1  ;;  %v17643_v56 = vld [vmem:[#allocation64] sm:$0xff]  }
0x384e   : > { %v13608_v57 = vadd.f32 %v16138_v48, %v15313_v25  ;;  %16700 = vmatpush3.bf16.msra.mxu0 %v17643_v56  ;;  %v17644_v33 = vld [vmem:[#allocation64 + $0x8] sm:$0xff]  }
0x384f   : > { %16701 = vmatprep.subr.bf16.mxu0 %v19111_v0 }
0x3850   : > { %v13648_v51 = vadd.f32 %v16160_v49, %v13608_v57 }
0x3852   : > { %16702 = vmatpush3.bf16.msra.mxu0 %v17644_v33 }
0x386a   : > { %v16180_v7 = vpop.f32.mrb[240].mxu0  ;;  %v16202_v14 = vpop.f32.mrb[240].mxu1 }
0x386b   : > { %v16181_v11 = vpop.f32.mrb[241].mxu0  ;;  %v16203_v15 = vpop.f32.mrb[241].mxu1 }
0x386c   : > { %v16182_v47 = vadd.f32 %v16181_v11, %v16180_v7  ;;  %v16204_v9 = vadd.f32 %v16203_v15, %v16202_v14  ;;  %v16183_v13 = vpop.f32.mrb[242].mxu0  ;;  %v16205_v21 = vpop.f32.mrb[242].mxu1  ;;  %v15444_v14 = vld [vmem:[#allocation61] ss:$0 sm:$0xff]  ;;  %v15445_v15 = vld [vmem:[#allocation62] ss:$0 sm:$0xff] }
0x386d   : > { %v16184_v59 = vpop.f32.mrb[243].mxu0  ;;  %v16206_v50 = vpop.f32.mrb[243].mxu1  ;;  %v15446_v21 = vld [vmem:[#allocation65] ss:$0 sm:$0xff] }
0x386e   : > { %v13688_v26 = vadd.f32 %v16182_v47, %v13648_v51 }
0x3870   : > { %v13728_v62 = vadd.f32 %v16204_v9, %v13688_v26 }
0x388a   : > { %v16224_v22 = vpop.f32.mrb[244].mxu0 }
0x388b   : > { %v16246_v42 = vpop.f32.mrb[244].mxu1  ;;  %v16225_v60 = vpop.f32.mrb[245].mxu0 }
0x388c   : > { %v16226_v52 = vadd.f32 %v16225_v60, %v16224_v22  ;;  %v16247_v53 = vpop.f32.mrb[245].mxu1  ;;  %v16227_v2 = vpop.f32.mrb[246].mxu0 }
0x388d   : > { %v16248_v19 = vadd.f32 %v16247_v53, %v16246_v42  ;;  %v16249_v16 = vpop.f32.mrb[246].mxu1  ;;  %v16228_v61 = vpop.f32.mrb[247].mxu0 }
0x388e   : > { %v13768_v3 = vadd.f32 %v16226_v52, %v13728_v62  ;;  %v16250_v4 = vpop.f32.mrb[247].mxu1 }
0x3890   : > { %v13808_v63 = vadd.f32 %v16248_v19, %v13768_v3 }
0x38aa   : > { %v16268_v8 = vpop.f32.mrb[248].mxu0 }
0x38ab   : > { %v16290_v43 = vpop.f32.mrb[248].mxu1  ;;  %v16269_v28 = vpop.f32.mrb[249].mxu0 }
0x38ac   : > { %v16270_v54 = vadd.f32 %v16269_v28, %v16268_v8  ;;  %v16291_v55 = vpop.f32.mrb[249].mxu1  ;;  %v16271_v29 = vpop.f32.mrb[250].mxu0 }
0x38ad   : > { %v16292_v35 = vadd.f32 %v16291_v55, %v16290_v43  ;;  %v16293_v34 = vpop.f32.mrb[250].mxu1  ;;  %v16272_v36 = vpop.f32.mrb[251].mxu0 }
0x38ae   : > { %v13848_v44 = vadd.f32 %v16270_v54, %v13808_v63  ;;  %v16294_v37 = vpop.f32.mrb[251].mxu1 }
0x38b0   : > { %v13888_v39 = vadd.f32 %v16292_v35, %v13848_v44 }
0x38b2   : > { %v13893_v31 = vadd.f32 %v13888_v39, %v21007_v30 }
0x38b4   : > { %v13898_v32 = vsel %vm1913_vm1, %v13893_v31, 0.0 }
0x38b5   : > { %13899 = vadd.xlane.f32.xlu0 %v13898_v32 }
0x3942   : > { %v13900_v5 = vpop.xlane.xlu0 %13899 }
0x3943   : > { %v13901_v40 = vmul.f32 0.03125, %v13900_v5 }
0x3945   : > { %v13902_v17 = vsub.f32 %v13893_v31, %v13901_v40 }
0x3947   : > { %v13903_v58 = vmul.f32 %v13902_v17, %v13902_v17 }
0x3949   : > { %v13904_v45 = vsel %vm1913_vm1, %v13903_v58, 0.0 }
0x394a   : > { %13905 = vadd.xlane.f32.xlu0 %v13904_v45 }
0x39d7   : > { %v13906_v24 = vpop.xlane.xlu0 %13905 }
0x39d8   : > { %v13907_v46 = vmul.f32 0.03125, %v13906_v24 }
0x39da   : > { %v13908_v18 = vadd.f32 1e-05, %v13907_v46 }
0x39dc   : > { %17761 = vrsqrt.f32 %v13908_v18 }
0x39e6   : > { %v17762_v38 = vpop.eup %17761 }
0x39e7   : > { %v13910_v41 = vmul.f32 %v17762_v38, %v13902_v17 }
0x39e9   : > { %v13917_v10 = vmul.f32 %v15442_v23, %v13910_v41 }
0x39eb   : > { %v13924_v30 = vadd.f32 %v15443_v27, %v13917_v10 }
0x39ed   : > { %v13927_v25 = vsel %vm1913_vm1, %v13924_v30, 0.0 }
0x39ee   : > { %13928 = vadd.xlane.f32.xlu1 %v13927_v25 }
0x3a7b   : > { %v13929_v12 = vpop.xlane.xlu1 %13928 }
0x3a7c   : > { %v13930_v20 = vmul.f32 0.03125, %v13929_v12 }
0x3a7e   : > { %v13931_v48 = vsub.f32 %v13924_v30, %v13930_v20 }
0x3a80   : > { %v13932_v49 = vmul.f32 %v13931_v48, %v13931_v48 }
0x3a82   : > { %v13933_v1 = vsel %vm1913_vm1, %v13932_v49, 0.0 }
0x3a83   : > { %13934 = vadd.xlane.f32.xlu0 %v13933_v1 }
0x3b10   : > { %v13935_v6 = vpop.xlane.xlu0 %13934 }
0x3b11   : > { %v13936_v57 = vmul.f32 0.03125, %v13935_v6 }
0x3b13   : > { %v13937_v51 = vadd.f32 1e-05, %v13936_v57 }
0x3b15   : > { %17763 = vrsqrt.f32 %v13937_v51 }
0x3b1f   : > { %v17764_v7 = vpop.eup %17763 }
0x3b20   : > { %v13939_v11 = vmul.f32 %v17764_v7, %v13931_v48 }
0x3b22   : > { %v13946_v47 = vmul.f32 %v15444_v14, %v13939_v11 }
0x3b24   : > { %v13953_v9 = vadd.f32 %v15445_v15, %v13946_v47 }
0x3b26   : > { %v13959_v13 = vpack.c.bf16 %v13953_v9, %v13953_v9 }
0x3b28   : > { %16704 = vmatmul.mubr.msk.bf16.vlgmr.msra.gmra.mrb[252].mxu0 %vm1913_vm1, %v13959_v13 }
0x3bfb   : > { %v14015_v0 = vpop.f32.mrb[252].mxu0 }
0x3bfc   : > { %v14016_v59 = vadd.f32 %v15446_v21, %v14015_v0  ;;  %v16705_v50 = vpop.f32.mrb[253].mxu0 }
0x3bfd   : > { %v14018_v26 = vpop.f32.mrb[254].mxu0 }
0x3bfe   : > { %14021 = vst [vmem:[%s1884_s11] sm:$0xff] %v14016_v59  ;;  %v16706_v62 = vpop.f32.mrb[255].mxu0 }
0x3bff   : > { %18878 = shalt.err (!%p18875_p5)
}
0x3c00   : > { %s18879_s9 = scalar_lea.hbm %s21108_s6, 128  ;;  %s18883_s1 = scalar_lea.hbm %s21387_s5, 256 }
0x3c01   : > { %p18880_p4 = scmp.ne.s32.totalorder %s21108_s6, %s18879_s9  ;;  %p18884_p13 = scmp.lt.u32.totalorder %s21108_s6, %s21387_s5 }
0x3c02   : > { %p18885_p11 = scmp.lt.u32.totalorder %s18883_s1, %s18879_s9  ;;  %p18887_p2 = scmp.lt.u32.totalorder %s18879_s9, %s21108_s6 }
0x3c03   : > { %p18881_p0 = pnand %p18880_p4, %p21389_p9 }
0x3c04   : > { %p18886_p7 = por %p18885_p11, %p18884_p13 }
0x3c05   : > { %p18882_p8 = pneg %p18881_p0 }
0x3c06   : > { %p18888_p10 = por %p18887_p2, %p18886_p7 }
0x3c08   : > { %p18889_p1 = pnand %p18888_p10, %p18882_p8 }
0x3c0a   : > { %18892 = shalt.err (!%p18889_p1)
}
0x3c0b   : > { %16871 = dma.vmem_to_hbm [thread:$0]  (%p21389_p9), %s21110_s10, 128, %s21108_s6, %s14023_s28  }
0x3c0c PF: > { %s21390_s12 = sld [smem:[#allocation126_spill]]  ;;  %s21391_s8 = sld [smem:[#allocation131_spill]] }
0x3c0d   : > { %p21393_p6 = scmp.ge.s32.totalorder %s19019_s18, 2 }
0x3c12   : > { %s14048_s0 = sand.u32 1, %s21390_s12   ;;  %p21392_p3 = scmp.ne.s32.totalorder %s21391_s8, 0 }
0x3c13   : > { %s14049_s11 = scalar_lea.sflag [#allocation4], %s14048_s0 }
0x3c14   : > { %p16881_p12 = pnand %p21393_p6, %p21392_p3 }
0x3c16   : > { %19002 = dma.done.wait (!%p16881_p12), %s14049_s11, 128  }
0x3c17   : > { %19004 = vsyncadd (!%p16881_p12), %s14049_s11, 4294967168  ;;  %s21394_s18 = sld [smem:[#allocation127_spill]]  ;;  %s21395_s7 = sld [smem:[#allocation128_spill]] }
0x3c18   : > { %s21396_s0 = smov %s19011_s15  ;;  %s21397_s15 = smov %s19015_s16 }
0x3c1d   : > { %p121_p5 = scmp.ge.s32.totalorder %s21394_s18, 4   ;;  %s21398_s16 = smov %s21395_s7 }
0x3c1f   :  { %123 = sbr.rel (!%p121_p5) target bundleno = 112 (0x70), region = 480 }
0x3c26   :  { %14054 = vsyncpa [#allocation3], 1 }
0x3c27   :  { %14056 = vsyncpa [#allocation3 + $0x1], 1 }
0x3c28   :  { %14057 = vsyncpa [#allocation6], 1 }
0x3c29   :  { %14059 = vsyncpa [#allocation6 + $0x1], 1 }
0x3c2a   :  { %14060 = vsyncpa [#allocation9], 1 }
0x3c2b   :  { %14061 = vsyncpa [#allocation12], 1 }
0x3c2c   :  { %14062 = vsyncpa [#allocation15], 1 }
0x3c2d   :  { %14063 = vsyncpa [#allocation18], 1 }
0x3c2e   :  { %14064 = vsyncpa [#allocation21], 1 }
0x3c2f   :  { %14065 = vsyncpa [#allocation24], 1 }
0x3c30   :  { %14066 = vsyncpa [#allocation27], 1 }
0x3c31   :  { %14067 = vsyncpa [#allocation30], 1 }
0x3c32   :  { %14068 = vsyncpa [#allocation33], 1 }
0x3c33   :  { %14069 = vsyncpa [#allocation36], 1 }
0x3c34   :  { %14070 = vsyncpa [#allocation39], 1 }
0x3c35   :  { %14071 = vsyncpa [#allocation42], 1 }
0x3c36   :  { %14072 = vsyncpa [#allocation45], 1 }
0x3c37   :  { %14073 = vsyncpa [#allocation48], 1 }
0x3c38   :  { %14074 = vsyncpa [#allocation51], 1 }
0x3c39   :  { %14075 = vsyncpa [#allocation54], 1 }
0x3c3a   :  { %14076 = vsyncpa [#allocation57], 1 }
0x3c3b   :  { %14077 = vsyncpa [#allocation60], 1 }
0x3c3c   :  { %14078 = vsyncpa [#allocation63], 1 }
0x3c3d   :  { %14079 = vsyncpa [#allocation66], 1 }
0x3c3e   :  { %14080 = vsyncpa [#allocation4], 1 }
0x3c3f   :  { %14082 = vsyncpa [#allocation4 + $0x1], 1 }

</bundles_post_ra>
